<compile_context>
chip_gen: v7x
topology: tpu7x:2x2x1
jax: 0.10.0
libtpu: 0.0.40
codegen_flags: <defaults>
</compile_context>

<pallas_src>
import jax
import jax.numpy as jnp
import numpy as np
from jax.experimental import pallas as pl
from jax.experimental.pallas import tpu as pltpu

# ---------------- problem sizes ----------------
B = 2                    # batch
CN = 3                   # noise / output channels (x_t[:, 0:3])
CC = 1                   # conditioning channels (input_data)
D_, H_, W_ = 4, 8, 8     # spatial dims (NCDHW)
S = D_ * H_ * W_         # flattened spatial -> lanes (256, multiple of 128)
T = 8                    # diffusion steps
HID = 8                  # hidden channels of the synthetic epsilon model
BETA = (1e-4, 0.02)

PREC = jax.lax.Precision.HIGHEST


def ddpm_kernel(c1_ref, c2_ref, sv_ref, temb_ref,    # SMEM schedules / temb+b1
                w1a_ref, w1b_ref, w2_ref, b2_ref,    # SMEM weights (scalars)
                x0_ref, cond_ref, z_ref,             # VMEM per-batch blocks
                out_ref):                            # VMEM output x_0
    # Per-batch state lives in vregs for the whole reverse-diffusion chain.
    x_rows = [x0_ref[c:c + 1, :] for c in range(CN)]        # x_T rows (1, S)
    cond_rows = [cond_ref[c:c + 1, :] for c in range(CC)]   # input_data rows

    # Fully unrolled loop over steps: step s  <->  time_step t = T - 1 - s.
    for s in range(T):
        # epsilon_theta = W2 @ tanh(W1a@x + W1b@cond + b1 + temb[t]) + b2
        # computed as scalar(SMEM) x vector(VPU) multiply-adds -- no MXU.
        h_rows = []
        for j in range(HID):
            acc = w1a_ref[j, 0] * x_rows[0]
            for c in range(1, CN):
                acc = acc + w1a_ref[j, c] * x_rows[c]
            for c in range(CC):
                acc = acc + w1b_ref[j, c] * cond_rows[c]
            h_rows.append(jnp.tanh(acc + temb_ref[s, j]))    # tanh on EUP

        c1 = c1_ref[s]           # coeff_1[t]
        c2 = c2_ref[s]           # coeff_2[t]
        sv = sv_ref[s]           # sqrt(posterior_variance[t])  (0 at t == 0)

        new_rows = []
        for o in range(CN):
            eps = w2_ref[o, 0] * h_rows[0]
            for j in range(1, HID):
                eps = eps + w2_ref[o, j] * h_rows[j]
            eps = eps + b2_ref[o]
            # x_{t-1} = coeff_1*x_t - coeff_2*eps + sqrt(var)*z
            new_rows.append(c1 * x_rows[o] - c2 * eps
                            + sv * z_ref[s, o:o + 1, :])
        x_rows = new_rows

    for o in range(CN):
        out_ref[o:o + 1, :] = x_rows[o]


def ddpm_sample(c1_rev, c2_rev, sv_rev, temb_rev, w1a, w1b, w2, b2,
                x0, cond, z):
    smem = pl.BlockSpec(memory_space=pltpu.MemorySpace.SMEM)
    in_specs = [
        smem, smem, smem, smem,                                   # schedules / temb
        smem, smem, smem, smem,                                   # W1a W1b W2 b2
        pl.BlockSpec((None, CN, S), lambda b: (b, 0, 0)),         # x_T noise
        pl.BlockSpec((None, CC, S), lambda b: (b, 0, 0)),         # input_data
        pl.BlockSpec((None, T, CN, S), lambda b: (b, 0, 0, 0)),   # z slab (per batch)
    ]
    out_spec = pl.BlockSpec((None, CN, S), lambda b: (b, 0, 0))
    return pl.pallas_call(
        ddpm_kernel,
        out_shape=jax.ShapeDtypeStruct((B, CN, S), jnp.float32),
        grid=(B,),                                # batch only: 2 TCs on v7x
        in_specs=in_specs,
        out_specs=out_spec,
        compiler_params=pltpu.CompilerParams(
            dimension_semantics=("parallel",)),
    )(c1_rev, c2_rev, sv_rev, temb_rev, w1a, w1b, w2, b2, x0, cond, z)


def ddpm_reference(x0, cond, z, coeff_1, coeff_2, post_var,
                   temb_b1, w1a, w1b, w2, b2):
    """Pure-JAX reference mirroring the PyTorch sampling loop."""
    x = x0
    for s in range(T):
        t = T - 1 - s
        h = (jnp.einsum('hc,bcs->bhs', w1a, x, precision=PREC)
             + jnp.einsum('hc,bcs->bhs', w1b, cond, precision=PREC)
             + temb_b1[t][None, :, None])
        h = jnp.tanh(h)
        eps = (jnp.einsum('oh,bhs->bos', w2, h, precision=PREC)
               + b2[None, :, None])
        mean = coeff_1[t] * x - coeff_2[t] * eps
        zz = z[s]                                   # z[T-1] is zero (t == 0)
        x = mean + jnp.sqrt(post_var[t]) * zz
    return x


if __name__ == "__main__":
    key = jax.random.PRNGKey(0)
    k = jax.random.split(key, 8)

    # inputs (NCDHW), then flatten spatial -> lanes
    x0 = jax.random.normal(k[0], (B, CN, D_, H_, W_), jnp.float32)    # x_T noise
    cond = jax.random.normal(k[1], (B, CC, D_, H_, W_), jnp.float32)  # input_data
    z_all = jax.random.normal(k[2], (T, B, CN, D_, H_, W_), jnp.float32)

    x0f = x0.reshape(B, CN, S)
    condf = cond.reshape(B, CC, S)
    zf_step = z_all.reshape(T, B, CN, S)
    # time_step == 0 (last kernel step) -> z = 0.  sqrt(post_var[0]) is also 0,
    # so the sv*z term vanishes in-kernel regardless; zero here for clarity.
    zf_step = zf_step.at[T - 1].set(0.0)
    zf_batch = jnp.transpose(zf_step, (1, 0, 2, 3))   # (B, T, CN, S)

    # deterministic synthetic epsilon-model parameters
    w1a = 0.3 * jax.random.normal(k[3], (HID, CN), jnp.float32)
    w1b = 0.3 * jax.random.normal(k[4], (HID, CC), jnp.float32)
    b1 = 0.1 * jax.random.normal(k[5], (HID,), jnp.float32)
    w2 = 0.3 * jax.random.normal(k[6], (CN, HID), jnp.float32)
    b2 = 0.1 * jax.random.normal(k[7], (CN,), jnp.float32)
    temb = 0.1 * jnp.stack(
        [jnp.sin((t + 1) * jnp.arange(1, HID + 1, dtype=jnp.float32))
         for t in range(T)])                          # (T, HID)
    temb_b1 = temb + b1[None, :]                      # (T, HID)

    # DDPM schedule (same math as the PyTorch registered buffers)
    beta_t = jnp.linspace(BETA[0], BETA[1], T, dtype=jnp.float32)
    alpha_t = 1.0 - beta_t
    alpha_bar = jnp.cumprod(alpha_t)
    alpha_bar_prev = jnp.concatenate([jnp.ones((1,), jnp.float32),
                                      alpha_bar[:-1]])
    coeff_1 = jnp.sqrt(1.0 / alpha_t)
    coeff_2 = coeff_1 * (1.0 - alpha_t) / jnp.sqrt(1.0 - alpha_bar)
    post_var = beta_t * (1.0 - alpha_bar_prev) / (1.0 - alpha_bar)

    # step-ordered (reversed-time) schedules for the kernel
    c1_rev = coeff_1[::-1]
    c2_rev = coeff_2[::-1]
    sv_rev = jnp.sqrt(post_var)[::-1]
    temb_rev = temb_b1[::-1]

    out = ddpm_sample(c1_rev, c2_rev, sv_rev, temb_rev,
                      w1a, w1b, w2, b2, x0f, condf, zf_batch)
    out = jax.block_until_ready(out)

    ref = ddpm_reference(x0f, condf, zf_step, coeff_1, coeff_2, post_var,
                         temb_b1, w1a, w1b, w2, b2)
    ref = jax.block_until_ready(ref)

    out_ncdhw = out.reshape(B, CN, D_, H_, W_)   # final x_0 in NCDHW
    assert out_ncdhw.shape == (B, CN, D_, H_, W_)
    np.testing.assert_allclose(np.asarray(out), np.asarray(ref),
                               rtol=1e-3, atol=1e-3)
    print("KERNEL_OK")
</pallas_src>

<mosaic_0001>
module attributes {stable_mosaic.version = 11 : i64} {
  func.func @ddpm_kernel(%arg0: i32, %arg1: memref<8xf32, #tpu.memory_space<smem>>, %arg2: memref<8xf32, #tpu.memory_space<smem>>, %arg3: memref<8xf32, #tpu.memory_space<smem>>, %arg4: memref<8x8xf32, #tpu.memory_space<smem>>, %arg5: memref<8x3xf32, #tpu.memory_space<smem>>, %arg6: memref<8x1xf32, #tpu.memory_space<smem>>, %arg7: memref<3x8xf32, #tpu.memory_space<smem>>, %arg8: memref<3xf32, #tpu.memory_space<smem>>, %arg9: memref<1x3x256xf32, #tpu.memory_space<vmem>>, %arg10: memref<1x1x256xf32, #tpu.memory_space<vmem>>, %arg11: memref<1x8x3x256xf32, #tpu.memory_space<vmem>>, %arg12: memref<1x3x256xf32, #tpu.memory_space<vmem>>) attributes {dimension_semantics = [#tpu.dimension_semantics<parallel>], iteration_bounds = array<i64: 2>, scalar_prefetch = 0 : i64, scratch_operands = 0 : i64, tpu.core_type = #tpu.core_type<tc>, window_params = [{transform_indices = @transform_0, window_bounds = array<i64: 8>}, {transform_indices = @transform_1, window_bounds = array<i64: 8>}, {transform_indices = @transform_2, window_bounds = array<i64: 8>}, {transform_indices = @transform_3, window_bounds = array<i64: 8, 8>}, {transform_indices = @transform_4, window_bounds = array<i64: 8, 3>}, {transform_indices = @transform_5, window_bounds = array<i64: 8, 1>}, {transform_indices = @transform_6, window_bounds = array<i64: 3, 8>}, {transform_indices = @transform_7, window_bounds = array<i64: 3>}, {transform_indices = @transform_8, window_bounds = array<i64: 1, 3, 256>}, {transform_indices = @transform_9, window_bounds = array<i64: 1, 1, 256>}, {transform_indices = @transform_10, window_bounds = array<i64: 1, 8, 3, 256>}, {transform_indices = @transform_11, window_bounds = array<i64: 1, 3, 256>}]} {
    %c0 = arith.constant 0 : index
    %c0_0 = arith.constant 0 : index
    %c0_1 = arith.constant 0 : index
    %0 = vector.load %arg9[%c0, %c0_0, %c0_1] : memref<1x3x256xf32, #tpu.memory_space<vmem>>, vector<1x1x256xf32>
    %1 = vector.shape_cast %0 : vector<1x1x256xf32> to vector<1x256xf32>
    %c0_2 = arith.constant 0 : index
    %c1 = arith.constant 1 : index
    %c0_3 = arith.constant 0 : index
    %2 = vector.load %arg9[%c0_2, %c1, %c0_3] : memref<1x3x256xf32, #tpu.memory_space<vmem>>, vector<1x1x256xf32>
    %3 = vector.shape_cast %2 : vector<1x1x256xf32> to vector<1x256xf32>
    %c0_4 = arith.constant 0 : index
    %c2 = arith.constant 2 : index
    %c0_5 = arith.constant 0 : index
    %4 = vector.load %arg9[%c0_4, %c2, %c0_5] : memref<1x3x256xf32, #tpu.memory_space<vmem>>, vector<1x1x256xf32>
    %5 = vector.shape_cast %4 : vector<1x1x256xf32> to vector<1x256xf32>
    %c0_6 = arith.constant 0 : index
    %c0_7 = arith.constant 0 : index
    %c0_8 = arith.constant 0 : index
    %6 = vector.load %arg10[%c0_6, %c0_7, %c0_8] : memref<1x1x256xf32, #tpu.memory_space<vmem>>, vector<1x1x256xf32>
    %7 = vector.shape_cast %6 : vector<1x1x256xf32> to vector<1x256xf32>
    %c0_9 = arith.constant 0 : index
    %c0_10 = arith.constant 0 : index
    %8 = memref.load %arg5[%c0_9, %c0_10] : memref<8x3xf32, #tpu.memory_space<smem>>
    %9 = vector.broadcast %8 : f32 to vector<1x256xf32>
    %10 = arith.mulf %9, %1 : vector<1x256xf32>
    %c0_11 = arith.constant 0 : index
    %c1_12 = arith.constant 1 : index
    %11 = memref.load %arg5[%c0_11, %c1_12] : memref<8x3xf32, #tpu.memory_space<smem>>
    %12 = vector.broadcast %11 : f32 to vector<1x256xf32>
    %13 = arith.mulf %12, %3 : vector<1x256xf32>
    %14 = arith.addf %10, %13 : vector<1x256xf32>
    %c0_13 = arith.constant 0 : index
    %c2_14 = arith.constant 2 : index
    %15 = memref.load %arg5[%c0_13, %c2_14] : memref<8x3xf32, #tpu.memory_space<smem>>
    %16 = vector.broadcast %15 : f32 to vector<1x256xf32>
    %17 = arith.mulf %16, %5 : vector<1x256xf32>
    %18 = arith.addf %14, %17 : vector<1x256xf32>
    %c0_15 = arith.constant 0 : index
    %c0_16 = arith.constant 0 : index
    %19 = memref.load %arg6[%c0_15, %c0_16] : memref<8x1xf32, #tpu.memory_space<smem>>
    %20 = vector.broadcast %19 : f32 to vector<1x256xf32>
    %21 = arith.mulf %20, %7 : vector<1x256xf32>
    %22 = arith.addf %18, %21 : vector<1x256xf32>
    %c0_17 = arith.constant 0 : index
    %c0_18 = arith.constant 0 : index
    %23 = memref.load %arg4[%c0_17, %c0_18] : memref<8x8xf32, #tpu.memory_space<smem>>
    %24 = vector.broadcast %23 : f32 to vector<1x256xf32>
    %25 = arith.addf %22, %24 : vector<1x256xf32>
    %26 = math.tanh %25 : vector<1x256xf32>
    %c1_19 = arith.constant 1 : index
    %c0_20 = arith.constant 0 : index
    %27 = memref.load %arg5[%c1_19, %c0_20] : memref<8x3xf32, #tpu.memory_space<smem>>
    %28 = vector.broadcast %27 : f32 to vector<1x256xf32>
    %29 = arith.mulf %28, %1 : vector<1x256xf32>
    %c1_21 = arith.constant 1 : index
    %c1_22 = arith.constant 1 : index
    %30 = memref.load %arg5[%c1_21, %c1_22] : memref<8x3xf32, #tpu.memory_space<smem>>
    %31 = vector.broadcast %30 : f32 to vector<1x256xf32>
    %32 = arith.mulf %31, %3 : vector<1x256xf32>
    %33 = arith.addf %29, %32 : vector<1x256xf32>
    %c1_23 = arith.constant 1 : index
    %c2_24 = arith.constant 2 : index
    %34 = memref.load %arg5[%c1_23, %c2_24] : memref<8x3xf32, #tpu.memory_space<smem>>
    %35 = vector.broadcast %34 : f32 to vector<1x256xf32>
    %36 = arith.mulf %35, %5 : vector<1x256xf32>
    %37 = arith.addf %33, %36 : vector<1x256xf32>
    %c1_25 = arith.constant 1 : index
    %c0_26 = arith.constant 0 : index
    %38 = memref.load %arg6[%c1_25, %c0_26] : memref<8x1xf32, #tpu.memory_space<smem>>
    %39 = vector.broadcast %38 : f32 to vector<1x256xf32>
    %40 = arith.mulf %39, %7 : vector<1x256xf32>
    %41 = arith.addf %37, %40 : vector<1x256xf32>
    %c0_27 = arith.constant 0 : index
    %c1_28 = arith.constant 1 : index
    %42 = memref.load %arg4[%c0_27, %c1_28] : memref<8x8xf32, #tpu.memory_space<smem>>
    %43 = vector.broadcast %42 : f32 to vector<1x256xf32>
    %44 = arith.addf %41, %43 : vector<1x256xf32>
    %45 = math.tanh %44 : vector<1x256xf32>
    %c2_29 = arith.constant 2 : index
    %c0_30 = arith.constant 0 : index
    %46 = memref.load %arg5[%c2_29, %c0_30] : memref<8x3xf32, #tpu.memory_space<smem>>
    %47 = vector.broadcast %46 : f32 to vector<1x256xf32>
    %48 = arith.mulf %47, %1 : vector<1x256xf32>
    %c2_31 = arith.constant 2 : index
    %c1_32 = arith.constant 1 : index
    %49 = memref.load %arg5[%c2_31, %c1_32] : memref<8x3xf32, #tpu.memory_space<smem>>
    %50 = vector.broadcast %49 : f32 to vector<1x256xf32>
    %51 = arith.mulf %50, %3 : vector<1x256xf32>
    %52 = arith.addf %48, %51 : vector<1x256xf32>
    %c2_33 = arith.constant 2 : index
    %c2_34 = arith.constant 2 : index
    %53 = memref.load %arg5[%c2_33, %c2_34] : memref<8x3xf32, #tpu.memory_space<smem>>
    %54 = vector.broadcast %53 : f32 to vector<1x256xf32>
    %55 = arith.mulf %54, %5 : vector<1x256xf32>
    %56 = arith.addf %52, %55 : vector<1x256xf32>
    %c2_35 = arith.constant 2 : index
    %c0_36 = arith.constant 0 : index
    %57 = memref.load %arg6[%c2_35, %c0_36] : memref<8x1xf32, #tpu.memory_space<smem>>
    %58 = vector.broadcast %57 : f32 to vector<1x256xf32>
    %59 = arith.mulf %58, %7 : vector<1x256xf32>
    %60 = arith.addf %56, %59 : vector<1x256xf32>
    %c0_37 = arith.constant 0 : index
    %c2_38 = arith.constant 2 : index
    %61 = memref.load %arg4[%c0_37, %c2_38] : memref<8x8xf32, #tpu.memory_space<smem>>
    %62 = vector.broadcast %61 : f32 to vector<1x256xf32>
    %63 = arith.addf %60, %62 : vector<1x256xf32>
    %64 = math.tanh %63 : vector<1x256xf32>
    %c3 = arith.constant 3 : index
    %c0_39 = arith.constant 0 : index
    %65 = memref.load %arg5[%c3, %c0_39] : memref<8x3xf32, #tpu.memory_space<smem>>
    %66 = vector.broadcast %65 : f32 to vector<1x256xf32>
    %67 = arith.mulf %66, %1 : vector<1x256xf32>
    %c3_40 = arith.constant 3 : index
    %c1_41 = arith.constant 1 : index
    %68 = memref.load %arg5[%c3_40, %c1_41] : memref<8x3xf32, #tpu.memory_space<smem>>
    %69 = vector.broadcast %68 : f32 to vector<1x256xf32>
    %70 = arith.mulf %69, %3 : vector<1x256xf32>
    %71 = arith.addf %67, %70 : vector<1x256xf32>
    %c3_42 = arith.constant 3 : index
    %c2_43 = arith.constant 2 : index
    %72 = memref.load %arg5[%c3_42, %c2_43] : memref<8x3xf32, #tpu.memory_space<smem>>
    %73 = vector.broadcast %72 : f32 to vector<1x256xf32>
    %74 = arith.mulf %73, %5 : vector<1x256xf32>
    %75 = arith.addf %71, %74 : vector<1x256xf32>
    %c3_44 = arith.constant 3 : index
    %c0_45 = arith.constant 0 : index
    %76 = memref.load %arg6[%c3_44, %c0_45] : memref<8x1xf32, #tpu.memory_space<smem>>
    %77 = vector.broadcast %76 : f32 to vector<1x256xf32>
    %78 = arith.mulf %77, %7 : vector<1x256xf32>
    %79 = arith.addf %75, %78 : vector<1x256xf32>
    %c0_46 = arith.constant 0 : index
    %c3_47 = arith.constant 3 : index
    %80 = memref.load %arg4[%c0_46, %c3_47] : memref<8x8xf32, #tpu.memory_space<smem>>
    %81 = vector.broadcast %80 : f32 to vector<1x256xf32>
    %82 = arith.addf %79, %81 : vector<1x256xf32>
    %83 = math.tanh %82 : vector<1x256xf32>
    %c4 = arith.constant 4 : index
    %c0_48 = arith.constant 0 : index
    %84 = memref.load %arg5[%c4, %c0_48] : memref<8x3xf32, #tpu.memory_space<smem>>
    %85 = vector.broadcast %84 : f32 to vector<1x256xf32>
    %86 = arith.mulf %85, %1 : vector<1x256xf32>
    %c4_49 = arith.constant 4 : index
    %c1_50 = arith.constant 1 : index
    %87 = memref.load %arg5[%c4_49, %c1_50] : memref<8x3xf32, #tpu.memory_space<smem>>
    %88 = vector.broadcast %87 : f32 to vector<1x256xf32>
    %89 = arith.mulf %88, %3 : vector<1x256xf32>
    %90 = arith.addf %86, %89 : vector<1x256xf32>
    %c4_51 = arith.constant 4 : index
    %c2_52 = arith.constant 2 : index
    %91 = memref.load %arg5[%c4_51, %c2_52] : memref<8x3xf32, #tpu.memory_space<smem>>
    %92 = vector.broadcast %91 : f32 to vector<1x256xf32>
    %93 = arith.mulf %92, %5 : vector<1x256xf32>
    %94 = arith.addf %90, %93 : vector<1x256xf32>
    %c4_53 = arith.constant 4 : index
    %c0_54 = arith.constant 0 : index
    %95 = memref.load %arg6[%c4_53, %c0_54] : memref<8x1xf32, #tpu.memory_space<smem>>
    %96 = vector.broadcast %95 : f32 to vector<1x256xf32>
    %97 = arith.mulf %96, %7 : vector<1x256xf32>
    %98 = arith.addf %94, %97 : vector<1x256xf32>
    %c0_55 = arith.constant 0 : index
    %c4_56 = arith.constant 4 : index
    %99 = memref.load %arg4[%c0_55, %c4_56] : memref<8x8xf32, #tpu.memory_space<smem>>
    %100 = vector.broadcast %99 : f32 to vector<1x256xf32>
    %101 = arith.addf %98, %100 : vector<1x256xf32>
    %102 = math.tanh %101 : vector<1x256xf32>
    %c5 = arith.constant 5 : index
    %c0_57 = arith.constant 0 : index
    %103 = memref.load %arg5[%c5, %c0_57] : memref<8x3xf32, #tpu.memory_space<smem>>
    %104 = vector.broadcast %103 : f32 to vector<1x256xf32>
    %105 = arith.mulf %104, %1 : vector<1x256xf32>
    %c5_58 = arith.constant 5 : index
    %c1_59 = arith.constant 1 : index
    %106 = memref.load %arg5[%c5_58, %c1_59] : memref<8x3xf32, #tpu.memory_space<smem>>
    %107 = vector.broadcast %106 : f32 to vector<1x256xf32>
    %108 = arith.mulf %107, %3 : vector<1x256xf32>
    %109 = arith.addf %105, %108 : vector<1x256xf32>
    %c5_60 = arith.constant 5 : index
    %c2_61 = arith.constant 2 : index
    %110 = memref.load %arg5[%c5_60, %c2_61] : memref<8x3xf32, #tpu.memory_space<smem>>
    %111 = vector.broadcast %110 : f32 to vector<1x256xf32>
    %112 = arith.mulf %111, %5 : vector<1x256xf32>
    %113 = arith.addf %109, %112 : vector<1x256xf32>
    %c5_62 = arith.constant 5 : index
    %c0_63 = arith.constant 0 : index
    %114 = memref.load %arg6[%c5_62, %c0_63] : memref<8x1xf32, #tpu.memory_space<smem>>
    %115 = vector.broadcast %114 : f32 to vector<1x256xf32>
    %116 = arith.mulf %115, %7 : vector<1x256xf32>
    %117 = arith.addf %113, %116 : vector<1x256xf32>
    %c0_64 = arith.constant 0 : index
    %c5_65 = arith.constant 5 : index
    %118 = memref.load %arg4[%c0_64, %c5_65] : memref<8x8xf32, #tpu.memory_space<smem>>
    %119 = vector.broadcast %118 : f32 to vector<1x256xf32>
    %120 = arith.addf %117, %119 : vector<1x256xf32>
    %121 = math.tanh %120 : vector<1x256xf32>
    %c6 = arith.constant 6 : index
    %c0_66 = arith.constant 0 : index
    %122 = memref.load %arg5[%c6, %c0_66] : memref<8x3xf32, #tpu.memory_space<smem>>
    %123 = vector.broadcast %122 : f32 to vector<1x256xf32>
    %124 = arith.mulf %123, %1 : vector<1x256xf32>
    %c6_67 = arith.constant 6 : index
    %c1_68 = arith.constant 1 : index
    %125 = memref.load %arg5[%c6_67, %c1_68] : memref<8x3xf32, #tpu.memory_space<smem>>
    %126 = vector.broadcast %125 : f32 to vector<1x256xf32>
    %127 = arith.mulf %126, %3 : vector<1x256xf32>
    %128 = arith.addf %124, %127 : vector<1x256xf32>
    %c6_69 = arith.constant 6 : index
    %c2_70 = arith.constant 2 : index
    %129 = memref.load %arg5[%c6_69, %c2_70] : memref<8x3xf32, #tpu.memory_space<smem>>
    %130 = vector.broadcast %129 : f32 to vector<1x256xf32>
    %131 = arith.mulf %130, %5 : vector<1x256xf32>
    %132 = arith.addf %128, %131 : vector<1x256xf32>
    %c6_71 = arith.constant 6 : index
    %c0_72 = arith.constant 0 : index
    %133 = memref.load %arg6[%c6_71, %c0_72] : memref<8x1xf32, #tpu.memory_space<smem>>
    %134 = vector.broadcast %133 : f32 to vector<1x256xf32>
    %135 = arith.mulf %134, %7 : vector<1x256xf32>
    %136 = arith.addf %132, %135 : vector<1x256xf32>
    %c0_73 = arith.constant 0 : index
    %c6_74 = arith.constant 6 : index
    %137 = memref.load %arg4[%c0_73, %c6_74] : memref<8x8xf32, #tpu.memory_space<smem>>
    %138 = vector.broadcast %137 : f32 to vector<1x256xf32>
    %139 = arith.addf %136, %138 : vector<1x256xf32>
    %140 = math.tanh %139 : vector<1x256xf32>
    %c7 = arith.constant 7 : index
    %c0_75 = arith.constant 0 : index
    %141 = memref.load %arg5[%c7, %c0_75] : memref<8x3xf32, #tpu.memory_space<smem>>
    %142 = vector.broadcast %141 : f32 to vector<1x256xf32>
    %143 = arith.mulf %142, %1 : vector<1x256xf32>
    %c7_76 = arith.constant 7 : index
    %c1_77 = arith.constant 1 : index
    %144 = memref.load %arg5[%c7_76, %c1_77] : memref<8x3xf32, #tpu.memory_space<smem>>
    %145 = vector.broadcast %144 : f32 to vector<1x256xf32>
    %146 = arith.mulf %145, %3 : vector<1x256xf32>
    %147 = arith.addf %143, %146 : vector<1x256xf32>
    %c7_78 = arith.constant 7 : index
    %c2_79 = arith.constant 2 : index
    %148 = memref.load %arg5[%c7_78, %c2_79] : memref<8x3xf32, #tpu.memory_space<smem>>
    %149 = vector.broadcast %148 : f32 to vector<1x256xf32>
    %150 = arith.mulf %149, %5 : vector<1x256xf32>
    %151 = arith.addf %147, %150 : vector<1x256xf32>
    %c7_80 = arith.constant 7 : index
    %c0_81 = arith.constant 0 : index
    %152 = memref.load %arg6[%c7_80, %c0_81] : memref<8x1xf32, #tpu.memory_space<smem>>
    %153 = vector.broadcast %152 : f32 to vector<1x256xf32>
    %154 = arith.mulf %153, %7 : vector<1x256xf32>
    %155 = arith.addf %151, %154 : vector<1x256xf32>
    %c0_82 = arith.constant 0 : index
    %c7_83 = arith.constant 7 : index
    %156 = memref.load %arg4[%c0_82, %c7_83] : memref<8x8xf32, #tpu.memory_space<smem>>
    %157 = vector.broadcast %156 : f32 to vector<1x256xf32>
    %158 = arith.addf %155, %157 : vector<1x256xf32>
    %159 = math.tanh %158 : vector<1x256xf32>
    %c0_84 = arith.constant 0 : index
    %160 = memref.load %arg1[%c0_84] : memref<8xf32, #tpu.memory_space<smem>>
    %c0_85 = arith.constant 0 : index
    %161 = memref.load %arg2[%c0_85] : memref<8xf32, #tpu.memory_space<smem>>
    %c0_86 = arith.constant 0 : index
    %162 = memref.load %arg3[%c0_86] : memref<8xf32, #tpu.memory_space<smem>>
    %c0_87 = arith.constant 0 : index
    %c0_88 = arith.constant 0 : index
    %163 = memref.load %arg7[%c0_87, %c0_88] : memref<3x8xf32, #tpu.memory_space<smem>>
    %164 = vector.broadcast %163 : f32 to vector<1x256xf32>
    %165 = arith.mulf %164, %26 : vector<1x256xf32>
    %c0_89 = arith.constant 0 : index
    %c1_90 = arith.constant 1 : index
    %166 = memref.load %arg7[%c0_89, %c1_90] : memref<3x8xf32, #tpu.memory_space<smem>>
    %167 = vector.broadcast %166 : f32 to vector<1x256xf32>
    %168 = arith.mulf %167, %45 : vector<1x256xf32>
    %169 = arith.addf %165, %168 : vector<1x256xf32>
    %c0_91 = arith.constant 0 : index
    %c2_92 = arith.constant 2 : index
    %170 = memref.load %arg7[%c0_91, %c2_92] : memref<3x8xf32, #tpu.memory_space<smem>>
    %171 = vector.broadcast %170 : f32 to vector<1x256xf32>
    %172 = arith.mulf %171, %64 : vector<1x256xf32>
    %173 = arith.addf %169, %172 : vector<1x256xf32>
    %c0_93 = arith.constant 0 : index
    %c3_94 = arith.constant 3 : index
    %174 = memref.load %arg7[%c0_93, %c3_94] : memref<3x8xf32, #tpu.memory_space<smem>>
    %175 = vector.broadcast %174 : f32 to vector<1x256xf32>
    %176 = arith.mulf %175, %83 : vector<1x256xf32>
    %177 = arith.addf %173, %176 : vector<1x256xf32>
    %c0_95 = arith.constant 0 : index
    %c4_96 = arith.constant 4 : index
    %178 = memref.load %arg7[%c0_95, %c4_96] : memref<3x8xf32, #tpu.memory_space<smem>>
    %179 = vector.broadcast %178 : f32 to vector<1x256xf32>
    %180 = arith.mulf %179, %102 : vector<1x256xf32>
    %181 = arith.addf %177, %180 : vector<1x256xf32>
    %c0_97 = arith.constant 0 : index
    %c5_98 = arith.constant 5 : index
    %182 = memref.load %arg7[%c0_97, %c5_98] : memref<3x8xf32, #tpu.memory_space<smem>>
    %183 = vector.broadcast %182 : f32 to vector<1x256xf32>
    %184 = arith.mulf %183, %121 : vector<1x256xf32>
    %185 = arith.addf %181, %184 : vector<1x256xf32>
    %c0_99 = arith.constant 0 : index
    %c6_100 = arith.constant 6 : index
    %186 = memref.load %arg7[%c0_99, %c6_100] : memref<3x8xf32, #tpu.memory_space<smem>>
    %187 = vector.broadcast %186 : f32 to vector<1x256xf32>
    %188 = arith.mulf %187, %140 : vector<1x256xf32>
    %189 = arith.addf %185, %188 : vector<1x256xf32>
    %c0_101 = arith.constant 0 : index
    %c7_102 = arith.constant 7 : index
    %190 = memref.load %arg7[%c0_101, %c7_102] : memref<3x8xf32, #tpu.memory_space<smem>>
    %191 = vector.broadcast %190 : f32 to vector<1x256xf32>
    %192 = arith.mulf %191, %159 : vector<1x256xf32>
    %193 = arith.addf %189, %192 : vector<1x256xf32>
    %c0_103 = arith.constant 0 : index
    %194 = memref.load %arg8[%c0_103] : memref<3xf32, #tpu.memory_space<smem>>
    %195 = vector.broadcast %194 : f32 to vector<1x256xf32>
    %196 = arith.addf %193, %195 : vector<1x256xf32>
    %197 = vector.broadcast %160 : f32 to vector<1x256xf32>
    %198 = arith.mulf %197, %1 : vector<1x256xf32>
    %199 = vector.broadcast %161 : f32 to vector<1x256xf32>
    %200 = arith.mulf %199, %196 : vector<1x256xf32>
    %201 = arith.subf %198, %200 : vector<1x256xf32>
    %c0_104 = arith.constant 0 : index
    %c0_105 = arith.constant 0 : index
    %c0_106 = arith.constant 0 : index
    %c0_107 = arith.constant 0 : index
    %202 = vector.load %arg11[%c0_104, %c0_105, %c0_106, %c0_107] : memref<1x8x3x256xf32, #tpu.memory_space<vmem>>, vector<1x1x1x256xf32>
    %203 = vector.shape_cast %202 : vector<1x1x1x256xf32> to vector<1x256xf32>
    %204 = vector.broadcast %162 : f32 to vector<1x256xf32>
    %205 = arith.mulf %204, %203 : vector<1x256xf32>
    %206 = arith.addf %201, %205 : vector<1x256xf32>
    %c1_108 = arith.constant 1 : index
    %c0_109 = arith.constant 0 : index
    %207 = memref.load %arg7[%c1_108, %c0_109] : memref<3x8xf32, #tpu.memory_space<smem>>
    %208 = vector.broadcast %207 : f32 to vector<1x256xf32>
    %209 = arith.mulf %208, %26 : vector<1x256xf32>
    %c1_110 = arith.constant 1 : index
    %c1_111 = arith.constant 1 : index
    %210 = memref.load %arg7[%c1_110, %c1_111] : memref<3x8xf32, #tpu.memory_space<smem>>
    %211 = vector.broadcast %210 : f32 to vector<1x256xf32>
    %212 = arith.mulf %211, %45 : vector<1x256xf32>
    %213 = arith.addf %209, %212 : vector<1x256xf32>
    %c1_112 = arith.constant 1 : index
    %c2_113 = arith.constant 2 : index
    %214 = memref.load %arg7[%c1_112, %c2_113] : memref<3x8xf32, #tpu.memory_space<smem>>
    %215 = vector.broadcast %214 : f32 to vector<1x256xf32>
    %216 = arith.mulf %215, %64 : vector<1x256xf32>
    %217 = arith.addf %213, %216 : vector<1x256xf32>
    %c1_114 = arith.constant 1 : index
    %c3_115 = arith.constant 3 : index
    %218 = memref.load %arg7[%c1_114, %c3_115] : memref<3x8xf32, #tpu.memory_space<smem>>
    %219 = vector.broadcast %218 : f32 to vector<1x256xf32>
    %220 = arith.mulf %219, %83 : vector<1x256xf32>
    %221 = arith.addf %217, %220 : vector<1x256xf32>
    %c1_116 = arith.constant 1 : index
    %c4_117 = arith.constant 4 : index
    %222 = memref.load %arg7[%c1_116, %c4_117] : memref<3x8xf32, #tpu.memory_space<smem>>
    %223 = vector.broadcast %222 : f32 to vector<1x256xf32>
    %224 = arith.mulf %223, %102 : vector<1x256xf32>
    %225 = arith.addf %221, %224 : vector<1x256xf32>
    %c1_118 = arith.constant 1 : index
    %c5_119 = arith.constant 5 : index
    %226 = memref.load %arg7[%c1_118, %c5_119] : memref<3x8xf32, #tpu.memory_space<smem>>
    %227 = vector.broadcast %226 : f32 to vector<1x256xf32>
    %228 = arith.mulf %227, %121 : vector<1x256xf32>
    %229 = arith.addf %225, %228 : vector<1x256xf32>
    %c1_120 = arith.constant 1 : index
    %c6_121 = arith.constant 6 : index
    %230 = memref.load %arg7[%c1_120, %c6_121] : memref<3x8xf32, #tpu.memory_space<smem>>
    %231 = vector.broadcast %230 : f32 to vector<1x256xf32>
    %232 = arith.mulf %231, %140 : vector<1x256xf32>
    %233 = arith.addf %229, %232 : vector<1x256xf32>
    %c1_122 = arith.constant 1 : index
    %c7_123 = arith.constant 7 : index
    %234 = memref.load %arg7[%c1_122, %c7_123] : memref<3x8xf32, #tpu.memory_space<smem>>
    %235 = vector.broadcast %234 : f32 to vector<1x256xf32>
    %236 = arith.mulf %235, %159 : vector<1x256xf32>
    %237 = arith.addf %233, %236 : vector<1x256xf32>
    %c1_124 = arith.constant 1 : index
    %238 = memref.load %arg8[%c1_124] : memref<3xf32, #tpu.memory_space<smem>>
    %239 = vector.broadcast %238 : f32 to vector<1x256xf32>
    %240 = arith.addf %237, %239 : vector<1x256xf32>
    %241 = vector.broadcast %160 : f32 to vector<1x256xf32>
    %242 = arith.mulf %241, %3 : vector<1x256xf32>
    %243 = vector.broadcast %161 : f32 to vector<1x256xf32>
    %244 = arith.mulf %243, %240 : vector<1x256xf32>
    %245 = arith.subf %242, %244 : vector<1x256xf32>
    %c0_125 = arith.constant 0 : index
    %c0_126 = arith.constant 0 : index
    %c1_127 = arith.constant 1 : index
    %c0_128 = arith.constant 0 : index
    %246 = vector.load %arg11[%c0_125, %c0_126, %c1_127, %c0_128] : memref<1x8x3x256xf32, #tpu.memory_space<vmem>>, vector<1x1x1x256xf32>
    %247 = vector.shape_cast %246 : vector<1x1x1x256xf32> to vector<1x256xf32>
    %248 = vector.broadcast %162 : f32 to vector<1x256xf32>
    %249 = arith.mulf %248, %247 : vector<1x256xf32>
    %250 = arith.addf %245, %249 : vector<1x256xf32>
    %c2_129 = arith.constant 2 : index
    %c0_130 = arith.constant 0 : index
    %251 = memref.load %arg7[%c2_129, %c0_130] : memref<3x8xf32, #tpu.memory_space<smem>>
    %252 = vector.broadcast %251 : f32 to vector<1x256xf32>
    %253 = arith.mulf %252, %26 : vector<1x256xf32>
    %c2_131 = arith.constant 2 : index
    %c1_132 = arith.constant 1 : index
    %254 = memref.load %arg7[%c2_131, %c1_132] : memref<3x8xf32, #tpu.memory_space<smem>>
    %255 = vector.broadcast %254 : f32 to vector<1x256xf32>
    %256 = arith.mulf %255, %45 : vector<1x256xf32>
    %257 = arith.addf %253, %256 : vector<1x256xf32>
    %c2_133 = arith.constant 2 : index
    %c2_134 = arith.constant 2 : index
    %258 = memref.load %arg7[%c2_133, %c2_134] : memref<3x8xf32, #tpu.memory_space<smem>>
    %259 = vector.broadcast %258 : f32 to vector<1x256xf32>
    %260 = arith.mulf %259, %64 : vector<1x256xf32>
    %261 = arith.addf %257, %260 : vector<1x256xf32>
    %c2_135 = arith.constant 2 : index
    %c3_136 = arith.constant 3 : index
    %262 = memref.load %arg7[%c2_135, %c3_136] : memref<3x8xf32, #tpu.memory_space<smem>>
    %263 = vector.broadcast %262 : f32 to vector<1x256xf32>
    %264 = arith.mulf %263, %83 : vector<1x256xf32>
    %265 = arith.addf %261, %264 : vector<1x256xf32>
    %c2_137 = arith.constant 2 : index
    %c4_138 = arith.constant 4 : index
    %266 = memref.load %arg7[%c2_137, %c4_138] : memref<3x8xf32, #tpu.memory_space<smem>>
    %267 = vector.broadcast %266 : f32 to vector<1x256xf32>
    %268 = arith.mulf %267, %102 : vector<1x256xf32>
    %269 = arith.addf %265, %268 : vector<1x256xf32>
    %c2_139 = arith.constant 2 : index
    %c5_140 = arith.constant 5 : index
    %270 = memref.load %arg7[%c2_139, %c5_140] : memref<3x8xf32, #tpu.memory_space<smem>>
    %271 = vector.broadcast %270 : f32 to vector<1x256xf32>
    %272 = arith.mulf %271, %121 : vector<1x256xf32>
    %273 = arith.addf %269, %272 : vector<1x256xf32>
    %c2_141 = arith.constant 2 : index
    %c6_142 = arith.constant 6 : index
    %274 = memref.load %arg7[%c2_141, %c6_142] : memref<3x8xf32, #tpu.memory_space<smem>>
    %275 = vector.broadcast %274 : f32 to vector<1x256xf32>
    %276 = arith.mulf %275, %140 : vector<1x256xf32>
    %277 = arith.addf %273, %276 : vector<1x256xf32>
    %c2_143 = arith.constant 2 : index
    %c7_144 = arith.constant 7 : index
    %278 = memref.load %arg7[%c2_143, %c7_144] : memref<3x8xf32, #tpu.memory_space<smem>>
    %279 = vector.broadcast %278 : f32 to vector<1x256xf32>
    %280 = arith.mulf %279, %159 : vector<1x256xf32>
    %281 = arith.addf %277, %280 : vector<1x256xf32>
    %c2_145 = arith.constant 2 : index
    %282 = memref.load %arg8[%c2_145] : memref<3xf32, #tpu.memory_space<smem>>
    %283 = vector.broadcast %282 : f32 to vector<1x256xf32>
    %284 = arith.addf %281, %283 : vector<1x256xf32>
    %285 = vector.broadcast %160 : f32 to vector<1x256xf32>
    %286 = arith.mulf %285, %5 : vector<1x256xf32>
    %287 = vector.broadcast %161 : f32 to vector<1x256xf32>
    %288 = arith.mulf %287, %284 : vector<1x256xf32>
    %289 = arith.subf %286, %288 : vector<1x256xf32>
    %c0_146 = arith.constant 0 : index
    %c0_147 = arith.constant 0 : index
    %c2_148 = arith.constant 2 : index
    %c0_149 = arith.constant 0 : index
    %290 = vector.load %arg11[%c0_146, %c0_147, %c2_148, %c0_149] : memref<1x8x3x256xf32, #tpu.memory_space<vmem>>, vector<1x1x1x256xf32>
    %291 = vector.shape_cast %290 : vector<1x1x1x256xf32> to vector<1x256xf32>
    %292 = vector.broadcast %162 : f32 to vector<1x256xf32>
    %293 = arith.mulf %292, %291 : vector<1x256xf32>
    %294 = arith.addf %289, %293 : vector<1x256xf32>
    %c0_150 = arith.constant 0 : index
    %c0_151 = arith.constant 0 : index
    %295 = memref.load %arg5[%c0_150, %c0_151] : memref<8x3xf32, #tpu.memory_space<smem>>
    %296 = vector.broadcast %295 : f32 to vector<1x256xf32>
    %297 = arith.mulf %296, %206 : vector<1x256xf32>
    %c0_152 = arith.constant 0 : index
    %c1_153 = arith.constant 1 : index
    %298 = memref.load %arg5[%c0_152, %c1_153] : memref<8x3xf32, #tpu.memory_space<smem>>
    %299 = vector.broadcast %298 : f32 to vector<1x256xf32>
    %300 = arith.mulf %299, %250 : vector<1x256xf32>
    %301 = arith.addf %297, %300 : vector<1x256xf32>
    %c0_154 = arith.constant 0 : index
    %c2_155 = arith.constant 2 : index
    %302 = memref.load %arg5[%c0_154, %c2_155] : memref<8x3xf32, #tpu.memory_space<smem>>
    %303 = vector.broadcast %302 : f32 to vector<1x256xf32>
    %304 = arith.mulf %303, %294 : vector<1x256xf32>
    %305 = arith.addf %301, %304 : vector<1x256xf32>
    %c0_156 = arith.constant 0 : index
    %c0_157 = arith.constant 0 : index
    %306 = memref.load %arg6[%c0_156, %c0_157] : memref<8x1xf32, #tpu.memory_space<smem>>
    %307 = vector.broadcast %306 : f32 to vector<1x256xf32>
    %308 = arith.mulf %307, %7 : vector<1x256xf32>
    %309 = arith.addf %305, %308 : vector<1x256xf32>
    %c1_158 = arith.constant 1 : index
    %c0_159 = arith.constant 0 : index
    %310 = memref.load %arg4[%c1_158, %c0_159] : memref<8x8xf32, #tpu.memory_space<smem>>
    %311 = vector.broadcast %310 : f32 to vector<1x256xf32>
    %312 = arith.addf %309, %311 : vector<1x256xf32>
    %313 = math.tanh %312 : vector<1x256xf32>
    %c1_160 = arith.constant 1 : index
    %c0_161 = arith.constant 0 : index
    %314 = memref.load %arg5[%c1_160, %c0_161] : memref<8x3xf32, #tpu.memory_space<smem>>
    %315 = vector.broadcast %314 : f32 to vector<1x256xf32>
    %316 = arith.mulf %315, %206 : vector<1x256xf32>
    %c1_162 = arith.constant 1 : index
    %c1_163 = arith.constant 1 : index
    %317 = memref.load %arg5[%c1_162, %c1_163] : memref<8x3xf32, #tpu.memory_space<smem>>
    %318 = vector.broadcast %317 : f32 to vector<1x256xf32>
    %319 = arith.mulf %318, %250 : vector<1x256xf32>
    %320 = arith.addf %316, %319 : vector<1x256xf32>
    %c1_164 = arith.constant 1 : index
    %c2_165 = arith.constant 2 : index
    %321 = memref.load %arg5[%c1_164, %c2_165] : memref<8x3xf32, #tpu.memory_space<smem>>
    %322 = vector.broadcast %321 : f32 to vector<1x256xf32>
    %323 = arith.mulf %322, %294 : vector<1x256xf32>
    %324 = arith.addf %320, %323 : vector<1x256xf32>
    %c1_166 = arith.constant 1 : index
    %c0_167 = arith.constant 0 : index
    %325 = memref.load %arg6[%c1_166, %c0_167] : memref<8x1xf32, #tpu.memory_space<smem>>
    %326 = vector.broadcast %325 : f32 to vector<1x256xf32>
    %327 = arith.mulf %326, %7 : vector<1x256xf32>
    %328 = arith.addf %324, %327 : vector<1x256xf32>
    %c1_168 = arith.constant 1 : index
    %c1_169 = arith.constant 1 : index
    %329 = memref.load %arg4[%c1_168, %c1_169] : memref<8x8xf32, #tpu.memory_space<smem>>
    %330 = vector.broadcast %329 : f32 to vector<1x256xf32>
    %331 = arith.addf %328, %330 : vector<1x256xf32>
    %332 = math.tanh %331 : vector<1x256xf32>
    %c2_170 = arith.constant 2 : index
    %c0_171 = arith.constant 0 : index
    %333 = memref.load %arg5[%c2_170, %c0_171] : memref<8x3xf32, #tpu.memory_space<smem>>
    %334 = vector.broadcast %333 : f32 to vector<1x256xf32>
    %335 = arith.mulf %334, %206 : vector<1x256xf32>
    %c2_172 = arith.constant 2 : index
    %c1_173 = arith.constant 1 : index
    %336 = memref.load %arg5[%c2_172, %c1_173] : memref<8x3xf32, #tpu.memory_space<smem>>
    %337 = vector.broadcast %336 : f32 to vector<1x256xf32>
    %338 = arith.mulf %337, %250 : vector<1x256xf32>
    %339 = arith.addf %335, %338 : vector<1x256xf32>
    %c2_174 = arith.constant 2 : index
    %c2_175 = arith.constant 2 : index
    %340 = memref.load %arg5[%c2_174, %c2_175] : memref<8x3xf32, #tpu.memory_space<smem>>
    %341 = vector.broadcast %340 : f32 to vector<1x256xf32>
    %342 = arith.mulf %341, %294 : vector<1x256xf32>
    %343 = arith.addf %339, %342 : vector<1x256xf32>
    %c2_176 = arith.constant 2 : index
    %c0_177 = arith.constant 0 : index
    %344 = memref.load %arg6[%c2_176, %c0_177] : memref<8x1xf32, #tpu.memory_space<smem>>
    %345 = vector.broadcast %344 : f32 to vector<1x256xf32>
    %346 = arith.mulf %345, %7 : vector<1x256xf32>
    %347 = arith.addf %343, %346 : vector<1x256xf32>
    %c1_178 = arith.constant 1 : index
    %c2_179 = arith.constant 2 : index
    %348 = memref.load %arg4[%c1_178, %c2_179] : memref<8x8xf32, #tpu.memory_space<smem>>
    %349 = vector.broadcast %348 : f32 to vector<1x256xf32>
    %350 = arith.addf %347, %349 : vector<1x256xf32>
    %351 = math.tanh %350 : vector<1x256xf32>
    %c3_180 = arith.constant 3 : index
    %c0_181 = arith.constant 0 : index
    %352 = memref.load %arg5[%c3_180, %c0_181] : memref<8x3xf32, #tpu.memory_space<smem>>
    %353 = vector.broadcast %352 : f32 to vector<1x256xf32>
    %354 = arith.mulf %353, %206 : vector<1x256xf32>
    %c3_182 = arith.constant 3 : index
    %c1_183 = arith.constant 1 : index
    %355 = memref.load %arg5[%c3_182, %c1_183] : memref<8x3xf32, #tpu.memory_space<smem>>
    %356 = vector.broadcast %355 : f32 to vector<1x256xf32>
    %357 = arith.mulf %356, %250 : vector<1x256xf32>
    %358 = arith.addf %354, %357 : vector<1x256xf32>
    %c3_184 = arith.constant 3 : index
    %c2_185 = arith.constant 2 : index
    %359 = memref.load %arg5[%c3_184, %c2_185] : memref<8x3xf32, #tpu.memory_space<smem>>
    %360 = vector.broadcast %359 : f32 to vector<1x256xf32>
    %361 = arith.mulf %360, %294 : vector<1x256xf32>
    %362 = arith.addf %358, %361 : vector<1x256xf32>
    %c3_186 = arith.constant 3 : index
    %c0_187 = arith.constant 0 : index
    %363 = memref.load %arg6[%c3_186, %c0_187] : memref<8x1xf32, #tpu.memory_space<smem>>
    %364 = vector.broadcast %363 : f32 to vector<1x256xf32>
    %365 = arith.mulf %364, %7 : vector<1x256xf32>
    %366 = arith.addf %362, %365 : vector<1x256xf32>
    %c1_188 = arith.constant 1 : index
    %c3_189 = arith.constant 3 : index
    %367 = memref.load %arg4[%c1_188, %c3_189] : memref<8x8xf32, #tpu.memory_space<smem>>
    %368 = vector.broadcast %367 : f32 to vector<1x256xf32>
    %369 = arith.addf %366, %368 : vector<1x256xf32>
    %370 = math.tanh %369 : vector<1x256xf32>
    %c4_190 = arith.constant 4 : index
    %c0_191 = arith.constant 0 : index
    %371 = memref.load %arg5[%c4_190, %c0_191] : memref<8x3xf32, #tpu.memory_space<smem>>
    %372 = vector.broadcast %371 : f32 to vector<1x256xf32>
    %373 = arith.mulf %372, %206 : vector<1x256xf32>
    %c4_192 = arith.constant 4 : index
    %c1_193 = arith.constant 1 : index
    %374 = memref.load %arg5[%c4_192, %c1_193] : memref<8x3xf32, #tpu.memory_space<smem>>
    %375 = vector.broadcast %374 : f32 to vector<1x256xf32>
    %376 = arith.mulf %375, %250 : vector<1x256xf32>
    %377 = arith.addf %373, %376 : vector<1x256xf32>
    %c4_194 = arith.constant 4 : index
    %c2_195 = arith.constant 2 : index
    %378 = memref.load %arg5[%c4_194, %c2_195] : memref<8x3xf32, #tpu.memory_space<smem>>
    %379 = vector.broadcast %378 : f32 to vector<1x256xf32>
    %380 = arith.mulf %379, %294 : vector<1x256xf32>
    %381 = arith.addf %377, %380 : vector<1x256xf32>
    %c4_196 = arith.constant 4 : index
    %c0_197 = arith.constant 0 : index
    %382 = memref.load %arg6[%c4_196, %c0_197] : memref<8x1xf32, #tpu.memory_space<smem>>
    %383 = vector.broadcast %382 : f32 to vector<1x256xf32>
    %384 = arith.mulf %383, %7 : vector<1x256xf32>
    %385 = arith.addf %381, %384 : vector<1x256xf32>
    %c1_198 = arith.constant 1 : index
    %c4_199 = arith.constant 4 : index
    %386 = memref.load %arg4[%c1_198, %c4_199] : memref<8x8xf32, #tpu.memory_space<smem>>
    %387 = vector.broadcast %386 : f32 to vector<1x256xf32>
    %388 = arith.addf %385, %387 : vector<1x256xf32>
    %389 = math.tanh %388 : vector<1x256xf32>
    %c5_200 = arith.constant 5 : index
    %c0_201 = arith.constant 0 : index
    %390 = memref.load %arg5[%c5_200, %c0_201] : memref<8x3xf32, #tpu.memory_space<smem>>
    %391 = vector.broadcast %390 : f32 to vector<1x256xf32>
    %392 = arith.mulf %391, %206 : vector<1x256xf32>
    %c5_202 = arith.constant 5 : index
    %c1_203 = arith.constant 1 : index
    %393 = memref.load %arg5[%c5_202, %c1_203] : memref<8x3xf32, #tpu.memory_space<smem>>
    %394 = vector.broadcast %393 : f32 to vector<1x256xf32>
    %395 = arith.mulf %394, %250 : vector<1x256xf32>
    %396 = arith.addf %392, %395 : vector<1x256xf32>
    %c5_204 = arith.constant 5 : index
    %c2_205 = arith.constant 2 : index
    %397 = memref.load %arg5[%c5_204, %c2_205] : memref<8x3xf32, #tpu.memory_space<smem>>
    %398 = vector.broadcast %397 : f32 to vector<1x256xf32>
    %399 = arith.mulf %398, %294 : vector<1x256xf32>
    %400 = arith.addf %396, %399 : vector<1x256xf32>
    %c5_206 = arith.constant 5 : index
    %c0_207 = arith.constant 0 : index
    %401 = memref.load %arg6[%c5_206, %c0_207] : memref<8x1xf32, #tpu.memory_space<smem>>
    %402 = vector.broadcast %401 : f32 to vector<1x256xf32>
    %403 = arith.mulf %402, %7 : vector<1x256xf32>
    %404 = arith.addf %400, %403 : vector<1x256xf32>
    %c1_208 = arith.constant 1 : index
    %c5_209 = arith.constant 5 : index
    %405 = memref.load %arg4[%c1_208, %c5_209] : memref<8x8xf32, #tpu.memory_space<smem>>
    %406 = vector.broadcast %405 : f32 to vector<1x256xf32>
    %407 = arith.addf %404, %406 : vector<1x256xf32>
    %408 = math.tanh %407 : vector<1x256xf32>
    %c6_210 = arith.constant 6 : index
    %c0_211 = arith.constant 0 : index
    %409 = memref.load %arg5[%c6_210, %c0_211] : memref<8x3xf32, #tpu.memory_space<smem>>
    %410 = vector.broadcast %409 : f32 to vector<1x256xf32>
    %411 = arith.mulf %410, %206 : vector<1x256xf32>
    %c6_212 = arith.constant 6 : index
    %c1_213 = arith.constant 1 : index
    %412 = memref.load %arg5[%c6_212, %c1_213] : memref<8x3xf32, #tpu.memory_space<smem>>
    %413 = vector.broadcast %412 : f32 to vector<1x256xf32>
    %414 = arith.mulf %413, %250 : vector<1x256xf32>
    %415 = arith.addf %411, %414 : vector<1x256xf32>
    %c6_214 = arith.constant 6 : index
    %c2_215 = arith.constant 2 : index
    %416 = memref.load %arg5[%c6_214, %c2_215] : memref<8x3xf32, #tpu.memory_space<smem>>
    %417 = vector.broadcast %416 : f32 to vector<1x256xf32>
    %418 = arith.mulf %417, %294 : vector<1x256xf32>
    %419 = arith.addf %415, %418 : vector<1x256xf32>
    %c6_216 = arith.constant 6 : index
    %c0_217 = arith.constant 0 : index
    %420 = memref.load %arg6[%c6_216, %c0_217] : memref<8x1xf32, #tpu.memory_space<smem>>
    %421 = vector.broadcast %420 : f32 to vector<1x256xf32>
    %422 = arith.mulf %421, %7 : vector<1x256xf32>
    %423 = arith.addf %419, %422 : vector<1x256xf32>
    %c1_218 = arith.constant 1 : index
    %c6_219 = arith.constant 6 : index
    %424 = memref.load %arg4[%c1_218, %c6_219] : memref<8x8xf32, #tpu.memory_space<smem>>
    %425 = vector.broadcast %424 : f32 to vector<1x256xf32>
    %426 = arith.addf %423, %425 : vector<1x256xf32>
    %427 = math.tanh %426 : vector<1x256xf32>
    %c7_220 = arith.constant 7 : index
    %c0_221 = arith.constant 0 : index
    %428 = memref.load %arg5[%c7_220, %c0_221] : memref<8x3xf32, #tpu.memory_space<smem>>
    %429 = vector.broadcast %428 : f32 to vector<1x256xf32>
    %430 = arith.mulf %429, %206 : vector<1x256xf32>
    %c7_222 = arith.constant 7 : index
    %c1_223 = arith.constant 1 : index
    %431 = memref.load %arg5[%c7_222, %c1_223] : memref<8x3xf32, #tpu.memory_space<smem>>
    %432 = vector.broadcast %431 : f32 to vector<1x256xf32>
    %433 = arith.mulf %432, %250 : vector<1x256xf32>
    %434 = arith.addf %430, %433 : vector<1x256xf32>
    %c7_224 = arith.constant 7 : index
    %c2_225 = arith.constant 2 : index
    %435 = memref.load %arg5[%c7_224, %c2_225] : memref<8x3xf32, #tpu.memory_space<smem>>
    %436 = vector.broadcast %435 : f32 to vector<1x256xf32>
    %437 = arith.mulf %436, %294 : vector<1x256xf32>
    %438 = arith.addf %434, %437 : vector<1x256xf32>
    %c7_226 = arith.constant 7 : index
    %c0_227 = arith.constant 0 : index
    %439 = memref.load %arg6[%c7_226, %c0_227] : memref<8x1xf32, #tpu.memory_space<smem>>
    %440 = vector.broadcast %439 : f32 to vector<1x256xf32>
    %441 = arith.mulf %440, %7 : vector<1x256xf32>
    %442 = arith.addf %438, %441 : vector<1x256xf32>
    %c1_228 = arith.constant 1 : index
    %c7_229 = arith.constant 7 : index
    %443 = memref.load %arg4[%c1_228, %c7_229] : memref<8x8xf32, #tpu.memory_space<smem>>
    %444 = vector.broadcast %443 : f32 to vector<1x256xf32>
    %445 = arith.addf %442, %444 : vector<1x256xf32>
    %446 = math.tanh %445 : vector<1x256xf32>
    %c1_230 = arith.constant 1 : index
    %447 = memref.load %arg1[%c1_230] : memref<8xf32, #tpu.memory_space<smem>>
    %c1_231 = arith.constant 1 : index
    %448 = memref.load %arg2[%c1_231] : memref<8xf32, #tpu.memory_space<smem>>
    %c1_232 = arith.constant 1 : index
    %449 = memref.load %arg3[%c1_232] : memref<8xf32, #tpu.memory_space<smem>>
    %c0_233 = arith.constant 0 : index
    %c0_234 = arith.constant 0 : index
    %450 = memref.load %arg7[%c0_233, %c0_234] : memref<3x8xf32, #tpu.memory_space<smem>>
    %451 = vector.broadcast %450 : f32 to vector<1x256xf32>
    %452 = arith.mulf %451, %313 : vector<1x256xf32>
    %c0_235 = arith.constant 0 : index
    %c1_236 = arith.constant 1 : index
    %453 = memref.load %arg7[%c0_235, %c1_236] : memref<3x8xf32, #tpu.memory_space<smem>>
    %454 = vector.broadcast %453 : f32 to vector<1x256xf32>
    %455 = arith.mulf %454, %332 : vector<1x256xf32>
    %456 = arith.addf %452, %455 : vector<1x256xf32>
    %c0_237 = arith.constant 0 : index
    %c2_238 = arith.constant 2 : index
    %457 = memref.load %arg7[%c0_237, %c2_238] : memref<3x8xf32, #tpu.memory_space<smem>>
    %458 = vector.broadcast %457 : f32 to vector<1x256xf32>
    %459 = arith.mulf %458, %351 : vector<1x256xf32>
    %460 = arith.addf %456, %459 : vector<1x256xf32>
    %c0_239 = arith.constant 0 : index
    %c3_240 = arith.constant 3 : index
    %461 = memref.load %arg7[%c0_239, %c3_240] : memref<3x8xf32, #tpu.memory_space<smem>>
    %462 = vector.broadcast %461 : f32 to vector<1x256xf32>
    %463 = arith.mulf %462, %370 : vector<1x256xf32>
    %464 = arith.addf %460, %463 : vector<1x256xf32>
    %c0_241 = arith.constant 0 : index
    %c4_242 = arith.constant 4 : index
    %465 = memref.load %arg7[%c0_241, %c4_242] : memref<3x8xf32, #tpu.memory_space<smem>>
    %466 = vector.broadcast %465 : f32 to vector<1x256xf32>
    %467 = arith.mulf %466, %389 : vector<1x256xf32>
    %468 = arith.addf %464, %467 : vector<1x256xf32>
    %c0_243 = arith.constant 0 : index
    %c5_244 = arith.constant 5 : index
    %469 = memref.load %arg7[%c0_243, %c5_244] : memref<3x8xf32, #tpu.memory_space<smem>>
    %470 = vector.broadcast %469 : f32 to vector<1x256xf32>
    %471 = arith.mulf %470, %408 : vector<1x256xf32>
    %472 = arith.addf %468, %471 : vector<1x256xf32>
    %c0_245 = arith.constant 0 : index
    %c6_246 = arith.constant 6 : index
    %473 = memref.load %arg7[%c0_245, %c6_246] : memref<3x8xf32, #tpu.memory_space<smem>>
    %474 = vector.broadcast %473 : f32 to vector<1x256xf32>
    %475 = arith.mulf %474, %427 : vector<1x256xf32>
    %476 = arith.addf %472, %475 : vector<1x256xf32>
    %c0_247 = arith.constant 0 : index
    %c7_248 = arith.constant 7 : index
    %477 = memref.load %arg7[%c0_247, %c7_248] : memref<3x8xf32, #tpu.memory_space<smem>>
    %478 = vector.broadcast %477 : f32 to vector<1x256xf32>
    %479 = arith.mulf %478, %446 : vector<1x256xf32>
    %480 = arith.addf %476, %479 : vector<1x256xf32>
    %c0_249 = arith.constant 0 : index
    %481 = memref.load %arg8[%c0_249] : memref<3xf32, #tpu.memory_space<smem>>
    %482 = vector.broadcast %481 : f32 to vector<1x256xf32>
    %483 = arith.addf %480, %482 : vector<1x256xf32>
    %484 = vector.broadcast %447 : f32 to vector<1x256xf32>
    %485 = arith.mulf %484, %206 : vector<1x256xf32>
    %486 = vector.broadcast %448 : f32 to vector<1x256xf32>
    %487 = arith.mulf %486, %483 : vector<1x256xf32>
    %488 = arith.subf %485, %487 : vector<1x256xf32>
    %c0_250 = arith.constant 0 : index
    %c1_251 = arith.constant 1 : index
    %c0_252 = arith.constant 0 : index
    %c0_253 = arith.constant 0 : index
    %489 = vector.load %arg11[%c0_250, %c1_251, %c0_252, %c0_253] : memref<1x8x3x256xf32, #tpu.memory_space<vmem>>, vector<1x1x1x256xf32>
    %490 = vector.shape_cast %489 : vector<1x1x1x256xf32> to vector<1x256xf32>
    %491 = vector.broadcast %449 : f32 to vector<1x256xf32>
    %492 = arith.mulf %491, %490 : vector<1x256xf32>
    %493 = arith.addf %488, %492 : vector<1x256xf32>
    %c1_254 = arith.constant 1 : index
    %c0_255 = arith.constant 0 : index
    %494 = memref.load %arg7[%c1_254, %c0_255] : memref<3x8xf32, #tpu.memory_space<smem>>
    %495 = vector.broadcast %494 : f32 to vector<1x256xf32>
    %496 = arith.mulf %495, %313 : vector<1x256xf32>
    %c1_256 = arith.constant 1 : index
    %c1_257 = arith.constant 1 : index
    %497 = memref.load %arg7[%c1_256, %c1_257] : memref<3x8xf32, #tpu.memory_space<smem>>
    %498 = vector.broadcast %497 : f32 to vector<1x256xf32>
    %499 = arith.mulf %498, %332 : vector<1x256xf32>
    %500 = arith.addf %496, %499 : vector<1x256xf32>
    %c1_258 = arith.constant 1 : index
    %c2_259 = arith.constant 2 : index
    %501 = memref.load %arg7[%c1_258, %c2_259] : memref<3x8xf32, #tpu.memory_space<smem>>
    %502 = vector.broadcast %501 : f32 to vector<1x256xf32>
    %503 = arith.mulf %502, %351 : vector<1x256xf32>
    %504 = arith.addf %500, %503 : vector<1x256xf32>
    %c1_260 = arith.constant 1 : index
    %c3_261 = arith.constant 3 : index
    %505 = memref.load %arg7[%c1_260, %c3_261] : memref<3x8xf32, #tpu.memory_space<smem>>
    %506 = vector.broadcast %505 : f32 to vector<1x256xf32>
    %507 = arith.mulf %506, %370 : vector<1x256xf32>
    %508 = arith.addf %504, %507 : vector<1x256xf32>
    %c1_262 = arith.constant 1 : index
    %c4_263 = arith.constant 4 : index
    %509 = memref.load %arg7[%c1_262, %c4_263] : memref<3x8xf32, #tpu.memory_space<smem>>
    %510 = vector.broadcast %509 : f32 to vector<1x256xf32>
    %511 = arith.mulf %510, %389 : vector<1x256xf32>
    %512 = arith.addf %508, %511 : vector<1x256xf32>
    %c1_264 = arith.constant 1 : index
    %c5_265 = arith.constant 5 : index
    %513 = memref.load %arg7[%c1_264, %c5_265] : memref<3x8xf32, #tpu.memory_space<smem>>
    %514 = vector.broadcast %513 : f32 to vector<1x256xf32>
    %515 = arith.mulf %514, %408 : vector<1x256xf32>
    %516 = arith.addf %512, %515 : vector<1x256xf32>
    %c1_266 = arith.constant 1 : index
    %c6_267 = arith.constant 6 : index
    %517 = memref.load %arg7[%c1_266, %c6_267] : memref<3x8xf32, #tpu.memory_space<smem>>
    %518 = vector.broadcast %517 : f32 to vector<1x256xf32>
    %519 = arith.mulf %518, %427 : vector<1x256xf32>
    %520 = arith.addf %516, %519 : vector<1x256xf32>
    %c1_268 = arith.constant 1 : index
    %c7_269 = arith.constant 7 : index
    %521 = memref.load %arg7[%c1_268, %c7_269] : memref<3x8xf32, #tpu.memory_space<smem>>
    %522 = vector.broadcast %521 : f32 to vector<1x256xf32>
    %523 = arith.mulf %522, %446 : vector<1x256xf32>
    %524 = arith.addf %520, %523 : vector<1x256xf32>
    %c1_270 = arith.constant 1 : index
    %525 = memref.load %arg8[%c1_270] : memref<3xf32, #tpu.memory_space<smem>>
    %526 = vector.broadcast %525 : f32 to vector<1x256xf32>
    %527 = arith.addf %524, %526 : vector<1x256xf32>
    %528 = vector.broadcast %447 : f32 to vector<1x256xf32>
    %529 = arith.mulf %528, %250 : vector<1x256xf32>
    %530 = vector.broadcast %448 : f32 to vector<1x256xf32>
    %531 = arith.mulf %530, %527 : vector<1x256xf32>
    %532 = arith.subf %529, %531 : vector<1x256xf32>
    %c0_271 = arith.constant 0 : index
    %c1_272 = arith.constant 1 : index
    %c1_273 = arith.constant 1 : index
    %c0_274 = arith.constant 0 : index
    %533 = vector.load %arg11[%c0_271, %c1_272, %c1_273, %c0_274] : memref<1x8x3x256xf32, #tpu.memory_space<vmem>>, vector<1x1x1x256xf32>
    %534 = vector.shape_cast %533 : vector<1x1x1x256xf32> to vector<1x256xf32>
    %535 = vector.broadcast %449 : f32 to vector<1x256xf32>
    %536 = arith.mulf %535, %534 : vector<1x256xf32>
    %537 = arith.addf %532, %536 : vector<1x256xf32>
    %c2_275 = arith.constant 2 : index
    %c0_276 = arith.constant 0 : index
    %538 = memref.load %arg7[%c2_275, %c0_276] : memref<3x8xf32, #tpu.memory_space<smem>>
    %539 = vector.broadcast %538 : f32 to vector<1x256xf32>
    %540 = arith.mulf %539, %313 : vector<1x256xf32>
    %c2_277 = arith.constant 2 : index
    %c1_278 = arith.constant 1 : index
    %541 = memref.load %arg7[%c2_277, %c1_278] : memref<3x8xf32, #tpu.memory_space<smem>>
    %542 = vector.broadcast %541 : f32 to vector<1x256xf32>
    %543 = arith.mulf %542, %332 : vector<1x256xf32>
    %544 = arith.addf %540, %543 : vector<1x256xf32>
    %c2_279 = arith.constant 2 : index
    %c2_280 = arith.constant 2 : index
    %545 = memref.load %arg7[%c2_279, %c2_280] : memref<3x8xf32, #tpu.memory_space<smem>>
    %546 = vector.broadcast %545 : f32 to vector<1x256xf32>
    %547 = arith.mulf %546, %351 : vector<1x256xf32>
    %548 = arith.addf %544, %547 : vector<1x256xf32>
    %c2_281 = arith.constant 2 : index
    %c3_282 = arith.constant 3 : index
    %549 = memref.load %arg7[%c2_281, %c3_282] : memref<3x8xf32, #tpu.memory_space<smem>>
    %550 = vector.broadcast %549 : f32 to vector<1x256xf32>
    %551 = arith.mulf %550, %370 : vector<1x256xf32>
    %552 = arith.addf %548, %551 : vector<1x256xf32>
    %c2_283 = arith.constant 2 : index
    %c4_284 = arith.constant 4 : index
    %553 = memref.load %arg7[%c2_283, %c4_284] : memref<3x8xf32, #tpu.memory_space<smem>>
    %554 = vector.broadcast %553 : f32 to vector<1x256xf32>
    %555 = arith.mulf %554, %389 : vector<1x256xf32>
    %556 = arith.addf %552, %555 : vector<1x256xf32>
    %c2_285 = arith.constant 2 : index
    %c5_286 = arith.constant 5 : index
    %557 = memref.load %arg7[%c2_285, %c5_286] : memref<3x8xf32, #tpu.memory_space<smem>>
    %558 = vector.broadcast %557 : f32 to vector<1x256xf32>
    %559 = arith.mulf %558, %408 : vector<1x256xf32>
    %560 = arith.addf %556, %559 : vector<1x256xf32>
    %c2_287 = arith.constant 2 : index
    %c6_288 = arith.constant 6 : index
    %561 = memref.load %arg7[%c2_287, %c6_288] : memref<3x8xf32, #tpu.memory_space<smem>>
    %562 = vector.broadcast %561 : f32 to vector<1x256xf32>
    %563 = arith.mulf %562, %427 : vector<1x256xf32>
    %564 = arith.addf %560, %563 : vector<1x256xf32>
    %c2_289 = arith.constant 2 : index
    %c7_290 = arith.constant 7 : index
    %565 = memref.load %arg7[%c2_289, %c7_290] : memref<3x8xf32, #tpu.memory_space<smem>>
    %566 = vector.broadcast %565 : f32 to vector<1x256xf32>
    %567 = arith.mulf %566, %446 : vector<1x256xf32>
    %568 = arith.addf %564, %567 : vector<1x256xf32>
    %c2_291 = arith.constant 2 : index
    %569 = memref.load %arg8[%c2_291] : memref<3xf32, #tpu.memory_space<smem>>
    %570 = vector.broadcast %569 : f32 to vector<1x256xf32>
    %571 = arith.addf %568, %570 : vector<1x256xf32>
    %572 = vector.broadcast %447 : f32 to vector<1x256xf32>
    %573 = arith.mulf %572, %294 : vector<1x256xf32>
    %574 = vector.broadcast %448 : f32 to vector<1x256xf32>
    %575 = arith.mulf %574, %571 : vector<1x256xf32>
    %576 = arith.subf %573, %575 : vector<1x256xf32>
    %c0_292 = arith.constant 0 : index
    %c1_293 = arith.constant 1 : index
    %c2_294 = arith.constant 2 : index
    %c0_295 = arith.constant 0 : index
    %577 = vector.load %arg11[%c0_292, %c1_293, %c2_294, %c0_295] : memref<1x8x3x256xf32, #tpu.memory_space<vmem>>, vector<1x1x1x256xf32>
    %578 = vector.shape_cast %577 : vector<1x1x1x256xf32> to vector<1x256xf32>
    %579 = vector.broadcast %449 : f32 to vector<1x256xf32>
    %580 = arith.mulf %579, %578 : vector<1x256xf32>
    %581 = arith.addf %576, %580 : vector<1x256xf32>
    %c0_296 = arith.constant 0 : index
    %c0_297 = arith.constant 0 : index
    %582 = memref.load %arg5[%c0_296, %c0_297] : memref<8x3xf32, #tpu.memory_space<smem>>
    %583 = vector.broadcast %582 : f32 to vector<1x256xf32>
    %584 = arith.mulf %583, %493 : vector<1x256xf32>
    %c0_298 = arith.constant 0 : index
    %c1_299 = arith.constant 1 : index
    %585 = memref.load %arg5[%c0_298, %c1_299] : memref<8x3xf32, #tpu.memory_space<smem>>
    %586 = vector.broadcast %585 : f32 to vector<1x256xf32>
    %587 = arith.mulf %586, %537 : vector<1x256xf32>
    %588 = arith.addf %584, %587 : vector<1x256xf32>
    %c0_300 = arith.constant 0 : index
    %c2_301 = arith.constant 2 : index
    %589 = memref.load %arg5[%c0_300, %c2_301] : memref<8x3xf32, #tpu.memory_space<smem>>
    %590 = vector.broadcast %589 : f32 to vector<1x256xf32>
    %591 = arith.mulf %590, %581 : vector<1x256xf32>
    %592 = arith.addf %588, %591 : vector<1x256xf32>
    %c0_302 = arith.constant 0 : index
    %c0_303 = arith.constant 0 : index
    %593 = memref.load %arg6[%c0_302, %c0_303] : memref<8x1xf32, #tpu.memory_space<smem>>
    %594 = vector.broadcast %593 : f32 to vector<1x256xf32>
    %595 = arith.mulf %594, %7 : vector<1x256xf32>
    %596 = arith.addf %592, %595 : vector<1x256xf32>
    %c2_304 = arith.constant 2 : index
    %c0_305 = arith.constant 0 : index
    %597 = memref.load %arg4[%c2_304, %c0_305] : memref<8x8xf32, #tpu.memory_space<smem>>
    %598 = vector.broadcast %597 : f32 to vector<1x256xf32>
    %599 = arith.addf %596, %598 : vector<1x256xf32>
    %600 = math.tanh %599 : vector<1x256xf32>
    %c1_306 = arith.constant 1 : index
    %c0_307 = arith.constant 0 : index
    %601 = memref.load %arg5[%c1_306, %c0_307] : memref<8x3xf32, #tpu.memory_space<smem>>
    %602 = vector.broadcast %601 : f32 to vector<1x256xf32>
    %603 = arith.mulf %602, %493 : vector<1x256xf32>
    %c1_308 = arith.constant 1 : index
    %c1_309 = arith.constant 1 : index
    %604 = memref.load %arg5[%c1_308, %c1_309] : memref<8x3xf32, #tpu.memory_space<smem>>
    %605 = vector.broadcast %604 : f32 to vector<1x256xf32>
    %606 = arith.mulf %605, %537 : vector<1x256xf32>
    %607 = arith.addf %603, %606 : vector<1x256xf32>
    %c1_310 = arith.constant 1 : index
    %c2_311 = arith.constant 2 : index
    %608 = memref.load %arg5[%c1_310, %c2_311] : memref<8x3xf32, #tpu.memory_space<smem>>
    %609 = vector.broadcast %608 : f32 to vector<1x256xf32>
    %610 = arith.mulf %609, %581 : vector<1x256xf32>
    %611 = arith.addf %607, %610 : vector<1x256xf32>
    %c1_312 = arith.constant 1 : index
    %c0_313 = arith.constant 0 : index
    %612 = memref.load %arg6[%c1_312, %c0_313] : memref<8x1xf32, #tpu.memory_space<smem>>
    %613 = vector.broadcast %612 : f32 to vector<1x256xf32>
    %614 = arith.mulf %613, %7 : vector<1x256xf32>
    %615 = arith.addf %611, %614 : vector<1x256xf32>
    %c2_314 = arith.constant 2 : index
    %c1_315 = arith.constant 1 : index
    %616 = memref.load %arg4[%c2_314, %c1_315] : memref<8x8xf32, #tpu.memory_space<smem>>
    %617 = vector.broadcast %616 : f32 to vector<1x256xf32>
    %618 = arith.addf %615, %617 : vector<1x256xf32>
    %619 = math.tanh %618 : vector<1x256xf32>
    %c2_316 = arith.constant 2 : index
    %c0_317 = arith.constant 0 : index
    %620 = memref.load %arg5[%c2_316, %c0_317] : memref<8x3xf32, #tpu.memory_space<smem>>
    %621 = vector.broadcast %620 : f32 to vector<1x256xf32>
    %622 = arith.mulf %621, %493 : vector<1x256xf32>
    %c2_318 = arith.constant 2 : index
    %c1_319 = arith.constant 1 : index
    %623 = memref.load %arg5[%c2_318, %c1_319] : memref<8x3xf32, #tpu.memory_space<smem>>
    %624 = vector.broadcast %623 : f32 to vector<1x256xf32>
    %625 = arith.mulf %624, %537 : vector<1x256xf32>
    %626 = arith.addf %622, %625 : vector<1x256xf32>
    %c2_320 = arith.constant 2 : index
    %c2_321 = arith.constant 2 : index
    %627 = memref.load %arg5[%c2_320, %c2_321] : memref<8x3xf32, #tpu.memory_space<smem>>
    %628 = vector.broadcast %627 : f32 to vector<1x256xf32>
    %629 = arith.mulf %628, %581 : vector<1x256xf32>
    %630 = arith.addf %626, %629 : vector<1x256xf32>
    %c2_322 = arith.constant 2 : index
    %c0_323 = arith.constant 0 : index
    %631 = memref.load %arg6[%c2_322, %c0_323] : memref<8x1xf32, #tpu.memory_space<smem>>
    %632 = vector.broadcast %631 : f32 to vector<1x256xf32>
    %633 = arith.mulf %632, %7 : vector<1x256xf32>
    %634 = arith.addf %630, %633 : vector<1x256xf32>
    %c2_324 = arith.constant 2 : index
    %c2_325 = arith.constant 2 : index
    %635 = memref.load %arg4[%c2_324, %c2_325] : memref<8x8xf32, #tpu.memory_space<smem>>
    %636 = vector.broadcast %635 : f32 to vector<1x256xf32>
    %637 = arith.addf %634, %636 : vector<1x256xf32>
    %638 = math.tanh %637 : vector<1x256xf32>
    %c3_326 = arith.constant 3 : index
    %c0_327 = arith.constant 0 : index
    %639 = memref.load %arg5[%c3_326, %c0_327] : memref<8x3xf32, #tpu.memory_space<smem>>
    %640 = vector.broadcast %639 : f32 to vector<1x256xf32>
    %641 = arith.mulf %640, %493 : vector<1x256xf32>
    %c3_328 = arith.constant 3 : index
    %c1_329 = arith.constant 1 : index
    %642 = memref.load %arg5[%c3_328, %c1_329] : memref<8x3xf32, #tpu.memory_space<smem>>
    %643 = vector.broadcast %642 : f32 to vector<1x256xf32>
    %644 = arith.mulf %643, %537 : vector<1x256xf32>
    %645 = arith.addf %641, %644 : vector<1x256xf32>
    %c3_330 = arith.constant 3 : index
    %c2_331 = arith.constant 2 : index
    %646 = memref.load %arg5[%c3_330, %c2_331] : memref<8x3xf32, #tpu.memory_space<smem>>
    %647 = vector.broadcast %646 : f32 to vector<1x256xf32>
    %648 = arith.mulf %647, %581 : vector<1x256xf32>
    %649 = arith.addf %645, %648 : vector<1x256xf32>
    %c3_332 = arith.constant 3 : index
    %c0_333 = arith.constant 0 : index
    %650 = memref.load %arg6[%c3_332, %c0_333] : memref<8x1xf32, #tpu.memory_space<smem>>
    %651 = vector.broadcast %650 : f32 to vector<1x256xf32>
    %652 = arith.mulf %651, %7 : vector<1x256xf32>
    %653 = arith.addf %649, %652 : vector<1x256xf32>
    %c2_334 = arith.constant 2 : index
    %c3_335 = arith.constant 3 : index
    %654 = memref.load %arg4[%c2_334, %c3_335] : memref<8x8xf32, #tpu.memory_space<smem>>
    %655 = vector.broadcast %654 : f32 to vector<1x256xf32>
    %656 = arith.addf %653, %655 : vector<1x256xf32>
    %657 = math.tanh %656 : vector<1x256xf32>
    %c4_336 = arith.constant 4 : index
    %c0_337 = arith.constant 0 : index
    %658 = memref.load %arg5[%c4_336, %c0_337] : memref<8x3xf32, #tpu.memory_space<smem>>
    %659 = vector.broadcast %658 : f32 to vector<1x256xf32>
    %660 = arith.mulf %659, %493 : vector<1x256xf32>
    %c4_338 = arith.constant 4 : index
    %c1_339 = arith.constant 1 : index
    %661 = memref.load %arg5[%c4_338, %c1_339] : memref<8x3xf32, #tpu.memory_space<smem>>
    %662 = vector.broadcast %661 : f32 to vector<1x256xf32>
    %663 = arith.mulf %662, %537 : vector<1x256xf32>
    %664 = arith.addf %660, %663 : vector<1x256xf32>
    %c4_340 = arith.constant 4 : index
    %c2_341 = arith.constant 2 : index
    %665 = memref.load %arg5[%c4_340, %c2_341] : memref<8x3xf32, #tpu.memory_space<smem>>
    %666 = vector.broadcast %665 : f32 to vector<1x256xf32>
    %667 = arith.mulf %666, %581 : vector<1x256xf32>
    %668 = arith.addf %664, %667 : vector<1x256xf32>
    %c4_342 = arith.constant 4 : index
    %c0_343 = arith.constant 0 : index
    %669 = memref.load %arg6[%c4_342, %c0_343] : memref<8x1xf32, #tpu.memory_space<smem>>
    %670 = vector.broadcast %669 : f32 to vector<1x256xf32>
    %671 = arith.mulf %670, %7 : vector<1x256xf32>
    %672 = arith.addf %668, %671 : vector<1x256xf32>
    %c2_344 = arith.constant 2 : index
    %c4_345 = arith.constant 4 : index
    %673 = memref.load %arg4[%c2_344, %c4_345] : memref<8x8xf32, #tpu.memory_space<smem>>
    %674 = vector.broadcast %673 : f32 to vector<1x256xf32>
    %675 = arith.addf %672, %674 : vector<1x256xf32>
    %676 = math.tanh %675 : vector<1x256xf32>
    %c5_346 = arith.constant 5 : index
    %c0_347 = arith.constant 0 : index
    %677 = memref.load %arg5[%c5_346, %c0_347] : memref<8x3xf32, #tpu.memory_space<smem>>
    %678 = vector.broadcast %677 : f32 to vector<1x256xf32>
    %679 = arith.mulf %678, %493 : vector<1x256xf32>
    %c5_348 = arith.constant 5 : index
    %c1_349 = arith.constant 1 : index
    %680 = memref.load %arg5[%c5_348, %c1_349] : memref<8x3xf32, #tpu.memory_space<smem>>
    %681 = vector.broadcast %680 : f32 to vector<1x256xf32>
    %682 = arith.mulf %681, %537 : vector<1x256xf32>
    %683 = arith.addf %679, %682 : vector<1x256xf32>
    %c5_350 = arith.constant 5 : index
    %c2_351 = arith.constant 2 : index
    %684 = memref.load %arg5[%c5_350, %c2_351] : memref<8x3xf32, #tpu.memory_space<smem>>
    %685 = vector.broadcast %684 : f32 to vector<1x256xf32>
    %686 = arith.mulf %685, %581 : vector<1x256xf32>
    %687 = arith.addf %683, %686 : vector<1x256xf32>
    %c5_352 = arith.constant 5 : index
    %c0_353 = arith.constant 0 : index
    %688 = memref.load %arg6[%c5_352, %c0_353] : memref<8x1xf32, #tpu.memory_space<smem>>
    %689 = vector.broadcast %688 : f32 to vector<1x256xf32>
    %690 = arith.mulf %689, %7 : vector<1x256xf32>
    %691 = arith.addf %687, %690 : vector<1x256xf32>
    %c2_354 = arith.constant 2 : index
    %c5_355 = arith.constant 5 : index
    %692 = memref.load %arg4[%c2_354, %c5_355] : memref<8x8xf32, #tpu.memory_space<smem>>
    %693 = vector.broadcast %692 : f32 to vector<1x256xf32>
    %694 = arith.addf %691, %693 : vector<1x256xf32>
    %695 = math.tanh %694 : vector<1x256xf32>
    %c6_356 = arith.constant 6 : index
    %c0_357 = arith.constant 0 : index
    %696 = memref.load %arg5[%c6_356, %c0_357] : memref<8x3xf32, #tpu.memory_space<smem>>
    %697 = vector.broadcast %696 : f32 to vector<1x256xf32>
    %698 = arith.mulf %697, %493 : vector<1x256xf32>
    %c6_358 = arith.constant 6 : index
    %c1_359 = arith.constant 1 : index
    %699 = memref.load %arg5[%c6_358, %c1_359] : memref<8x3xf32, #tpu.memory_space<smem>>
    %700 = vector.broadcast %699 : f32 to vector<1x256xf32>
    %701 = arith.mulf %700, %537 : vector<1x256xf32>
    %702 = arith.addf %698, %701 : vector<1x256xf32>
    %c6_360 = arith.constant 6 : index
    %c2_361 = arith.constant 2 : index
    %703 = memref.load %arg5[%c6_360, %c2_361] : memref<8x3xf32, #tpu.memory_space<smem>>
    %704 = vector.broadcast %703 : f32 to vector<1x256xf32>
    %705 = arith.mulf %704, %581 : vector<1x256xf32>
    %706 = arith.addf %702, %705 : vector<1x256xf32>
    %c6_362 = arith.constant 6 : index
    %c0_363 = arith.constant 0 : index
    %707 = memref.load %arg6[%c6_362, %c0_363] : memref<8x1xf32, #tpu.memory_space<smem>>
    %708 = vector.broadcast %707 : f32 to vector<1x256xf32>
    %709 = arith.mulf %708, %7 : vector<1x256xf32>
    %710 = arith.addf %706, %709 : vector<1x256xf32>
    %c2_364 = arith.constant 2 : index
    %c6_365 = arith.constant 6 : index
    %711 = memref.load %arg4[%c2_364, %c6_365] : memref<8x8xf32, #tpu.memory_space<smem>>
    %712 = vector.broadcast %711 : f32 to vector<1x256xf32>
    %713 = arith.addf %710, %712 : vector<1x256xf32>
    %714 = math.tanh %713 : vector<1x256xf32>
    %c7_366 = arith.constant 7 : index
    %c0_367 = arith.constant 0 : index
    %715 = memref.load %arg5[%c7_366, %c0_367] : memref<8x3xf32, #tpu.memory_space<smem>>
    %716 = vector.broadcast %715 : f32 to vector<1x256xf32>
    %717 = arith.mulf %716, %493 : vector<1x256xf32>
    %c7_368 = arith.constant 7 : index
    %c1_369 = arith.constant 1 : index
    %718 = memref.load %arg5[%c7_368, %c1_369] : memref<8x3xf32, #tpu.memory_space<smem>>
    %719 = vector.broadcast %718 : f32 to vector<1x256xf32>
    %720 = arith.mulf %719, %537 : vector<1x256xf32>
    %721 = arith.addf %717, %720 : vector<1x256xf32>
    %c7_370 = arith.constant 7 : index
    %c2_371 = arith.constant 2 : index
    %722 = memref.load %arg5[%c7_370, %c2_371] : memref<8x3xf32, #tpu.memory_space<smem>>
    %723 = vector.broadcast %722 : f32 to vector<1x256xf32>
    %724 = arith.mulf %723, %581 : vector<1x256xf32>
    %725 = arith.addf %721, %724 : vector<1x256xf32>
    %c7_372 = arith.constant 7 : index
    %c0_373 = arith.constant 0 : index
    %726 = memref.load %arg6[%c7_372, %c0_373] : memref<8x1xf32, #tpu.memory_space<smem>>
    %727 = vector.broadcast %726 : f32 to vector<1x256xf32>
    %728 = arith.mulf %727, %7 : vector<1x256xf32>
    %729 = arith.addf %725, %728 : vector<1x256xf32>
    %c2_374 = arith.constant 2 : index
    %c7_375 = arith.constant 7 : index
    %730 = memref.load %arg4[%c2_374, %c7_375] : memref<8x8xf32, #tpu.memory_space<smem>>
    %731 = vector.broadcast %730 : f32 to vector<1x256xf32>
    %732 = arith.addf %729, %731 : vector<1x256xf32>
    %733 = math.tanh %732 : vector<1x256xf32>
    %c2_376 = arith.constant 2 : index
    %734 = memref.load %arg1[%c2_376] : memref<8xf32, #tpu.memory_space<smem>>
    %c2_377 = arith.constant 2 : index
    %735 = memref.load %arg2[%c2_377] : memref<8xf32, #tpu.memory_space<smem>>
    %c2_378 = arith.constant 2 : index
    %736 = memref.load %arg3[%c2_378] : memref<8xf32, #tpu.memory_space<smem>>
    %c0_379 = arith.constant 0 : index
    %c0_380 = arith.constant 0 : index
    %737 = memref.load %arg7[%c0_379, %c0_380] : memref<3x8xf32, #tpu.memory_space<smem>>
    %738 = vector.broadcast %737 : f32 to vector<1x256xf32>
    %739 = arith.mulf %738, %600 : vector<1x256xf32>
    %c0_381 = arith.constant 0 : index
    %c1_382 = arith.constant 1 : index
    %740 = memref.load %arg7[%c0_381, %c1_382] : memref<3x8xf32, #tpu.memory_space<smem>>
    %741 = vector.broadcast %740 : f32 to vector<1x256xf32>
    %742 = arith.mulf %741, %619 : vector<1x256xf32>
    %743 = arith.addf %739, %742 : vector<1x256xf32>
    %c0_383 = arith.constant 0 : index
    %c2_384 = arith.constant 2 : index
    %744 = memref.load %arg7[%c0_383, %c2_384] : memref<3x8xf32, #tpu.memory_space<smem>>
    %745 = vector.broadcast %744 : f32 to vector<1x256xf32>
    %746 = arith.mulf %745, %638 : vector<1x256xf32>
    %747 = arith.addf %743, %746 : vector<1x256xf32>
    %c0_385 = arith.constant 0 : index
    %c3_386 = arith.constant 3 : index
    %748 = memref.load %arg7[%c0_385, %c3_386] : memref<3x8xf32, #tpu.memory_space<smem>>
    %749 = vector.broadcast %748 : f32 to vector<1x256xf32>
    %750 = arith.mulf %749, %657 : vector<1x256xf32>
    %751 = arith.addf %747, %750 : vector<1x256xf32>
    %c0_387 = arith.constant 0 : index
    %c4_388 = arith.constant 4 : index
    %752 = memref.load %arg7[%c0_387, %c4_388] : memref<3x8xf32, #tpu.memory_space<smem>>
    %753 = vector.broadcast %752 : f32 to vector<1x256xf32>
    %754 = arith.mulf %753, %676 : vector<1x256xf32>
    %755 = arith.addf %751, %754 : vector<1x256xf32>
    %c0_389 = arith.constant 0 : index
    %c5_390 = arith.constant 5 : index
    %756 = memref.load %arg7[%c0_389, %c5_390] : memref<3x8xf32, #tpu.memory_space<smem>>
    %757 = vector.broadcast %756 : f32 to vector<1x256xf32>
    %758 = arith.mulf %757, %695 : vector<1x256xf32>
    %759 = arith.addf %755, %758 : vector<1x256xf32>
    %c0_391 = arith.constant 0 : index
    %c6_392 = arith.constant 6 : index
    %760 = memref.load %arg7[%c0_391, %c6_392] : memref<3x8xf32, #tpu.memory_space<smem>>
    %761 = vector.broadcast %760 : f32 to vector<1x256xf32>
    %762 = arith.mulf %761, %714 : vector<1x256xf32>
    %763 = arith.addf %759, %762 : vector<1x256xf32>
    %c0_393 = arith.constant 0 : index
    %c7_394 = arith.constant 7 : index
    %764 = memref.load %arg7[%c0_393, %c7_394] : memref<3x8xf32, #tpu.memory_space<smem>>
    %765 = vector.broadcast %764 : f32 to vector<1x256xf32>
    %766 = arith.mulf %765, %733 : vector<1x256xf32>
    %767 = arith.addf %763, %766 : vector<1x256xf32>
    %c0_395 = arith.constant 0 : index
    %768 = memref.load %arg8[%c0_395] : memref<3xf32, #tpu.memory_space<smem>>
    %769 = vector.broadcast %768 : f32 to vector<1x256xf32>
    %770 = arith.addf %767, %769 : vector<1x256xf32>
    %771 = vector.broadcast %734 : f32 to vector<1x256xf32>
    %772 = arith.mulf %771, %493 : vector<1x256xf32>
    %773 = vector.broadcast %735 : f32 to vector<1x256xf32>
    %774 = arith.mulf %773, %770 : vector<1x256xf32>
    %775 = arith.subf %772, %774 : vector<1x256xf32>
    %c0_396 = arith.constant 0 : index
    %c2_397 = arith.constant 2 : index
    %c0_398 = arith.constant 0 : index
    %c0_399 = arith.constant 0 : index
    %776 = vector.load %arg11[%c0_396, %c2_397, %c0_398, %c0_399] : memref<1x8x3x256xf32, #tpu.memory_space<vmem>>, vector<1x1x1x256xf32>
    %777 = vector.shape_cast %776 : vector<1x1x1x256xf32> to vector<1x256xf32>
    %778 = vector.broadcast %736 : f32 to vector<1x256xf32>
    %779 = arith.mulf %778, %777 : vector<1x256xf32>
    %780 = arith.addf %775, %779 : vector<1x256xf32>
    %c1_400 = arith.constant 1 : index
    %c0_401 = arith.constant 0 : index
    %781 = memref.load %arg7[%c1_400, %c0_401] : memref<3x8xf32, #tpu.memory_space<smem>>
    %782 = vector.broadcast %781 : f32 to vector<1x256xf32>
    %783 = arith.mulf %782, %600 : vector<1x256xf32>
    %c1_402 = arith.constant 1 : index
    %c1_403 = arith.constant 1 : index
    %784 = memref.load %arg7[%c1_402, %c1_403] : memref<3x8xf32, #tpu.memory_space<smem>>
    %785 = vector.broadcast %784 : f32 to vector<1x256xf32>
    %786 = arith.mulf %785, %619 : vector<1x256xf32>
    %787 = arith.addf %783, %786 : vector<1x256xf32>
    %c1_404 = arith.constant 1 : index
    %c2_405 = arith.constant 2 : index
    %788 = memref.load %arg7[%c1_404, %c2_405] : memref<3x8xf32, #tpu.memory_space<smem>>
    %789 = vector.broadcast %788 : f32 to vector<1x256xf32>
    %790 = arith.mulf %789, %638 : vector<1x256xf32>
    %791 = arith.addf %787, %790 : vector<1x256xf32>
    %c1_406 = arith.constant 1 : index
    %c3_407 = arith.constant 3 : index
    %792 = memref.load %arg7[%c1_406, %c3_407] : memref<3x8xf32, #tpu.memory_space<smem>>
    %793 = vector.broadcast %792 : f32 to vector<1x256xf32>
    %794 = arith.mulf %793, %657 : vector<1x256xf32>
    %795 = arith.addf %791, %794 : vector<1x256xf32>
    %c1_408 = arith.constant 1 : index
    %c4_409 = arith.constant 4 : index
    %796 = memref.load %arg7[%c1_408, %c4_409] : memref<3x8xf32, #tpu.memory_space<smem>>
    %797 = vector.broadcast %796 : f32 to vector<1x256xf32>
    %798 = arith.mulf %797, %676 : vector<1x256xf32>
    %799 = arith.addf %795, %798 : vector<1x256xf32>
    %c1_410 = arith.constant 1 : index
    %c5_411 = arith.constant 5 : index
    %800 = memref.load %arg7[%c1_410, %c5_411] : memref<3x8xf32, #tpu.memory_space<smem>>
    %801 = vector.broadcast %800 : f32 to vector<1x256xf32>
    %802 = arith.mulf %801, %695 : vector<1x256xf32>
    %803 = arith.addf %799, %802 : vector<1x256xf32>
    %c1_412 = arith.constant 1 : index
    %c6_413 = arith.constant 6 : index
    %804 = memref.load %arg7[%c1_412, %c6_413] : memref<3x8xf32, #tpu.memory_space<smem>>
    %805 = vector.broadcast %804 : f32 to vector<1x256xf32>
    %806 = arith.mulf %805, %714 : vector<1x256xf32>
    %807 = arith.addf %803, %806 : vector<1x256xf32>
    %c1_414 = arith.constant 1 : index
    %c7_415 = arith.constant 7 : index
    %808 = memref.load %arg7[%c1_414, %c7_415] : memref<3x8xf32, #tpu.memory_space<smem>>
    %809 = vector.broadcast %808 : f32 to vector<1x256xf32>
    %810 = arith.mulf %809, %733 : vector<1x256xf32>
    %811 = arith.addf %807, %810 : vector<1x256xf32>
    %c1_416 = arith.constant 1 : index
    %812 = memref.load %arg8[%c1_416] : memref<3xf32, #tpu.memory_space<smem>>
    %813 = vector.broadcast %812 : f32 to vector<1x256xf32>
    %814 = arith.addf %811, %813 : vector<1x256xf32>
    %815 = vector.broadcast %734 : f32 to vector<1x256xf32>
    %816 = arith.mulf %815, %537 : vector<1x256xf32>
    %817 = vector.broadcast %735 : f32 to vector<1x256xf32>
    %818 = arith.mulf %817, %814 : vector<1x256xf32>
    %819 = arith.subf %816, %818 : vector<1x256xf32>
    %c0_417 = arith.constant 0 : index
    %c2_418 = arith.constant 2 : index
    %c1_419 = arith.constant 1 : index
    %c0_420 = arith.constant 0 : index
    %820 = vector.load %arg11[%c0_417, %c2_418, %c1_419, %c0_420] : memref<1x8x3x256xf32, #tpu.memory_space<vmem>>, vector<1x1x1x256xf32>
    %821 = vector.shape_cast %820 : vector<1x1x1x256xf32> to vector<1x256xf32>
    %822 = vector.broadcast %736 : f32 to vector<1x256xf32>
    %823 = arith.mulf %822, %821 : vector<1x256xf32>
    %824 = arith.addf %819, %823 : vector<1x256xf32>
    %c2_421 = arith.constant 2 : index
    %c0_422 = arith.constant 0 : index
    %825 = memref.load %arg7[%c2_421, %c0_422] : memref<3x8xf32, #tpu.memory_space<smem>>
    %826 = vector.broadcast %825 : f32 to vector<1x256xf32>
    %827 = arith.mulf %826, %600 : vector<1x256xf32>
    %c2_423 = arith.constant 2 : index
    %c1_424 = arith.constant 1 : index
    %828 = memref.load %arg7[%c2_423, %c1_424] : memref<3x8xf32, #tpu.memory_space<smem>>
    %829 = vector.broadcast %828 : f32 to vector<1x256xf32>
    %830 = arith.mulf %829, %619 : vector<1x256xf32>
    %831 = arith.addf %827, %830 : vector<1x256xf32>
    %c2_425 = arith.constant 2 : index
    %c2_426 = arith.constant 2 : index
    %832 = memref.load %arg7[%c2_425, %c2_426] : memref<3x8xf32, #tpu.memory_space<smem>>
    %833 = vector.broadcast %832 : f32 to vector<1x256xf32>
    %834 = arith.mulf %833, %638 : vector<1x256xf32>
    %835 = arith.addf %831, %834 : vector<1x256xf32>
    %c2_427 = arith.constant 2 : index
    %c3_428 = arith.constant 3 : index
    %836 = memref.load %arg7[%c2_427, %c3_428] : memref<3x8xf32, #tpu.memory_space<smem>>
    %837 = vector.broadcast %836 : f32 to vector<1x256xf32>
    %838 = arith.mulf %837, %657 : vector<1x256xf32>
    %839 = arith.addf %835, %838 : vector<1x256xf32>
    %c2_429 = arith.constant 2 : index
    %c4_430 = arith.constant 4 : index
    %840 = memref.load %arg7[%c2_429, %c4_430] : memref<3x8xf32, #tpu.memory_space<smem>>
    %841 = vector.broadcast %840 : f32 to vector<1x256xf32>
    %842 = arith.mulf %841, %676 : vector<1x256xf32>
    %843 = arith.addf %839, %842 : vector<1x256xf32>
    %c2_431 = arith.constant 2 : index
    %c5_432 = arith.constant 5 : index
    %844 = memref.load %arg7[%c2_431, %c5_432] : memref<3x8xf32, #tpu.memory_space<smem>>
    %845 = vector.broadcast %844 : f32 to vector<1x256xf32>
    %846 = arith.mulf %845, %695 : vector<1x256xf32>
    %847 = arith.addf %843, %846 : vector<1x256xf32>
    %c2_433 = arith.constant 2 : index
    %c6_434 = arith.constant 6 : index
    %848 = memref.load %arg7[%c2_433, %c6_434] : memref<3x8xf32, #tpu.memory_space<smem>>
    %849 = vector.broadcast %848 : f32 to vector<1x256xf32>
    %850 = arith.mulf %849, %714 : vector<1x256xf32>
    %851 = arith.addf %847, %850 : vector<1x256xf32>
    %c2_435 = arith.constant 2 : index
    %c7_436 = arith.constant 7 : index
    %852 = memref.load %arg7[%c2_435, %c7_436] : memref<3x8xf32, #tpu.memory_space<smem>>
    %853 = vector.broadcast %852 : f32 to vector<1x256xf32>
    %854 = arith.mulf %853, %733 : vector<1x256xf32>
    %855 = arith.addf %851, %854 : vector<1x256xf32>
    %c2_437 = arith.constant 2 : index
    %856 = memref.load %arg8[%c2_437] : memref<3xf32, #tpu.memory_space<smem>>
    %857 = vector.broadcast %856 : f32 to vector<1x256xf32>
    %858 = arith.addf %855, %857 : vector<1x256xf32>
    %859 = vector.broadcast %734 : f32 to vector<1x256xf32>
    %860 = arith.mulf %859, %581 : vector<1x256xf32>
    %861 = vector.broadcast %735 : f32 to vector<1x256xf32>
    %862 = arith.mulf %861, %858 : vector<1x256xf32>
    %863 = arith.subf %860, %862 : vector<1x256xf32>
    %c0_438 = arith.constant 0 : index
    %c2_439 = arith.constant 2 : index
    %c2_440 = arith.constant 2 : index
    %c0_441 = arith.constant 0 : index
    %864 = vector.load %arg11[%c0_438, %c2_439, %c2_440, %c0_441] : memref<1x8x3x256xf32, #tpu.memory_space<vmem>>, vector<1x1x1x256xf32>
    %865 = vector.shape_cast %864 : vector<1x1x1x256xf32> to vector<1x256xf32>
    %866 = vector.broadcast %736 : f32 to vector<1x256xf32>
    %867 = arith.mulf %866, %865 : vector<1x256xf32>
    %868 = arith.addf %863, %867 : vector<1x256xf32>
    %c0_442 = arith.constant 0 : index
    %c0_443 = arith.constant 0 : index
    %869 = memref.load %arg5[%c0_442, %c0_443] : memref<8x3xf32, #tpu.memory_space<smem>>
    %870 = vector.broadcast %869 : f32 to vector<1x256xf32>
    %871 = arith.mulf %870, %780 : vector<1x256xf32>
    %c0_444 = arith.constant 0 : index
    %c1_445 = arith.constant 1 : index
    %872 = memref.load %arg5[%c0_444, %c1_445] : memref<8x3xf32, #tpu.memory_space<smem>>
    %873 = vector.broadcast %872 : f32 to vector<1x256xf32>
    %874 = arith.mulf %873, %824 : vector<1x256xf32>
    %875 = arith.addf %871, %874 : vector<1x256xf32>
    %c0_446 = arith.constant 0 : index
    %c2_447 = arith.constant 2 : index
    %876 = memref.load %arg5[%c0_446, %c2_447] : memref<8x3xf32, #tpu.memory_space<smem>>
    %877 = vector.broadcast %876 : f32 to vector<1x256xf32>
    %878 = arith.mulf %877, %868 : vector<1x256xf32>
    %879 = arith.addf %875, %878 : vector<1x256xf32>
    %c0_448 = arith.constant 0 : index
    %c0_449 = arith.constant 0 : index
    %880 = memref.load %arg6[%c0_448, %c0_449] : memref<8x1xf32, #tpu.memory_space<smem>>
    %881 = vector.broadcast %880 : f32 to vector<1x256xf32>
    %882 = arith.mulf %881, %7 : vector<1x256xf32>
    %883 = arith.addf %879, %882 : vector<1x256xf32>
    %c3_450 = arith.constant 3 : index
    %c0_451 = arith.constant 0 : index
    %884 = memref.load %arg4[%c3_450, %c0_451] : memref<8x8xf32, #tpu.memory_space<smem>>
    %885 = vector.broadcast %884 : f32 to vector<1x256xf32>
    %886 = arith.addf %883, %885 : vector<1x256xf32>
    %887 = math.tanh %886 : vector<1x256xf32>
    %c1_452 = arith.constant 1 : index
    %c0_453 = arith.constant 0 : index
    %888 = memref.load %arg5[%c1_452, %c0_453] : memref<8x3xf32, #tpu.memory_space<smem>>
    %889 = vector.broadcast %888 : f32 to vector<1x256xf32>
    %890 = arith.mulf %889, %780 : vector<1x256xf32>
    %c1_454 = arith.constant 1 : index
    %c1_455 = arith.constant 1 : index
    %891 = memref.load %arg5[%c1_454, %c1_455] : memref<8x3xf32, #tpu.memory_space<smem>>
    %892 = vector.broadcast %891 : f32 to vector<1x256xf32>
    %893 = arith.mulf %892, %824 : vector<1x256xf32>
    %894 = arith.addf %890, %893 : vector<1x256xf32>
    %c1_456 = arith.constant 1 : index
    %c2_457 = arith.constant 2 : index
    %895 = memref.load %arg5[%c1_456, %c2_457] : memref<8x3xf32, #tpu.memory_space<smem>>
    %896 = vector.broadcast %895 : f32 to vector<1x256xf32>
    %897 = arith.mulf %896, %868 : vector<1x256xf32>
    %898 = arith.addf %894, %897 : vector<1x256xf32>
    %c1_458 = arith.constant 1 : index
    %c0_459 = arith.constant 0 : index
    %899 = memref.load %arg6[%c1_458, %c0_459] : memref<8x1xf32, #tpu.memory_space<smem>>
    %900 = vector.broadcast %899 : f32 to vector<1x256xf32>
    %901 = arith.mulf %900, %7 : vector<1x256xf32>
    %902 = arith.addf %898, %901 : vector<1x256xf32>
    %c3_460 = arith.constant 3 : index
    %c1_461 = arith.constant 1 : index
    %903 = memref.load %arg4[%c3_460, %c1_461] : memref<8x8xf32, #tpu.memory_space<smem>>
    %904 = vector.broadcast %903 : f32 to vector<1x256xf32>
    %905 = arith.addf %902, %904 : vector<1x256xf32>
    %906 = math.tanh %905 : vector<1x256xf32>
    %c2_462 = arith.constant 2 : index
    %c0_463 = arith.constant 0 : index
    %907 = memref.load %arg5[%c2_462, %c0_463] : memref<8x3xf32, #tpu.memory_space<smem>>
    %908 = vector.broadcast %907 : f32 to vector<1x256xf32>
    %909 = arith.mulf %908, %780 : vector<1x256xf32>
    %c2_464 = arith.constant 2 : index
    %c1_465 = arith.constant 1 : index
    %910 = memref.load %arg5[%c2_464, %c1_465] : memref<8x3xf32, #tpu.memory_space<smem>>
    %911 = vector.broadcast %910 : f32 to vector<1x256xf32>
    %912 = arith.mulf %911, %824 : vector<1x256xf32>
    %913 = arith.addf %909, %912 : vector<1x256xf32>
    %c2_466 = arith.constant 2 : index
    %c2_467 = arith.constant 2 : index
    %914 = memref.load %arg5[%c2_466, %c2_467] : memref<8x3xf32, #tpu.memory_space<smem>>
    %915 = vector.broadcast %914 : f32 to vector<1x256xf32>
    %916 = arith.mulf %915, %868 : vector<1x256xf32>
    %917 = arith.addf %913, %916 : vector<1x256xf32>
    %c2_468 = arith.constant 2 : index
    %c0_469 = arith.constant 0 : index
    %918 = memref.load %arg6[%c2_468, %c0_469] : memref<8x1xf32, #tpu.memory_space<smem>>
    %919 = vector.broadcast %918 : f32 to vector<1x256xf32>
    %920 = arith.mulf %919, %7 : vector<1x256xf32>
    %921 = arith.addf %917, %920 : vector<1x256xf32>
    %c3_470 = arith.constant 3 : index
    %c2_471 = arith.constant 2 : index
    %922 = memref.load %arg4[%c3_470, %c2_471] : memref<8x8xf32, #tpu.memory_space<smem>>
    %923 = vector.broadcast %922 : f32 to vector<1x256xf32>
    %924 = arith.addf %921, %923 : vector<1x256xf32>
    %925 = math.tanh %924 : vector<1x256xf32>
    %c3_472 = arith.constant 3 : index
    %c0_473 = arith.constant 0 : index
    %926 = memref.load %arg5[%c3_472, %c0_473] : memref<8x3xf32, #tpu.memory_space<smem>>
    %927 = vector.broadcast %926 : f32 to vector<1x256xf32>
    %928 = arith.mulf %927, %780 : vector<1x256xf32>
    %c3_474 = arith.constant 3 : index
    %c1_475 = arith.constant 1 : index
    %929 = memref.load %arg5[%c3_474, %c1_475] : memref<8x3xf32, #tpu.memory_space<smem>>
    %930 = vector.broadcast %929 : f32 to vector<1x256xf32>
    %931 = arith.mulf %930, %824 : vector<1x256xf32>
    %932 = arith.addf %928, %931 : vector<1x256xf32>
    %c3_476 = arith.constant 3 : index
    %c2_477 = arith.constant 2 : index
    %933 = memref.load %arg5[%c3_476, %c2_477] : memref<8x3xf32, #tpu.memory_space<smem>>
    %934 = vector.broadcast %933 : f32 to vector<1x256xf32>
    %935 = arith.mulf %934, %868 : vector<1x256xf32>
    %936 = arith.addf %932, %935 : vector<1x256xf32>
    %c3_478 = arith.constant 3 : index
    %c0_479 = arith.constant 0 : index
    %937 = memref.load %arg6[%c3_478, %c0_479] : memref<8x1xf32, #tpu.memory_space<smem>>
    %938 = vector.broadcast %937 : f32 to vector<1x256xf32>
    %939 = arith.mulf %938, %7 : vector<1x256xf32>
    %940 = arith.addf %936, %939 : vector<1x256xf32>
    %c3_480 = arith.constant 3 : index
    %c3_481 = arith.constant 3 : index
    %941 = memref.load %arg4[%c3_480, %c3_481] : memref<8x8xf32, #tpu.memory_space<smem>>
    %942 = vector.broadcast %941 : f32 to vector<1x256xf32>
    %943 = arith.addf %940, %942 : vector<1x256xf32>
    %944 = math.tanh %943 : vector<1x256xf32>
    %c4_482 = arith.constant 4 : index
    %c0_483 = arith.constant 0 : index
    %945 = memref.load %arg5[%c4_482, %c0_483] : memref<8x3xf32, #tpu.memory_space<smem>>
    %946 = vector.broadcast %945 : f32 to vector<1x256xf32>
    %947 = arith.mulf %946, %780 : vector<1x256xf32>
    %c4_484 = arith.constant 4 : index
    %c1_485 = arith.constant 1 : index
    %948 = memref.load %arg5[%c4_484, %c1_485] : memref<8x3xf32, #tpu.memory_space<smem>>
    %949 = vector.broadcast %948 : f32 to vector<1x256xf32>
    %950 = arith.mulf %949, %824 : vector<1x256xf32>
    %951 = arith.addf %947, %950 : vector<1x256xf32>
    %c4_486 = arith.constant 4 : index
    %c2_487 = arith.constant 2 : index
    %952 = memref.load %arg5[%c4_486, %c2_487] : memref<8x3xf32, #tpu.memory_space<smem>>
    %953 = vector.broadcast %952 : f32 to vector<1x256xf32>
    %954 = arith.mulf %953, %868 : vector<1x256xf32>
    %955 = arith.addf %951, %954 : vector<1x256xf32>
    %c4_488 = arith.constant 4 : index
    %c0_489 = arith.constant 0 : index
    %956 = memref.load %arg6[%c4_488, %c0_489] : memref<8x1xf32, #tpu.memory_space<smem>>
    %957 = vector.broadcast %956 : f32 to vector<1x256xf32>
    %958 = arith.mulf %957, %7 : vector<1x256xf32>
    %959 = arith.addf %955, %958 : vector<1x256xf32>
    %c3_490 = arith.constant 3 : index
    %c4_491 = arith.constant 4 : index
    %960 = memref.load %arg4[%c3_490, %c4_491] : memref<8x8xf32, #tpu.memory_space<smem>>
    %961 = vector.broadcast %960 : f32 to vector<1x256xf32>
    %962 = arith.addf %959, %961 : vector<1x256xf32>
    %963 = math.tanh %962 : vector<1x256xf32>
    %c5_492 = arith.constant 5 : index
    %c0_493 = arith.constant 0 : index
    %964 = memref.load %arg5[%c5_492, %c0_493] : memref<8x3xf32, #tpu.memory_space<smem>>
    %965 = vector.broadcast %964 : f32 to vector<1x256xf32>
    %966 = arith.mulf %965, %780 : vector<1x256xf32>
    %c5_494 = arith.constant 5 : index
    %c1_495 = arith.constant 1 : index
    %967 = memref.load %arg5[%c5_494, %c1_495] : memref<8x3xf32, #tpu.memory_space<smem>>
    %968 = vector.broadcast %967 : f32 to vector<1x256xf32>
    %969 = arith.mulf %968, %824 : vector<1x256xf32>
    %970 = arith.addf %966, %969 : vector<1x256xf32>
    %c5_496 = arith.constant 5 : index
    %c2_497 = arith.constant 2 : index
    %971 = memref.load %arg5[%c5_496, %c2_497] : memref<8x3xf32, #tpu.memory_space<smem>>
    %972 = vector.broadcast %971 : f32 to vector<1x256xf32>
    %973 = arith.mulf %972, %868 : vector<1x256xf32>
    %974 = arith.addf %970, %973 : vector<1x256xf32>
    %c5_498 = arith.constant 5 : index
    %c0_499 = arith.constant 0 : index
    %975 = memref.load %arg6[%c5_498, %c0_499] : memref<8x1xf32, #tpu.memory_space<smem>>
    %976 = vector.broadcast %975 : f32 to vector<1x256xf32>
    %977 = arith.mulf %976, %7 : vector<1x256xf32>
    %978 = arith.addf %974, %977 : vector<1x256xf32>
    %c3_500 = arith.constant 3 : index
    %c5_501 = arith.constant 5 : index
    %979 = memref.load %arg4[%c3_500, %c5_501] : memref<8x8xf32, #tpu.memory_space<smem>>
    %980 = vector.broadcast %979 : f32 to vector<1x256xf32>
    %981 = arith.addf %978, %980 : vector<1x256xf32>
    %982 = math.tanh %981 : vector<1x256xf32>
    %c6_502 = arith.constant 6 : index
    %c0_503 = arith.constant 0 : index
    %983 = memref.load %arg5[%c6_502, %c0_503] : memref<8x3xf32, #tpu.memory_space<smem>>
    %984 = vector.broadcast %983 : f32 to vector<1x256xf32>
    %985 = arith.mulf %984, %780 : vector<1x256xf32>
    %c6_504 = arith.constant 6 : index
    %c1_505 = arith.constant 1 : index
    %986 = memref.load %arg5[%c6_504, %c1_505] : memref<8x3xf32, #tpu.memory_space<smem>>
    %987 = vector.broadcast %986 : f32 to vector<1x256xf32>
    %988 = arith.mulf %987, %824 : vector<1x256xf32>
    %989 = arith.addf %985, %988 : vector<1x256xf32>
    %c6_506 = arith.constant 6 : index
    %c2_507 = arith.constant 2 : index
    %990 = memref.load %arg5[%c6_506, %c2_507] : memref<8x3xf32, #tpu.memory_space<smem>>
    %991 = vector.broadcast %990 : f32 to vector<1x256xf32>
    %992 = arith.mulf %991, %868 : vector<1x256xf32>
    %993 = arith.addf %989, %992 : vector<1x256xf32>
    %c6_508 = arith.constant 6 : index
    %c0_509 = arith.constant 0 : index
    %994 = memref.load %arg6[%c6_508, %c0_509] : memref<8x1xf32, #tpu.memory_space<smem>>
    %995 = vector.broadcast %994 : f32 to vector<1x256xf32>
    %996 = arith.mulf %995, %7 : vector<1x256xf32>
    %997 = arith.addf %993, %996 : vector<1x256xf32>
    %c3_510 = arith.constant 3 : index
    %c6_511 = arith.constant 6 : index
    %998 = memref.load %arg4[%c3_510, %c6_511] : memref<8x8xf32, #tpu.memory_space<smem>>
    %999 = vector.broadcast %998 : f32 to vector<1x256xf32>
    %1000 = arith.addf %997, %999 : vector<1x256xf32>
    %1001 = math.tanh %1000 : vector<1x256xf32>
    %c7_512 = arith.constant 7 : index
    %c0_513 = arith.constant 0 : index
    %1002 = memref.load %arg5[%c7_512, %c0_513] : memref<8x3xf32, #tpu.memory_space<smem>>
    %1003 = vector.broadcast %1002 : f32 to vector<1x256xf32>
    %1004 = arith.mulf %1003, %780 : vector<1x256xf32>
    %c7_514 = arith.constant 7 : index
    %c1_515 = arith.constant 1 : index
    %1005 = memref.load %arg5[%c7_514, %c1_515] : memref<8x3xf32, #tpu.memory_space<smem>>
    %1006 = vector.broadcast %1005 : f32 to vector<1x256xf32>
    %1007 = arith.mulf %1006, %824 : vector<1x256xf32>
    %1008 = arith.addf %1004, %1007 : vector<1x256xf32>
    %c7_516 = arith.constant 7 : index
    %c2_517 = arith.constant 2 : index
    %1009 = memref.load %arg5[%c7_516, %c2_517] : memref<8x3xf32, #tpu.memory_space<smem>>
    %1010 = vector.broadcast %1009 : f32 to vector<1x256xf32>
    %1011 = arith.mulf %1010, %868 : vector<1x256xf32>
    %1012 = arith.addf %1008, %1011 : vector<1x256xf32>
    %c7_518 = arith.constant 7 : index
    %c0_519 = arith.constant 0 : index
    %1013 = memref.load %arg6[%c7_518, %c0_519] : memref<8x1xf32, #tpu.memory_space<smem>>
    %1014 = vector.broadcast %1013 : f32 to vector<1x256xf32>
    %1015 = arith.mulf %1014, %7 : vector<1x256xf32>
    %1016 = arith.addf %1012, %1015 : vector<1x256xf32>
    %c3_520 = arith.constant 3 : index
    %c7_521 = arith.constant 7 : index
    %1017 = memref.load %arg4[%c3_520, %c7_521] : memref<8x8xf32, #tpu.memory_space<smem>>
    %1018 = vector.broadcast %1017 : f32 to vector<1x256xf32>
    %1019 = arith.addf %1016, %1018 : vector<1x256xf32>
    %1020 = math.tanh %1019 : vector<1x256xf32>
    %c3_522 = arith.constant 3 : index
    %1021 = memref.load %arg1[%c3_522] : memref<8xf32, #tpu.memory_space<smem>>
    %c3_523 = arith.constant 3 : index
    %1022 = memref.load %arg2[%c3_523] : memref<8xf32, #tpu.memory_space<smem>>
    %c3_524 = arith.constant 3 : index
    %1023 = memref.load %arg3[%c3_524] : memref<8xf32, #tpu.memory_space<smem>>
    %c0_525 = arith.constant 0 : index
    %c0_526 = arith.constant 0 : index
    %1024 = memref.load %arg7[%c0_525, %c0_526] : memref<3x8xf32, #tpu.memory_space<smem>>
    %1025 = vector.broadcast %1024 : f32 to vector<1x256xf32>
    %1026 = arith.mulf %1025, %887 : vector<1x256xf32>
    %c0_527 = arith.constant 0 : index
    %c1_528 = arith.constant 1 : index
    %1027 = memref.load %arg7[%c0_527, %c1_528] : memref<3x8xf32, #tpu.memory_space<smem>>
    %1028 = vector.broadcast %1027 : f32 to vector<1x256xf32>
    %1029 = arith.mulf %1028, %906 : vector<1x256xf32>
    %1030 = arith.addf %1026, %1029 : vector<1x256xf32>
    %c0_529 = arith.constant 0 : index
    %c2_530 = arith.constant 2 : index
    %1031 = memref.load %arg7[%c0_529, %c2_530] : memref<3x8xf32, #tpu.memory_space<smem>>
    %1032 = vector.broadcast %1031 : f32 to vector<1x256xf32>
    %1033 = arith.mulf %1032, %925 : vector<1x256xf32>
    %1034 = arith.addf %1030, %1033 : vector<1x256xf32>
    %c0_531 = arith.constant 0 : index
    %c3_532 = arith.constant 3 : index
    %1035 = memref.load %arg7[%c0_531, %c3_532] : memref<3x8xf32, #tpu.memory_space<smem>>
    %1036 = vector.broadcast %1035 : f32 to vector<1x256xf32>
    %1037 = arith.mulf %1036, %944 : vector<1x256xf32>
    %1038 = arith.addf %1034, %1037 : vector<1x256xf32>
    %c0_533 = arith.constant 0 : index
    %c4_534 = arith.constant 4 : index
    %1039 = memref.load %arg7[%c0_533, %c4_534] : memref<3x8xf32, #tpu.memory_space<smem>>
    %1040 = vector.broadcast %1039 : f32 to vector<1x256xf32>
    %1041 = arith.mulf %1040, %963 : vector<1x256xf32>
    %1042 = arith.addf %1038, %1041 : vector<1x256xf32>
    %c0_535 = arith.constant 0 : index
    %c5_536 = arith.constant 5 : index
    %1043 = memref.load %arg7[%c0_535, %c5_536] : memref<3x8xf32, #tpu.memory_space<smem>>
    %1044 = vector.broadcast %1043 : f32 to vector<1x256xf32>
    %1045 = arith.mulf %1044, %982 : vector<1x256xf32>
    %1046 = arith.addf %1042, %1045 : vector<1x256xf32>
    %c0_537 = arith.constant 0 : index
    %c6_538 = arith.constant 6 : index
    %1047 = memref.load %arg7[%c0_537, %c6_538] : memref<3x8xf32, #tpu.memory_space<smem>>
    %1048 = vector.broadcast %1047 : f32 to vector<1x256xf32>
    %1049 = arith.mulf %1048, %1001 : vector<1x256xf32>
    %1050 = arith.addf %1046, %1049 : vector<1x256xf32>
    %c0_539 = arith.constant 0 : index
    %c7_540 = arith.constant 7 : index
    %1051 = memref.load %arg7[%c0_539, %c7_540] : memref<3x8xf32, #tpu.memory_space<smem>>
    %1052 = vector.broadcast %1051 : f32 to vector<1x256xf32>
    %1053 = arith.mulf %1052, %1020 : vector<1x256xf32>
    %1054 = arith.addf %1050, %1053 : vector<1x256xf32>
    %c0_541 = arith.constant 0 : index
    %1055 = memref.load %arg8[%c0_541] : memref<3xf32, #tpu.memory_space<smem>>
    %1056 = vector.broadcast %1055 : f32 to vector<1x256xf32>
    %1057 = arith.addf %1054, %1056 : vector<1x256xf32>
    %1058 = vector.broadcast %1021 : f32 to vector<1x256xf32>
    %1059 = arith.mulf %1058, %780 : vector<1x256xf32>
    %1060 = vector.broadcast %1022 : f32 to vector<1x256xf32>
    %1061 = arith.mulf %1060, %1057 : vector<1x256xf32>
    %1062 = arith.subf %1059, %1061 : vector<1x256xf32>
    %c0_542 = arith.constant 0 : index
    %c3_543 = arith.constant 3 : index
    %c0_544 = arith.constant 0 : index
    %c0_545 = arith.constant 0 : index
    %1063 = vector.load %arg11[%c0_542, %c3_543, %c0_544, %c0_545] : memref<1x8x3x256xf32, #tpu.memory_space<vmem>>, vector<1x1x1x256xf32>
    %1064 = vector.shape_cast %1063 : vector<1x1x1x256xf32> to vector<1x256xf32>
    %1065 = vector.broadcast %1023 : f32 to vector<1x256xf32>
    %1066 = arith.mulf %1065, %1064 : vector<1x256xf32>
    %1067 = arith.addf %1062, %1066 : vector<1x256xf32>
    %c1_546 = arith.constant 1 : index
    %c0_547 = arith.constant 0 : index
    %1068 = memref.load %arg7[%c1_546, %c0_547] : memref<3x8xf32, #tpu.memory_space<smem>>
    %1069 = vector.broadcast %1068 : f32 to vector<1x256xf32>
    %1070 = arith.mulf %1069, %887 : vector<1x256xf32>
    %c1_548 = arith.constant 1 : index
    %c1_549 = arith.constant 1 : index
    %1071 = memref.load %arg7[%c1_548, %c1_549] : memref<3x8xf32, #tpu.memory_space<smem>>
    %1072 = vector.broadcast %1071 : f32 to vector<1x256xf32>
    %1073 = arith.mulf %1072, %906 : vector<1x256xf32>
    %1074 = arith.addf %1070, %1073 : vector<1x256xf32>
    %c1_550 = arith.constant 1 : index
    %c2_551 = arith.constant 2 : index
    %1075 = memref.load %arg7[%c1_550, %c2_551] : memref<3x8xf32, #tpu.memory_space<smem>>
    %1076 = vector.broadcast %1075 : f32 to vector<1x256xf32>
    %1077 = arith.mulf %1076, %925 : vector<1x256xf32>
    %1078 = arith.addf %1074, %1077 : vector<1x256xf32>
    %c1_552 = arith.constant 1 : index
    %c3_553 = arith.constant 3 : index
    %1079 = memref.load %arg7[%c1_552, %c3_553] : memref<3x8xf32, #tpu.memory_space<smem>>
    %1080 = vector.broadcast %1079 : f32 to vector<1x256xf32>
    %1081 = arith.mulf %1080, %944 : vector<1x256xf32>
    %1082 = arith.addf %1078, %1081 : vector<1x256xf32>
    %c1_554 = arith.constant 1 : index
    %c4_555 = arith.constant 4 : index
    %1083 = memref.load %arg7[%c1_554, %c4_555] : memref<3x8xf32, #tpu.memory_space<smem>>
    %1084 = vector.broadcast %1083 : f32 to vector<1x256xf32>
    %1085 = arith.mulf %1084, %963 : vector<1x256xf32>
    %1086 = arith.addf %1082, %1085 : vector<1x256xf32>
    %c1_556 = arith.constant 1 : index
    %c5_557 = arith.constant 5 : index
    %1087 = memref.load %arg7[%c1_556, %c5_557] : memref<3x8xf32, #tpu.memory_space<smem>>
    %1088 = vector.broadcast %1087 : f32 to vector<1x256xf32>
    %1089 = arith.mulf %1088, %982 : vector<1x256xf32>
    %1090 = arith.addf %1086, %1089 : vector<1x256xf32>
    %c1_558 = arith.constant 1 : index
    %c6_559 = arith.constant 6 : index
    %1091 = memref.load %arg7[%c1_558, %c6_559] : memref<3x8xf32, #tpu.memory_space<smem>>
    %1092 = vector.broadcast %1091 : f32 to vector<1x256xf32>
    %1093 = arith.mulf %1092, %1001 : vector<1x256xf32>
    %1094 = arith.addf %1090, %1093 : vector<1x256xf32>
    %c1_560 = arith.constant 1 : index
    %c7_561 = arith.constant 7 : index
    %1095 = memref.load %arg7[%c1_560, %c7_561] : memref<3x8xf32, #tpu.memory_space<smem>>
    %1096 = vector.broadcast %1095 : f32 to vector<1x256xf32>
    %1097 = arith.mulf %1096, %1020 : vector<1x256xf32>
    %1098 = arith.addf %1094, %1097 : vector<1x256xf32>
    %c1_562 = arith.constant 1 : index
    %1099 = memref.load %arg8[%c1_562] : memref<3xf32, #tpu.memory_space<smem>>
    %1100 = vector.broadcast %1099 : f32 to vector<1x256xf32>
    %1101 = arith.addf %1098, %1100 : vector<1x256xf32>
    %1102 = vector.broadcast %1021 : f32 to vector<1x256xf32>
    %1103 = arith.mulf %1102, %824 : vector<1x256xf32>
    %1104 = vector.broadcast %1022 : f32 to vector<1x256xf32>
    %1105 = arith.mulf %1104, %1101 : vector<1x256xf32>
    %1106 = arith.subf %1103, %1105 : vector<1x256xf32>
    %c0_563 = arith.constant 0 : index
    %c3_564 = arith.constant 3 : index
    %c1_565 = arith.constant 1 : index
    %c0_566 = arith.constant 0 : index
    %1107 = vector.load %arg11[%c0_563, %c3_564, %c1_565, %c0_566] : memref<1x8x3x256xf32, #tpu.memory_space<vmem>>, vector<1x1x1x256xf32>
    %1108 = vector.shape_cast %1107 : vector<1x1x1x256xf32> to vector<1x256xf32>
    %1109 = vector.broadcast %1023 : f32 to vector<1x256xf32>
    %1110 = arith.mulf %1109, %1108 : vector<1x256xf32>
    %1111 = arith.addf %1106, %1110 : vector<1x256xf32>
    %c2_567 = arith.constant 2 : index
    %c0_568 = arith.constant 0 : index
    %1112 = memref.load %arg7[%c2_567, %c0_568] : memref<3x8xf32, #tpu.memory_space<smem>>
    %1113 = vector.broadcast %1112 : f32 to vector<1x256xf32>
    %1114 = arith.mulf %1113, %887 : vector<1x256xf32>
    %c2_569 = arith.constant 2 : index
    %c1_570 = arith.constant 1 : index
    %1115 = memref.load %arg7[%c2_569, %c1_570] : memref<3x8xf32, #tpu.memory_space<smem>>
    %1116 = vector.broadcast %1115 : f32 to vector<1x256xf32>
    %1117 = arith.mulf %1116, %906 : vector<1x256xf32>
    %1118 = arith.addf %1114, %1117 : vector<1x256xf32>
    %c2_571 = arith.constant 2 : index
    %c2_572 = arith.constant 2 : index
    %1119 = memref.load %arg7[%c2_571, %c2_572] : memref<3x8xf32, #tpu.memory_space<smem>>
    %1120 = vector.broadcast %1119 : f32 to vector<1x256xf32>
    %1121 = arith.mulf %1120, %925 : vector<1x256xf32>
    %1122 = arith.addf %1118, %1121 : vector<1x256xf32>
    %c2_573 = arith.constant 2 : index
    %c3_574 = arith.constant 3 : index
    %1123 = memref.load %arg7[%c2_573, %c3_574] : memref<3x8xf32, #tpu.memory_space<smem>>
    %1124 = vector.broadcast %1123 : f32 to vector<1x256xf32>
    %1125 = arith.mulf %1124, %944 : vector<1x256xf32>
    %1126 = arith.addf %1122, %1125 : vector<1x256xf32>
    %c2_575 = arith.constant 2 : index
    %c4_576 = arith.constant 4 : index
    %1127 = memref.load %arg7[%c2_575, %c4_576] : memref<3x8xf32, #tpu.memory_space<smem>>
    %1128 = vector.broadcast %1127 : f32 to vector<1x256xf32>
    %1129 = arith.mulf %1128, %963 : vector<1x256xf32>
    %1130 = arith.addf %1126, %1129 : vector<1x256xf32>
    %c2_577 = arith.constant 2 : index
    %c5_578 = arith.constant 5 : index
    %1131 = memref.load %arg7[%c2_577, %c5_578] : memref<3x8xf32, #tpu.memory_space<smem>>
    %1132 = vector.broadcast %1131 : f32 to vector<1x256xf32>
    %1133 = arith.mulf %1132, %982 : vector<1x256xf32>
    %1134 = arith.addf %1130, %1133 : vector<1x256xf32>
    %c2_579 = arith.constant 2 : index
    %c6_580 = arith.constant 6 : index
    %1135 = memref.load %arg7[%c2_579, %c6_580] : memref<3x8xf32, #tpu.memory_space<smem>>
    %1136 = vector.broadcast %1135 : f32 to vector<1x256xf32>
    %1137 = arith.mulf %1136, %1001 : vector<1x256xf32>
    %1138 = arith.addf %1134, %1137 : vector<1x256xf32>
    %c2_581 = arith.constant 2 : index
    %c7_582 = arith.constant 7 : index
    %1139 = memref.load %arg7[%c2_581, %c7_582] : memref<3x8xf32, #tpu.memory_space<smem>>
    %1140 = vector.broadcast %1139 : f32 to vector<1x256xf32>
    %1141 = arith.mulf %1140, %1020 : vector<1x256xf32>
    %1142 = arith.addf %1138, %1141 : vector<1x256xf32>
    %c2_583 = arith.constant 2 : index
    %1143 = memref.load %arg8[%c2_583] : memref<3xf32, #tpu.memory_space<smem>>
    %1144 = vector.broadcast %1143 : f32 to vector<1x256xf32>
    %1145 = arith.addf %1142, %1144 : vector<1x256xf32>
    %1146 = vector.broadcast %1021 : f32 to vector<1x256xf32>
    %1147 = arith.mulf %1146, %868 : vector<1x256xf32>
    %1148 = vector.broadcast %1022 : f32 to vector<1x256xf32>
    %1149 = arith.mulf %1148, %1145 : vector<1x256xf32>
    %1150 = arith.subf %1147, %1149 : vector<1x256xf32>
    %c0_584 = arith.constant 0 : index
    %c3_585 = arith.constant 3 : index
    %c2_586 = arith.constant 2 : index
    %c0_587 = arith.constant 0 : index
    %1151 = vector.load %arg11[%c0_584, %c3_585, %c2_586, %c0_587] : memref<1x8x3x256xf32, #tpu.memory_space<vmem>>, vector<1x1x1x256xf32>
    %1152 = vector.shape_cast %1151 : vector<1x1x1x256xf32> to vector<1x256xf32>
    %1153 = vector.broadcast %1023 : f32 to vector<1x256xf32>
    %1154 = arith.mulf %1153, %1152 : vector<1x256xf32>
    %1155 = arith.addf %1150, %1154 : vector<1x256xf32>
    %c0_588 = arith.constant 0 : index
    %c0_589 = arith.constant 0 : index
    %1156 = memref.load %arg5[%c0_588, %c0_589] : memref<8x3xf32, #tpu.memory_space<smem>>
    %1157 = vector.broadcast %1156 : f32 to vector<1x256xf32>
    %1158 = arith.mulf %1157, %1067 : vector<1x256xf32>
    %c0_590 = arith.constant 0 : index
    %c1_591 = arith.constant 1 : index
    %1159 = memref.load %arg5[%c0_590, %c1_591] : memref<8x3xf32, #tpu.memory_space<smem>>
    %1160 = vector.broadcast %1159 : f32 to vector<1x256xf32>
    %1161 = arith.mulf %1160, %1111 : vector<1x256xf32>
    %1162 = arith.addf %1158, %1161 : vector<1x256xf32>
    %c0_592 = arith.constant 0 : index
    %c2_593 = arith.constant 2 : index
    %1163 = memref.load %arg5[%c0_592, %c2_593] : memref<8x3xf32, #tpu.memory_space<smem>>
    %1164 = vector.broadcast %1163 : f32 to vector<1x256xf32>
    %1165 = arith.mulf %1164, %1155 : vector<1x256xf32>
    %1166 = arith.addf %1162, %1165 : vector<1x256xf32>
    %c0_594 = arith.constant 0 : index
    %c0_595 = arith.constant 0 : index
    %1167 = memref.load %arg6[%c0_594, %c0_595] : memref<8x1xf32, #tpu.memory_space<smem>>
    %1168 = vector.broadcast %1167 : f32 to vector<1x256xf32>
    %1169 = arith.mulf %1168, %7 : vector<1x256xf32>
    %1170 = arith.addf %1166, %1169 : vector<1x256xf32>
    %c4_596 = arith.constant 4 : index
    %c0_597 = arith.constant 0 : index
    %1171 = memref.load %arg4[%c4_596, %c0_597] : memref<8x8xf32, #tpu.memory_space<smem>>
    %1172 = vector.broadcast %1171 : f32 to vector<1x256xf32>
    %1173 = arith.addf %1170, %1172 : vector<1x256xf32>
    %1174 = math.tanh %1173 : vector<1x256xf32>
    %c1_598 = arith.constant 1 : index
    %c0_599 = arith.constant 0 : index
    %1175 = memref.load %arg5[%c1_598, %c0_599] : memref<8x3xf32, #tpu.memory_space<smem>>
    %1176 = vector.broadcast %1175 : f32 to vector<1x256xf32>
    %1177 = arith.mulf %1176, %1067 : vector<1x256xf32>
    %c1_600 = arith.constant 1 : index
    %c1_601 = arith.constant 1 : index
    %1178 = memref.load %arg5[%c1_600, %c1_601] : memref<8x3xf32, #tpu.memory_space<smem>>
    %1179 = vector.broadcast %1178 : f32 to vector<1x256xf32>
    %1180 = arith.mulf %1179, %1111 : vector<1x256xf32>
    %1181 = arith.addf %1177, %1180 : vector<1x256xf32>
    %c1_602 = arith.constant 1 : index
    %c2_603 = arith.constant 2 : index
    %1182 = memref.load %arg5[%c1_602, %c2_603] : memref<8x3xf32, #tpu.memory_space<smem>>
    %1183 = vector.broadcast %1182 : f32 to vector<1x256xf32>
    %1184 = arith.mulf %1183, %1155 : vector<1x256xf32>
    %1185 = arith.addf %1181, %1184 : vector<1x256xf32>
    %c1_604 = arith.constant 1 : index
    %c0_605 = arith.constant 0 : index
    %1186 = memref.load %arg6[%c1_604, %c0_605] : memref<8x1xf32, #tpu.memory_space<smem>>
    %1187 = vector.broadcast %1186 : f32 to vector<1x256xf32>
    %1188 = arith.mulf %1187, %7 : vector<1x256xf32>
    %1189 = arith.addf %1185, %1188 : vector<1x256xf32>
    %c4_606 = arith.constant 4 : index
    %c1_607 = arith.constant 1 : index
    %1190 = memref.load %arg4[%c4_606, %c1_607] : memref<8x8xf32, #tpu.memory_space<smem>>
    %1191 = vector.broadcast %1190 : f32 to vector<1x256xf32>
    %1192 = arith.addf %1189, %1191 : vector<1x256xf32>
    %1193 = math.tanh %1192 : vector<1x256xf32>
    %c2_608 = arith.constant 2 : index
    %c0_609 = arith.constant 0 : index
    %1194 = memref.load %arg5[%c2_608, %c0_609] : memref<8x3xf32, #tpu.memory_space<smem>>
    %1195 = vector.broadcast %1194 : f32 to vector<1x256xf32>
    %1196 = arith.mulf %1195, %1067 : vector<1x256xf32>
    %c2_610 = arith.constant 2 : index
    %c1_611 = arith.constant 1 : index
    %1197 = memref.load %arg5[%c2_610, %c1_611] : memref<8x3xf32, #tpu.memory_space<smem>>
    %1198 = vector.broadcast %1197 : f32 to vector<1x256xf32>
    %1199 = arith.mulf %1198, %1111 : vector<1x256xf32>
    %1200 = arith.addf %1196, %1199 : vector<1x256xf32>
    %c2_612 = arith.constant 2 : index
    %c2_613 = arith.constant 2 : index
    %1201 = memref.load %arg5[%c2_612, %c2_613] : memref<8x3xf32, #tpu.memory_space<smem>>
    %1202 = vector.broadcast %1201 : f32 to vector<1x256xf32>
    %1203 = arith.mulf %1202, %1155 : vector<1x256xf32>
    %1204 = arith.addf %1200, %1203 : vector<1x256xf32>
    %c2_614 = arith.constant 2 : index
    %c0_615 = arith.constant 0 : index
    %1205 = memref.load %arg6[%c2_614, %c0_615] : memref<8x1xf32, #tpu.memory_space<smem>>
    %1206 = vector.broadcast %1205 : f32 to vector<1x256xf32>
    %1207 = arith.mulf %1206, %7 : vector<1x256xf32>
    %1208 = arith.addf %1204, %1207 : vector<1x256xf32>
    %c4_616 = arith.constant 4 : index
    %c2_617 = arith.constant 2 : index
    %1209 = memref.load %arg4[%c4_616, %c2_617] : memref<8x8xf32, #tpu.memory_space<smem>>
    %1210 = vector.broadcast %1209 : f32 to vector<1x256xf32>
    %1211 = arith.addf %1208, %1210 : vector<1x256xf32>
    %1212 = math.tanh %1211 : vector<1x256xf32>
    %c3_618 = arith.constant 3 : index
    %c0_619 = arith.constant 0 : index
    %1213 = memref.load %arg5[%c3_618, %c0_619] : memref<8x3xf32, #tpu.memory_space<smem>>
    %1214 = vector.broadcast %1213 : f32 to vector<1x256xf32>
    %1215 = arith.mulf %1214, %1067 : vector<1x256xf32>
    %c3_620 = arith.constant 3 : index
    %c1_621 = arith.constant 1 : index
    %1216 = memref.load %arg5[%c3_620, %c1_621] : memref<8x3xf32, #tpu.memory_space<smem>>
    %1217 = vector.broadcast %1216 : f32 to vector<1x256xf32>
    %1218 = arith.mulf %1217, %1111 : vector<1x256xf32>
    %1219 = arith.addf %1215, %1218 : vector<1x256xf32>
    %c3_622 = arith.constant 3 : index
    %c2_623 = arith.constant 2 : index
    %1220 = memref.load %arg5[%c3_622, %c2_623] : memref<8x3xf32, #tpu.memory_space<smem>>
    %1221 = vector.broadcast %1220 : f32 to vector<1x256xf32>
    %1222 = arith.mulf %1221, %1155 : vector<1x256xf32>
    %1223 = arith.addf %1219, %1222 : vector<1x256xf32>
    %c3_624 = arith.constant 3 : index
    %c0_625 = arith.constant 0 : index
    %1224 = memref.load %arg6[%c3_624, %c0_625] : memref<8x1xf32, #tpu.memory_space<smem>>
    %1225 = vector.broadcast %1224 : f32 to vector<1x256xf32>
    %1226 = arith.mulf %1225, %7 : vector<1x256xf32>
    %1227 = arith.addf %1223, %1226 : vector<1x256xf32>
    %c4_626 = arith.constant 4 : index
    %c3_627 = arith.constant 3 : index
    %1228 = memref.load %arg4[%c4_626, %c3_627] : memref<8x8xf32, #tpu.memory_space<smem>>
    %1229 = vector.broadcast %1228 : f32 to vector<1x256xf32>
    %1230 = arith.addf %1227, %1229 : vector<1x256xf32>
    %1231 = math.tanh %1230 : vector<1x256xf32>
    %c4_628 = arith.constant 4 : index
    %c0_629 = arith.constant 0 : index
    %1232 = memref.load %arg5[%c4_628, %c0_629] : memref<8x3xf32, #tpu.memory_space<smem>>
    %1233 = vector.broadcast %1232 : f32 to vector<1x256xf32>
    %1234 = arith.mulf %1233, %1067 : vector<1x256xf32>
    %c4_630 = arith.constant 4 : index
    %c1_631 = arith.constant 1 : index
    %1235 = memref.load %arg5[%c4_630, %c1_631] : memref<8x3xf32, #tpu.memory_space<smem>>
    %1236 = vector.broadcast %1235 : f32 to vector<1x256xf32>
    %1237 = arith.mulf %1236, %1111 : vector<1x256xf32>
    %1238 = arith.addf %1234, %1237 : vector<1x256xf32>
    %c4_632 = arith.constant 4 : index
    %c2_633 = arith.constant 2 : index
    %1239 = memref.load %arg5[%c4_632, %c2_633] : memref<8x3xf32, #tpu.memory_space<smem>>
    %1240 = vector.broadcast %1239 : f32 to vector<1x256xf32>
    %1241 = arith.mulf %1240, %1155 : vector<1x256xf32>
    %1242 = arith.addf %1238, %1241 : vector<1x256xf32>
    %c4_634 = arith.constant 4 : index
    %c0_635 = arith.constant 0 : index
    %1243 = memref.load %arg6[%c4_634, %c0_635] : memref<8x1xf32, #tpu.memory_space<smem>>
    %1244 = vector.broadcast %1243 : f32 to vector<1x256xf32>
    %1245 = arith.mulf %1244, %7 : vector<1x256xf32>
    %1246 = arith.addf %1242, %1245 : vector<1x256xf32>
    %c4_636 = arith.constant 4 : index
    %c4_637 = arith.constant 4 : index
    %1247 = memref.load %arg4[%c4_636, %c4_637] : memref<8x8xf32, #tpu.memory_space<smem>>
    %1248 = vector.broadcast %1247 : f32 to vector<1x256xf32>
    %1249 = arith.addf %1246, %1248 : vector<1x256xf32>
    %1250 = math.tanh %1249 : vector<1x256xf32>
    %c5_638 = arith.constant 5 : index
    %c0_639 = arith.constant 0 : index
    %1251 = memref.load %arg5[%c5_638, %c0_639] : memref<8x3xf32, #tpu.memory_space<smem>>
    %1252 = vector.broadcast %1251 : f32 to vector<1x256xf32>
    %1253 = arith.mulf %1252, %1067 : vector<1x256xf32>
    %c5_640 = arith.constant 5 : index
    %c1_641 = arith.constant 1 : index
    %1254 = memref.load %arg5[%c5_640, %c1_641] : memref<8x3xf32, #tpu.memory_space<smem>>
    %1255 = vector.broadcast %1254 : f32 to vector<1x256xf32>
    %1256 = arith.mulf %1255, %1111 : vector<1x256xf32>
    %1257 = arith.addf %1253, %1256 : vector<1x256xf32>
    %c5_642 = arith.constant 5 : index
    %c2_643 = arith.constant 2 : index
    %1258 = memref.load %arg5[%c5_642, %c2_643] : memref<8x3xf32, #tpu.memory_space<smem>>
    %1259 = vector.broadcast %1258 : f32 to vector<1x256xf32>
    %1260 = arith.mulf %1259, %1155 : vector<1x256xf32>
    %1261 = arith.addf %1257, %1260 : vector<1x256xf32>
    %c5_644 = arith.constant 5 : index
    %c0_645 = arith.constant 0 : index
    %1262 = memref.load %arg6[%c5_644, %c0_645] : memref<8x1xf32, #tpu.memory_space<smem>>
    %1263 = vector.broadcast %1262 : f32 to vector<1x256xf32>
    %1264 = arith.mulf %1263, %7 : vector<1x256xf32>
    %1265 = arith.addf %1261, %1264 : vector<1x256xf32>
    %c4_646 = arith.constant 4 : index
    %c5_647 = arith.constant 5 : index
    %1266 = memref.load %arg4[%c4_646, %c5_647] : memref<8x8xf32, #tpu.memory_space<smem>>
    %1267 = vector.broadcast %1266 : f32 to vector<1x256xf32>
    %1268 = arith.addf %1265, %1267 : vector<1x256xf32>
    %1269 = math.tanh %1268 : vector<1x256xf32>
    %c6_648 = arith.constant 6 : index
    %c0_649 = arith.constant 0 : index
    %1270 = memref.load %arg5[%c6_648, %c0_649] : memref<8x3xf32, #tpu.memory_space<smem>>
    %1271 = vector.broadcast %1270 : f32 to vector<1x256xf32>
    %1272 = arith.mulf %1271, %1067 : vector<1x256xf32>
    %c6_650 = arith.constant 6 : index
    %c1_651 = arith.constant 1 : index
    %1273 = memref.load %arg5[%c6_650, %c1_651] : memref<8x3xf32, #tpu.memory_space<smem>>
    %1274 = vector.broadcast %1273 : f32 to vector<1x256xf32>
    %1275 = arith.mulf %1274, %1111 : vector<1x256xf32>
    %1276 = arith.addf %1272, %1275 : vector<1x256xf32>
    %c6_652 = arith.constant 6 : index
    %c2_653 = arith.constant 2 : index
    %1277 = memref.load %arg5[%c6_652, %c2_653] : memref<8x3xf32, #tpu.memory_space<smem>>
    %1278 = vector.broadcast %1277 : f32 to vector<1x256xf32>
    %1279 = arith.mulf %1278, %1155 : vector<1x256xf32>
    %1280 = arith.addf %1276, %1279 : vector<1x256xf32>
    %c6_654 = arith.constant 6 : index
    %c0_655 = arith.constant 0 : index
    %1281 = memref.load %arg6[%c6_654, %c0_655] : memref<8x1xf32, #tpu.memory_space<smem>>
    %1282 = vector.broadcast %1281 : f32 to vector<1x256xf32>
    %1283 = arith.mulf %1282, %7 : vector<1x256xf32>
    %1284 = arith.addf %1280, %1283 : vector<1x256xf32>
    %c4_656 = arith.constant 4 : index
    %c6_657 = arith.constant 6 : index
    %1285 = memref.load %arg4[%c4_656, %c6_657] : memref<8x8xf32, #tpu.memory_space<smem>>
    %1286 = vector.broadcast %1285 : f32 to vector<1x256xf32>
    %1287 = arith.addf %1284, %1286 : vector<1x256xf32>
    %1288 = math.tanh %1287 : vector<1x256xf32>
    %c7_658 = arith.constant 7 : index
    %c0_659 = arith.constant 0 : index
    %1289 = memref.load %arg5[%c7_658, %c0_659] : memref<8x3xf32, #tpu.memory_space<smem>>
    %1290 = vector.broadcast %1289 : f32 to vector<1x256xf32>
    %1291 = arith.mulf %1290, %1067 : vector<1x256xf32>
    %c7_660 = arith.constant 7 : index
    %c1_661 = arith.constant 1 : index
    %1292 = memref.load %arg5[%c7_660, %c1_661] : memref<8x3xf32, #tpu.memory_space<smem>>
    %1293 = vector.broadcast %1292 : f32 to vector<1x256xf32>
    %1294 = arith.mulf %1293, %1111 : vector<1x256xf32>
    %1295 = arith.addf %1291, %1294 : vector<1x256xf32>
    %c7_662 = arith.constant 7 : index
    %c2_663 = arith.constant 2 : index
    %1296 = memref.load %arg5[%c7_662, %c2_663] : memref<8x3xf32, #tpu.memory_space<smem>>
    %1297 = vector.broadcast %1296 : f32 to vector<1x256xf32>
    %1298 = arith.mulf %1297, %1155 : vector<1x256xf32>
    %1299 = arith.addf %1295, %1298 : vector<1x256xf32>
    %c7_664 = arith.constant 7 : index
    %c0_665 = arith.constant 0 : index
    %1300 = memref.load %arg6[%c7_664, %c0_665] : memref<8x1xf32, #tpu.memory_space<smem>>
    %1301 = vector.broadcast %1300 : f32 to vector<1x256xf32>
    %1302 = arith.mulf %1301, %7 : vector<1x256xf32>
    %1303 = arith.addf %1299, %1302 : vector<1x256xf32>
    %c4_666 = arith.constant 4 : index
    %c7_667 = arith.constant 7 : index
    %1304 = memref.load %arg4[%c4_666, %c7_667] : memref<8x8xf32, #tpu.memory_space<smem>>
    %1305 = vector.broadcast %1304 : f32 to vector<1x256xf32>
    %1306 = arith.addf %1303, %1305 : vector<1x256xf32>
    %1307 = math.tanh %1306 : vector<1x256xf32>
    %c4_668 = arith.constant 4 : index
    %1308 = memref.load %arg1[%c4_668] : memref<8xf32, #tpu.memory_space<smem>>
    %c4_669 = arith.constant 4 : index
    %1309 = memref.load %arg2[%c4_669] : memref<8xf32, #tpu.memory_space<smem>>
    %c4_670 = arith.constant 4 : index
    %1310 = memref.load %arg3[%c4_670] : memref<8xf32, #tpu.memory_space<smem>>
    %c0_671 = arith.constant 0 : index
    %c0_672 = arith.constant 0 : index
    %1311 = memref.load %arg7[%c0_671, %c0_672] : memref<3x8xf32, #tpu.memory_space<smem>>
    %1312 = vector.broadcast %1311 : f32 to vector<1x256xf32>
    %1313 = arith.mulf %1312, %1174 : vector<1x256xf32>
    %c0_673 = arith.constant 0 : index
    %c1_674 = arith.constant 1 : index
    %1314 = memref.load %arg7[%c0_673, %c1_674] : memref<3x8xf32, #tpu.memory_space<smem>>
    %1315 = vector.broadcast %1314 : f32 to vector<1x256xf32>
    %1316 = arith.mulf %1315, %1193 : vector<1x256xf32>
    %1317 = arith.addf %1313, %1316 : vector<1x256xf32>
    %c0_675 = arith.constant 0 : index
    %c2_676 = arith.constant 2 : index
    %1318 = memref.load %arg7[%c0_675, %c2_676] : memref<3x8xf32, #tpu.memory_space<smem>>
    %1319 = vector.broadcast %1318 : f32 to vector<1x256xf32>
    %1320 = arith.mulf %1319, %1212 : vector<1x256xf32>
    %1321 = arith.addf %1317, %1320 : vector<1x256xf32>
    %c0_677 = arith.constant 0 : index
    %c3_678 = arith.constant 3 : index
    %1322 = memref.load %arg7[%c0_677, %c3_678] : memref<3x8xf32, #tpu.memory_space<smem>>
    %1323 = vector.broadcast %1322 : f32 to vector<1x256xf32>
    %1324 = arith.mulf %1323, %1231 : vector<1x256xf32>
    %1325 = arith.addf %1321, %1324 : vector<1x256xf32>
    %c0_679 = arith.constant 0 : index
    %c4_680 = arith.constant 4 : index
    %1326 = memref.load %arg7[%c0_679, %c4_680] : memref<3x8xf32, #tpu.memory_space<smem>>
    %1327 = vector.broadcast %1326 : f32 to vector<1x256xf32>
    %1328 = arith.mulf %1327, %1250 : vector<1x256xf32>
    %1329 = arith.addf %1325, %1328 : vector<1x256xf32>
    %c0_681 = arith.constant 0 : index
    %c5_682 = arith.constant 5 : index
    %1330 = memref.load %arg7[%c0_681, %c5_682] : memref<3x8xf32, #tpu.memory_space<smem>>
    %1331 = vector.broadcast %1330 : f32 to vector<1x256xf32>
    %1332 = arith.mulf %1331, %1269 : vector<1x256xf32>
    %1333 = arith.addf %1329, %1332 : vector<1x256xf32>
    %c0_683 = arith.constant 0 : index
    %c6_684 = arith.constant 6 : index
    %1334 = memref.load %arg7[%c0_683, %c6_684] : memref<3x8xf32, #tpu.memory_space<smem>>
    %1335 = vector.broadcast %1334 : f32 to vector<1x256xf32>
    %1336 = arith.mulf %1335, %1288 : vector<1x256xf32>
    %1337 = arith.addf %1333, %1336 : vector<1x256xf32>
    %c0_685 = arith.constant 0 : index
    %c7_686 = arith.constant 7 : index
    %1338 = memref.load %arg7[%c0_685, %c7_686] : memref<3x8xf32, #tpu.memory_space<smem>>
    %1339 = vector.broadcast %1338 : f32 to vector<1x256xf32>
    %1340 = arith.mulf %1339, %1307 : vector<1x256xf32>
    %1341 = arith.addf %1337, %1340 : vector<1x256xf32>
    %c0_687 = arith.constant 0 : index
    %1342 = memref.load %arg8[%c0_687] : memref<3xf32, #tpu.memory_space<smem>>
    %1343 = vector.broadcast %1342 : f32 to vector<1x256xf32>
    %1344 = arith.addf %1341, %1343 : vector<1x256xf32>
    %1345 = vector.broadcast %1308 : f32 to vector<1x256xf32>
    %1346 = arith.mulf %1345, %1067 : vector<1x256xf32>
    %1347 = vector.broadcast %1309 : f32 to vector<1x256xf32>
    %1348 = arith.mulf %1347, %1344 : vector<1x256xf32>
    %1349 = arith.subf %1346, %1348 : vector<1x256xf32>
    %c0_688 = arith.constant 0 : index
    %c4_689 = arith.constant 4 : index
    %c0_690 = arith.constant 0 : index
    %c0_691 = arith.constant 0 : index
    %1350 = vector.load %arg11[%c0_688, %c4_689, %c0_690, %c0_691] : memref<1x8x3x256xf32, #tpu.memory_space<vmem>>, vector<1x1x1x256xf32>
    %1351 = vector.shape_cast %1350 : vector<1x1x1x256xf32> to vector<1x256xf32>
    %1352 = vector.broadcast %1310 : f32 to vector<1x256xf32>
    %1353 = arith.mulf %1352, %1351 : vector<1x256xf32>
    %1354 = arith.addf %1349, %1353 : vector<1x256xf32>
    %c1_692 = arith.constant 1 : index
    %c0_693 = arith.constant 0 : index
    %1355 = memref.load %arg7[%c1_692, %c0_693] : memref<3x8xf32, #tpu.memory_space<smem>>
    %1356 = vector.broadcast %1355 : f32 to vector<1x256xf32>
    %1357 = arith.mulf %1356, %1174 : vector<1x256xf32>
    %c1_694 = arith.constant 1 : index
    %c1_695 = arith.constant 1 : index
    %1358 = memref.load %arg7[%c1_694, %c1_695] : memref<3x8xf32, #tpu.memory_space<smem>>
    %1359 = vector.broadcast %1358 : f32 to vector<1x256xf32>
    %1360 = arith.mulf %1359, %1193 : vector<1x256xf32>
    %1361 = arith.addf %1357, %1360 : vector<1x256xf32>
    %c1_696 = arith.constant 1 : index
    %c2_697 = arith.constant 2 : index
    %1362 = memref.load %arg7[%c1_696, %c2_697] : memref<3x8xf32, #tpu.memory_space<smem>>
    %1363 = vector.broadcast %1362 : f32 to vector<1x256xf32>
    %1364 = arith.mulf %1363, %1212 : vector<1x256xf32>
    %1365 = arith.addf %1361, %1364 : vector<1x256xf32>
    %c1_698 = arith.constant 1 : index
    %c3_699 = arith.constant 3 : index
    %1366 = memref.load %arg7[%c1_698, %c3_699] : memref<3x8xf32, #tpu.memory_space<smem>>
    %1367 = vector.broadcast %1366 : f32 to vector<1x256xf32>
    %1368 = arith.mulf %1367, %1231 : vector<1x256xf32>
    %1369 = arith.addf %1365, %1368 : vector<1x256xf32>
    %c1_700 = arith.constant 1 : index
    %c4_701 = arith.constant 4 : index
    %1370 = memref.load %arg7[%c1_700, %c4_701] : memref<3x8xf32, #tpu.memory_space<smem>>
    %1371 = vector.broadcast %1370 : f32 to vector<1x256xf32>
    %1372 = arith.mulf %1371, %1250 : vector<1x256xf32>
    %1373 = arith.addf %1369, %1372 : vector<1x256xf32>
    %c1_702 = arith.constant 1 : index
    %c5_703 = arith.constant 5 : index
    %1374 = memref.load %arg7[%c1_702, %c5_703] : memref<3x8xf32, #tpu.memory_space<smem>>
    %1375 = vector.broadcast %1374 : f32 to vector<1x256xf32>
    %1376 = arith.mulf %1375, %1269 : vector<1x256xf32>
    %1377 = arith.addf %1373, %1376 : vector<1x256xf32>
    %c1_704 = arith.constant 1 : index
    %c6_705 = arith.constant 6 : index
    %1378 = memref.load %arg7[%c1_704, %c6_705] : memref<3x8xf32, #tpu.memory_space<smem>>
    %1379 = vector.broadcast %1378 : f32 to vector<1x256xf32>
    %1380 = arith.mulf %1379, %1288 : vector<1x256xf32>
    %1381 = arith.addf %1377, %1380 : vector<1x256xf32>
    %c1_706 = arith.constant 1 : index
    %c7_707 = arith.constant 7 : index
    %1382 = memref.load %arg7[%c1_706, %c7_707] : memref<3x8xf32, #tpu.memory_space<smem>>
    %1383 = vector.broadcast %1382 : f32 to vector<1x256xf32>
    %1384 = arith.mulf %1383, %1307 : vector<1x256xf32>
    %1385 = arith.addf %1381, %1384 : vector<1x256xf32>
    %c1_708 = arith.constant 1 : index
    %1386 = memref.load %arg8[%c1_708] : memref<3xf32, #tpu.memory_space<smem>>
    %1387 = vector.broadcast %1386 : f32 to vector<1x256xf32>
    %1388 = arith.addf %1385, %1387 : vector<1x256xf32>
    %1389 = vector.broadcast %1308 : f32 to vector<1x256xf32>
    %1390 = arith.mulf %1389, %1111 : vector<1x256xf32>
    %1391 = vector.broadcast %1309 : f32 to vector<1x256xf32>
    %1392 = arith.mulf %1391, %1388 : vector<1x256xf32>
    %1393 = arith.subf %1390, %1392 : vector<1x256xf32>
    %c0_709 = arith.constant 0 : index
    %c4_710 = arith.constant 4 : index
    %c1_711 = arith.constant 1 : index
    %c0_712 = arith.constant 0 : index
    %1394 = vector.load %arg11[%c0_709, %c4_710, %c1_711, %c0_712] : memref<1x8x3x256xf32, #tpu.memory_space<vmem>>, vector<1x1x1x256xf32>
    %1395 = vector.shape_cast %1394 : vector<1x1x1x256xf32> to vector<1x256xf32>
    %1396 = vector.broadcast %1310 : f32 to vector<1x256xf32>
    %1397 = arith.mulf %1396, %1395 : vector<1x256xf32>
    %1398 = arith.addf %1393, %1397 : vector<1x256xf32>
    %c2_713 = arith.constant 2 : index
    %c0_714 = arith.constant 0 : index
    %1399 = memref.load %arg7[%c2_713, %c0_714] : memref<3x8xf32, #tpu.memory_space<smem>>
    %1400 = vector.broadcast %1399 : f32 to vector<1x256xf32>
    %1401 = arith.mulf %1400, %1174 : vector<1x256xf32>
    %c2_715 = arith.constant 2 : index
    %c1_716 = arith.constant 1 : index
    %1402 = memref.load %arg7[%c2_715, %c1_716] : memref<3x8xf32, #tpu.memory_space<smem>>
    %1403 = vector.broadcast %1402 : f32 to vector<1x256xf32>
    %1404 = arith.mulf %1403, %1193 : vector<1x256xf32>
    %1405 = arith.addf %1401, %1404 : vector<1x256xf32>
    %c2_717 = arith.constant 2 : index
    %c2_718 = arith.constant 2 : index
    %1406 = memref.load %arg7[%c2_717, %c2_718] : memref<3x8xf32, #tpu.memory_space<smem>>
    %1407 = vector.broadcast %1406 : f32 to vector<1x256xf32>
    %1408 = arith.mulf %1407, %1212 : vector<1x256xf32>
    %1409 = arith.addf %1405, %1408 : vector<1x256xf32>
    %c2_719 = arith.constant 2 : index
    %c3_720 = arith.constant 3 : index
    %1410 = memref.load %arg7[%c2_719, %c3_720] : memref<3x8xf32, #tpu.memory_space<smem>>
    %1411 = vector.broadcast %1410 : f32 to vector<1x256xf32>
    %1412 = arith.mulf %1411, %1231 : vector<1x256xf32>
    %1413 = arith.addf %1409, %1412 : vector<1x256xf32>
    %c2_721 = arith.constant 2 : index
    %c4_722 = arith.constant 4 : index
    %1414 = memref.load %arg7[%c2_721, %c4_722] : memref<3x8xf32, #tpu.memory_space<smem>>
    %1415 = vector.broadcast %1414 : f32 to vector<1x256xf32>
    %1416 = arith.mulf %1415, %1250 : vector<1x256xf32>
    %1417 = arith.addf %1413, %1416 : vector<1x256xf32>
    %c2_723 = arith.constant 2 : index
    %c5_724 = arith.constant 5 : index
    %1418 = memref.load %arg7[%c2_723, %c5_724] : memref<3x8xf32, #tpu.memory_space<smem>>
    %1419 = vector.broadcast %1418 : f32 to vector<1x256xf32>
    %1420 = arith.mulf %1419, %1269 : vector<1x256xf32>
    %1421 = arith.addf %1417, %1420 : vector<1x256xf32>
    %c2_725 = arith.constant 2 : index
    %c6_726 = arith.constant 6 : index
    %1422 = memref.load %arg7[%c2_725, %c6_726] : memref<3x8xf32, #tpu.memory_space<smem>>
    %1423 = vector.broadcast %1422 : f32 to vector<1x256xf32>
    %1424 = arith.mulf %1423, %1288 : vector<1x256xf32>
    %1425 = arith.addf %1421, %1424 : vector<1x256xf32>
    %c2_727 = arith.constant 2 : index
    %c7_728 = arith.constant 7 : index
    %1426 = memref.load %arg7[%c2_727, %c7_728] : memref<3x8xf32, #tpu.memory_space<smem>>
    %1427 = vector.broadcast %1426 : f32 to vector<1x256xf32>
    %1428 = arith.mulf %1427, %1307 : vector<1x256xf32>
    %1429 = arith.addf %1425, %1428 : vector<1x256xf32>
    %c2_729 = arith.constant 2 : index
    %1430 = memref.load %arg8[%c2_729] : memref<3xf32, #tpu.memory_space<smem>>
    %1431 = vector.broadcast %1430 : f32 to vector<1x256xf32>
    %1432 = arith.addf %1429, %1431 : vector<1x256xf32>
    %1433 = vector.broadcast %1308 : f32 to vector<1x256xf32>
    %1434 = arith.mulf %1433, %1155 : vector<1x256xf32>
    %1435 = vector.broadcast %1309 : f32 to vector<1x256xf32>
    %1436 = arith.mulf %1435, %1432 : vector<1x256xf32>
    %1437 = arith.subf %1434, %1436 : vector<1x256xf32>
    %c0_730 = arith.constant 0 : index
    %c4_731 = arith.constant 4 : index
    %c2_732 = arith.constant 2 : index
    %c0_733 = arith.constant 0 : index
    %1438 = vector.load %arg11[%c0_730, %c4_731, %c2_732, %c0_733] : memref<1x8x3x256xf32, #tpu.memory_space<vmem>>, vector<1x1x1x256xf32>
    %1439 = vector.shape_cast %1438 : vector<1x1x1x256xf32> to vector<1x256xf32>
    %1440 = vector.broadcast %1310 : f32 to vector<1x256xf32>
    %1441 = arith.mulf %1440, %1439 : vector<1x256xf32>
    %1442 = arith.addf %1437, %1441 : vector<1x256xf32>
    %c0_734 = arith.constant 0 : index
    %c0_735 = arith.constant 0 : index
    %1443 = memref.load %arg5[%c0_734, %c0_735] : memref<8x3xf32, #tpu.memory_space<smem>>
    %1444 = vector.broadcast %1443 : f32 to vector<1x256xf32>
    %1445 = arith.mulf %1444, %1354 : vector<1x256xf32>
    %c0_736 = arith.constant 0 : index
    %c1_737 = arith.constant 1 : index
    %1446 = memref.load %arg5[%c0_736, %c1_737] : memref<8x3xf32, #tpu.memory_space<smem>>
    %1447 = vector.broadcast %1446 : f32 to vector<1x256xf32>
    %1448 = arith.mulf %1447, %1398 : vector<1x256xf32>
    %1449 = arith.addf %1445, %1448 : vector<1x256xf32>
    %c0_738 = arith.constant 0 : index
    %c2_739 = arith.constant 2 : index
    %1450 = memref.load %arg5[%c0_738, %c2_739] : memref<8x3xf32, #tpu.memory_space<smem>>
    %1451 = vector.broadcast %1450 : f32 to vector<1x256xf32>
    %1452 = arith.mulf %1451, %1442 : vector<1x256xf32>
    %1453 = arith.addf %1449, %1452 : vector<1x256xf32>
    %c0_740 = arith.constant 0 : index
    %c0_741 = arith.constant 0 : index
    %1454 = memref.load %arg6[%c0_740, %c0_741] : memref<8x1xf32, #tpu.memory_space<smem>>
    %1455 = vector.broadcast %1454 : f32 to vector<1x256xf32>
    %1456 = arith.mulf %1455, %7 : vector<1x256xf32>
    %1457 = arith.addf %1453, %1456 : vector<1x256xf32>
    %c5_742 = arith.constant 5 : index
    %c0_743 = arith.constant 0 : index
    %1458 = memref.load %arg4[%c5_742, %c0_743] : memref<8x8xf32, #tpu.memory_space<smem>>
    %1459 = vector.broadcast %1458 : f32 to vector<1x256xf32>
    %1460 = arith.addf %1457, %1459 : vector<1x256xf32>
    %1461 = math.tanh %1460 : vector<1x256xf32>
    %c1_744 = arith.constant 1 : index
    %c0_745 = arith.constant 0 : index
    %1462 = memref.load %arg5[%c1_744, %c0_745] : memref<8x3xf32, #tpu.memory_space<smem>>
    %1463 = vector.broadcast %1462 : f32 to vector<1x256xf32>
    %1464 = arith.mulf %1463, %1354 : vector<1x256xf32>
    %c1_746 = arith.constant 1 : index
    %c1_747 = arith.constant 1 : index
    %1465 = memref.load %arg5[%c1_746, %c1_747] : memref<8x3xf32, #tpu.memory_space<smem>>
    %1466 = vector.broadcast %1465 : f32 to vector<1x256xf32>
    %1467 = arith.mulf %1466, %1398 : vector<1x256xf32>
    %1468 = arith.addf %1464, %1467 : vector<1x256xf32>
    %c1_748 = arith.constant 1 : index
    %c2_749 = arith.constant 2 : index
    %1469 = memref.load %arg5[%c1_748, %c2_749] : memref<8x3xf32, #tpu.memory_space<smem>>
    %1470 = vector.broadcast %1469 : f32 to vector<1x256xf32>
    %1471 = arith.mulf %1470, %1442 : vector<1x256xf32>
    %1472 = arith.addf %1468, %1471 : vector<1x256xf32>
    %c1_750 = arith.constant 1 : index
    %c0_751 = arith.constant 0 : index
    %1473 = memref.load %arg6[%c1_750, %c0_751] : memref<8x1xf32, #tpu.memory_space<smem>>
    %1474 = vector.broadcast %1473 : f32 to vector<1x256xf32>
    %1475 = arith.mulf %1474, %7 : vector<1x256xf32>
    %1476 = arith.addf %1472, %1475 : vector<1x256xf32>
    %c5_752 = arith.constant 5 : index
    %c1_753 = arith.constant 1 : index
    %1477 = memref.load %arg4[%c5_752, %c1_753] : memref<8x8xf32, #tpu.memory_space<smem>>
    %1478 = vector.broadcast %1477 : f32 to vector<1x256xf32>
    %1479 = arith.addf %1476, %1478 : vector<1x256xf32>
    %1480 = math.tanh %1479 : vector<1x256xf32>
    %c2_754 = arith.constant 2 : index
    %c0_755 = arith.constant 0 : index
    %1481 = memref.load %arg5[%c2_754, %c0_755] : memref<8x3xf32, #tpu.memory_space<smem>>
    %1482 = vector.broadcast %1481 : f32 to vector<1x256xf32>
    %1483 = arith.mulf %1482, %1354 : vector<1x256xf32>
    %c2_756 = arith.constant 2 : index
    %c1_757 = arith.constant 1 : index
    %1484 = memref.load %arg5[%c2_756, %c1_757] : memref<8x3xf32, #tpu.memory_space<smem>>
    %1485 = vector.broadcast %1484 : f32 to vector<1x256xf32>
    %1486 = arith.mulf %1485, %1398 : vector<1x256xf32>
    %1487 = arith.addf %1483, %1486 : vector<1x256xf32>
    %c2_758 = arith.constant 2 : index
    %c2_759 = arith.constant 2 : index
    %1488 = memref.load %arg5[%c2_758, %c2_759] : memref<8x3xf32, #tpu.memory_space<smem>>
    %1489 = vector.broadcast %1488 : f32 to vector<1x256xf32>
    %1490 = arith.mulf %1489, %1442 : vector<1x256xf32>
    %1491 = arith.addf %1487, %1490 : vector<1x256xf32>
    %c2_760 = arith.constant 2 : index
    %c0_761 = arith.constant 0 : index
    %1492 = memref.load %arg6[%c2_760, %c0_761] : memref<8x1xf32, #tpu.memory_space<smem>>
    %1493 = vector.broadcast %1492 : f32 to vector<1x256xf32>
    %1494 = arith.mulf %1493, %7 : vector<1x256xf32>
    %1495 = arith.addf %1491, %1494 : vector<1x256xf32>
    %c5_762 = arith.constant 5 : index
    %c2_763 = arith.constant 2 : index
    %1496 = memref.load %arg4[%c5_762, %c2_763] : memref<8x8xf32, #tpu.memory_space<smem>>
    %1497 = vector.broadcast %1496 : f32 to vector<1x256xf32>
    %1498 = arith.addf %1495, %1497 : vector<1x256xf32>
    %1499 = math.tanh %1498 : vector<1x256xf32>
    %c3_764 = arith.constant 3 : index
    %c0_765 = arith.constant 0 : index
    %1500 = memref.load %arg5[%c3_764, %c0_765] : memref<8x3xf32, #tpu.memory_space<smem>>
    %1501 = vector.broadcast %1500 : f32 to vector<1x256xf32>
    %1502 = arith.mulf %1501, %1354 : vector<1x256xf32>
    %c3_766 = arith.constant 3 : index
    %c1_767 = arith.constant 1 : index
    %1503 = memref.load %arg5[%c3_766, %c1_767] : memref<8x3xf32, #tpu.memory_space<smem>>
    %1504 = vector.broadcast %1503 : f32 to vector<1x256xf32>
    %1505 = arith.mulf %1504, %1398 : vector<1x256xf32>
    %1506 = arith.addf %1502, %1505 : vector<1x256xf32>
    %c3_768 = arith.constant 3 : index
    %c2_769 = arith.constant 2 : index
    %1507 = memref.load %arg5[%c3_768, %c2_769] : memref<8x3xf32, #tpu.memory_space<smem>>
    %1508 = vector.broadcast %1507 : f32 to vector<1x256xf32>
    %1509 = arith.mulf %1508, %1442 : vector<1x256xf32>
    %1510 = arith.addf %1506, %1509 : vector<1x256xf32>
    %c3_770 = arith.constant 3 : index
    %c0_771 = arith.constant 0 : index
    %1511 = memref.load %arg6[%c3_770, %c0_771] : memref<8x1xf32, #tpu.memory_space<smem>>
    %1512 = vector.broadcast %1511 : f32 to vector<1x256xf32>
    %1513 = arith.mulf %1512, %7 : vector<1x256xf32>
    %1514 = arith.addf %1510, %1513 : vector<1x256xf32>
    %c5_772 = arith.constant 5 : index
    %c3_773 = arith.constant 3 : index
    %1515 = memref.load %arg4[%c5_772, %c3_773] : memref<8x8xf32, #tpu.memory_space<smem>>
    %1516 = vector.broadcast %1515 : f32 to vector<1x256xf32>
    %1517 = arith.addf %1514, %1516 : vector<1x256xf32>
    %1518 = math.tanh %1517 : vector<1x256xf32>
    %c4_774 = arith.constant 4 : index
    %c0_775 = arith.constant 0 : index
    %1519 = memref.load %arg5[%c4_774, %c0_775] : memref<8x3xf32, #tpu.memory_space<smem>>
    %1520 = vector.broadcast %1519 : f32 to vector<1x256xf32>
    %1521 = arith.mulf %1520, %1354 : vector<1x256xf32>
    %c4_776 = arith.constant 4 : index
    %c1_777 = arith.constant 1 : index
    %1522 = memref.load %arg5[%c4_776, %c1_777] : memref<8x3xf32, #tpu.memory_space<smem>>
    %1523 = vector.broadcast %1522 : f32 to vector<1x256xf32>
    %1524 = arith.mulf %1523, %1398 : vector<1x256xf32>
    %1525 = arith.addf %1521, %1524 : vector<1x256xf32>
    %c4_778 = arith.constant 4 : index
    %c2_779 = arith.constant 2 : index
    %1526 = memref.load %arg5[%c4_778, %c2_779] : memref<8x3xf32, #tpu.memory_space<smem>>
    %1527 = vector.broadcast %1526 : f32 to vector<1x256xf32>
    %1528 = arith.mulf %1527, %1442 : vector<1x256xf32>
    %1529 = arith.addf %1525, %1528 : vector<1x256xf32>
    %c4_780 = arith.constant 4 : index
    %c0_781 = arith.constant 0 : index
    %1530 = memref.load %arg6[%c4_780, %c0_781] : memref<8x1xf32, #tpu.memory_space<smem>>
    %1531 = vector.broadcast %1530 : f32 to vector<1x256xf32>
    %1532 = arith.mulf %1531, %7 : vector<1x256xf32>
    %1533 = arith.addf %1529, %1532 : vector<1x256xf32>
    %c5_782 = arith.constant 5 : index
    %c4_783 = arith.constant 4 : index
    %1534 = memref.load %arg4[%c5_782, %c4_783] : memref<8x8xf32, #tpu.memory_space<smem>>
    %1535 = vector.broadcast %1534 : f32 to vector<1x256xf32>
    %1536 = arith.addf %1533, %1535 : vector<1x256xf32>
    %1537 = math.tanh %1536 : vector<1x256xf32>
    %c5_784 = arith.constant 5 : index
    %c0_785 = arith.constant 0 : index
    %1538 = memref.load %arg5[%c5_784, %c0_785] : memref<8x3xf32, #tpu.memory_space<smem>>
    %1539 = vector.broadcast %1538 : f32 to vector<1x256xf32>
    %1540 = arith.mulf %1539, %1354 : vector<1x256xf32>
    %c5_786 = arith.constant 5 : index
    %c1_787 = arith.constant 1 : index
    %1541 = memref.load %arg5[%c5_786, %c1_787] : memref<8x3xf32, #tpu.memory_space<smem>>
    %1542 = vector.broadcast %1541 : f32 to vector<1x256xf32>
    %1543 = arith.mulf %1542, %1398 : vector<1x256xf32>
    %1544 = arith.addf %1540, %1543 : vector<1x256xf32>
    %c5_788 = arith.constant 5 : index
    %c2_789 = arith.constant 2 : index
    %1545 = memref.load %arg5[%c5_788, %c2_789] : memref<8x3xf32, #tpu.memory_space<smem>>
    %1546 = vector.broadcast %1545 : f32 to vector<1x256xf32>
    %1547 = arith.mulf %1546, %1442 : vector<1x256xf32>
    %1548 = arith.addf %1544, %1547 : vector<1x256xf32>
    %c5_790 = arith.constant 5 : index
    %c0_791 = arith.constant 0 : index
    %1549 = memref.load %arg6[%c5_790, %c0_791] : memref<8x1xf32, #tpu.memory_space<smem>>
    %1550 = vector.broadcast %1549 : f32 to vector<1x256xf32>
    %1551 = arith.mulf %1550, %7 : vector<1x256xf32>
    %1552 = arith.addf %1548, %1551 : vector<1x256xf32>
    %c5_792 = arith.constant 5 : index
    %c5_793 = arith.constant 5 : index
    %1553 = memref.load %arg4[%c5_792, %c5_793] : memref<8x8xf32, #tpu.memory_space<smem>>
    %1554 = vector.broadcast %1553 : f32 to vector<1x256xf32>
    %1555 = arith.addf %1552, %1554 : vector<1x256xf32>
    %1556 = math.tanh %1555 : vector<1x256xf32>
    %c6_794 = arith.constant 6 : index
    %c0_795 = arith.constant 0 : index
    %1557 = memref.load %arg5[%c6_794, %c0_795] : memref<8x3xf32, #tpu.memory_space<smem>>
    %1558 = vector.broadcast %1557 : f32 to vector<1x256xf32>
    %1559 = arith.mulf %1558, %1354 : vector<1x256xf32>
    %c6_796 = arith.constant 6 : index
    %c1_797 = arith.constant 1 : index
    %1560 = memref.load %arg5[%c6_796, %c1_797] : memref<8x3xf32, #tpu.memory_space<smem>>
    %1561 = vector.broadcast %1560 : f32 to vector<1x256xf32>
    %1562 = arith.mulf %1561, %1398 : vector<1x256xf32>
    %1563 = arith.addf %1559, %1562 : vector<1x256xf32>
    %c6_798 = arith.constant 6 : index
    %c2_799 = arith.constant 2 : index
    %1564 = memref.load %arg5[%c6_798, %c2_799] : memref<8x3xf32, #tpu.memory_space<smem>>
    %1565 = vector.broadcast %1564 : f32 to vector<1x256xf32>
    %1566 = arith.mulf %1565, %1442 : vector<1x256xf32>
    %1567 = arith.addf %1563, %1566 : vector<1x256xf32>
    %c6_800 = arith.constant 6 : index
    %c0_801 = arith.constant 0 : index
    %1568 = memref.load %arg6[%c6_800, %c0_801] : memref<8x1xf32, #tpu.memory_space<smem>>
    %1569 = vector.broadcast %1568 : f32 to vector<1x256xf32>
    %1570 = arith.mulf %1569, %7 : vector<1x256xf32>
    %1571 = arith.addf %1567, %1570 : vector<1x256xf32>
    %c5_802 = arith.constant 5 : index
    %c6_803 = arith.constant 6 : index
    %1572 = memref.load %arg4[%c5_802, %c6_803] : memref<8x8xf32, #tpu.memory_space<smem>>
    %1573 = vector.broadcast %1572 : f32 to vector<1x256xf32>
    %1574 = arith.addf %1571, %1573 : vector<1x256xf32>
    %1575 = math.tanh %1574 : vector<1x256xf32>
    %c7_804 = arith.constant 7 : index
    %c0_805 = arith.constant 0 : index
    %1576 = memref.load %arg5[%c7_804, %c0_805] : memref<8x3xf32, #tpu.memory_space<smem>>
    %1577 = vector.broadcast %1576 : f32 to vector<1x256xf32>
    %1578 = arith.mulf %1577, %1354 : vector<1x256xf32>
    %c7_806 = arith.constant 7 : index
    %c1_807 = arith.constant 1 : index
    %1579 = memref.load %arg5[%c7_806, %c1_807] : memref<8x3xf32, #tpu.memory_space<smem>>
    %1580 = vector.broadcast %1579 : f32 to vector<1x256xf32>
    %1581 = arith.mulf %1580, %1398 : vector<1x256xf32>
    %1582 = arith.addf %1578, %1581 : vector<1x256xf32>
    %c7_808 = arith.constant 7 : index
    %c2_809 = arith.constant 2 : index
    %1583 = memref.load %arg5[%c7_808, %c2_809] : memref<8x3xf32, #tpu.memory_space<smem>>
    %1584 = vector.broadcast %1583 : f32 to vector<1x256xf32>
    %1585 = arith.mulf %1584, %1442 : vector<1x256xf32>
    %1586 = arith.addf %1582, %1585 : vector<1x256xf32>
    %c7_810 = arith.constant 7 : index
    %c0_811 = arith.constant 0 : index
    %1587 = memref.load %arg6[%c7_810, %c0_811] : memref<8x1xf32, #tpu.memory_space<smem>>
    %1588 = vector.broadcast %1587 : f32 to vector<1x256xf32>
    %1589 = arith.mulf %1588, %7 : vector<1x256xf32>
    %1590 = arith.addf %1586, %1589 : vector<1x256xf32>
    %c5_812 = arith.constant 5 : index
    %c7_813 = arith.constant 7 : index
    %1591 = memref.load %arg4[%c5_812, %c7_813] : memref<8x8xf32, #tpu.memory_space<smem>>
    %1592 = vector.broadcast %1591 : f32 to vector<1x256xf32>
    %1593 = arith.addf %1590, %1592 : vector<1x256xf32>
    %1594 = math.tanh %1593 : vector<1x256xf32>
    %c5_814 = arith.constant 5 : index
    %1595 = memref.load %arg1[%c5_814] : memref<8xf32, #tpu.memory_space<smem>>
    %c5_815 = arith.constant 5 : index
    %1596 = memref.load %arg2[%c5_815] : memref<8xf32, #tpu.memory_space<smem>>
    %c5_816 = arith.constant 5 : index
    %1597 = memref.load %arg3[%c5_816] : memref<8xf32, #tpu.memory_space<smem>>
    %c0_817 = arith.constant 0 : index
    %c0_818 = arith.constant 0 : index
    %1598 = memref.load %arg7[%c0_817, %c0_818] : memref<3x8xf32, #tpu.memory_space<smem>>
    %1599 = vector.broadcast %1598 : f32 to vector<1x256xf32>
    %1600 = arith.mulf %1599, %1461 : vector<1x256xf32>
    %c0_819 = arith.constant 0 : index
    %c1_820 = arith.constant 1 : index
    %1601 = memref.load %arg7[%c0_819, %c1_820] : memref<3x8xf32, #tpu.memory_space<smem>>
    %1602 = vector.broadcast %1601 : f32 to vector<1x256xf32>
    %1603 = arith.mulf %1602, %1480 : vector<1x256xf32>
    %1604 = arith.addf %1600, %1603 : vector<1x256xf32>
    %c0_821 = arith.constant 0 : index
    %c2_822 = arith.constant 2 : index
    %1605 = memref.load %arg7[%c0_821, %c2_822] : memref<3x8xf32, #tpu.memory_space<smem>>
    %1606 = vector.broadcast %1605 : f32 to vector<1x256xf32>
    %1607 = arith.mulf %1606, %1499 : vector<1x256xf32>
    %1608 = arith.addf %1604, %1607 : vector<1x256xf32>
    %c0_823 = arith.constant 0 : index
    %c3_824 = arith.constant 3 : index
    %1609 = memref.load %arg7[%c0_823, %c3_824] : memref<3x8xf32, #tpu.memory_space<smem>>
    %1610 = vector.broadcast %1609 : f32 to vector<1x256xf32>
    %1611 = arith.mulf %1610, %1518 : vector<1x256xf32>
    %1612 = arith.addf %1608, %1611 : vector<1x256xf32>
    %c0_825 = arith.constant 0 : index
    %c4_826 = arith.constant 4 : index
    %1613 = memref.load %arg7[%c0_825, %c4_826] : memref<3x8xf32, #tpu.memory_space<smem>>
    %1614 = vector.broadcast %1613 : f32 to vector<1x256xf32>
    %1615 = arith.mulf %1614, %1537 : vector<1x256xf32>
    %1616 = arith.addf %1612, %1615 : vector<1x256xf32>
    %c0_827 = arith.constant 0 : index
    %c5_828 = arith.constant 5 : index
    %1617 = memref.load %arg7[%c0_827, %c5_828] : memref<3x8xf32, #tpu.memory_space<smem>>
    %1618 = vector.broadcast %1617 : f32 to vector<1x256xf32>
    %1619 = arith.mulf %1618, %1556 : vector<1x256xf32>
    %1620 = arith.addf %1616, %1619 : vector<1x256xf32>
    %c0_829 = arith.constant 0 : index
    %c6_830 = arith.constant 6 : index
    %1621 = memref.load %arg7[%c0_829, %c6_830] : memref<3x8xf32, #tpu.memory_space<smem>>
    %1622 = vector.broadcast %1621 : f32 to vector<1x256xf32>
    %1623 = arith.mulf %1622, %1575 : vector<1x256xf32>
    %1624 = arith.addf %1620, %1623 : vector<1x256xf32>
    %c0_831 = arith.constant 0 : index
    %c7_832 = arith.constant 7 : index
    %1625 = memref.load %arg7[%c0_831, %c7_832] : memref<3x8xf32, #tpu.memory_space<smem>>
    %1626 = vector.broadcast %1625 : f32 to vector<1x256xf32>
    %1627 = arith.mulf %1626, %1594 : vector<1x256xf32>
    %1628 = arith.addf %1624, %1627 : vector<1x256xf32>
    %c0_833 = arith.constant 0 : index
    %1629 = memref.load %arg8[%c0_833] : memref<3xf32, #tpu.memory_space<smem>>
    %1630 = vector.broadcast %1629 : f32 to vector<1x256xf32>
    %1631 = arith.addf %1628, %1630 : vector<1x256xf32>
    %1632 = vector.broadcast %1595 : f32 to vector<1x256xf32>
    %1633 = arith.mulf %1632, %1354 : vector<1x256xf32>
    %1634 = vector.broadcast %1596 : f32 to vector<1x256xf32>
    %1635 = arith.mulf %1634, %1631 : vector<1x256xf32>
    %1636 = arith.subf %1633, %1635 : vector<1x256xf32>
    %c0_834 = arith.constant 0 : index
    %c5_835 = arith.constant 5 : index
    %c0_836 = arith.constant 0 : index
    %c0_837 = arith.constant 0 : index
    %1637 = vector.load %arg11[%c0_834, %c5_835, %c0_836, %c0_837] : memref<1x8x3x256xf32, #tpu.memory_space<vmem>>, vector<1x1x1x256xf32>
    %1638 = vector.shape_cast %1637 : vector<1x1x1x256xf32> to vector<1x256xf32>
    %1639 = vector.broadcast %1597 : f32 to vector<1x256xf32>
    %1640 = arith.mulf %1639, %1638 : vector<1x256xf32>
    %1641 = arith.addf %1636, %1640 : vector<1x256xf32>
    %c1_838 = arith.constant 1 : index
    %c0_839 = arith.constant 0 : index
    %1642 = memref.load %arg7[%c1_838, %c0_839] : memref<3x8xf32, #tpu.memory_space<smem>>
    %1643 = vector.broadcast %1642 : f32 to vector<1x256xf32>
    %1644 = arith.mulf %1643, %1461 : vector<1x256xf32>
    %c1_840 = arith.constant 1 : index
    %c1_841 = arith.constant 1 : index
    %1645 = memref.load %arg7[%c1_840, %c1_841] : memref<3x8xf32, #tpu.memory_space<smem>>
    %1646 = vector.broadcast %1645 : f32 to vector<1x256xf32>
    %1647 = arith.mulf %1646, %1480 : vector<1x256xf32>
    %1648 = arith.addf %1644, %1647 : vector<1x256xf32>
    %c1_842 = arith.constant 1 : index
    %c2_843 = arith.constant 2 : index
    %1649 = memref.load %arg7[%c1_842, %c2_843] : memref<3x8xf32, #tpu.memory_space<smem>>
    %1650 = vector.broadcast %1649 : f32 to vector<1x256xf32>
    %1651 = arith.mulf %1650, %1499 : vector<1x256xf32>
    %1652 = arith.addf %1648, %1651 : vector<1x256xf32>
    %c1_844 = arith.constant 1 : index
    %c3_845 = arith.constant 3 : index
    %1653 = memref.load %arg7[%c1_844, %c3_845] : memref<3x8xf32, #tpu.memory_space<smem>>
    %1654 = vector.broadcast %1653 : f32 to vector<1x256xf32>
    %1655 = arith.mulf %1654, %1518 : vector<1x256xf32>
    %1656 = arith.addf %1652, %1655 : vector<1x256xf32>
    %c1_846 = arith.constant 1 : index
    %c4_847 = arith.constant 4 : index
    %1657 = memref.load %arg7[%c1_846, %c4_847] : memref<3x8xf32, #tpu.memory_space<smem>>
    %1658 = vector.broadcast %1657 : f32 to vector<1x256xf32>
    %1659 = arith.mulf %1658, %1537 : vector<1x256xf32>
    %1660 = arith.addf %1656, %1659 : vector<1x256xf32>
    %c1_848 = arith.constant 1 : index
    %c5_849 = arith.constant 5 : index
    %1661 = memref.load %arg7[%c1_848, %c5_849] : memref<3x8xf32, #tpu.memory_space<smem>>
    %1662 = vector.broadcast %1661 : f32 to vector<1x256xf32>
    %1663 = arith.mulf %1662, %1556 : vector<1x256xf32>
    %1664 = arith.addf %1660, %1663 : vector<1x256xf32>
    %c1_850 = arith.constant 1 : index
    %c6_851 = arith.constant 6 : index
    %1665 = memref.load %arg7[%c1_850, %c6_851] : memref<3x8xf32, #tpu.memory_space<smem>>
    %1666 = vector.broadcast %1665 : f32 to vector<1x256xf32>
    %1667 = arith.mulf %1666, %1575 : vector<1x256xf32>
    %1668 = arith.addf %1664, %1667 : vector<1x256xf32>
    %c1_852 = arith.constant 1 : index
    %c7_853 = arith.constant 7 : index
    %1669 = memref.load %arg7[%c1_852, %c7_853] : memref<3x8xf32, #tpu.memory_space<smem>>
    %1670 = vector.broadcast %1669 : f32 to vector<1x256xf32>
    %1671 = arith.mulf %1670, %1594 : vector<1x256xf32>
    %1672 = arith.addf %1668, %1671 : vector<1x256xf32>
    %c1_854 = arith.constant 1 : index
    %1673 = memref.load %arg8[%c1_854] : memref<3xf32, #tpu.memory_space<smem>>
    %1674 = vector.broadcast %1673 : f32 to vector<1x256xf32>
    %1675 = arith.addf %1672, %1674 : vector<1x256xf32>
    %1676 = vector.broadcast %1595 : f32 to vector<1x256xf32>
    %1677 = arith.mulf %1676, %1398 : vector<1x256xf32>
    %1678 = vector.broadcast %1596 : f32 to vector<1x256xf32>
    %1679 = arith.mulf %1678, %1675 : vector<1x256xf32>
    %1680 = arith.subf %1677, %1679 : vector<1x256xf32>
    %c0_855 = arith.constant 0 : index
    %c5_856 = arith.constant 5 : index
    %c1_857 = arith.constant 1 : index
    %c0_858 = arith.constant 0 : index
    %1681 = vector.load %arg11[%c0_855, %c5_856, %c1_857, %c0_858] : memref<1x8x3x256xf32, #tpu.memory_space<vmem>>, vector<1x1x1x256xf32>
    %1682 = vector.shape_cast %1681 : vector<1x1x1x256xf32> to vector<1x256xf32>
    %1683 = vector.broadcast %1597 : f32 to vector<1x256xf32>
    %1684 = arith.mulf %1683, %1682 : vector<1x256xf32>
    %1685 = arith.addf %1680, %1684 : vector<1x256xf32>
    %c2_859 = arith.constant 2 : index
    %c0_860 = arith.constant 0 : index
    %1686 = memref.load %arg7[%c2_859, %c0_860] : memref<3x8xf32, #tpu.memory_space<smem>>
    %1687 = vector.broadcast %1686 : f32 to vector<1x256xf32>
    %1688 = arith.mulf %1687, %1461 : vector<1x256xf32>
    %c2_861 = arith.constant 2 : index
    %c1_862 = arith.constant 1 : index
    %1689 = memref.load %arg7[%c2_861, %c1_862] : memref<3x8xf32, #tpu.memory_space<smem>>
    %1690 = vector.broadcast %1689 : f32 to vector<1x256xf32>
    %1691 = arith.mulf %1690, %1480 : vector<1x256xf32>
    %1692 = arith.addf %1688, %1691 : vector<1x256xf32>
    %c2_863 = arith.constant 2 : index
    %c2_864 = arith.constant 2 : index
    %1693 = memref.load %arg7[%c2_863, %c2_864] : memref<3x8xf32, #tpu.memory_space<smem>>
    %1694 = vector.broadcast %1693 : f32 to vector<1x256xf32>
    %1695 = arith.mulf %1694, %1499 : vector<1x256xf32>
    %1696 = arith.addf %1692, %1695 : vector<1x256xf32>
    %c2_865 = arith.constant 2 : index
    %c3_866 = arith.constant 3 : index
    %1697 = memref.load %arg7[%c2_865, %c3_866] : memref<3x8xf32, #tpu.memory_space<smem>>
    %1698 = vector.broadcast %1697 : f32 to vector<1x256xf32>
    %1699 = arith.mulf %1698, %1518 : vector<1x256xf32>
    %1700 = arith.addf %1696, %1699 : vector<1x256xf32>
    %c2_867 = arith.constant 2 : index
    %c4_868 = arith.constant 4 : index
    %1701 = memref.load %arg7[%c2_867, %c4_868] : memref<3x8xf32, #tpu.memory_space<smem>>
    %1702 = vector.broadcast %1701 : f32 to vector<1x256xf32>
    %1703 = arith.mulf %1702, %1537 : vector<1x256xf32>
    %1704 = arith.addf %1700, %1703 : vector<1x256xf32>
    %c2_869 = arith.constant 2 : index
    %c5_870 = arith.constant 5 : index
    %1705 = memref.load %arg7[%c2_869, %c5_870] : memref<3x8xf32, #tpu.memory_space<smem>>
    %1706 = vector.broadcast %1705 : f32 to vector<1x256xf32>
    %1707 = arith.mulf %1706, %1556 : vector<1x256xf32>
    %1708 = arith.addf %1704, %1707 : vector<1x256xf32>
    %c2_871 = arith.constant 2 : index
    %c6_872 = arith.constant 6 : index
    %1709 = memref.load %arg7[%c2_871, %c6_872] : memref<3x8xf32, #tpu.memory_space<smem>>
    %1710 = vector.broadcast %1709 : f32 to vector<1x256xf32>
    %1711 = arith.mulf %1710, %1575 : vector<1x256xf32>
    %1712 = arith.addf %1708, %1711 : vector<1x256xf32>
    %c2_873 = arith.constant 2 : index
    %c7_874 = arith.constant 7 : index
    %1713 = memref.load %arg7[%c2_873, %c7_874] : memref<3x8xf32, #tpu.memory_space<smem>>
    %1714 = vector.broadcast %1713 : f32 to vector<1x256xf32>
    %1715 = arith.mulf %1714, %1594 : vector<1x256xf32>
    %1716 = arith.addf %1712, %1715 : vector<1x256xf32>
    %c2_875 = arith.constant 2 : index
    %1717 = memref.load %arg8[%c2_875] : memref<3xf32, #tpu.memory_space<smem>>
    %1718 = vector.broadcast %1717 : f32 to vector<1x256xf32>
    %1719 = arith.addf %1716, %1718 : vector<1x256xf32>
    %1720 = vector.broadcast %1595 : f32 to vector<1x256xf32>
    %1721 = arith.mulf %1720, %1442 : vector<1x256xf32>
    %1722 = vector.broadcast %1596 : f32 to vector<1x256xf32>
    %1723 = arith.mulf %1722, %1719 : vector<1x256xf32>
    %1724 = arith.subf %1721, %1723 : vector<1x256xf32>
    %c0_876 = arith.constant 0 : index
    %c5_877 = arith.constant 5 : index
    %c2_878 = arith.constant 2 : index
    %c0_879 = arith.constant 0 : index
    %1725 = vector.load %arg11[%c0_876, %c5_877, %c2_878, %c0_879] : memref<1x8x3x256xf32, #tpu.memory_space<vmem>>, vector<1x1x1x256xf32>
    %1726 = vector.shape_cast %1725 : vector<1x1x1x256xf32> to vector<1x256xf32>
    %1727 = vector.broadcast %1597 : f32 to vector<1x256xf32>
    %1728 = arith.mulf %1727, %1726 : vector<1x256xf32>
    %1729 = arith.addf %1724, %1728 : vector<1x256xf32>
    %c0_880 = arith.constant 0 : index
    %c0_881 = arith.constant 0 : index
    %1730 = memref.load %arg5[%c0_880, %c0_881] : memref<8x3xf32, #tpu.memory_space<smem>>
    %1731 = vector.broadcast %1730 : f32 to vector<1x256xf32>
    %1732 = arith.mulf %1731, %1641 : vector<1x256xf32>
    %c0_882 = arith.constant 0 : index
    %c1_883 = arith.constant 1 : index
    %1733 = memref.load %arg5[%c0_882, %c1_883] : memref<8x3xf32, #tpu.memory_space<smem>>
    %1734 = vector.broadcast %1733 : f32 to vector<1x256xf32>
    %1735 = arith.mulf %1734, %1685 : vector<1x256xf32>
    %1736 = arith.addf %1732, %1735 : vector<1x256xf32>
    %c0_884 = arith.constant 0 : index
    %c2_885 = arith.constant 2 : index
    %1737 = memref.load %arg5[%c0_884, %c2_885] : memref<8x3xf32, #tpu.memory_space<smem>>
    %1738 = vector.broadcast %1737 : f32 to vector<1x256xf32>
    %1739 = arith.mulf %1738, %1729 : vector<1x256xf32>
    %1740 = arith.addf %1736, %1739 : vector<1x256xf32>
    %c0_886 = arith.constant 0 : index
    %c0_887 = arith.constant 0 : index
    %1741 = memref.load %arg6[%c0_886, %c0_887] : memref<8x1xf32, #tpu.memory_space<smem>>
    %1742 = vector.broadcast %1741 : f32 to vector<1x256xf32>
    %1743 = arith.mulf %1742, %7 : vector<1x256xf32>
    %1744 = arith.addf %1740, %1743 : vector<1x256xf32>
    %c6_888 = arith.constant 6 : index
    %c0_889 = arith.constant 0 : index
    %1745 = memref.load %arg4[%c6_888, %c0_889] : memref<8x8xf32, #tpu.memory_space<smem>>
    %1746 = vector.broadcast %1745 : f32 to vector<1x256xf32>
    %1747 = arith.addf %1744, %1746 : vector<1x256xf32>
    %1748 = math.tanh %1747 : vector<1x256xf32>
    %c1_890 = arith.constant 1 : index
    %c0_891 = arith.constant 0 : index
    %1749 = memref.load %arg5[%c1_890, %c0_891] : memref<8x3xf32, #tpu.memory_space<smem>>
    %1750 = vector.broadcast %1749 : f32 to vector<1x256xf32>
    %1751 = arith.mulf %1750, %1641 : vector<1x256xf32>
    %c1_892 = arith.constant 1 : index
    %c1_893 = arith.constant 1 : index
    %1752 = memref.load %arg5[%c1_892, %c1_893] : memref<8x3xf32, #tpu.memory_space<smem>>
    %1753 = vector.broadcast %1752 : f32 to vector<1x256xf32>
    %1754 = arith.mulf %1753, %1685 : vector<1x256xf32>
    %1755 = arith.addf %1751, %1754 : vector<1x256xf32>
    %c1_894 = arith.constant 1 : index
    %c2_895 = arith.constant 2 : index
    %1756 = memref.load %arg5[%c1_894, %c2_895] : memref<8x3xf32, #tpu.memory_space<smem>>
    %1757 = vector.broadcast %1756 : f32 to vector<1x256xf32>
    %1758 = arith.mulf %1757, %1729 : vector<1x256xf32>
    %1759 = arith.addf %1755, %1758 : vector<1x256xf32>
    %c1_896 = arith.constant 1 : index
    %c0_897 = arith.constant 0 : index
    %1760 = memref.load %arg6[%c1_896, %c0_897] : memref<8x1xf32, #tpu.memory_space<smem>>
    %1761 = vector.broadcast %1760 : f32 to vector<1x256xf32>
    %1762 = arith.mulf %1761, %7 : vector<1x256xf32>
    %1763 = arith.addf %1759, %1762 : vector<1x256xf32>
    %c6_898 = arith.constant 6 : index
    %c1_899 = arith.constant 1 : index
    %1764 = memref.load %arg4[%c6_898, %c1_899] : memref<8x8xf32, #tpu.memory_space<smem>>
    %1765 = vector.broadcast %1764 : f32 to vector<1x256xf32>
    %1766 = arith.addf %1763, %1765 : vector<1x256xf32>
    %1767 = math.tanh %1766 : vector<1x256xf32>
    %c2_900 = arith.constant 2 : index
    %c0_901 = arith.constant 0 : index
    %1768 = memref.load %arg5[%c2_900, %c0_901] : memref<8x3xf32, #tpu.memory_space<smem>>
    %1769 = vector.broadcast %1768 : f32 to vector<1x256xf32>
    %1770 = arith.mulf %1769, %1641 : vector<1x256xf32>
    %c2_902 = arith.constant 2 : index
    %c1_903 = arith.constant 1 : index
    %1771 = memref.load %arg5[%c2_902, %c1_903] : memref<8x3xf32, #tpu.memory_space<smem>>
    %1772 = vector.broadcast %1771 : f32 to vector<1x256xf32>
    %1773 = arith.mulf %1772, %1685 : vector<1x256xf32>
    %1774 = arith.addf %1770, %1773 : vector<1x256xf32>
    %c2_904 = arith.constant 2 : index
    %c2_905 = arith.constant 2 : index
    %1775 = memref.load %arg5[%c2_904, %c2_905] : memref<8x3xf32, #tpu.memory_space<smem>>
    %1776 = vector.broadcast %1775 : f32 to vector<1x256xf32>
    %1777 = arith.mulf %1776, %1729 : vector<1x256xf32>
    %1778 = arith.addf %1774, %1777 : vector<1x256xf32>
    %c2_906 = arith.constant 2 : index
    %c0_907 = arith.constant 0 : index
    %1779 = memref.load %arg6[%c2_906, %c0_907] : memref<8x1xf32, #tpu.memory_space<smem>>
    %1780 = vector.broadcast %1779 : f32 to vector<1x256xf32>
    %1781 = arith.mulf %1780, %7 : vector<1x256xf32>
    %1782 = arith.addf %1778, %1781 : vector<1x256xf32>
    %c6_908 = arith.constant 6 : index
    %c2_909 = arith.constant 2 : index
    %1783 = memref.load %arg4[%c6_908, %c2_909] : memref<8x8xf32, #tpu.memory_space<smem>>
    %1784 = vector.broadcast %1783 : f32 to vector<1x256xf32>
    %1785 = arith.addf %1782, %1784 : vector<1x256xf32>
    %1786 = math.tanh %1785 : vector<1x256xf32>
    %c3_910 = arith.constant 3 : index
    %c0_911 = arith.constant 0 : index
    %1787 = memref.load %arg5[%c3_910, %c0_911] : memref<8x3xf32, #tpu.memory_space<smem>>
    %1788 = vector.broadcast %1787 : f32 to vector<1x256xf32>
    %1789 = arith.mulf %1788, %1641 : vector<1x256xf32>
    %c3_912 = arith.constant 3 : index
    %c1_913 = arith.constant 1 : index
    %1790 = memref.load %arg5[%c3_912, %c1_913] : memref<8x3xf32, #tpu.memory_space<smem>>
    %1791 = vector.broadcast %1790 : f32 to vector<1x256xf32>
    %1792 = arith.mulf %1791, %1685 : vector<1x256xf32>
    %1793 = arith.addf %1789, %1792 : vector<1x256xf32>
    %c3_914 = arith.constant 3 : index
    %c2_915 = arith.constant 2 : index
    %1794 = memref.load %arg5[%c3_914, %c2_915] : memref<8x3xf32, #tpu.memory_space<smem>>
    %1795 = vector.broadcast %1794 : f32 to vector<1x256xf32>
    %1796 = arith.mulf %1795, %1729 : vector<1x256xf32>
    %1797 = arith.addf %1793, %1796 : vector<1x256xf32>
    %c3_916 = arith.constant 3 : index
    %c0_917 = arith.constant 0 : index
    %1798 = memref.load %arg6[%c3_916, %c0_917] : memref<8x1xf32, #tpu.memory_space<smem>>
    %1799 = vector.broadcast %1798 : f32 to vector<1x256xf32>
    %1800 = arith.mulf %1799, %7 : vector<1x256xf32>
    %1801 = arith.addf %1797, %1800 : vector<1x256xf32>
    %c6_918 = arith.constant 6 : index
    %c3_919 = arith.constant 3 : index
    %1802 = memref.load %arg4[%c6_918, %c3_919] : memref<8x8xf32, #tpu.memory_space<smem>>
    %1803 = vector.broadcast %1802 : f32 to vector<1x256xf32>
    %1804 = arith.addf %1801, %1803 : vector<1x256xf32>
    %1805 = math.tanh %1804 : vector<1x256xf32>
    %c4_920 = arith.constant 4 : index
    %c0_921 = arith.constant 0 : index
    %1806 = memref.load %arg5[%c4_920, %c0_921] : memref<8x3xf32, #tpu.memory_space<smem>>
    %1807 = vector.broadcast %1806 : f32 to vector<1x256xf32>
    %1808 = arith.mulf %1807, %1641 : vector<1x256xf32>
    %c4_922 = arith.constant 4 : index
    %c1_923 = arith.constant 1 : index
    %1809 = memref.load %arg5[%c4_922, %c1_923] : memref<8x3xf32, #tpu.memory_space<smem>>
    %1810 = vector.broadcast %1809 : f32 to vector<1x256xf32>
    %1811 = arith.mulf %1810, %1685 : vector<1x256xf32>
    %1812 = arith.addf %1808, %1811 : vector<1x256xf32>
    %c4_924 = arith.constant 4 : index
    %c2_925 = arith.constant 2 : index
    %1813 = memref.load %arg5[%c4_924, %c2_925] : memref<8x3xf32, #tpu.memory_space<smem>>
    %1814 = vector.broadcast %1813 : f32 to vector<1x256xf32>
    %1815 = arith.mulf %1814, %1729 : vector<1x256xf32>
    %1816 = arith.addf %1812, %1815 : vector<1x256xf32>
    %c4_926 = arith.constant 4 : index
    %c0_927 = arith.constant 0 : index
    %1817 = memref.load %arg6[%c4_926, %c0_927] : memref<8x1xf32, #tpu.memory_space<smem>>
    %1818 = vector.broadcast %1817 : f32 to vector<1x256xf32>
    %1819 = arith.mulf %1818, %7 : vector<1x256xf32>
    %1820 = arith.addf %1816, %1819 : vector<1x256xf32>
    %c6_928 = arith.constant 6 : index
    %c4_929 = arith.constant 4 : index
    %1821 = memref.load %arg4[%c6_928, %c4_929] : memref<8x8xf32, #tpu.memory_space<smem>>
    %1822 = vector.broadcast %1821 : f32 to vector<1x256xf32>
    %1823 = arith.addf %1820, %1822 : vector<1x256xf32>
    %1824 = math.tanh %1823 : vector<1x256xf32>
    %c5_930 = arith.constant 5 : index
    %c0_931 = arith.constant 0 : index
    %1825 = memref.load %arg5[%c5_930, %c0_931] : memref<8x3xf32, #tpu.memory_space<smem>>
    %1826 = vector.broadcast %1825 : f32 to vector<1x256xf32>
    %1827 = arith.mulf %1826, %1641 : vector<1x256xf32>
    %c5_932 = arith.constant 5 : index
    %c1_933 = arith.constant 1 : index
    %1828 = memref.load %arg5[%c5_932, %c1_933] : memref<8x3xf32, #tpu.memory_space<smem>>
    %1829 = vector.broadcast %1828 : f32 to vector<1x256xf32>
    %1830 = arith.mulf %1829, %1685 : vector<1x256xf32>
    %1831 = arith.addf %1827, %1830 : vector<1x256xf32>
    %c5_934 = arith.constant 5 : index
    %c2_935 = arith.constant 2 : index
    %1832 = memref.load %arg5[%c5_934, %c2_935] : memref<8x3xf32, #tpu.memory_space<smem>>
    %1833 = vector.broadcast %1832 : f32 to vector<1x256xf32>
    %1834 = arith.mulf %1833, %1729 : vector<1x256xf32>
    %1835 = arith.addf %1831, %1834 : vector<1x256xf32>
    %c5_936 = arith.constant 5 : index
    %c0_937 = arith.constant 0 : index
    %1836 = memref.load %arg6[%c5_936, %c0_937] : memref<8x1xf32, #tpu.memory_space<smem>>
    %1837 = vector.broadcast %1836 : f32 to vector<1x256xf32>
    %1838 = arith.mulf %1837, %7 : vector<1x256xf32>
    %1839 = arith.addf %1835, %1838 : vector<1x256xf32>
    %c6_938 = arith.constant 6 : index
    %c5_939 = arith.constant 5 : index
    %1840 = memref.load %arg4[%c6_938, %c5_939] : memref<8x8xf32, #tpu.memory_space<smem>>
    %1841 = vector.broadcast %1840 : f32 to vector<1x256xf32>
    %1842 = arith.addf %1839, %1841 : vector<1x256xf32>
    %1843 = math.tanh %1842 : vector<1x256xf32>
    %c6_940 = arith.constant 6 : index
    %c0_941 = arith.constant 0 : index
    %1844 = memref.load %arg5[%c6_940, %c0_941] : memref<8x3xf32, #tpu.memory_space<smem>>
    %1845 = vector.broadcast %1844 : f32 to vector<1x256xf32>
    %1846 = arith.mulf %1845, %1641 : vector<1x256xf32>
    %c6_942 = arith.constant 6 : index
    %c1_943 = arith.constant 1 : index
    %1847 = memref.load %arg5[%c6_942, %c1_943] : memref<8x3xf32, #tpu.memory_space<smem>>
    %1848 = vector.broadcast %1847 : f32 to vector<1x256xf32>
    %1849 = arith.mulf %1848, %1685 : vector<1x256xf32>
    %1850 = arith.addf %1846, %1849 : vector<1x256xf32>
    %c6_944 = arith.constant 6 : index
    %c2_945 = arith.constant 2 : index
    %1851 = memref.load %arg5[%c6_944, %c2_945] : memref<8x3xf32, #tpu.memory_space<smem>>
    %1852 = vector.broadcast %1851 : f32 to vector<1x256xf32>
    %1853 = arith.mulf %1852, %1729 : vector<1x256xf32>
    %1854 = arith.addf %1850, %1853 : vector<1x256xf32>
    %c6_946 = arith.constant 6 : index
    %c0_947 = arith.constant 0 : index
    %1855 = memref.load %arg6[%c6_946, %c0_947] : memref<8x1xf32, #tpu.memory_space<smem>>
    %1856 = vector.broadcast %1855 : f32 to vector<1x256xf32>
    %1857 = arith.mulf %1856, %7 : vector<1x256xf32>
    %1858 = arith.addf %1854, %1857 : vector<1x256xf32>
    %c6_948 = arith.constant 6 : index
    %c6_949 = arith.constant 6 : index
    %1859 = memref.load %arg4[%c6_948, %c6_949] : memref<8x8xf32, #tpu.memory_space<smem>>
    %1860 = vector.broadcast %1859 : f32 to vector<1x256xf32>
    %1861 = arith.addf %1858, %1860 : vector<1x256xf32>
    %1862 = math.tanh %1861 : vector<1x256xf32>
    %c7_950 = arith.constant 7 : index
    %c0_951 = arith.constant 0 : index
    %1863 = memref.load %arg5[%c7_950, %c0_951] : memref<8x3xf32, #tpu.memory_space<smem>>
    %1864 = vector.broadcast %1863 : f32 to vector<1x256xf32>
    %1865 = arith.mulf %1864, %1641 : vector<1x256xf32>
    %c7_952 = arith.constant 7 : index
    %c1_953 = arith.constant 1 : index
    %1866 = memref.load %arg5[%c7_952, %c1_953] : memref<8x3xf32, #tpu.memory_space<smem>>
    %1867 = vector.broadcast %1866 : f32 to vector<1x256xf32>
    %1868 = arith.mulf %1867, %1685 : vector<1x256xf32>
    %1869 = arith.addf %1865, %1868 : vector<1x256xf32>
    %c7_954 = arith.constant 7 : index
    %c2_955 = arith.constant 2 : index
    %1870 = memref.load %arg5[%c7_954, %c2_955] : memref<8x3xf32, #tpu.memory_space<smem>>
    %1871 = vector.broadcast %1870 : f32 to vector<1x256xf32>
    %1872 = arith.mulf %1871, %1729 : vector<1x256xf32>
    %1873 = arith.addf %1869, %1872 : vector<1x256xf32>
    %c7_956 = arith.constant 7 : index
    %c0_957 = arith.constant 0 : index
    %1874 = memref.load %arg6[%c7_956, %c0_957] : memref<8x1xf32, #tpu.memory_space<smem>>
    %1875 = vector.broadcast %1874 : f32 to vector<1x256xf32>
    %1876 = arith.mulf %1875, %7 : vector<1x256xf32>
    %1877 = arith.addf %1873, %1876 : vector<1x256xf32>
    %c6_958 = arith.constant 6 : index
    %c7_959 = arith.constant 7 : index
    %1878 = memref.load %arg4[%c6_958, %c7_959] : memref<8x8xf32, #tpu.memory_space<smem>>
    %1879 = vector.broadcast %1878 : f32 to vector<1x256xf32>
    %1880 = arith.addf %1877, %1879 : vector<1x256xf32>
    %1881 = math.tanh %1880 : vector<1x256xf32>
    %c6_960 = arith.constant 6 : index
    %1882 = memref.load %arg1[%c6_960] : memref<8xf32, #tpu.memory_space<smem>>
    %c6_961 = arith.constant 6 : index
    %1883 = memref.load %arg2[%c6_961] : memref<8xf32, #tpu.memory_space<smem>>
    %c6_962 = arith.constant 6 : index
    %1884 = memref.load %arg3[%c6_962] : memref<8xf32, #tpu.memory_space<smem>>
    %c0_963 = arith.constant 0 : index
    %c0_964 = arith.constant 0 : index
    %1885 = memref.load %arg7[%c0_963, %c0_964] : memref<3x8xf32, #tpu.memory_space<smem>>
    %1886 = vector.broadcast %1885 : f32 to vector<1x256xf32>
    %1887 = arith.mulf %1886, %1748 : vector<1x256xf32>
    %c0_965 = arith.constant 0 : index
    %c1_966 = arith.constant 1 : index
    %1888 = memref.load %arg7[%c0_965, %c1_966] : memref<3x8xf32, #tpu.memory_space<smem>>
    %1889 = vector.broadcast %1888 : f32 to vector<1x256xf32>
    %1890 = arith.mulf %1889, %1767 : vector<1x256xf32>
    %1891 = arith.addf %1887, %1890 : vector<1x256xf32>
    %c0_967 = arith.constant 0 : index
    %c2_968 = arith.constant 2 : index
    %1892 = memref.load %arg7[%c0_967, %c2_968] : memref<3x8xf32, #tpu.memory_space<smem>>
    %1893 = vector.broadcast %1892 : f32 to vector<1x256xf32>
    %1894 = arith.mulf %1893, %1786 : vector<1x256xf32>
    %1895 = arith.addf %1891, %1894 : vector<1x256xf32>
    %c0_969 = arith.constant 0 : index
    %c3_970 = arith.constant 3 : index
    %1896 = memref.load %arg7[%c0_969, %c3_970] : memref<3x8xf32, #tpu.memory_space<smem>>
    %1897 = vector.broadcast %1896 : f32 to vector<1x256xf32>
    %1898 = arith.mulf %1897, %1805 : vector<1x256xf32>
    %1899 = arith.addf %1895, %1898 : vector<1x256xf32>
    %c0_971 = arith.constant 0 : index
    %c4_972 = arith.constant 4 : index
    %1900 = memref.load %arg7[%c0_971, %c4_972] : memref<3x8xf32, #tpu.memory_space<smem>>
    %1901 = vector.broadcast %1900 : f32 to vector<1x256xf32>
    %1902 = arith.mulf %1901, %1824 : vector<1x256xf32>
    %1903 = arith.addf %1899, %1902 : vector<1x256xf32>
    %c0_973 = arith.constant 0 : index
    %c5_974 = arith.constant 5 : index
    %1904 = memref.load %arg7[%c0_973, %c5_974] : memref<3x8xf32, #tpu.memory_space<smem>>
    %1905 = vector.broadcast %1904 : f32 to vector<1x256xf32>
    %1906 = arith.mulf %1905, %1843 : vector<1x256xf32>
    %1907 = arith.addf %1903, %1906 : vector<1x256xf32>
    %c0_975 = arith.constant 0 : index
    %c6_976 = arith.constant 6 : index
    %1908 = memref.load %arg7[%c0_975, %c6_976] : memref<3x8xf32, #tpu.memory_space<smem>>
    %1909 = vector.broadcast %1908 : f32 to vector<1x256xf32>
    %1910 = arith.mulf %1909, %1862 : vector<1x256xf32>
    %1911 = arith.addf %1907, %1910 : vector<1x256xf32>
    %c0_977 = arith.constant 0 : index
    %c7_978 = arith.constant 7 : index
    %1912 = memref.load %arg7[%c0_977, %c7_978] : memref<3x8xf32, #tpu.memory_space<smem>>
    %1913 = vector.broadcast %1912 : f32 to vector<1x256xf32>
    %1914 = arith.mulf %1913, %1881 : vector<1x256xf32>
    %1915 = arith.addf %1911, %1914 : vector<1x256xf32>
    %c0_979 = arith.constant 0 : index
    %1916 = memref.load %arg8[%c0_979] : memref<3xf32, #tpu.memory_space<smem>>
    %1917 = vector.broadcast %1916 : f32 to vector<1x256xf32>
    %1918 = arith.addf %1915, %1917 : vector<1x256xf32>
    %1919 = vector.broadcast %1882 : f32 to vector<1x256xf32>
    %1920 = arith.mulf %1919, %1641 : vector<1x256xf32>
    %1921 = vector.broadcast %1883 : f32 to vector<1x256xf32>
    %1922 = arith.mulf %1921, %1918 : vector<1x256xf32>
    %1923 = arith.subf %1920, %1922 : vector<1x256xf32>
    %c0_980 = arith.constant 0 : index
    %c6_981 = arith.constant 6 : index
    %c0_982 = arith.constant 0 : index
    %c0_983 = arith.constant 0 : index
    %1924 = vector.load %arg11[%c0_980, %c6_981, %c0_982, %c0_983] : memref<1x8x3x256xf32, #tpu.memory_space<vmem>>, vector<1x1x1x256xf32>
    %1925 = vector.shape_cast %1924 : vector<1x1x1x256xf32> to vector<1x256xf32>
    %1926 = vector.broadcast %1884 : f32 to vector<1x256xf32>
    %1927 = arith.mulf %1926, %1925 : vector<1x256xf32>
    %1928 = arith.addf %1923, %1927 : vector<1x256xf32>
    %c1_984 = arith.constant 1 : index
    %c0_985 = arith.constant 0 : index
    %1929 = memref.load %arg7[%c1_984, %c0_985] : memref<3x8xf32, #tpu.memory_space<smem>>
    %1930 = vector.broadcast %1929 : f32 to vector<1x256xf32>
    %1931 = arith.mulf %1930, %1748 : vector<1x256xf32>
    %c1_986 = arith.constant 1 : index
    %c1_987 = arith.constant 1 : index
    %1932 = memref.load %arg7[%c1_986, %c1_987] : memref<3x8xf32, #tpu.memory_space<smem>>
    %1933 = vector.broadcast %1932 : f32 to vector<1x256xf32>
    %1934 = arith.mulf %1933, %1767 : vector<1x256xf32>
    %1935 = arith.addf %1931, %1934 : vector<1x256xf32>
    %c1_988 = arith.constant 1 : index
    %c2_989 = arith.constant 2 : index
    %1936 = memref.load %arg7[%c1_988, %c2_989] : memref<3x8xf32, #tpu.memory_space<smem>>
    %1937 = vector.broadcast %1936 : f32 to vector<1x256xf32>
    %1938 = arith.mulf %1937, %1786 : vector<1x256xf32>
    %1939 = arith.addf %1935, %1938 : vector<1x256xf32>
    %c1_990 = arith.constant 1 : index
    %c3_991 = arith.constant 3 : index
    %1940 = memref.load %arg7[%c1_990, %c3_991] : memref<3x8xf32, #tpu.memory_space<smem>>
    %1941 = vector.broadcast %1940 : f32 to vector<1x256xf32>
    %1942 = arith.mulf %1941, %1805 : vector<1x256xf32>
    %1943 = arith.addf %1939, %1942 : vector<1x256xf32>
    %c1_992 = arith.constant 1 : index
    %c4_993 = arith.constant 4 : index
    %1944 = memref.load %arg7[%c1_992, %c4_993] : memref<3x8xf32, #tpu.memory_space<smem>>
    %1945 = vector.broadcast %1944 : f32 to vector<1x256xf32>
    %1946 = arith.mulf %1945, %1824 : vector<1x256xf32>
    %1947 = arith.addf %1943, %1946 : vector<1x256xf32>
    %c1_994 = arith.constant 1 : index
    %c5_995 = arith.constant 5 : index
    %1948 = memref.load %arg7[%c1_994, %c5_995] : memref<3x8xf32, #tpu.memory_space<smem>>
    %1949 = vector.broadcast %1948 : f32 to vector<1x256xf32>
    %1950 = arith.mulf %1949, %1843 : vector<1x256xf32>
    %1951 = arith.addf %1947, %1950 : vector<1x256xf32>
    %c1_996 = arith.constant 1 : index
    %c6_997 = arith.constant 6 : index
    %1952 = memref.load %arg7[%c1_996, %c6_997] : memref<3x8xf32, #tpu.memory_space<smem>>
    %1953 = vector.broadcast %1952 : f32 to vector<1x256xf32>
    %1954 = arith.mulf %1953, %1862 : vector<1x256xf32>
    %1955 = arith.addf %1951, %1954 : vector<1x256xf32>
    %c1_998 = arith.constant 1 : index
    %c7_999 = arith.constant 7 : index
    %1956 = memref.load %arg7[%c1_998, %c7_999] : memref<3x8xf32, #tpu.memory_space<smem>>
    %1957 = vector.broadcast %1956 : f32 to vector<1x256xf32>
    %1958 = arith.mulf %1957, %1881 : vector<1x256xf32>
    %1959 = arith.addf %1955, %1958 : vector<1x256xf32>
    %c1_1000 = arith.constant 1 : index
    %1960 = memref.load %arg8[%c1_1000] : memref<3xf32, #tpu.memory_space<smem>>
    %1961 = vector.broadcast %1960 : f32 to vector<1x256xf32>
    %1962 = arith.addf %1959, %1961 : vector<1x256xf32>
    %1963 = vector.broadcast %1882 : f32 to vector<1x256xf32>
    %1964 = arith.mulf %1963, %1685 : vector<1x256xf32>
    %1965 = vector.broadcast %1883 : f32 to vector<1x256xf32>
    %1966 = arith.mulf %1965, %1962 : vector<1x256xf32>
    %1967 = arith.subf %1964, %1966 : vector<1x256xf32>
    %c0_1001 = arith.constant 0 : index
    %c6_1002 = arith.constant 6 : index
    %c1_1003 = arith.constant 1 : index
    %c0_1004 = arith.constant 0 : index
    %1968 = vector.load %arg11[%c0_1001, %c6_1002, %c1_1003, %c0_1004] : memref<1x8x3x256xf32, #tpu.memory_space<vmem>>, vector<1x1x1x256xf32>
    %1969 = vector.shape_cast %1968 : vector<1x1x1x256xf32> to vector<1x256xf32>
    %1970 = vector.broadcast %1884 : f32 to vector<1x256xf32>
    %1971 = arith.mulf %1970, %1969 : vector<1x256xf32>
    %1972 = arith.addf %1967, %1971 : vector<1x256xf32>
    %c2_1005 = arith.constant 2 : index
    %c0_1006 = arith.constant 0 : index
    %1973 = memref.load %arg7[%c2_1005, %c0_1006] : memref<3x8xf32, #tpu.memory_space<smem>>
    %1974 = vector.broadcast %1973 : f32 to vector<1x256xf32>
    %1975 = arith.mulf %1974, %1748 : vector<1x256xf32>
    %c2_1007 = arith.constant 2 : index
    %c1_1008 = arith.constant 1 : index
    %1976 = memref.load %arg7[%c2_1007, %c1_1008] : memref<3x8xf32, #tpu.memory_space<smem>>
    %1977 = vector.broadcast %1976 : f32 to vector<1x256xf32>
    %1978 = arith.mulf %1977, %1767 : vector<1x256xf32>
    %1979 = arith.addf %1975, %1978 : vector<1x256xf32>
    %c2_1009 = arith.constant 2 : index
    %c2_1010 = arith.constant 2 : index
    %1980 = memref.load %arg7[%c2_1009, %c2_1010] : memref<3x8xf32, #tpu.memory_space<smem>>
    %1981 = vector.broadcast %1980 : f32 to vector<1x256xf32>
    %1982 = arith.mulf %1981, %1786 : vector<1x256xf32>
    %1983 = arith.addf %1979, %1982 : vector<1x256xf32>
    %c2_1011 = arith.constant 2 : index
    %c3_1012 = arith.constant 3 : index
    %1984 = memref.load %arg7[%c2_1011, %c3_1012] : memref<3x8xf32, #tpu.memory_space<smem>>
    %1985 = vector.broadcast %1984 : f32 to vector<1x256xf32>
    %1986 = arith.mulf %1985, %1805 : vector<1x256xf32>
    %1987 = arith.addf %1983, %1986 : vector<1x256xf32>
    %c2_1013 = arith.constant 2 : index
    %c4_1014 = arith.constant 4 : index
    %1988 = memref.load %arg7[%c2_1013, %c4_1014] : memref<3x8xf32, #tpu.memory_space<smem>>
    %1989 = vector.broadcast %1988 : f32 to vector<1x256xf32>
    %1990 = arith.mulf %1989, %1824 : vector<1x256xf32>
    %1991 = arith.addf %1987, %1990 : vector<1x256xf32>
    %c2_1015 = arith.constant 2 : index
    %c5_1016 = arith.constant 5 : index
    %1992 = memref.load %arg7[%c2_1015, %c5_1016] : memref<3x8xf32, #tpu.memory_space<smem>>
    %1993 = vector.broadcast %1992 : f32 to vector<1x256xf32>
    %1994 = arith.mulf %1993, %1843 : vector<1x256xf32>
    %1995 = arith.addf %1991, %1994 : vector<1x256xf32>
    %c2_1017 = arith.constant 2 : index
    %c6_1018 = arith.constant 6 : index
    %1996 = memref.load %arg7[%c2_1017, %c6_1018] : memref<3x8xf32, #tpu.memory_space<smem>>
    %1997 = vector.broadcast %1996 : f32 to vector<1x256xf32>
    %1998 = arith.mulf %1997, %1862 : vector<1x256xf32>
    %1999 = arith.addf %1995, %1998 : vector<1x256xf32>
    %c2_1019 = arith.constant 2 : index
    %c7_1020 = arith.constant 7 : index
    %2000 = memref.load %arg7[%c2_1019, %c7_1020] : memref<3x8xf32, #tpu.memory_space<smem>>
    %2001 = vector.broadcast %2000 : f32 to vector<1x256xf32>
    %2002 = arith.mulf %2001, %1881 : vector<1x256xf32>
    %2003 = arith.addf %1999, %2002 : vector<1x256xf32>
    %c2_1021 = arith.constant 2 : index
    %2004 = memref.load %arg8[%c2_1021] : memref<3xf32, #tpu.memory_space<smem>>
    %2005 = vector.broadcast %2004 : f32 to vector<1x256xf32>
    %2006 = arith.addf %2003, %2005 : vector<1x256xf32>
    %2007 = vector.broadcast %1882 : f32 to vector<1x256xf32>
    %2008 = arith.mulf %2007, %1729 : vector<1x256xf32>
    %2009 = vector.broadcast %1883 : f32 to vector<1x256xf32>
    %2010 = arith.mulf %2009, %2006 : vector<1x256xf32>
    %2011 = arith.subf %2008, %2010 : vector<1x256xf32>
    %c0_1022 = arith.constant 0 : index
    %c6_1023 = arith.constant 6 : index
    %c2_1024 = arith.constant 2 : index
    %c0_1025 = arith.constant 0 : index
    %2012 = vector.load %arg11[%c0_1022, %c6_1023, %c2_1024, %c0_1025] : memref<1x8x3x256xf32, #tpu.memory_space<vmem>>, vector<1x1x1x256xf32>
    %2013 = vector.shape_cast %2012 : vector<1x1x1x256xf32> to vector<1x256xf32>
    %2014 = vector.broadcast %1884 : f32 to vector<1x256xf32>
    %2015 = arith.mulf %2014, %2013 : vector<1x256xf32>
    %2016 = arith.addf %2011, %2015 : vector<1x256xf32>
    %c0_1026 = arith.constant 0 : index
    %c0_1027 = arith.constant 0 : index
    %2017 = memref.load %arg5[%c0_1026, %c0_1027] : memref<8x3xf32, #tpu.memory_space<smem>>
    %2018 = vector.broadcast %2017 : f32 to vector<1x256xf32>
    %2019 = arith.mulf %2018, %1928 : vector<1x256xf32>
    %c0_1028 = arith.constant 0 : index
    %c1_1029 = arith.constant 1 : index
    %2020 = memref.load %arg5[%c0_1028, %c1_1029] : memref<8x3xf32, #tpu.memory_space<smem>>
    %2021 = vector.broadcast %2020 : f32 to vector<1x256xf32>
    %2022 = arith.mulf %2021, %1972 : vector<1x256xf32>
    %2023 = arith.addf %2019, %2022 : vector<1x256xf32>
    %c0_1030 = arith.constant 0 : index
    %c2_1031 = arith.constant 2 : index
    %2024 = memref.load %arg5[%c0_1030, %c2_1031] : memref<8x3xf32, #tpu.memory_space<smem>>
    %2025 = vector.broadcast %2024 : f32 to vector<1x256xf32>
    %2026 = arith.mulf %2025, %2016 : vector<1x256xf32>
    %2027 = arith.addf %2023, %2026 : vector<1x256xf32>
    %c0_1032 = arith.constant 0 : index
    %c0_1033 = arith.constant 0 : index
    %2028 = memref.load %arg6[%c0_1032, %c0_1033] : memref<8x1xf32, #tpu.memory_space<smem>>
    %2029 = vector.broadcast %2028 : f32 to vector<1x256xf32>
    %2030 = arith.mulf %2029, %7 : vector<1x256xf32>
    %2031 = arith.addf %2027, %2030 : vector<1x256xf32>
    %c7_1034 = arith.constant 7 : index
    %c0_1035 = arith.constant 0 : index
    %2032 = memref.load %arg4[%c7_1034, %c0_1035] : memref<8x8xf32, #tpu.memory_space<smem>>
    %2033 = vector.broadcast %2032 : f32 to vector<1x256xf32>
    %2034 = arith.addf %2031, %2033 : vector<1x256xf32>
    %2035 = math.tanh %2034 : vector<1x256xf32>
    %c1_1036 = arith.constant 1 : index
    %c0_1037 = arith.constant 0 : index
    %2036 = memref.load %arg5[%c1_1036, %c0_1037] : memref<8x3xf32, #tpu.memory_space<smem>>
    %2037 = vector.broadcast %2036 : f32 to vector<1x256xf32>
    %2038 = arith.mulf %2037, %1928 : vector<1x256xf32>
    %c1_1038 = arith.constant 1 : index
    %c1_1039 = arith.constant 1 : index
    %2039 = memref.load %arg5[%c1_1038, %c1_1039] : memref<8x3xf32, #tpu.memory_space<smem>>
    %2040 = vector.broadcast %2039 : f32 to vector<1x256xf32>
    %2041 = arith.mulf %2040, %1972 : vector<1x256xf32>
    %2042 = arith.addf %2038, %2041 : vector<1x256xf32>
    %c1_1040 = arith.constant 1 : index
    %c2_1041 = arith.constant 2 : index
    %2043 = memref.load %arg5[%c1_1040, %c2_1041] : memref<8x3xf32, #tpu.memory_space<smem>>
    %2044 = vector.broadcast %2043 : f32 to vector<1x256xf32>
    %2045 = arith.mulf %2044, %2016 : vector<1x256xf32>
    %2046 = arith.addf %2042, %2045 : vector<1x256xf32>
    %c1_1042 = arith.constant 1 : index
    %c0_1043 = arith.constant 0 : index
    %2047 = memref.load %arg6[%c1_1042, %c0_1043] : memref<8x1xf32, #tpu.memory_space<smem>>
    %2048 = vector.broadcast %2047 : f32 to vector<1x256xf32>
    %2049 = arith.mulf %2048, %7 : vector<1x256xf32>
    %2050 = arith.addf %2046, %2049 : vector<1x256xf32>
    %c7_1044 = arith.constant 7 : index
    %c1_1045 = arith.constant 1 : index
    %2051 = memref.load %arg4[%c7_1044, %c1_1045] : memref<8x8xf32, #tpu.memory_space<smem>>
    %2052 = vector.broadcast %2051 : f32 to vector<1x256xf32>
    %2053 = arith.addf %2050, %2052 : vector<1x256xf32>
    %2054 = math.tanh %2053 : vector<1x256xf32>
    %c2_1046 = arith.constant 2 : index
    %c0_1047 = arith.constant 0 : index
    %2055 = memref.load %arg5[%c2_1046, %c0_1047] : memref<8x3xf32, #tpu.memory_space<smem>>
    %2056 = vector.broadcast %2055 : f32 to vector<1x256xf32>
    %2057 = arith.mulf %2056, %1928 : vector<1x256xf32>
    %c2_1048 = arith.constant 2 : index
    %c1_1049 = arith.constant 1 : index
    %2058 = memref.load %arg5[%c2_1048, %c1_1049] : memref<8x3xf32, #tpu.memory_space<smem>>
    %2059 = vector.broadcast %2058 : f32 to vector<1x256xf32>
    %2060 = arith.mulf %2059, %1972 : vector<1x256xf32>
    %2061 = arith.addf %2057, %2060 : vector<1x256xf32>
    %c2_1050 = arith.constant 2 : index
    %c2_1051 = arith.constant 2 : index
    %2062 = memref.load %arg5[%c2_1050, %c2_1051] : memref<8x3xf32, #tpu.memory_space<smem>>
    %2063 = vector.broadcast %2062 : f32 to vector<1x256xf32>
    %2064 = arith.mulf %2063, %2016 : vector<1x256xf32>
    %2065 = arith.addf %2061, %2064 : vector<1x256xf32>
    %c2_1052 = arith.constant 2 : index
    %c0_1053 = arith.constant 0 : index
    %2066 = memref.load %arg6[%c2_1052, %c0_1053] : memref<8x1xf32, #tpu.memory_space<smem>>
    %2067 = vector.broadcast %2066 : f32 to vector<1x256xf32>
    %2068 = arith.mulf %2067, %7 : vector<1x256xf32>
    %2069 = arith.addf %2065, %2068 : vector<1x256xf32>
    %c7_1054 = arith.constant 7 : index
    %c2_1055 = arith.constant 2 : index
    %2070 = memref.load %arg4[%c7_1054, %c2_1055] : memref<8x8xf32, #tpu.memory_space<smem>>
    %2071 = vector.broadcast %2070 : f32 to vector<1x256xf32>
    %2072 = arith.addf %2069, %2071 : vector<1x256xf32>
    %2073 = math.tanh %2072 : vector<1x256xf32>
    %c3_1056 = arith.constant 3 : index
    %c0_1057 = arith.constant 0 : index
    %2074 = memref.load %arg5[%c3_1056, %c0_1057] : memref<8x3xf32, #tpu.memory_space<smem>>
    %2075 = vector.broadcast %2074 : f32 to vector<1x256xf32>
    %2076 = arith.mulf %2075, %1928 : vector<1x256xf32>
    %c3_1058 = arith.constant 3 : index
    %c1_1059 = arith.constant 1 : index
    %2077 = memref.load %arg5[%c3_1058, %c1_1059] : memref<8x3xf32, #tpu.memory_space<smem>>
    %2078 = vector.broadcast %2077 : f32 to vector<1x256xf32>
    %2079 = arith.mulf %2078, %1972 : vector<1x256xf32>
    %2080 = arith.addf %2076, %2079 : vector<1x256xf32>
    %c3_1060 = arith.constant 3 : index
    %c2_1061 = arith.constant 2 : index
    %2081 = memref.load %arg5[%c3_1060, %c2_1061] : memref<8x3xf32, #tpu.memory_space<smem>>
    %2082 = vector.broadcast %2081 : f32 to vector<1x256xf32>
    %2083 = arith.mulf %2082, %2016 : vector<1x256xf32>
    %2084 = arith.addf %2080, %2083 : vector<1x256xf32>
    %c3_1062 = arith.constant 3 : index
    %c0_1063 = arith.constant 0 : index
    %2085 = memref.load %arg6[%c3_1062, %c0_1063] : memref<8x1xf32, #tpu.memory_space<smem>>
    %2086 = vector.broadcast %2085 : f32 to vector<1x256xf32>
    %2087 = arith.mulf %2086, %7 : vector<1x256xf32>
    %2088 = arith.addf %2084, %2087 : vector<1x256xf32>
    %c7_1064 = arith.constant 7 : index
    %c3_1065 = arith.constant 3 : index
    %2089 = memref.load %arg4[%c7_1064, %c3_1065] : memref<8x8xf32, #tpu.memory_space<smem>>
    %2090 = vector.broadcast %2089 : f32 to vector<1x256xf32>
    %2091 = arith.addf %2088, %2090 : vector<1x256xf32>
    %2092 = math.tanh %2091 : vector<1x256xf32>
    %c4_1066 = arith.constant 4 : index
    %c0_1067 = arith.constant 0 : index
    %2093 = memref.load %arg5[%c4_1066, %c0_1067] : memref<8x3xf32, #tpu.memory_space<smem>>
    %2094 = vector.broadcast %2093 : f32 to vector<1x256xf32>
    %2095 = arith.mulf %2094, %1928 : vector<1x256xf32>
    %c4_1068 = arith.constant 4 : index
    %c1_1069 = arith.constant 1 : index
    %2096 = memref.load %arg5[%c4_1068, %c1_1069] : memref<8x3xf32, #tpu.memory_space<smem>>
    %2097 = vector.broadcast %2096 : f32 to vector<1x256xf32>
    %2098 = arith.mulf %2097, %1972 : vector<1x256xf32>
    %2099 = arith.addf %2095, %2098 : vector<1x256xf32>
    %c4_1070 = arith.constant 4 : index
    %c2_1071 = arith.constant 2 : index
    %2100 = memref.load %arg5[%c4_1070, %c2_1071] : memref<8x3xf32, #tpu.memory_space<smem>>
    %2101 = vector.broadcast %2100 : f32 to vector<1x256xf32>
    %2102 = arith.mulf %2101, %2016 : vector<1x256xf32>
    %2103 = arith.addf %2099, %2102 : vector<1x256xf32>
    %c4_1072 = arith.constant 4 : index
    %c0_1073 = arith.constant 0 : index
    %2104 = memref.load %arg6[%c4_1072, %c0_1073] : memref<8x1xf32, #tpu.memory_space<smem>>
    %2105 = vector.broadcast %2104 : f32 to vector<1x256xf32>
    %2106 = arith.mulf %2105, %7 : vector<1x256xf32>
    %2107 = arith.addf %2103, %2106 : vector<1x256xf32>
    %c7_1074 = arith.constant 7 : index
    %c4_1075 = arith.constant 4 : index
    %2108 = memref.load %arg4[%c7_1074, %c4_1075] : memref<8x8xf32, #tpu.memory_space<smem>>
    %2109 = vector.broadcast %2108 : f32 to vector<1x256xf32>
    %2110 = arith.addf %2107, %2109 : vector<1x256xf32>
    %2111 = math.tanh %2110 : vector<1x256xf32>
    %c5_1076 = arith.constant 5 : index
    %c0_1077 = arith.constant 0 : index
    %2112 = memref.load %arg5[%c5_1076, %c0_1077] : memref<8x3xf32, #tpu.memory_space<smem>>
    %2113 = vector.broadcast %2112 : f32 to vector<1x256xf32>
    %2114 = arith.mulf %2113, %1928 : vector<1x256xf32>
    %c5_1078 = arith.constant 5 : index
    %c1_1079 = arith.constant 1 : index
    %2115 = memref.load %arg5[%c5_1078, %c1_1079] : memref<8x3xf32, #tpu.memory_space<smem>>
    %2116 = vector.broadcast %2115 : f32 to vector<1x256xf32>
    %2117 = arith.mulf %2116, %1972 : vector<1x256xf32>
    %2118 = arith.addf %2114, %2117 : vector<1x256xf32>
    %c5_1080 = arith.constant 5 : index
    %c2_1081 = arith.constant 2 : index
    %2119 = memref.load %arg5[%c5_1080, %c2_1081] : memref<8x3xf32, #tpu.memory_space<smem>>
    %2120 = vector.broadcast %2119 : f32 to vector<1x256xf32>
    %2121 = arith.mulf %2120, %2016 : vector<1x256xf32>
    %2122 = arith.addf %2118, %2121 : vector<1x256xf32>
    %c5_1082 = arith.constant 5 : index
    %c0_1083 = arith.constant 0 : index
    %2123 = memref.load %arg6[%c5_1082, %c0_1083] : memref<8x1xf32, #tpu.memory_space<smem>>
    %2124 = vector.broadcast %2123 : f32 to vector<1x256xf32>
    %2125 = arith.mulf %2124, %7 : vector<1x256xf32>
    %2126 = arith.addf %2122, %2125 : vector<1x256xf32>
    %c7_1084 = arith.constant 7 : index
    %c5_1085 = arith.constant 5 : index
    %2127 = memref.load %arg4[%c7_1084, %c5_1085] : memref<8x8xf32, #tpu.memory_space<smem>>
    %2128 = vector.broadcast %2127 : f32 to vector<1x256xf32>
    %2129 = arith.addf %2126, %2128 : vector<1x256xf32>
    %2130 = math.tanh %2129 : vector<1x256xf32>
    %c6_1086 = arith.constant 6 : index
    %c0_1087 = arith.constant 0 : index
    %2131 = memref.load %arg5[%c6_1086, %c0_1087] : memref<8x3xf32, #tpu.memory_space<smem>>
    %2132 = vector.broadcast %2131 : f32 to vector<1x256xf32>
    %2133 = arith.mulf %2132, %1928 : vector<1x256xf32>
    %c6_1088 = arith.constant 6 : index
    %c1_1089 = arith.constant 1 : index
    %2134 = memref.load %arg5[%c6_1088, %c1_1089] : memref<8x3xf32, #tpu.memory_space<smem>>
    %2135 = vector.broadcast %2134 : f32 to vector<1x256xf32>
    %2136 = arith.mulf %2135, %1972 : vector<1x256xf32>
    %2137 = arith.addf %2133, %2136 : vector<1x256xf32>
    %c6_1090 = arith.constant 6 : index
    %c2_1091 = arith.constant 2 : index
    %2138 = memref.load %arg5[%c6_1090, %c2_1091] : memref<8x3xf32, #tpu.memory_space<smem>>
    %2139 = vector.broadcast %2138 : f32 to vector<1x256xf32>
    %2140 = arith.mulf %2139, %2016 : vector<1x256xf32>
    %2141 = arith.addf %2137, %2140 : vector<1x256xf32>
    %c6_1092 = arith.constant 6 : index
    %c0_1093 = arith.constant 0 : index
    %2142 = memref.load %arg6[%c6_1092, %c0_1093] : memref<8x1xf32, #tpu.memory_space<smem>>
    %2143 = vector.broadcast %2142 : f32 to vector<1x256xf32>
    %2144 = arith.mulf %2143, %7 : vector<1x256xf32>
    %2145 = arith.addf %2141, %2144 : vector<1x256xf32>
    %c7_1094 = arith.constant 7 : index
    %c6_1095 = arith.constant 6 : index
    %2146 = memref.load %arg4[%c7_1094, %c6_1095] : memref<8x8xf32, #tpu.memory_space<smem>>
    %2147 = vector.broadcast %2146 : f32 to vector<1x256xf32>
    %2148 = arith.addf %2145, %2147 : vector<1x256xf32>
    %2149 = math.tanh %2148 : vector<1x256xf32>
    %c7_1096 = arith.constant 7 : index
    %c0_1097 = arith.constant 0 : index
    %2150 = memref.load %arg5[%c7_1096, %c0_1097] : memref<8x3xf32, #tpu.memory_space<smem>>
    %2151 = vector.broadcast %2150 : f32 to vector<1x256xf32>
    %2152 = arith.mulf %2151, %1928 : vector<1x256xf32>
    %c7_1098 = arith.constant 7 : index
    %c1_1099 = arith.constant 1 : index
    %2153 = memref.load %arg5[%c7_1098, %c1_1099] : memref<8x3xf32, #tpu.memory_space<smem>>
    %2154 = vector.broadcast %2153 : f32 to vector<1x256xf32>
    %2155 = arith.mulf %2154, %1972 : vector<1x256xf32>
    %2156 = arith.addf %2152, %2155 : vector<1x256xf32>
    %c7_1100 = arith.constant 7 : index
    %c2_1101 = arith.constant 2 : index
    %2157 = memref.load %arg5[%c7_1100, %c2_1101] : memref<8x3xf32, #tpu.memory_space<smem>>
    %2158 = vector.broadcast %2157 : f32 to vector<1x256xf32>
    %2159 = arith.mulf %2158, %2016 : vector<1x256xf32>
    %2160 = arith.addf %2156, %2159 : vector<1x256xf32>
    %c7_1102 = arith.constant 7 : index
    %c0_1103 = arith.constant 0 : index
    %2161 = memref.load %arg6[%c7_1102, %c0_1103] : memref<8x1xf32, #tpu.memory_space<smem>>
    %2162 = vector.broadcast %2161 : f32 to vector<1x256xf32>
    %2163 = arith.mulf %2162, %7 : vector<1x256xf32>
    %2164 = arith.addf %2160, %2163 : vector<1x256xf32>
    %c7_1104 = arith.constant 7 : index
    %c7_1105 = arith.constant 7 : index
    %2165 = memref.load %arg4[%c7_1104, %c7_1105] : memref<8x8xf32, #tpu.memory_space<smem>>
    %2166 = vector.broadcast %2165 : f32 to vector<1x256xf32>
    %2167 = arith.addf %2164, %2166 : vector<1x256xf32>
    %2168 = math.tanh %2167 : vector<1x256xf32>
    %c7_1106 = arith.constant 7 : index
    %2169 = memref.load %arg1[%c7_1106] : memref<8xf32, #tpu.memory_space<smem>>
    %c7_1107 = arith.constant 7 : index
    %2170 = memref.load %arg2[%c7_1107] : memref<8xf32, #tpu.memory_space<smem>>
    %c7_1108 = arith.constant 7 : index
    %2171 = memref.load %arg3[%c7_1108] : memref<8xf32, #tpu.memory_space<smem>>
    %c0_1109 = arith.constant 0 : index
    %c0_1110 = arith.constant 0 : index
    %2172 = memref.load %arg7[%c0_1109, %c0_1110] : memref<3x8xf32, #tpu.memory_space<smem>>
    %2173 = vector.broadcast %2172 : f32 to vector<1x256xf32>
    %2174 = arith.mulf %2173, %2035 : vector<1x256xf32>
    %c0_1111 = arith.constant 0 : index
    %c1_1112 = arith.constant 1 : index
    %2175 = memref.load %arg7[%c0_1111, %c1_1112] : memref<3x8xf32, #tpu.memory_space<smem>>
    %2176 = vector.broadcast %2175 : f32 to vector<1x256xf32>
    %2177 = arith.mulf %2176, %2054 : vector<1x256xf32>
    %2178 = arith.addf %2174, %2177 : vector<1x256xf32>
    %c0_1113 = arith.constant 0 : index
    %c2_1114 = arith.constant 2 : index
    %2179 = memref.load %arg7[%c0_1113, %c2_1114] : memref<3x8xf32, #tpu.memory_space<smem>>
    %2180 = vector.broadcast %2179 : f32 to vector<1x256xf32>
    %2181 = arith.mulf %2180, %2073 : vector<1x256xf32>
    %2182 = arith.addf %2178, %2181 : vector<1x256xf32>
    %c0_1115 = arith.constant 0 : index
    %c3_1116 = arith.constant 3 : index
    %2183 = memref.load %arg7[%c0_1115, %c3_1116] : memref<3x8xf32, #tpu.memory_space<smem>>
    %2184 = vector.broadcast %2183 : f32 to vector<1x256xf32>
    %2185 = arith.mulf %2184, %2092 : vector<1x256xf32>
    %2186 = arith.addf %2182, %2185 : vector<1x256xf32>
    %c0_1117 = arith.constant 0 : index
    %c4_1118 = arith.constant 4 : index
    %2187 = memref.load %arg7[%c0_1117, %c4_1118] : memref<3x8xf32, #tpu.memory_space<smem>>
    %2188 = vector.broadcast %2187 : f32 to vector<1x256xf32>
    %2189 = arith.mulf %2188, %2111 : vector<1x256xf32>
    %2190 = arith.addf %2186, %2189 : vector<1x256xf32>
    %c0_1119 = arith.constant 0 : index
    %c5_1120 = arith.constant 5 : index
    %2191 = memref.load %arg7[%c0_1119, %c5_1120] : memref<3x8xf32, #tpu.memory_space<smem>>
    %2192 = vector.broadcast %2191 : f32 to vector<1x256xf32>
    %2193 = arith.mulf %2192, %2130 : vector<1x256xf32>
    %2194 = arith.addf %2190, %2193 : vector<1x256xf32>
    %c0_1121 = arith.constant 0 : index
    %c6_1122 = arith.constant 6 : index
    %2195 = memref.load %arg7[%c0_1121, %c6_1122] : memref<3x8xf32, #tpu.memory_space<smem>>
    %2196 = vector.broadcast %2195 : f32 to vector<1x256xf32>
    %2197 = arith.mulf %2196, %2149 : vector<1x256xf32>
    %2198 = arith.addf %2194, %2197 : vector<1x256xf32>
    %c0_1123 = arith.constant 0 : index
    %c7_1124 = arith.constant 7 : index
    %2199 = memref.load %arg7[%c0_1123, %c7_1124] : memref<3x8xf32, #tpu.memory_space<smem>>
    %2200 = vector.broadcast %2199 : f32 to vector<1x256xf32>
    %2201 = arith.mulf %2200, %2168 : vector<1x256xf32>
    %2202 = arith.addf %2198, %2201 : vector<1x256xf32>
    %c0_1125 = arith.constant 0 : index
    %2203 = memref.load %arg8[%c0_1125] : memref<3xf32, #tpu.memory_space<smem>>
    %2204 = vector.broadcast %2203 : f32 to vector<1x256xf32>
    %2205 = arith.addf %2202, %2204 : vector<1x256xf32>
    %2206 = vector.broadcast %2169 : f32 to vector<1x256xf32>
    %2207 = arith.mulf %2206, %1928 : vector<1x256xf32>
    %2208 = vector.broadcast %2170 : f32 to vector<1x256xf32>
    %2209 = arith.mulf %2208, %2205 : vector<1x256xf32>
    %2210 = arith.subf %2207, %2209 : vector<1x256xf32>
    %c0_1126 = arith.constant 0 : index
    %c7_1127 = arith.constant 7 : index
    %c0_1128 = arith.constant 0 : index
    %c0_1129 = arith.constant 0 : index
    %2211 = vector.load %arg11[%c0_1126, %c7_1127, %c0_1128, %c0_1129] : memref<1x8x3x256xf32, #tpu.memory_space<vmem>>, vector<1x1x1x256xf32>
    %2212 = vector.shape_cast %2211 : vector<1x1x1x256xf32> to vector<1x256xf32>
    %2213 = vector.broadcast %2171 : f32 to vector<1x256xf32>
    %2214 = arith.mulf %2213, %2212 : vector<1x256xf32>
    %2215 = arith.addf %2210, %2214 : vector<1x256xf32>
    %c1_1130 = arith.constant 1 : index
    %c0_1131 = arith.constant 0 : index
    %2216 = memref.load %arg7[%c1_1130, %c0_1131] : memref<3x8xf32, #tpu.memory_space<smem>>
    %2217 = vector.broadcast %2216 : f32 to vector<1x256xf32>
    %2218 = arith.mulf %2217, %2035 : vector<1x256xf32>
    %c1_1132 = arith.constant 1 : index
    %c1_1133 = arith.constant 1 : index
    %2219 = memref.load %arg7[%c1_1132, %c1_1133] : memref<3x8xf32, #tpu.memory_space<smem>>
    %2220 = vector.broadcast %2219 : f32 to vector<1x256xf32>
    %2221 = arith.mulf %2220, %2054 : vector<1x256xf32>
    %2222 = arith.addf %2218, %2221 : vector<1x256xf32>
    %c1_1134 = arith.constant 1 : index
    %c2_1135 = arith.constant 2 : index
    %2223 = memref.load %arg7[%c1_1134, %c2_1135] : memref<3x8xf32, #tpu.memory_space<smem>>
    %2224 = vector.broadcast %2223 : f32 to vector<1x256xf32>
    %2225 = arith.mulf %2224, %2073 : vector<1x256xf32>
    %2226 = arith.addf %2222, %2225 : vector<1x256xf32>
    %c1_1136 = arith.constant 1 : index
    %c3_1137 = arith.constant 3 : index
    %2227 = memref.load %arg7[%c1_1136, %c3_1137] : memref<3x8xf32, #tpu.memory_space<smem>>
    %2228 = vector.broadcast %2227 : f32 to vector<1x256xf32>
    %2229 = arith.mulf %2228, %2092 : vector<1x256xf32>
    %2230 = arith.addf %2226, %2229 : vector<1x256xf32>
    %c1_1138 = arith.constant 1 : index
    %c4_1139 = arith.constant 4 : index
    %2231 = memref.load %arg7[%c1_1138, %c4_1139] : memref<3x8xf32, #tpu.memory_space<smem>>
    %2232 = vector.broadcast %2231 : f32 to vector<1x256xf32>
    %2233 = arith.mulf %2232, %2111 : vector<1x256xf32>
    %2234 = arith.addf %2230, %2233 : vector<1x256xf32>
    %c1_1140 = arith.constant 1 : index
    %c5_1141 = arith.constant 5 : index
    %2235 = memref.load %arg7[%c1_1140, %c5_1141] : memref<3x8xf32, #tpu.memory_space<smem>>
    %2236 = vector.broadcast %2235 : f32 to vector<1x256xf32>
    %2237 = arith.mulf %2236, %2130 : vector<1x256xf32>
    %2238 = arith.addf %2234, %2237 : vector<1x256xf32>
    %c1_1142 = arith.constant 1 : index
    %c6_1143 = arith.constant 6 : index
    %2239 = memref.load %arg7[%c1_1142, %c6_1143] : memref<3x8xf32, #tpu.memory_space<smem>>
    %2240 = vector.broadcast %2239 : f32 to vector<1x256xf32>
    %2241 = arith.mulf %2240, %2149 : vector<1x256xf32>
    %2242 = arith.addf %2238, %2241 : vector<1x256xf32>
    %c1_1144 = arith.constant 1 : index
    %c7_1145 = arith.constant 7 : index
    %2243 = memref.load %arg7[%c1_1144, %c7_1145] : memref<3x8xf32, #tpu.memory_space<smem>>
    %2244 = vector.broadcast %2243 : f32 to vector<1x256xf32>
    %2245 = arith.mulf %2244, %2168 : vector<1x256xf32>
    %2246 = arith.addf %2242, %2245 : vector<1x256xf32>
    %c1_1146 = arith.constant 1 : index
    %2247 = memref.load %arg8[%c1_1146] : memref<3xf32, #tpu.memory_space<smem>>
    %2248 = vector.broadcast %2247 : f32 to vector<1x256xf32>
    %2249 = arith.addf %2246, %2248 : vector<1x256xf32>
    %2250 = vector.broadcast %2169 : f32 to vector<1x256xf32>
    %2251 = arith.mulf %2250, %1972 : vector<1x256xf32>
    %2252 = vector.broadcast %2170 : f32 to vector<1x256xf32>
    %2253 = arith.mulf %2252, %2249 : vector<1x256xf32>
    %2254 = arith.subf %2251, %2253 : vector<1x256xf32>
    %c0_1147 = arith.constant 0 : index
    %c7_1148 = arith.constant 7 : index
    %c1_1149 = arith.constant 1 : index
    %c0_1150 = arith.constant 0 : index
    %2255 = vector.load %arg11[%c0_1147, %c7_1148, %c1_1149, %c0_1150] : memref<1x8x3x256xf32, #tpu.memory_space<vmem>>, vector<1x1x1x256xf32>
    %2256 = vector.shape_cast %2255 : vector<1x1x1x256xf32> to vector<1x256xf32>
    %2257 = vector.broadcast %2171 : f32 to vector<1x256xf32>
    %2258 = arith.mulf %2257, %2256 : vector<1x256xf32>
    %2259 = arith.addf %2254, %2258 : vector<1x256xf32>
    %c2_1151 = arith.constant 2 : index
    %c0_1152 = arith.constant 0 : index
    %2260 = memref.load %arg7[%c2_1151, %c0_1152] : memref<3x8xf32, #tpu.memory_space<smem>>
    %2261 = vector.broadcast %2260 : f32 to vector<1x256xf32>
    %2262 = arith.mulf %2261, %2035 : vector<1x256xf32>
    %c2_1153 = arith.constant 2 : index
    %c1_1154 = arith.constant 1 : index
    %2263 = memref.load %arg7[%c2_1153, %c1_1154] : memref<3x8xf32, #tpu.memory_space<smem>>
    %2264 = vector.broadcast %2263 : f32 to vector<1x256xf32>
    %2265 = arith.mulf %2264, %2054 : vector<1x256xf32>
    %2266 = arith.addf %2262, %2265 : vector<1x256xf32>
    %c2_1155 = arith.constant 2 : index
    %c2_1156 = arith.constant 2 : index
    %2267 = memref.load %arg7[%c2_1155, %c2_1156] : memref<3x8xf32, #tpu.memory_space<smem>>
    %2268 = vector.broadcast %2267 : f32 to vector<1x256xf32>
    %2269 = arith.mulf %2268, %2073 : vector<1x256xf32>
    %2270 = arith.addf %2266, %2269 : vector<1x256xf32>
    %c2_1157 = arith.constant 2 : index
    %c3_1158 = arith.constant 3 : index
    %2271 = memref.load %arg7[%c2_1157, %c3_1158] : memref<3x8xf32, #tpu.memory_space<smem>>
    %2272 = vector.broadcast %2271 : f32 to vector<1x256xf32>
    %2273 = arith.mulf %2272, %2092 : vector<1x256xf32>
    %2274 = arith.addf %2270, %2273 : vector<1x256xf32>
    %c2_1159 = arith.constant 2 : index
    %c4_1160 = arith.constant 4 : index
    %2275 = memref.load %arg7[%c2_1159, %c4_1160] : memref<3x8xf32, #tpu.memory_space<smem>>
    %2276 = vector.broadcast %2275 : f32 to vector<1x256xf32>
    %2277 = arith.mulf %2276, %2111 : vector<1x256xf32>
    %2278 = arith.addf %2274, %2277 : vector<1x256xf32>
    %c2_1161 = arith.constant 2 : index
    %c5_1162 = arith.constant 5 : index
    %2279 = memref.load %arg7[%c2_1161, %c5_1162] : memref<3x8xf32, #tpu.memory_space<smem>>
    %2280 = vector.broadcast %2279 : f32 to vector<1x256xf32>
    %2281 = arith.mulf %2280, %2130 : vector<1x256xf32>
    %2282 = arith.addf %2278, %2281 : vector<1x256xf32>
    %c2_1163 = arith.constant 2 : index
    %c6_1164 = arith.constant 6 : index
    %2283 = memref.load %arg7[%c2_1163, %c6_1164] : memref<3x8xf32, #tpu.memory_space<smem>>
    %2284 = vector.broadcast %2283 : f32 to vector<1x256xf32>
    %2285 = arith.mulf %2284, %2149 : vector<1x256xf32>
    %2286 = arith.addf %2282, %2285 : vector<1x256xf32>
    %c2_1165 = arith.constant 2 : index
    %c7_1166 = arith.constant 7 : index
    %2287 = memref.load %arg7[%c2_1165, %c7_1166] : memref<3x8xf32, #tpu.memory_space<smem>>
    %2288 = vector.broadcast %2287 : f32 to vector<1x256xf32>
    %2289 = arith.mulf %2288, %2168 : vector<1x256xf32>
    %2290 = arith.addf %2286, %2289 : vector<1x256xf32>
    %c2_1167 = arith.constant 2 : index
    %2291 = memref.load %arg8[%c2_1167] : memref<3xf32, #tpu.memory_space<smem>>
    %2292 = vector.broadcast %2291 : f32 to vector<1x256xf32>
    %2293 = arith.addf %2290, %2292 : vector<1x256xf32>
    %2294 = vector.broadcast %2169 : f32 to vector<1x256xf32>
    %2295 = arith.mulf %2294, %2016 : vector<1x256xf32>
    %2296 = vector.broadcast %2170 : f32 to vector<1x256xf32>
    %2297 = arith.mulf %2296, %2293 : vector<1x256xf32>
    %2298 = arith.subf %2295, %2297 : vector<1x256xf32>
    %c0_1168 = arith.constant 0 : index
    %c7_1169 = arith.constant 7 : index
    %c2_1170 = arith.constant 2 : index
    %c0_1171 = arith.constant 0 : index
    %2299 = vector.load %arg11[%c0_1168, %c7_1169, %c2_1170, %c0_1171] : memref<1x8x3x256xf32, #tpu.memory_space<vmem>>, vector<1x1x1x256xf32>
    %2300 = vector.shape_cast %2299 : vector<1x1x1x256xf32> to vector<1x256xf32>
    %2301 = vector.broadcast %2171 : f32 to vector<1x256xf32>
    %2302 = arith.mulf %2301, %2300 : vector<1x256xf32>
    %2303 = arith.addf %2298, %2302 : vector<1x256xf32>
    %c0_1172 = arith.constant 0 : index
    %c0_1173 = arith.constant 0 : index
    %c0_1174 = arith.constant 0 : index
    %2304 = vector.load %arg12[%c0_1172, %c0_1173, %c0_1174] : memref<1x3x256xf32, #tpu.memory_space<vmem>>, vector<1x1x256xf32>
    %2305 = vector.shape_cast %2304 : vector<1x1x256xf32> to vector<1x256xf32>
    %2306 = vector.shape_cast %2215 : vector<1x256xf32> to vector<1x1x256xf32>
    tpu.vector_store %arg12[%c0_1172, %c0_1173, %c0_1174], %2306 {strides = array<i32>} : memref<1x3x256xf32, #tpu.memory_space<vmem>>, vector<1x1x256xf32>,
    %c0_1175 = arith.constant 0 : index
    %c1_1176 = arith.constant 1 : index
    %c0_1177 = arith.constant 0 : index
    %2307 = vector.load %arg12[%c0_1175, %c1_1176, %c0_1177] : memref<1x3x256xf32, #tpu.memory_space<vmem>>, vector<1x1x256xf32>
    %2308 = vector.shape_cast %2307 : vector<1x1x256xf32> to vector<1x256xf32>
    %2309 = vector.shape_cast %2259 : vector<1x256xf32> to vector<1x1x256xf32>
    tpu.vector_store %arg12[%c0_1175, %c1_1176, %c0_1177], %2309 {strides = array<i32>} : memref<1x3x256xf32, #tpu.memory_space<vmem>>, vector<1x1x256xf32>,
    %c0_1178 = arith.constant 0 : index
    %c2_1179 = arith.constant 2 : index
    %c0_1180 = arith.constant 0 : index
    %2310 = vector.load %arg12[%c0_1178, %c2_1179, %c0_1180] : memref<1x3x256xf32, #tpu.memory_space<vmem>>, vector<1x1x256xf32>
    %2311 = vector.shape_cast %2310 : vector<1x1x256xf32> to vector<1x256xf32>
    %2312 = vector.shape_cast %2303 : vector<1x256xf32> to vector<1x1x256xf32>
    tpu.vector_store %arg12[%c0_1178, %c2_1179, %c0_1180], %2312 {strides = array<i32>} : memref<1x3x256xf32, #tpu.memory_space<vmem>>, vector<1x1x256xf32>,
    return
  }
  func.func @transform_0(%arg0: i32) -> i32 {
    %c0_i32 = arith.constant 0 : i32
    %c0_i32_0 = arith.constant 0 : i32
    return %c0_i32 : i32
  }
  func.func @transform_1(%arg0: i32) -> i32 {
    %c0_i32 = arith.constant 0 : i32
    %c0_i32_0 = arith.constant 0 : i32
    return %c0_i32 : i32
  }
  func.func @transform_2(%arg0: i32) -> i32 {
    %c0_i32 = arith.constant 0 : i32
    %c0_i32_0 = arith.constant 0 : i32
    return %c0_i32 : i32
  }
  func.func @transform_3(%arg0: i32) -> (i32, i32) {
    %c0_i32 = arith.constant 0 : i32
    %c0_i32_0 = arith.constant 0 : i32
    %c0_i32_1 = arith.constant 0 : i32
    return %c0_i32, %c0_i32_0 : i32, i32
  }
  func.func @transform_4(%arg0: i32) -> (i32, i32) {
    %c0_i32 = arith.constant 0 : i32
    %c0_i32_0 = arith.constant 0 : i32
    %c0_i32_1 = arith.constant 0 : i32
    return %c0_i32, %c0_i32_0 : i32, i32
  }
  func.func @transform_5(%arg0: i32) -> (i32, i32) {
    %c0_i32 = arith.constant 0 : i32
    %c0_i32_0 = arith.constant 0 : i32
    %c0_i32_1 = arith.constant 0 : i32
    return %c0_i32, %c0_i32_0 : i32, i32
  }
  func.func @transform_6(%arg0: i32) -> (i32, i32) {
    %c0_i32 = arith.constant 0 : i32
    %c0_i32_0 = arith.constant 0 : i32
    %c0_i32_1 = arith.constant 0 : i32
    return %c0_i32, %c0_i32_0 : i32, i32
  }
  func.func @transform_7(%arg0: i32) -> i32 {
    %c0_i32 = arith.constant 0 : i32
    %c0_i32_0 = arith.constant 0 : i32
    return %c0_i32 : i32
  }
  func.func @transform_8(%arg0: i32) -> (i32, i32, i32) {
    %c0_i32 = arith.constant 0 : i32
    %c0_i32_0 = arith.constant 0 : i32
    %c0_i32_1 = arith.constant 0 : i32
    return %arg0, %c0_i32, %c0_i32_0 : i32, i32, i32
  }
  func.func @transform_9(%arg0: i32) -> (i32, i32, i32) {
    %c0_i32 = arith.constant 0 : i32
    %c0_i32_0 = arith.constant 0 : i32
    %c0_i32_1 = arith.constant 0 : i32
    return %arg0, %c0_i32, %c0_i32_0 : i32, i32, i32
  }
  func.func @transform_10(%arg0: i32) -> (i32, i32, i32, i32) {
    %c0_i32 = arith.constant 0 : i32
    %c0_i32_0 = arith.constant 0 : i32
    %c0_i32_1 = arith.constant 0 : i32
    %c0_i32_2 = arith.constant 0 : i32
    return %arg0, %c0_i32, %c0_i32_0, %c0_i32_1 : i32, i32, i32, i32
  }
  func.func @transform_11(%arg0: i32) -> (i32, i32, i32) {
    %c0_i32 = arith.constant 0 : i32
    %c0_i32_0 = arith.constant 0 : i32
    %c0_i32_1 = arith.constant 0 : i32
    return %arg0, %c0_i32, %c0_i32_0 : i32, i32, i32
  }
}

</mosaic_0001>

<bundles_post_ra>
// kernel: tpu_custom_call.1
= control target key start
LH: loop header
LB: loop body
LE: loop exit
PB: predicated region body
PF: predicated region fallthrough
CT: control target
= control target key end

     0   :  { %16 = vsyncpa [#allocation3], 0  ;;  %s4105_s0 = inlined_call_operand.vmem [shape: f32[8], index: 0, kind: input, shape index: {}]   ;;  %s4106_s1 = inlined_call_operand.vmem [shape: f32[8], index: 1, kind: input, shape index: {}]   ;;  %s4107_s2 = inlined_call_operand.vmem [shape: f32[8], index: 2, kind: input, shape index: {}]   ;;  %s4108_s3 = inlined_call_operand.vmem [shape: f32[8,8], index: 3, kind: input, shape index: {}]   ;;  %s4109_s4 = inlined_call_operand.vmem [shape: f32[8,3], index: 4, kind: input, shape index: {}]   ;;  %s4110_s5 = inlined_call_operand.vmem [shape: f32[8,1], index: 5, kind: input, shape index: {}]   ;;  %s4111_s6 = inlined_call_operand.vmem [shape: f32[3,8], index: 6, kind: input, shape index: {}]   ;;  %s4112_s7 = inlined_call_operand.vmem [shape: f32[3], index: 7, kind: input, shape index: {}]   ;;  %s4113_s8 = inlined_call_operand.vmem [shape: f32[2,3,256], index: 8, kind: input, shape index: {}]   ;;  %s4114_s9 = inlined_call_operand.vmem [shape: f32[2,1,256], index: 9, kind: input, shape index: {}]   ;;  %s4115_s10 = inlined_call_operand.vmem [shape: f32[2,8,3,256], index: 10, kind: input, shape index: {}]   ;;  %s4116_s11 = inlined_call_operand.vmem [shape: f32[2,3,256], index: 11, kind: output, shape index: {}]  }
   0x1   :  { %17 = vsyncpa [#allocation5], 0 }
   0x2   :  { %18 = vsyncpa [#allocation8], 0 }
   0x3   :  { %19 = vsyncpa [#allocation11], 0 }
   0x4   :  { %20 = vsyncpa [#allocation14], 0  ;;  %s2710_s17 = smov 0  }
   0x5 LB: > { %s327_s20 = sshll.u32 %s4106_s1, 4  ;;  %s2719_s21 = sadd.s32 4294967295, %s2640_s17   ;;  %s2640_s17 = sphi %s2710_s17, %s26_s17   ;;  %s328_s20 = int_to_ptr.vmem [resolvable:$true] %s327_s20 }
   0x6   : > { %p2080_p0 = scmp.ge.s32.totalorder %s2640_s17, 1  ;;  %p303_p1 = scmp.lt.s32.totalorder %s2640_s17, 3 }
   0x7   : > { %p4117_p2 = scmp.eq.s32.totalorder %s2719_s21, 0  ;;  %s349_s25 = sshll.u32 %s4108_s3, 4  ;;  %s2731_s25 = int_to_ptr.vmem [resolvable:$true] %s349_s25 }
   0x8   : > { %p2724_p3 = pnand %p2080_p0, %p303_p1  ;;  %s371_s28 = sshll.u32 %s4110_s5, 4  ;;  %s2738_s28 = int_to_ptr.vmem [resolvable:$true] %s371_s28 }
   0x9   : > { %s316_s13 = sshll.u32 %s4105_s0, 4  ;;  %s338_s16 = sshll.u32 %s4107_s2, 4  ;;  %s2749_s13 = int_to_ptr.vmem [resolvable:$true] %s316_s13  ;;  %s339_s16 = int_to_ptr.vmem [resolvable:$true] %s338_s16 }
   0xa   : > { %s4221_s22 = scalar_select %p2724_p3, 1, 0 }
   0xb   : > { %p2309_p4 = pneg %p2724_p3  ;;  %s2494_s18 = scalar_lea.vmem %s328_s20, 16 }
   0xc   : > { %p2495_p6 = scmp.ne.s32.totalorder %s328_s20, %s2494_s18  ;;  %p2502_p10 = scmp.lt.s32.totalorder %s328_s20, %s328_s20 }
   0xd   : > { %p2742_p5 = pnand %p4117_p2, %p2309_p4  ;;  %p2503_p11 = scmp.lt.s32.totalorder %s2494_s18, %s2494_s18 }
   0xf   : > { %p2756_p7 = pneg %p2742_p5  ;;  %p2504_p12 = por %p2503_p11, %p2502_p10 }
  0x11   : > { %p2497_p8 = pnand %p2756_p7, %p2495_p6 }
  0x13   : > { %p2498_p9 = pneg %p2497_p8 }
  0x15   : > { %p2505_p13 = pnand %p2504_p12, %p2498_p9 }
  0x17   : > { %2508 = shalt.err (!%p2505_p13)
}
  0x18   : > { %s2642_s23 = smov [#allocation4]   ;;  %s2509_s24 = scalar_lea.vmem %s2731_s25, 128 }
  0x19   : > { %2315 = dma.vmem_to_smem (!%p2742_p5), %s328_s20, 16, %s2642_s23, [#allocation5]  }
  0x1a   : > { %p2510_p0 = scmp.ne.s32.totalorder %s2731_s25, %s2509_s24  ;;  %p2517_p6 = scmp.lt.s32.totalorder %s2731_s25, %s2731_s25 }
  0x1b   : > { %p2518_p8 = scmp.lt.s32.totalorder %s2509_s24, %s2509_s24 }
  0x1c   : > { %p2512_p1 = pnand %p2510_p0, %p2756_p7 }
  0x1d   : > { %p2519_p2 = por %p2518_p8, %p2517_p6 }
  0x1e   : > { %p2513_p4 = pneg %p2512_p1 }
  0x20   : > { %p2520_p10 = pnand %p2519_p2, %p2513_p4 }
  0x22   : > { %2523 = shalt.err (!%p2520_p10)
}
  0x23   : > { %s2643_s26 = smov [#allocation7]   ;;  %s2524_s20 = scalar_lea.vmem %s2738_s28, 128 }
  0x24   : > { %2321 = dma.vmem_to_smem (!%p2742_p5), %s2731_s25, 128, %s2643_s26, [#allocation8]  }
  0x25   : > { %p2525_p9 = scmp.ne.s32.totalorder %s2738_s28, %s2524_s20  ;;  %p2532_p13 = scmp.lt.s32.totalorder %s2738_s28, %s2738_s28 }
  0x26   : > { %p2533_p0 = scmp.lt.s32.totalorder %s2524_s20, %s2524_s20 }
  0x27   : > { %p2527_p11 = pnand %p2525_p9, %p2756_p7 }
  0x28   : > { %p2534_p1 = por %p2533_p0, %p2532_p13 }
  0x29   : > { %p2528_p12 = pneg %p2527_p11 }
  0x2b   : > { %p2535_p2 = pnand %p2534_p1, %p2528_p12 }
  0x2d   : > { %2538 = shalt.err (!%p2535_p2)
}
  0x2e   : > { %s2644_s27 = smov [#allocation10]   ;;  %s2539_s25 = scalar_lea.vmem %s2749_s13, 16 }
  0x2f   : > { %2327 = dma.vmem_to_smem (!%p2742_p5), %s2738_s28, 128, %s2644_s27, [#allocation11]  }
  0x30   : > { %p2540_p4 = scmp.ne.s32.totalorder %s2749_s13, %s2539_s25  ;;  %p2547_p10 = scmp.lt.s32.totalorder %s2749_s13, %s2749_s13 }
  0x31   : > { %p2548_p9 = scmp.lt.s32.totalorder %s2539_s25, %s2539_s25 }
  0x32   : > { %p2542_p6 = pnand %p2540_p4, %p2756_p7 }
  0x33   : > { %p2549_p11 = por %p2548_p9, %p2547_p10 }
  0x34   : > { %p2543_p8 = pneg %p2542_p6 }
  0x36   : > { %p2550_p12 = pnand %p2549_p11, %p2543_p8 }
  0x38   : > { %2553 = shalt.err (!%p2550_p12)
}
  0x39   : > { %s2645_s30 = smov [#allocation2]   ;;  %s2554_s28 = scalar_lea.vmem %s339_s16, 16 }
  0x3a   : > { %2312 = dma.vmem_to_smem (!%p2742_p5), %s2749_s13, 16, %s2645_s30, [#allocation3]  }
  0x3b   : > { %p2555_p13 = scmp.ne.s32.totalorder %s339_s16, %s2554_s28  ;;  %p2562_p2 = scmp.lt.s32.totalorder %s339_s16, %s339_s16 }
  0x3c   : > { %p2563_p4 = scmp.lt.s32.totalorder %s2554_s28, %s2554_s28 }
  0x3d   : > { %p2557_p0 = pnand %p2555_p13, %p2756_p7 }
  0x3e   : > { %p2564_p6 = por %p2563_p4, %p2562_p2 }
  0x3f   : > { %p2558_p1 = pneg %p2557_p0 }
  0x41   : > { %p2565_p8 = pnand %p2564_p6, %p2558_p1 }
  0x43   : > { %2568 = shalt.err (!%p2565_p8)
}
  0x44   : > { %s2646_s15 = smov [#allocation6]   ;;  %s360_s23 = sshll.u32 %s4109_s4, 4  ;;  %s361_s23 = int_to_ptr.vmem [resolvable:$true] %s360_s23 }
  0x45   : > { %2318 = dma.vmem_to_smem (!%p2742_p5), %s339_s16, 16, %s2646_s15, [#allocation5]  }
  0x46   : > { %s382_s20 = sshll.u32 %s4111_s6, 4  ;;  %s2569_s27 = scalar_lea.vmem %s361_s23, 128  ;;  %s383_s20 = int_to_ptr.vmem [resolvable:$true] %s382_s20 }
  0x47   : > { %p2570_p10 = scmp.ne.s32.totalorder %s361_s23, %s2569_s27  ;;  %p2577_p12 = scmp.lt.s32.totalorder %s361_s23, %s361_s23 }
  0x48   : > { %p2578_p13 = scmp.lt.s32.totalorder %s2569_s27, %s2569_s27 }
  0x49   : > { %p2572_p9 = pnand %p2570_p10, %p2756_p7 }
  0x4a   : > { %p2579_p0 = por %p2578_p13, %p2577_p12 }
  0x4b   : > { %p2573_p11 = pneg %p2572_p9 }
  0x4d   : > { %p2580_p1 = pnand %p2579_p0, %p2573_p11 }
  0x4f   : > { %2583 = shalt.err (!%p2580_p1)
}
  0x50   : > { %s2647_s16 = smov [#allocation9]   ;;  %s2584_s25 = scalar_lea.vmem %s383_s20, 64 }
  0x51   : > { %2324 = dma.vmem_to_smem (!%p2742_p5), %s361_s23, 128, %s2647_s16, [#allocation8]  }
  0x52   : > { %p2585_p2 = scmp.ne.s32.totalorder %s383_s20, %s2584_s25  ;;  %p2592_p8 = scmp.lt.s32.totalorder %s383_s20, %s383_s20 }
  0x53   : > { %p2593_p3 = scmp.lt.s32.totalorder %s2584_s25, %s2584_s25 }
  0x54   : > { %p2587_p4 = pnand %p2585_p2, %p2756_p7 }
  0x55   : > { %p2594_p10 = por %p2593_p3, %p2592_p8 }
  0x56   : > { %p2588_p6 = pneg %p2587_p4 }
  0x58   : > { %p2595_p9 = pnand %p2594_p10, %p2588_p6 }
  0x5a   : > { %2598 = shalt.err (!%p2595_p9)
}
  0x5b   : > { %s2648_s30 = smov [#allocation12]   ;;  %s393_s28 = sshll.u32 %s4112_s7, 4  ;;  %s394_s28 = int_to_ptr.vmem [resolvable:$true] %s393_s28 }
  0x5c   : > { %2330 = dma.vmem_to_smem (!%p2742_p5), %s383_s20, 64, %s2648_s30, [#allocation11]  }
  0x5d   : > { %s2599_s15 = scalar_lea.vmem %s394_s28, 16  ;;  %p2607_p0 = scmp.lt.s32.totalorder %s394_s28, %s394_s28 }
  0x5e   : > { %p2600_p11 = scmp.ne.s32.totalorder %s394_s28, %s2599_s15  ;;  %p2608_p1 = scmp.lt.s32.totalorder %s2599_s15, %s2599_s15 }
  0x60   : > { %p2602_p12 = pnand %p2600_p11, %p2756_p7  ;;  %p2609_p3 = por %p2608_p1, %p2607_p0 }
  0x62   : > { %p2603_p13 = pneg %p2602_p12 }
  0x64   : > { %p2610_p2 = pnand %p2609_p3, %p2603_p13 }
  0x66   : > { %2613 = shalt.err (!%p2610_p2)
}
  0x67   : > { %s2649_s13 = smov [#allocation13]   ;;  %p4224_p4 = scmp.ne.s32.totalorder %s4221_s22, 0 }
  0x68   : > { %2333 = dma.vmem_to_smem (!%p2742_p5), %s394_s28, 16, %s2649_s13, [#allocation14]  }
  0x69   : > { %429 = sbr.rel (%p4224_p4) target bundleno = 525 (0x20d), region = 64 }
  0x70   : > { %p4225_p6 = scmp.eq.s32.totalorder %s2719_s21, 0 }
  0x72   : > { %2619 = dma.done.wait (%p4225_p6), [#allocation3], 16   ;;  %p4226_p8 = pmov %p4225_p6 }
  0x73   : > { %p4227_p7 = pmov %p4225_p6 }
  0x74   : > { %2621 = vsyncadd (%p4226_p8), [#allocation3], 4294967280 }
  0x75   : > { %2623 = dma.done.wait (%p4227_p7), [#allocation5], 32   ;;  %p4228_p10 = pmov %p4225_p6 }
  0x76   : > { %p4229_p9 = pmov %p4225_p6 }
  0x77   : > { %2625 = vsyncadd (%p4228_p10), [#allocation5], 4294967264 }
  0x78   : > { %2627 = dma.done.wait (%p4229_p9), [#allocation8], 256   ;;  %p4230_p5 = pmov %p4225_p6 }
  0x7a   : > { %2629 = vsyncadd (%p4230_p5), [#allocation8], 4294967040  ;;  %p4231_p11 = pmov %p4230_p5 }
  0x7b   : > { %p4232_p12 = pmov %p4230_p5 }
  0x7c   : > { %2631 = dma.done.wait (%p4231_p11), [#allocation11], 192  }
  0x7d   : > { %2633 = vsyncadd (%p4232_p12), [#allocation11], 4294967104  ;;  %p4233_p13 = pmov %p4230_p5 }
  0x7e   : > { %p4234_p0 = pmov %p4230_p5 }
  0x7f   : > { %2635 = dma.done.wait (%p4233_p13), [#allocation14], 16  }
  0x80   : > { %2637 = vsyncadd (%p4234_p0), [#allocation14], 4294967280 }
  0x81   : > { %463 = sfence }
  0x82   : > { %p507_p1 = scmp.lt.s32.totalorder %s2719_s21, 1  ;;  %s532_s22 = sld [smem:[#allocation9]] }
  0x83   : > { %s2108_s29 = sld [smem:[#allocation9 + $0x1]]  ;;  %s2109_s19 = sld [smem:[#allocation9 + $0x2]] }
  0x84   : > { %s4453_s21 = smov (!%p507_p1, %s2719_s21), 1  ;;  %s543_s18 = sld [smem:[#allocation10]] }
  0x85   : > { %s2846_s23 = sld [smem:[#allocation7]]  ;;  %s2274_s24 = sshll.u32 %s4453_s21, 3 }
  0x86   : > { %s2101_s26 = sshll.u32 %s4453_s21, 1  ;;  %s511_s16 = scalar_lea.vmem %s4113_s8, %s2274_s24 }
  0x87   : > { %s515_s12 = scalar_lea.vmem %s4114_s9, %s2101_s26  ;;  %v2858_v0 = vld [vmem:[%s511_s16] ss:$4 sm:$0x3]  ;;  %v2864_v3 = vld [vmem:[%s511_s16 + $0x1] ss:$4 sm:$0x3] }
  0x88   : > { %v2860_v1 = vld [vmem:[%s515_s12] sm:$0x3]  ;;  %v2862_v2 = vstv %s532_s22  ;;  %v2866_v4 = vld [vmem:[%s511_s16 + $0x2] ss:$4 sm:$0x3]  ;;  %s2110_s14 = sld [smem:[#allocation9 + $0x80]] }
  0x89   : > { %4235 = vst [vmem:[#allocation20_spill] sm:$0xff] %v2862_v2  ;;  %v534_v5 = vmul.f32 %v2862_v2, %v2858_v0  ;;  %v2870_v6 = vstv %s2108_s29  ;;  %v2872_v7 = vstv %s2109_s19  ;;  %s2111_s28 = sld [smem:[#allocation9 + $0x81]]  ;;  %s2112_s15 = sld [smem:[#allocation9 + $0x82]] }
  0x8a   : > { %4236 = vst [vmem:[#allocation21_spill] sm:$0xff] %v2870_v6  ;;  %4237 = vst [vmem:[#allocation22_spill] sm:$0xff] %v2872_v7  ;;  %v537_v8 = vmul.f32 %v2864_v3, %v2870_v6  ;;  %v541_v9 = vmul.f32 %v2866_v4, %v2872_v7  ;;  %v544_v10 = vstv %s543_s18  ;;  %s2113_s13 = sld [smem:[#allocation10 + $0x80]]  ;;  %s2881_s22 = sld [smem:[#allocation7 + $0x1]] }
  0x8b   : > { %v2879_v12 = vmul.f32 %v544_v10, %v2860_v1  ;;  %s2115_s29 = sld [smem:[#allocation9 + $0x100]]  ;;  %s2116_s19 = sld [smem:[#allocation9 + $0x101]]  ;;  %v548_v14 = vstv %s2846_s23 }
  0x8c   : > { %v538_v11 = vadd.f32 %v537_v8, %v534_v5  ;;  %s2117_s26 = sld [smem:[#allocation9 + $0x102]]  ;;  %s2883_s20 = sld [smem:[#allocation10 + $0x100]] }
  0x8d   : > { %s2885_s27 = sld [smem:[#allocation7 + $0x2]]  ;;  %s2888_s16 = sld [smem:[#allocation9 + $0x180]] }
  0x8e   : > { %v542_v13 = vadd.f32 %v541_v9, %v538_v11  ;;  %s2890_s18 = sld [smem:[#allocation9 + $0x181]]  ;;  %v2893_v16 = vstv %s2110_s14  ;;  %s2897_s25 = sld [smem:[#allocation9 + $0x182]] }
  0x8f   : > { %4238 = vst [vmem:[#allocation23_spill] sm:$0xff] %v2893_v16  ;;  %v2895_v17 = vstv %s2111_s28  ;;  %s2899_s30 = sld [smem:[#allocation10 + $0x180]]  ;;  %v553_v18 = vmul.f32 %v2893_v16, %v2858_v0  ;;  %v2905_v20 = vstv %s2112_s15  ;;  %s2914_s12 = sld [smem:[#allocation9 + $0x201]] }
  0x90   : > { %v546_v15 = vadd.f32 %v2879_v12, %v542_v13  ;;  %4239 = vst [vmem:[#allocation24_spill] sm:$0xff] %v2895_v17  ;;  %v556_v19 = vmul.f32 %v2864_v3, %v2895_v17  ;;  %4240 = vst [vmem:[#allocation25_spill] sm:$0xff] %v2905_v20  ;;  %v563_v21 = vstv %s2113_s13  ;;  %s2907_s23 = sld [smem:[#allocation9 + $0x200]]  ;;  %v560_v23 = vmul.f32 %v2866_v4, %v2905_v20  ;;  %s2916_s14 = sld [smem:[#allocation9 + $0x202]] }
  0x91   : > { %v2912_v24 = vmul.f32 %v563_v21, %v2860_v1  ;;  %v2918_v26 = vstv %s2115_s29  ;;  %v2920_v27 = vstv %s2116_s19  ;;  %s2924_s28 = sld [smem:[#allocation10 + $0x200]]  ;;  %v567_v29 = vstv %s2881_s22  ;;  %s2933_s15 = sld [smem:[#allocation7 + $0x3]] }
  0x92   : > { %v549_v22 = vadd.f32 %v548_v14, %v546_v15  ;;  %v557_v25 = vadd.f32 %v556_v19, %v553_v18  ;;  %4241 = vst [vmem:[#allocation26_spill] sm:$0xff] %v2918_v26  ;;  %4242 = vst [vmem:[#allocation27_spill] sm:$0xff] %v2920_v27  ;;  %v2922_v28 = vstv %s2117_s26  ;;  %v572_v30 = vmul.f32 %v2918_v26, %v2858_v0  ;;  %s2935_s13 = sld [smem:[#allocation9 + $0x280]]  ;;  %s2941_s22 = sld [smem:[#allocation9 + $0x281]] }
  0x93   : > { %4243 = vst [vmem:[#allocation28_spill] sm:$0xff] %v2922_v28  ;;  %v575_v31 = vmul.f32 %v2864_v3, %v2920_v27  ;;  %v579_v32 = vmul.f32 %v2866_v4, %v2922_v28  ;;  %v582_v34 = vstv %s2883_s20  ;;  %v2939_v35 = vstv %s2888_s16  ;;  %s2943_s29 = sld [smem:[#allocation9 + $0x282]]  ;;  %s2960_s19 = sld [smem:[#allocation7 + $0x4]] }
  0x94   : > { %2366 = vtanh.f32 %v549_v22  ;;  %v561_v33 = vadd.f32 %v560_v23, %v557_v25  ;;  %4244 = vst [vmem:[#allocation29_spill] sm:$0xff] %v2939_v35  ;;  %v2946_v37 = vmul.f32 %v582_v34, %v2860_v1  ;;  %v591_v38 = vmul.f32 %v2939_v35, %v2858_v0  ;;  %s2962_s26 = sld [smem:[#allocation10 + $0x280]]  ;;  %s2978_s16 = sld [smem:[#allocation9 + $0x301]] }
  0x95   : > { %v576_v36 = vadd.f32 %v575_v31, %v572_v30  ;;  %v2951_v39 = vstv %s2890_s18  ;;  %v2957_v42 = vstv %s2897_s25  ;;  %v601_v43 = vstv %s2899_s30  ;;  %s2970_s20 = sld [smem:[#allocation9 + $0x300]]  ;;  %s2980_s18 = sld [smem:[#allocation9 + $0x302]] }
  0x96   : > { %4245 = vst [vmem:[#allocation30_spill] sm:$0xff] %v2951_v39  ;;  %v565_v40 = vadd.f32 %v2912_v24, %v561_v33  ;;  %v594_v41 = vmul.f32 %v2864_v3, %v2951_v39  ;;  %4246 = vst [vmem:[#allocation31_spill] sm:$0xff] %v2957_v42  ;;  %v586_v45 = vstv %s2885_s27  ;;  %v598_v46 = vmul.f32 %v2866_v4, %v2957_v42  ;;  %s2990_s27 = sld [smem:[#allocation7 + $0x5]]  ;;  %s2992_s25 = sld [smem:[#allocation10 + $0x300]] }
  0x97   : > { %v580_v44 = vadd.f32 %v579_v32, %v576_v36  ;;  %v2968_v47 = vmul.f32 %v601_v43, %v2860_v1  ;;  %v2973_v50 = vstv %s2907_s23  ;;  %v2976_v51 = vstv %s2914_s12  ;;  %s2997_s30 = sld [smem:[#allocation9 + $0x380]]  ;;  %s2999_s23 = sld [smem:[#allocation9 + $0x381]] }
  0x98   : > { %v568_v48 = vadd.f32 %v567_v29, %v565_v40  ;;  %v595_v49 = vadd.f32 %v594_v41, %v591_v38  ;;  %4247 = vst [vmem:[#allocation32_spill] sm:$0xff] %v2973_v50  ;;  %4248 = vst [vmem:[#allocation33_spill] sm:$0xff] %v2976_v51  ;;  %v610_v53 = vmul.f32 %v2973_v50, %v2858_v0  ;;  %v2988_v55 = vstv %s2916_s14  ;;  %s3015_s12 = sld [smem:[#allocation9 + $0x382]]  ;;  %s3017_s14 = sld [smem:[#allocation10 + $0x380]] }
  0x99   : > { %v584_v52 = vadd.f32 %v2946_v37, %v580_v44  ;;  %v613_v54 = vmul.f32 %v2864_v3, %v2976_v51  ;;  %4249 = vst [vmem:[#allocation34_spill] sm:$0xff] %v2988_v55  ;;  %v617_v57 = vmul.f32 %v2866_v4, %v2988_v55  ;;  %v620_v58 = vstv %s2924_s28  ;;  %s3023_s28 = sld [smem:[#allocation7 + $0x6]] }
  0x9a   : > { %2368 = vtanh.f32 %v568_v48  ;;  %v599_v56 = vadd.f32 %v598_v46, %v595_v49  ;;  %v605_v60 = vstv %s2933_s15  ;;  %v3003_v62 = vmul.f32 %v620_v58, %v2860_v1  ;;  %s3031_s15 = sld [smem:[#allocation12]] }
  0x9b   : > { %v587_v59 = vadd.f32 %v586_v45, %v584_v52  ;;  %v614_v61 = vadd.f32 %v613_v54, %v610_v53  ;;  %v3007_v5 = vstv %s2935_s13  ;;  %v3010_v8 = vstv %s2941_s22  ;;  %s3033_s13 = sld [smem:[#allocation12 + $0x1]]  ;;  %s3050_s22 = sld [smem:[#allocation12 + $0x2]] }
  0x9c   : > { %v603_v63 = vadd.f32 %v2968_v47, %v599_v56  ;;  %4250 = vst [vmem:[#allocation35_spill] sm:$0xff] %v3007_v5  ;;  %4251 = vst [vmem:[#allocation36_spill] sm:$0xff] %v3010_v8  ;;  %v3013_v9 = vstv %s2943_s29  ;;  %v629_v11 = vmul.f32 %v3007_v5, %v2858_v0  ;;  %v632_v13 = vmul.f32 %v2864_v3, %v3010_v8  ;;  %s3052_s29 = sld [smem:[#allocation12 + $0x3]] }
  0x9d   : > { %4252 = vst [vmem:[#allocation37_spill] sm:$0xff] %v3013_v9  ;;  %2370 = vtanh.f32 %v587_v59  ;;  %v618_v10 = vadd.f32 %v617_v57, %v614_v61  ;;  %v624_v18 = vstv %s2960_s19  ;;  %v636_v19 = vmul.f32 %v2866_v4, %v3013_v9  ;;  %s3058_s19 = sld [smem:[#allocation7 + $0x7]] }
  0x9e   : > { %v3025_v14 = vpop.eup %2366  ;;  %v606_v15 = vadd.f32 %v605_v60, %v603_v63  ;;  %v639_v21 = vstv %s2962_s26  ;;  %v633_v23 = vadd.f32 %v632_v13, %v629_v11  ;;  %v3040_v29 = vstv %s2970_s20  ;;  %s3072_s26 = sld [smem:[#allocation12 + $0x4]]  ;;  %s3084_s20 = sld [smem:[#allocation12 + $0x5]] }
  0x9f   : > { %v622_v22 = vadd.f32 %v3003_v62, %v618_v10  ;;  %v3037_v25 = vmul.f32 %v639_v21, %v2860_v1  ;;  %4253 = vst [vmem:[#allocation38_spill] sm:$0xff] %v3040_v29  ;;  %v648_v30 = vmul.f32 %v3040_v29, %v2858_v0  ;;  %v3045_v31 = vstv %s2978_s16  ;;  %s3089_s16 = sld [smem:[#allocation12 + $0x80]] }
  0xa0   : > { %2372 = vtanh.f32 %v606_v15  ;;  %4254 = vst [vmem:[#allocation39_spill] sm:$0xff] %v3045_v31  ;;  %v3048_v32 = vstv %s2980_s18  ;;  %v637_v34 = vadd.f32 %v636_v19, %v633_v23  ;;  %v651_v36 = vmul.f32 %v2864_v3, %v3045_v31  ;;  %s3091_s18 = sld [smem:[#allocation12 + $0x81]] }
  0xa1   : > { %v625_v33 = vadd.f32 %v624_v18, %v622_v22  ;;  %v655_v38 = vmul.f32 %v2866_v4, %v3048_v32  ;;  %v643_v40 = vstv %s2990_s27  ;;  %v658_v41 = vstv %s2992_s25  ;;  %s3102_s27 = sld [smem:[#allocation12 + $0x82]]  ;;  %s3104_s25 = sld [smem:[#allocation12 + $0x83]] }
  0xa2   : > { %v3063_v43 = vstv %s2997_s30  ;;  %v3066_v44 = vstv %s2999_s23  ;;  %v641_v45 = vadd.f32 %v3037_v25, %v637_v34  ;;  %v652_v46 = vadd.f32 %v651_v36, %v648_v30  ;;  %s3113_s30 = sld [smem:[#allocation12 + $0x84]]  ;;  %s3115_s23 = sld [smem:[#allocation12 + $0x85]] }
  0xa3   : > { %4255 = vst [vmem:[#allocation40_spill] sm:$0xff] %v3063_v43  ;;  %4256 = vst [vmem:[#allocation41_spill] sm:$0xff] %v3066_v44  ;;  %2374 = vtanh.f32 %v625_v33  ;;  %v3070_v48 = vmul.f32 %v658_v41, %v2860_v1  ;;  %v667_v52 = vmul.f32 %v3063_v43, %v2858_v0  ;;  %v670_v53 = vmul.f32 %v2864_v3, %v3066_v44 }
  0xa4   : > { %v3074_v49 = vpop.eup %2368  ;;  %v3081_v54 = vstv %s3015_s12  ;;  %v677_v56 = vstv %s3017_s14  ;;  %v644_v57 = vadd.f32 %v643_v40, %v641_v45  ;;  %v656_v58 = vadd.f32 %v655_v38, %v652_v46  ;;  %s3126_s12 = sld [smem:[#allocation12 + $0x6]]  ;;  %s3128_s14 = sld [smem:[#allocation12 + $0x7]] }
  0xa5   : > { %v662_v59 = vstv %s3023_s28  ;;  %v674_v60 = vmul.f32 %v2866_v4, %v3081_v54  ;;  %v671_v61 = vadd.f32 %v670_v53, %v667_v52  ;;  %v3094_v63 = vmul.f32 %v677_v56, %v2860_v1  ;;  %s3133_s28 = sld [smem:[#allocation12 + $0x86]] }
  0xa6   : > { %v3097_v10 = vstv %s3031_s15  ;;  %v3100_v11 = vstv %s3033_s13  ;;  %2376 = vtanh.f32 %v644_v57  ;;  %v660_v15 = vadd.f32 %v3070_v48, %v656_v58  ;;  %s3135_s15 = sld [smem:[#allocation12 + $0x100]]  ;;  %s3142_s13 = sld [smem:[#allocation12 + $0x101]] }
  0xa7   : > { %4257 = vst [vmem:[#allocation42_spill] sm:$0xff] %v3097_v10  ;;  %4258 = vst [vmem:[#allocation43_spill] sm:$0xff] %v3100_v11  ;;  %v3106_v13 = vpop.eup %2370  ;;  %v689_v18 = vmul.f32 %v3025_v14, %v3097_v10  ;;  %v692_v1 = vmul.f32 %v3074_v49, %v3100_v11  ;;  %v675_v19 = vadd.f32 %v674_v60, %v671_v61  ;;  %v3118_v21 = vstv %s3050_s22  ;;  %s3144_s22 = sld [smem:[#allocation12 + $0x102]] }
  0xa8   : > { %4259 = vst [vmem:[#allocation44_spill] sm:$0xff] %v3118_v21  ;;  %v3121_v22 = vstv %s3052_s29  ;;  %v663_v23 = vadd.f32 %v662_v59, %v660_v15  ;;  %v681_v30 = vstv %s3058_s19  ;;  %v696_v34 = vmul.f32 %v3106_v13, %v3118_v21  ;;  %s3146_s29 = sld [smem:[#allocation12 + $0x87]]  ;;  %s3157_s19 = sld [smem:[#allocation12 + $0x103]] }
  0xa9   : > { %4260 = vst [vmem:[#allocation45_spill] sm:$0xff] %v3121_v22  ;;  %v693_v33 = vadd.f32 %v692_v1, %v689_v18  ;;  %v679_v38 = vadd.f32 %v3094_v63, %v675_v19  ;;  %v3140_v45 = vstv %s3072_s26  ;;  %v3149_v56 = vstv %s3084_s20  ;;  %s3159_s26 = sld [smem:[#allocation12 + $0x104]]  ;;  %s3178_s20 = sld [smem:[#allocation12 + $0x105]] }
  0xaa   : > { %v3130_v36 = vpop.eup %2372  ;;  %2378 = vtanh.f32 %v663_v23  ;;  %4261 = vst [vmem:[#allocation46_spill] sm:$0xff] %v3140_v45  ;;  %4262 = vst [vmem:[#allocation47_spill] sm:$0xff] %v3149_v56  ;;  %v3152_v57 = vstv %s3089_s16  ;;  %v3155_v58 = vstv %s3091_s18  ;;  %v3167_v15 = vstv %s3102_s27  ;;  %s3190_s16 = sld [smem:[#allocation13]]  ;;  %s3192_s18 = sld [smem:[#allocation12 + $0x106]] }
  0xab   : > { %v697_v40 = vadd.f32 %v696_v34, %v693_v33  ;;  %v700_v41 = vmul.f32 %v3130_v36, %v3121_v22  ;;  %v682_v46 = vadd.f32 %v681_v30, %v679_v38  ;;  %4263 = vst [vmem:[#allocation48_spill] sm:$0xff] %v3152_v57  ;;  %4264 = vst [vmem:[#allocation49_spill] sm:$0xff] %v3155_v58  ;;  %v3170_v18 = vstv %s3104_s25  ;;  %s3194_s27 = sld [smem:[#allocation2]] }
  0xac   : > { %v732_v60 = vmul.f32 %v3025_v14, %v3152_v57  ;;  %v735_v61 = vmul.f32 %v3074_v49, %v3155_v58  ;;  %4265 = vst [vmem:[#allocation50_spill] sm:$0xff] %v3167_v15  ;;  %4266 = vst [vmem:[#allocation51_spill] sm:$0xff] %v3170_v18  ;;  %v3173_v1 = vstv %s3113_s30  ;;  %v3176_v19 = vstv %s3115_s23  ;;  %s3196_s25 = sld [smem:[#allocation4]]  ;;  %s3204_s30 = sld [smem:[#allocation13 + $0x1]] }
  0xad   : > { %v2375_v52 = vpop.eup %2374  ;;  %v701_v53 = vadd.f32 %v700_v41, %v697_v40  ;;  %2380 = vtanh.f32 %v682_v46  ;;  %4267 = vst [vmem:[#allocation52_spill] sm:$0xff] %v3173_v1  ;;  %4268 = vst [vmem:[#allocation53_spill] sm:$0xff] %v3176_v19  ;;  %v739_v33 = vmul.f32 %v3106_v13, %v3167_v15  ;;  %v743_v34 = vmul.f32 %v3130_v36, %v3170_v18  ;;  %s3215_s23 = sld [smem:[#allocation12 + $0x107]] }
  0xae   : > { %v704_v59 = vmul.f32 %v2375_v52, %v3140_v45  ;;  %v736_v30 = vadd.f32 %v735_v61, %v732_v60  ;;  %v3185_v40 = vstv %s3126_s12  ;;  %v3188_v41 = vstv %s3128_s14  ;;  %s3217_s12 = sld [smem:[#allocation6]]  ;;  %s2275_s14 = sshll.u32 %s4453_s21, 6 }
  0xaf   : > { %4269 = vst [vmem:[#allocation54_spill] sm:$0xff] %v3185_v40  ;;  %4270 = vst [vmem:[#allocation55_spill] sm:$0xff] %v3188_v41  ;;  %v3201_v60 = vstv %s3133_s28  ;;  %v3207_v45 = vstv %s3135_s15  ;;  %v3210_v18 = vstv %s3142_s13  ;;  %v3213_v22 = vstv %s3144_s22  ;;  %s3246_s13 = scalar_lea.vmem %s4115_s10, %s2275_s14  ;;  %s3256_s22 = sld [smem:[#allocation13 + $0x2]] }
  0xb0   : > { %v705_v23 = vadd.f32 %v704_v59, %v701_v53  ;;  %v2377_v38 = vpop.eup %2376  ;;  %v740_v53 = vadd.f32 %v739_v33, %v736_v30  ;;  %v747_v59 = vmul.f32 %v2375_v52, %v3173_v1  ;;  %4271 = vst [vmem:[#allocation56_spill] sm:$0xff] %v3201_v60  ;;  %4272 = vst [vmem:[#allocation57_spill] sm:$0xff] %v3207_v45  ;;  %v3224_v15 = vstv %s3146_s29  ;;  %s3270_s29 = sld [smem:[#allocation7 + $0x80]]  ;;  %s3396_s28 = sld [smem:[#allocation7 + $0x101]] }
  0xb1   : > { %v708_v46 = vmul.f32 %v2377_v38, %v3149_v56  ;;  %v751_v61 = vmul.f32 %v2377_v38, %v3176_v19  ;;  %4273 = vst [vmem:[#allocation58_spill] sm:$0xff] %v3210_v18  ;;  %4274 = vst [vmem:[#allocation59_spill] sm:$0xff] %v3213_v22  ;;  %v773_v56 = vmul.f32 %v3025_v14, %v3207_v45  ;;  %v3229_v58 = vstv %s3157_s19  ;;  %s3278_s19 = sld [smem:[#allocation7 + $0x81]]  ;;  %s3394_s14 = sld [smem:[#allocation7 + $0x100]] }
  0xb2   : > { %v744_v33 = vadd.f32 %v743_v34, %v740_v53  ;;  %v776_v19 = vmul.f32 %v3074_v49, %v3210_v18  ;;  %4275 = vst [vmem:[#allocation60_spill] sm:$0xff] %v3224_v15  ;;  %v780_v21 = vmul.f32 %v3106_v13, %v3213_v22  ;;  %4276 = vst [vmem:[#allocation61_spill] sm:$0xff] %v3229_v58  ;;  %v3232_v11 = vstv %s3159_s26  ;;  %s3280_s26 = sld [smem:[#allocation7 + $0x82]] }
  0xb3   : > { %v709_v30 = vadd.f32 %v708_v46, %v705_v23  ;;  %4277 = vst [vmem:[#allocation62_spill] sm:$0xff] %v3232_v11  ;;  %v784_v46 = vmul.f32 %v3130_v36, %v3229_v58  ;;  %v3240_v53 = vstv %s3178_s20  ;;  %v788_v57 = vmul.f32 %v2375_v52, %v3232_v11  ;;  %s3282_s20 = sld [smem:[#allocation7 + $0x83]]  ;;  %s3398_s15 = sld [smem:[#allocation7 + $0x102]] }
  0xb4   : > { %v2379_v1 = vpop.eup %2378  ;;  %v748_v34 = vadd.f32 %v747_v59, %v744_v33  ;;  %v777_v49 = vadd.f32 %v776_v19, %v773_v56  ;;  %4278 = vst [vmem:[#allocation63_spill] sm:$0xff] %v3240_v53  ;;  %v3250_v56 = vstv %s3190_s16  ;;  %v3254_v59 = vstv %s3192_s18  ;;  %s3320_s16 = sld [smem:[#allocation7 + $0x84]]  ;;  %s3328_s18 = sld [smem:[#allocation7 + $0x85]] }
  0xb5   : > { %v712_v23 = vmul.f32 %v2379_v1, %v3185_v40  ;;  %v755_v14 = vmul.f32 %v2379_v1, %v3201_v60  ;;  %4279 = vst [vmem:[#allocation64_spill] sm:$0xff] %v3250_v56  ;;  %v727_v60 = vstv %s3217_s12  ;;  %v796_v11 = vmul.f32 %v2379_v1, %v3254_v59  ;;  %s2182_s12 = sld [smem:[#allocation6 + $0x1]] }
  0xb6   : > { %v752_v18 = vadd.f32 %v751_v61, %v748_v34  ;;  %v781_v45 = vadd.f32 %v780_v21, %v777_v49  ;;  %v721_v21 = vstv %s3194_s27  ;;  %v3262_v34 = vstv %s3204_s30  ;;  %s3344_s27 = sld [smem:[#allocation7 + $0x86]]  ;;  %s2180_s30 = sld [smem:[#allocation2 + $0x1]] }
  0xb7   : > { %v2381_v13 = vpop.eup %2380  ;;  %v713_v22 = vadd.f32 %v712_v23, %v709_v30  ;;  %v792_v30 = vmul.f32 %v2377_v38, %v3240_v53  ;;  %v723_v23 = vstv %s3196_s25  ;;  %4280 = vst [vmem:[#allocation65_spill] sm:$0xff] %v3262_v34  ;;  %v3265_v49 = vstv %s3215_s23  ;;  %s3352_s25 = sld [smem:[#allocation7 + $0x87]]  ;;  %s2181_s23 = sld [smem:[#allocation4 + $0x1]] }
  0xb8   : > { %v716_v36 = vmul.f32 %v2381_v13, %v3188_v41  ;;  %v759_v19 = vmul.f32 %v2381_v13, %v3224_v15  ;;  %v756_v52 = vadd.f32 %v755_v14, %v752_v18  ;;  %v785_v61 = vadd.f32 %v784_v46, %v781_v45  ;;  %4281 = vst [vmem:[#allocation66_spill] sm:$0xff] %v3265_v49  ;;  %v726_v41 = vld [vmem:[%s3246_s13] ss:$4 sm:$0x3] }
  0xb9   : > { %v722_v45 = vmul.f32 %v721_v21, %v2858_v0  ;;  %v764_v38 = vmul.f32 %v2864_v3, %v721_v21  ;;  %v800_v46 = vmul.f32 %v2381_v13, %v3265_v49 }
  0xba   : > { %v717_v33 = vadd.f32 %v716_v36, %v713_v22  ;;  %v760_v40 = vadd.f32 %v759_v19, %v756_v52  ;;  %v789_v15 = vadd.f32 %v788_v57, %v785_v61  ;;  %v2161_v22 = vld [vmem:[%s3246_s13 + $0x1] ss:$4 sm:$0x3]  ;;  %v728_v57 = vmul.f32 %v727_v60, %v726_v41 }
  0xbb   : > { %v769_v19 = vmul.f32 %v2161_v22, %v727_v60  ;;  %v3285_v61 = vstv %s3256_s22  ;;  %s3400_s22 = sld [smem:[#allocation7 + $0x103]] }
  0xbc   : > { %v720_v58 = vadd.f32 %v3250_v56, %v717_v33  ;;  %v763_v18 = vadd.f32 %v3262_v34, %v760_v40  ;;  %v793_v14 = vadd.f32 %v792_v30, %v789_v15  ;;  %4282 = vst [vmem:[#allocation67_spill] sm:$0xff] %v3285_v61  ;;  %v2171_v40 = vld [vmem:[%s3246_s13 + $0x2] ss:$4 sm:$0x3]  ;;  %v819_v33 = vstv %s3270_s29  ;;  %s3402_s29 = sld [smem:[#allocation7 + $0x104]] }
  0xbe   : > { %v724_v36 = vmul.f32 %v723_v23, %v720_v58  ;;  %v765_v1 = vmul.f32 %v763_v18, %v723_v23  ;;  %v797_v52 = vadd.f32 %v796_v11, %v793_v14  ;;  %v805_v58 = vmul.f32 %v2866_v4, %v721_v21 }
  0xbf   : > { %v810_v11 = vmul.f32 %v2171_v40, %v727_v60 }
  0xc0   : > { %v725_v0 = vsub.f32 %v722_v45, %v724_v36  ;;  %v766_v3 = vsub.f32 %v764_v38, %v765_v1  ;;  %v801_v15 = vadd.f32 %v800_v46, %v797_v52  ;;  %v839_v52 = vstv %s3280_s26  ;;  %s3459_s26 = sld [smem:[#allocation7 + $0x106]] }
  0xc2   : > { %v3288_v30 = vadd.f32 %v728_v57, %v725_v0  ;;  %v3291_v41 = vadd.f32 %v769_v19, %v766_v3  ;;  %v804_v13 = vadd.f32 %v3285_v61, %v801_v15  ;;  %v829_v19 = vstv %s3278_s19  ;;  %s3404_s19 = sld [smem:[#allocation7 + $0x105]] }
  0xc3   : > { %v849_v0 = vstv %s3282_s20  ;;  %s2193_s20 = sld [smem:[#allocation7 + $0x107]] }
  0xc4   : > { %v812_v45 = vmul.f32 %v3288_v30, %v2862_v2  ;;  %v822_v22 = vmul.f32 %v3288_v30, %v2893_v16  ;;  %v832_v18 = vmul.f32 %v3288_v30, %v2918_v26  ;;  %v842_v4 = vmul.f32 %v3288_v30, %v2939_v35 }
  0xc5   : > { %v806_v21 = vmul.f32 %v804_v13, %v723_v23  ;;  %v813_v38 = vmul.f32 %v3291_v41, %v2870_v6  ;;  %v823_v60 = vmul.f32 %v3291_v41, %v2895_v17  ;;  %v833_v14 = vmul.f32 %v3291_v41, %v2920_v27 }
  0xc6   : > { %v843_v46 = vmul.f32 %v3291_v41, %v2951_v39  ;;  %v852_v36 = vmul.f32 %v3288_v30, %v2973_v50  ;;  %v853_v57 = vmul.f32 %v3291_v41, %v2976_v51  ;;  %v862_v23 = vmul.f32 %v3288_v30, %v3007_v5 }
  0xc7   : > { %v807_v1 = vsub.f32 %v805_v58, %v806_v21  ;;  %v814_v40 = vadd.f32 %v813_v38, %v812_v45  ;;  %v824_v3 = vadd.f32 %v823_v60, %v822_v22  ;;  %v863_v15 = vmul.f32 %v3291_v41, %v3010_v8 }
  0xc8   : > { %v872_v13 = vmul.f32 %v3288_v30, %v3040_v29  ;;  %v834_v51 = vadd.f32 %v833_v14, %v832_v18  ;;  %v844_v39 = vadd.f32 %v843_v46, %v842_v4  ;;  %v873_v58 = vmul.f32 %v3291_v41, %v3045_v31 }
  0xc9   : > { %v3326_v50 = vadd.f32 %v810_v11, %v807_v1  ;;  %v854_v21 = vadd.f32 %v853_v57, %v852_v36  ;;  %v864_v45 = vadd.f32 %v863_v15, %v862_v23  ;;  %v882_v22 = vmul.f32 %v3288_v30, %v3063_v43 }
  0xca   : > { %v883_v38 = vmul.f32 %v3291_v41, %v3066_v44  ;;  %v874_v36 = vadd.f32 %v873_v58, %v872_v13 }
  0xcb   : > { %v815_v60 = vmul.f32 %v3326_v50, %v2872_v7  ;;  %v825_v11 = vmul.f32 %v3326_v50, %v2905_v20  ;;  %v835_v18 = vmul.f32 %v3326_v50, %v2922_v28  ;;  %v845_v4 = vmul.f32 %v3326_v50, %v2957_v42 }
  0xcc   : > { %v855_v14 = vmul.f32 %v3326_v50, %v2988_v55  ;;  %v865_v46 = vmul.f32 %v3326_v50, %v3013_v9  ;;  %v875_v57 = vmul.f32 %v3326_v50, %v3048_v32  ;;  %v884_v8 = vadd.f32 %v883_v38, %v882_v22 }
  0xcd   : > { %v816_v23 = vadd.f32 %v815_v60, %v814_v40  ;;  %v826_v1 = vadd.f32 %v825_v11, %v824_v3  ;;  %v836_v15 = vadd.f32 %v835_v18, %v834_v51  ;;  %v846_v44 = vadd.f32 %v845_v4, %v844_v39 }
  0xce   : > { %v856_v43 = vadd.f32 %v855_v14, %v854_v21  ;;  %v866_v31 = vadd.f32 %v865_v46, %v864_v45  ;;  %v876_v29 = vadd.f32 %v875_v57, %v874_v36  ;;  %v859_v51 = vstv %s3320_s16  ;;  %v4285_v57 = vld [vmem:[#allocation43_spill] sm:$0xff]  ;;  %s2194_s16 = sld [smem:[#allocation2 + $0x2]] }
  0xcf   : > { %v817_v5 = vadd.f32 %v816_v23, %v2879_v12  ;;  %v827_v9 = vadd.f32 %v826_v1, %v2912_v24  ;;  %v837_v13 = vadd.f32 %v836_v15, %v2946_v37  ;;  %v847_v58 = vadd.f32 %v846_v44, %v2968_v47  ;;  %v4286_v1 = vld [vmem:[#allocation49_spill] sm:$0xff] }
  0xd0   : > { %v857_v40 = vadd.f32 %v856_v43, %v3003_v62  ;;  %v867_v39 = vadd.f32 %v866_v31, %v3037_v25  ;;  %v885_v3 = vmul.f32 %v3326_v50, %v3081_v54  ;;  %v869_v38 = vstv %s3328_s18  ;;  %s2195_s18 = sld [smem:[#allocation4 + $0x2]] }
  0xd1   : > { %v820_v21 = vadd.f32 %v819_v33, %v817_v5  ;;  %v830_v45 = vadd.f32 %v829_v19, %v827_v9  ;;  %v840_v22 = vadd.f32 %v839_v52, %v837_v13  ;;  %v850_v60 = vadd.f32 %v849_v0, %v847_v58  ;;  %v4284_v52 = vld [vmem:[#allocation57_spill] sm:$0xff]  ;;  %v4287_v13 = vld [vmem:[#allocation58_spill] sm:$0xff] }
  0xd2   : > { %v877_v11 = vadd.f32 %v876_v29, %v3070_v48  ;;  %v886_v18 = vadd.f32 %v885_v3, %v884_v8  ;;  %v860_v4 = vadd.f32 %v859_v51, %v857_v40  ;;  %v879_v44 = vstv %s3344_s27  ;;  %v4283_v29 = vld [vmem:[#allocation48_spill] sm:$0xff]  ;;  %v4289_v3 = vld [vmem:[#allocation50_spill] sm:$0xff]  ;;  %s2196_s27 = sld [smem:[#allocation6 + $0x2]] }
  0xd3   : > { %2382 = vtanh.f32 %v820_v21  ;;  %v870_v43 = vadd.f32 %v869_v38, %v867_v39  ;;  %v889_v31 = vstv %s3352_s25  ;;  %v4288_v51 = vld [vmem:[#allocation44_spill] sm:$0xff]  ;;  %s3510_s25 = sld [smem:[#allocation7 + $0x180]] }
  0xd4   : > { %2384 = vtanh.f32 %v830_v45  ;;  %v887_v14 = vadd.f32 %v886_v18, %v3094_v63  ;;  %v880_v46 = vadd.f32 %v879_v44, %v877_v11  ;;  %v4290_v45 = vld [vmem:[#allocation59_spill] sm:$0xff]  ;;  %v4291_v11 = vld [vmem:[#allocation45_spill] sm:$0xff] }
  0xd5   : > { %2386 = vtanh.f32 %v840_v22  ;;  %v4292_v44 = vld [vmem:[#allocation51_spill] sm:$0xff] }
  0xd6   : > { %2388 = vtanh.f32 %v850_v60  ;;  %v890_v5 = vadd.f32 %v889_v31, %v887_v14 }
  0xd7   : > { %2390 = vtanh.f32 %v860_v4 }
  0xd8   : > { %2392 = vtanh.f32 %v870_v43 }
  0xd9   : > { %2394 = vtanh.f32 %v880_v46  ;;  %v4293_v46 = vld [vmem:[#allocation61_spill] sm:$0xff] }
  0xda   : > { %2396 = vtanh.f32 %v890_v5 }
  0xdd   : > { %v2383_v9 = vpop.eup %2382 }
  0xde   : > { %v2385_v33 = vpop.eup %2384  ;;  %v895_v8 = vmul.f32 %v2383_v9, %v3097_v10  ;;  %v921_v19 = vmul.f32 %v2383_v9, %v4283_v29  ;;  %v944_v0 = vmul.f32 %v2383_v9, %v4284_v52 }
  0xdf   : > { %v2387_v36 = vpop.eup %2386  ;;  %v896_v23 = vmul.f32 %v2385_v33, %v4285_v57  ;;  %v922_v15 = vmul.f32 %v2385_v33, %v4286_v1  ;;  %v945_v58 = vmul.f32 %v2385_v33, %v4287_v13  ;;  %v4294_v33 = vld [vmem:[#allocation46_spill] sm:$0xff] }
  0xe0   : > { %v2389_v40 = vpop.eup %2388  ;;  %v898_v39 = vmul.f32 %v2387_v36, %v4288_v51  ;;  %v924_v21 = vmul.f32 %v2387_v36, %v4289_v3  ;;  %v947_v22 = vmul.f32 %v2387_v36, %v4290_v45  ;;  %v4295_v51 = vld [vmem:[#allocation52_spill] sm:$0xff]  ;;  %v4296_v45 = vld [vmem:[#allocation62_spill] sm:$0xff] }
  0xe1   : > { %v2391_v38 = vpop.eup %2390  ;;  %v897_v60 = vadd.f32 %v896_v23, %v895_v8  ;;  %v900_v18 = vmul.f32 %v2389_v40, %v4291_v11  ;;  %v923_v4 = vadd.f32 %v922_v15, %v921_v19  ;;  %v926_v43 = vmul.f32 %v2389_v40, %v4292_v44  ;;  %v4297_v11 = vld [vmem:[#allocation47_spill] sm:$0xff]  ;;  %v4298_v44 = vld [vmem:[#allocation53_spill] sm:$0xff] }
  0xe2   : > { %v2393_v14 = vpop.eup %2392  ;;  %v946_v31 = vadd.f32 %v945_v58, %v944_v0  ;;  %v949_v5 = vmul.f32 %v2389_v40, %v4293_v46  ;;  %v902_v13 = vmul.f32 %v2391_v38, %v4294_v33  ;;  %v928_v57 = vmul.f32 %v2391_v38, %v4295_v51 }
  0xe3   : > { %v899_v9 = vadd.f32 %v898_v39, %v897_v60  ;;  %v925_v1 = vadd.f32 %v924_v21, %v923_v4  ;;  %v2395_v3 = vpop.eup %2394  ;;  %v951_v8 = vmul.f32 %v2391_v38, %v4296_v45  ;;  %v904_v19 = vmul.f32 %v2393_v14, %v4297_v11  ;;  %v4299_v21 = vld [vmem:[#allocation54_spill] sm:$0xff]  ;;  %v4300_v4 = vld [vmem:[#allocation56_spill] sm:$0xff] }
  0xe4   : > { %v948_v36 = vadd.f32 %v947_v22, %v946_v31  ;;  %v930_v52 = vmul.f32 %v2393_v14, %v4298_v44  ;;  %v2397_v0 = vpop.eup %2396  ;;  %v953_v40 = vmul.f32 %v2393_v14, %v3240_v53  ;;  %v906_v60 = vmul.f32 %v2395_v3, %v4299_v21  ;;  %v4302_v11 = vld [vmem:[#allocation60_spill] sm:$0xff]  ;;  %v2183_v53 = vld [vmem:[%s3246_s13 + $0x8] ss:$4 sm:$0x3] }
  0xe5   : > { %v901_v23 = vadd.f32 %v900_v18, %v899_v9  ;;  %v927_v15 = vadd.f32 %v926_v43, %v925_v1  ;;  %v932_v38 = vmul.f32 %v2395_v3, %v4300_v4  ;;  %v955_v31 = vmul.f32 %v2395_v3, %v3254_v59  ;;  %v4301_v43 = vld [vmem:[#allocation55_spill] sm:$0xff]  ;;  %v2184_v21 = vld [vmem:[%s3246_s13 + $0x9] ss:$4 sm:$0x3] }
  0xe6   : > { %v950_v58 = vadd.f32 %v949_v5, %v948_v36  ;;  %v908_v9 = vmul.f32 %v2397_v0, %v4301_v43  ;;  %v934_v45 = vmul.f32 %v2397_v0, %v4302_v11  ;;  %v957_v14 = vmul.f32 %v2397_v0, %v3265_v49 }
  0xe7   : > { %v903_v39 = vadd.f32 %v902_v13, %v901_v23  ;;  %v929_v22 = vadd.f32 %v928_v57, %v927_v15  ;;  %v911_v23 = vstv %s2180_s30  ;;  %s3512_s30 = sld [smem:[#allocation7 + $0x181]] }
  0xe8   : > { %v952_v18 = vadd.f32 %v951_v8, %v950_v58  ;;  %v912_v0 = vmul.f32 %v911_v23, %v3288_v30 }
  0xe9   : > { %v905_v1 = vadd.f32 %v904_v19, %v903_v39  ;;  %v931_v44 = vadd.f32 %v930_v52, %v929_v22  ;;  %v913_v52 = vstv %s2181_s23  ;;  %v918_v19 = vstv %s2182_s12  ;;  %s3514_s23 = sld [smem:[#allocation7 + $0x182]]  ;;  %s3516_s12 = sld [smem:[#allocation7 + $0x183]] }
  0xea   : > { %v954_v5 = vadd.f32 %v953_v40, %v952_v18  ;;  %v2185_v40 = vld [vmem:[%s3246_s13 + $0xa] ss:$4 sm:$0x3] }
  0xeb   : > { %v907_v36 = vadd.f32 %v906_v60, %v905_v1  ;;  %v933_v13 = vadd.f32 %v932_v38, %v931_v44  ;;  %v960_v60 = vmul.f32 %v911_v23, %v3326_v50  ;;  %v919_v38 = vmul.f32 %v2183_v53, %v918_v19 }
  0xec   : > { %v956_v57 = vadd.f32 %v955_v31, %v954_v5  ;;  %v942_v31 = vmul.f32 %v2184_v21, %v918_v19  ;;  %v965_v30 = vmul.f32 %v2185_v40, %v918_v19  ;;  %v1024_v53 = vstv %s3404_s19  ;;  %s2209_s19 = sld [smem:[#allocation4 + $0x3]] }
  0xed   : > { %v909_v3 = vadd.f32 %v908_v9, %v907_v36  ;;  %v935_v8 = vadd.f32 %v934_v45, %v933_v13  ;;  %v937_v45 = vmul.f32 %v911_v23, %v3291_v41  ;;  %v974_v41 = vstv %s3394_s14  ;;  %s3518_s14 = sld [smem:[#allocation7 + $0x184]] }
  0xee   : > { %v958_v15 = vadd.f32 %v957_v14, %v956_v57  ;;  %v984_v57 = vstv %s3396_s28  ;;  %v1004_v23 = vstv %s3400_s22  ;;  %s3520_s28 = sld [smem:[#allocation7 + $0x185]]  ;;  %s2207_s22 = sld [smem:[#allocation7 + $0x187]] }
  0xef   : > { %v910_v44 = vadd.f32 %v909_v3, %v3250_v56  ;;  %v936_v58 = vadd.f32 %v935_v8, %v3262_v34  ;;  %v994_v3 = vstv %s3398_s15  ;;  %v1014_v8 = vstv %s3402_s29  ;;  %s3575_s15 = sld [smem:[#allocation7 + $0x186]]  ;;  %s2208_s29 = sld [smem:[#allocation2 + $0x3]] }
  0xf0   : > { %v959_v39 = vadd.f32 %v958_v15, %v3285_v61 }
  0xf1   : > { %v914_v22 = vmul.f32 %v913_v52, %v910_v44  ;;  %v938_v18 = vmul.f32 %v936_v58, %v913_v52 }
  0xf2   : > { %v961_v1 = vmul.f32 %v959_v39, %v913_v52 }
  0xf3   : > { %v915_v9 = vsub.f32 %v912_v0, %v914_v22  ;;  %v939_v5 = vsub.f32 %v937_v45, %v938_v18  ;;  %v4303_v18 = vld [vmem:[#allocation30_spill] sm:$0xff] }
  0xf4   : > { %v962_v14 = vsub.f32 %v960_v60, %v961_v1 }
  0xf5   : > { %v3414_v36 = vadd.f32 %v919_v38, %v915_v9  ;;  %v3416_v13 = vadd.f32 %v942_v31, %v939_v5 }
  0xf6   : > { %v3420_v50 = vadd.f32 %v965_v30, %v962_v14  ;;  %v4304_v30 = vld [vmem:[#allocation32_spill] sm:$0xff] }
  0xf7   : > { %v967_v21 = vmul.f32 %v3414_v36, %v2862_v2  ;;  %v968_v52 = vmul.f32 %v3416_v13, %v2870_v6  ;;  %v977_v19 = vmul.f32 %v3414_v36, %v2893_v16  ;;  %v978_v15 = vmul.f32 %v3416_v13, %v2895_v17 }
  0xf8   : > { %v970_v44 = vmul.f32 %v3420_v50, %v2872_v7  ;;  %v980_v0 = vmul.f32 %v3420_v50, %v2905_v20  ;;  %v987_v58 = vmul.f32 %v3414_v36, %v2918_v26  ;;  %v988_v45 = vmul.f32 %v3416_v13, %v2920_v27 }
  0xf9   : > { %v969_v40 = vadd.f32 %v968_v52, %v967_v21  ;;  %v979_v39 = vadd.f32 %v978_v15, %v977_v19  ;;  %v990_v60 = vmul.f32 %v3420_v50, %v2922_v28  ;;  %v997_v22 = vmul.f32 %v3414_v36, %v2939_v35  ;;  %v4305_v21 = vld [vmem:[#allocation33_spill] sm:$0xff] }
  0xfa   : > { %v989_v38 = vadd.f32 %v988_v45, %v987_v58  ;;  %v998_v31 = vmul.f32 %v3416_v13, %v4303_v18  ;;  %v1000_v1 = vmul.f32 %v3420_v50, %v2957_v42  ;;  %v1007_v9 = vmul.f32 %v3414_v36, %v4304_v30  ;;  %v4306_v58 = vld [vmem:[#allocation35_spill] sm:$0xff]  ;;  %v4307_v18 = vld [vmem:[#allocation36_spill] sm:$0xff] }
  0xfb   : > { %v971_v5 = vadd.f32 %v970_v44, %v969_v40  ;;  %v981_v14 = vadd.f32 %v980_v0, %v979_v39  ;;  %v1008_v52 = vmul.f32 %v3416_v13, %v4305_v21  ;;  %v1010_v19 = vmul.f32 %v3420_v50, %v2988_v55  ;;  %v4308_v40 = vld [vmem:[#allocation37_spill] sm:$0xff]  ;;  %v4310_v42 = vld [vmem:[#allocation39_spill] sm:$0xff] }
  0xfc   : > { %v991_v15 = vadd.f32 %v990_v60, %v989_v38  ;;  %v999_v35 = vadd.f32 %v998_v31, %v997_v22  ;;  %v1017_v45 = vmul.f32 %v3414_v36, %v4306_v58  ;;  %v1018_v28 = vmul.f32 %v3416_v13, %v4307_v18  ;;  %v4309_v38 = vld [vmem:[#allocation38_spill] sm:$0xff] }
  0xfd   : > { %v972_v30 = vadd.f32 %v971_v5, %v2879_v12  ;;  %v982_v44 = vadd.f32 %v981_v14, %v2912_v24  ;;  %v1009_v0 = vadd.f32 %v1008_v52, %v1007_v9  ;;  %v1020_v39 = vmul.f32 %v3420_v50, %v4308_v40 }
  0xfe   : > { %v992_v55 = vadd.f32 %v991_v15, %v2946_v37  ;;  %v1001_v60 = vadd.f32 %v1000_v1, %v999_v35  ;;  %v1019_v22 = vadd.f32 %v1018_v28, %v1017_v45  ;;  %v1027_v31 = vmul.f32 %v3414_v36, %v4309_v38  ;;  %v4311_v1 = vld [vmem:[#allocation40_spill] sm:$0xff] }
  0xff   : > { %v975_v58 = vadd.f32 %v974_v41, %v972_v30  ;;  %v985_v21 = vadd.f32 %v984_v57, %v982_v44  ;;  %v1011_v18 = vadd.f32 %v1010_v19, %v1009_v0  ;;  %v1028_v27 = vmul.f32 %v3416_v13, %v4310_v42  ;;  %v4312_v19 = vld [vmem:[#allocation41_spill] sm:$0xff] }
 0x100   : > { %v995_v5 = vadd.f32 %v994_v3, %v992_v55  ;;  %v1002_v9 = vadd.f32 %v1001_v60, %v2968_v47  ;;  %v1021_v14 = vadd.f32 %v1020_v39, %v1019_v22  ;;  %v1030_v52 = vmul.f32 %v3420_v50, %v3048_v32 }
 0x101   : > { %2398 = vtanh.f32 %v975_v58  ;;  %v1012_v28 = vadd.f32 %v1011_v18, %v3003_v62  ;;  %v1029_v35 = vadd.f32 %v1028_v27, %v1027_v31  ;;  %v1037_v41 = vmul.f32 %v3414_v36, %v4311_v1 }
 0x102   : > { %2400 = vtanh.f32 %v985_v21  ;;  %v1005_v57 = vadd.f32 %v1004_v23, %v1002_v9  ;;  %v1022_v30 = vadd.f32 %v1021_v14, %v3037_v25  ;;  %v1038_v55 = vmul.f32 %v3416_v13, %v4312_v19 }
 0x103   : > { %2402 = vtanh.f32 %v995_v5  ;;  %v1015_v3 = vadd.f32 %v1014_v8, %v1012_v28  ;;  %v1031_v15 = vadd.f32 %v1030_v52, %v1029_v35  ;;  %v1040_v45 = vmul.f32 %v3420_v50, %v3081_v54  ;;  %v4313_v5 = vld [vmem:[#allocation57_spill] sm:$0xff]  ;;  %v4314_v52 = vld [vmem:[#allocation43_spill] sm:$0xff] }
 0x104   : > { %2404 = vtanh.f32 %v1005_v57  ;;  %v1025_v58 = vadd.f32 %v1024_v53, %v1022_v30  ;;  %v1034_v18 = vstv %s3459_s26  ;;  %v1039_v27 = vadd.f32 %v1038_v55, %v1037_v41  ;;  %v4315_v35 = vld [vmem:[#allocation49_spill] sm:$0xff]  ;;  %v4316_v57 = vld [vmem:[#allocation58_spill] sm:$0xff]  ;;  %s2210_s26 = sld [smem:[#allocation6 + $0x3]] }
 0x105   : > { %2406 = vtanh.f32 %v1015_v3  ;;  %v1032_v44 = vadd.f32 %v1031_v15, %v3070_v48  ;;  %v1044_v0 = vstv %s2193_s20  ;;  %v4317_v3 = vld [vmem:[#allocation44_spill] sm:$0xff]  ;;  %s3626_s20 = sld [smem:[#allocation7 + $0x200]] }
 0x106   : > { %2408 = vtanh.f32 %v1025_v58  ;;  %v1041_v23 = vadd.f32 %v1040_v45, %v1039_v27  ;;  %v4318_v45 = vld [vmem:[#allocation50_spill] sm:$0xff] }
 0x107   : > { %v1035_v21 = vadd.f32 %v1034_v18, %v1032_v44  ;;  %v4319_v18 = vld [vmem:[#allocation59_spill] sm:$0xff] }
 0x108   : > { %v1042_v39 = vadd.f32 %v1041_v23, %v3094_v63 }
 0x109   : > { %2410 = vtanh.f32 %v1035_v21  ;;  %v4320_v21 = vld [vmem:[#allocation45_spill] sm:$0xff] }
 0x10a   : > { %v1045_v60 = vadd.f32 %v1044_v0, %v1042_v39 }
 0x10b   : > { %v2399_v8 = vpop.eup %2398 }
 0x10c   : > { %v2401_v22 = vpop.eup %2400  ;;  %2412 = vtanh.f32 %v1045_v60  ;;  %v1050_v31 = vmul.f32 %v2399_v8, %v3097_v10  ;;  %v1076_v53 = vmul.f32 %v2399_v8, %v4283_v29  ;;  %v1099_v9 = vmul.f32 %v2399_v8, %v4313_v5  ;;  %v4321_v60 = vld [vmem:[#allocation51_spill] sm:$0xff] }
 0x10d   : > { %v2403_v14 = vpop.eup %2402  ;;  %v1051_v28 = vmul.f32 %v2401_v22, %v4314_v52  ;;  %v1077_v41 = vmul.f32 %v2401_v22, %v4315_v35  ;;  %v1100_v30 = vmul.f32 %v2401_v22, %v4316_v57 }
 0x10e   : > { %v2405_v55 = vpop.eup %2404  ;;  %v1053_v15 = vmul.f32 %v2403_v14, %v4317_v3  ;;  %v1079_v58 = vmul.f32 %v2403_v14, %v4318_v45  ;;  %v1102_v27 = vmul.f32 %v2403_v14, %v4319_v18  ;;  %v4322_v14 = vld [vmem:[#allocation62_spill] sm:$0xff] }
 0x10f   : > { %v2407_v44 = vpop.eup %2406  ;;  %v1052_v23 = vadd.f32 %v1051_v28, %v1050_v31  ;;  %v1055_v0 = vmul.f32 %v2405_v55, %v4320_v21  ;;  %v1078_v39 = vadd.f32 %v1077_v41, %v1076_v53  ;;  %v1081_v8 = vmul.f32 %v2405_v55, %v4321_v60  ;;  %v4323_v21 = vld [vmem:[#allocation47_spill] sm:$0xff]  ;;  %v4324_v60 = vld [vmem:[#allocation53_spill] sm:$0xff] }
 0x110   : > { %v2409_v5 = vpop.eup %2408  ;;  %v1101_v52 = vadd.f32 %v1100_v30, %v1099_v9  ;;  %v1104_v35 = vmul.f32 %v2405_v55, %v4293_v46  ;;  %v1057_v22 = vmul.f32 %v2407_v44, %v4294_v33  ;;  %v1083_v3 = vmul.f32 %v2407_v44, %v4295_v51  ;;  %v4325_v30 = vld [vmem:[#allocation63_spill] sm:$0xff] }
 0x111   : > { %v1054_v29 = vadd.f32 %v1053_v15, %v1052_v23  ;;  %v1080_v57 = vadd.f32 %v1079_v58, %v1078_v39  ;;  %v1106_v18 = vmul.f32 %v2407_v44, %v4322_v14  ;;  %v1059_v53 = vmul.f32 %v2409_v5, %v4323_v21  ;;  %v4326_v58 = vld [vmem:[#allocation54_spill] sm:$0xff] }
 0x112   : > { %v1103_v45 = vadd.f32 %v1102_v27, %v1101_v52  ;;  %v1085_v10 = vmul.f32 %v2409_v5, %v4324_v60  ;;  %v1108_v55 = vmul.f32 %v2409_v5, %v4325_v30  ;;  %v2197_v30 = vld [vmem:[%s3246_s13 + $0x10] ss:$4 sm:$0x3] }
 0x113   : > { %v2411_v31 = vpop.eup %2410  ;;  %v1056_v28 = vadd.f32 %v1055_v0, %v1054_v29  ;;  %v1082_v41 = vadd.f32 %v1081_v8, %v1080_v57 }
 0x114   : > { %v1105_v9 = vadd.f32 %v1104_v35, %v1103_v45  ;;  %v1061_v23 = vmul.f32 %v2411_v31, %v4326_v58  ;;  %v1087_v27 = vmul.f32 %v2411_v31, %v4300_v4  ;;  %v1110_v0 = vmul.f32 %v2411_v31, %v3254_v59 }
 0x115   : > { %v1058_v15 = vadd.f32 %v1057_v22, %v1056_v28  ;;  %v1084_v52 = vadd.f32 %v1083_v3, %v1082_v41  ;;  %v1066_v58 = vstv %s2194_s16  ;;  %v2198_v3 = vld [vmem:[%s3246_s13 + $0x11] ss:$4 sm:$0x3]  ;;  %s3628_s16 = sld [smem:[#allocation7 + $0x201]] }
 0x116   : > { %v2413_v44 = vpop.eup %2412  ;;  %v1107_v29 = vadd.f32 %v1106_v18, %v1105_v9 }
 0x117   : > { %v1060_v57 = vadd.f32 %v1059_v53, %v1058_v15  ;;  %v1063_v39 = vmul.f32 %v2413_v44, %v4301_v43  ;;  %v1086_v8 = vadd.f32 %v1085_v10, %v1084_v52  ;;  %v1089_v35 = vmul.f32 %v2413_v44, %v4302_v11 }
 0x118   : > { %v1109_v45 = vadd.f32 %v1108_v55, %v1107_v29  ;;  %v1112_v5 = vmul.f32 %v2413_v44, %v3265_v49  ;;  %v1068_v10 = vstv %s2195_s18  ;;  %v1073_v53 = vstv %s2196_s27  ;;  %s3630_s18 = sld [smem:[#allocation7 + $0x202]]  ;;  %s3632_s27 = sld [smem:[#allocation7 + $0x203]] }
 0x119   : > { %v1062_v22 = vadd.f32 %v1061_v23, %v1060_v57  ;;  %v1088_v28 = vadd.f32 %v1087_v27, %v1086_v8  ;;  %v1067_v15 = vmul.f32 %v1066_v58, %v3414_v36  ;;  %v1092_v52 = vmul.f32 %v1066_v58, %v3416_v13  ;;  %v2199_v27 = vld [vmem:[%s3246_s13 + $0x12] ss:$4 sm:$0x3] }
 0x11a   : > { %v1111_v41 = vadd.f32 %v1110_v0, %v1109_v45  ;;  %v1115_v29 = vmul.f32 %v1066_v58, %v3420_v50  ;;  %v1074_v57 = vmul.f32 %v2197_v30, %v1073_v53  ;;  %v1097_v8 = vmul.f32 %v2198_v3, %v1073_v53 }
 0x11b   : > { %v1064_v18 = vadd.f32 %v1063_v39, %v1062_v22  ;;  %v1090_v31 = vadd.f32 %v1089_v35, %v1088_v28  ;;  %v1120_v36 = vmul.f32 %v2199_v27, %v1073_v53  ;;  %v1129_v13 = vstv %s3510_s25  ;;  %v4327_v27 = vld [vmem:[#allocation27_spill] sm:$0xff]  ;;  %s3634_s25 = sld [smem:[#allocation7 + $0x204]] }
 0x11c   : > { %v1113_v9 = vadd.f32 %v1112_v5, %v1111_v41  ;;  %v1159_v58 = vstv %s3516_s12  ;;  %v1179_v30 = vstv %s3520_s28  ;;  %s2221_s12 = sld [smem:[#allocation7 + $0x207]]  ;;  %s2223_s28 = sld [smem:[#allocation4 + $0x4]] }
 0x11d   : > { %v1065_v55 = vadd.f32 %v1064_v18, %v3250_v56  ;;  %v1091_v23 = vadd.f32 %v1090_v31, %v3262_v34  ;;  %v1139_v18 = vstv %s3512_s30  ;;  %v1149_v31 = vstv %s3514_s23  ;;  %s3636_s30 = sld [smem:[#allocation7 + $0x205]]  ;;  %s3691_s23 = sld [smem:[#allocation7 + $0x206]] }
 0x11e   : > { %v1114_v44 = vadd.f32 %v1113_v9, %v3285_v61  ;;  %v1169_v9 = vstv %s3518_s14  ;;  %s2222_s14 = sld [smem:[#allocation2 + $0x4]] }
 0x11f   : > { %v1069_v0 = vmul.f32 %v1068_v10, %v1065_v55  ;;  %v1093_v39 = vmul.f32 %v1091_v23, %v1068_v10 }
 0x120   : > { %v1116_v35 = vmul.f32 %v1114_v44, %v1068_v10 }
 0x121   : > { %v1070_v45 = vsub.f32 %v1067_v15, %v1069_v0  ;;  %v1094_v5 = vsub.f32 %v1092_v52, %v1093_v39 }
 0x122   : > { %v1117_v22 = vsub.f32 %v1115_v29, %v1116_v35 }
 0x123   : > { %v3530_v28 = vadd.f32 %v1074_v57, %v1070_v45  ;;  %v3532_v41 = vadd.f32 %v1097_v8, %v1094_v5  ;;  %v4328_v57 = vld [vmem:[#allocation28_spill] sm:$0xff]  ;;  %v4329_v8 = vld [vmem:[#allocation29_spill] sm:$0xff]  ;;  %v4330_v45 = vld [vmem:[#allocation30_spill] sm:$0xff] }
 0x124   : > { %v3536_v50 = vadd.f32 %v1120_v36, %v1117_v22  ;;  %v4331_v22 = vld [vmem:[#allocation31_spill] sm:$0xff] }
 0x125   : > { %v1122_v3 = vmul.f32 %v3530_v28, %v2862_v2  ;;  %v1123_v10 = vmul.f32 %v3532_v41, %v2870_v6  ;;  %v1132_v53 = vmul.f32 %v3530_v28, %v2893_v16  ;;  %v1133_v55 = vmul.f32 %v3532_v41, %v2895_v17 }
 0x126   : > { %v1125_v15 = vmul.f32 %v3536_v50, %v2872_v7  ;;  %v1135_v23 = vmul.f32 %v3536_v50, %v2905_v20  ;;  %v1142_v52 = vmul.f32 %v3530_v28, %v2918_v26  ;;  %v1143_v44 = vmul.f32 %v3532_v41, %v4327_v27  ;;  %v4332_v7 = vld [vmem:[#allocation32_spill] sm:$0xff] }
 0x127   : > { %v1124_v29 = vadd.f32 %v1123_v10, %v1122_v3  ;;  %v1134_v0 = vadd.f32 %v1133_v55, %v1132_v53  ;;  %v1145_v39 = vmul.f32 %v3536_v50, %v4328_v57  ;;  %v1152_v35 = vmul.f32 %v3530_v28, %v4329_v8  ;;  %v4333_v3 = vld [vmem:[#allocation33_spill] sm:$0xff]  ;;  %v4334_v53 = vld [vmem:[#allocation34_spill] sm:$0xff] }
 0x128   : > { %v1144_v36 = vadd.f32 %v1143_v44, %v1142_v52  ;;  %v1153_v5 = vmul.f32 %v3532_v41, %v4330_v45  ;;  %v1155_v20 = vmul.f32 %v3536_v50, %v4331_v22  ;;  %v1162_v26 = vmul.f32 %v3530_v28, %v4332_v7  ;;  %v4335_v52 = vld [vmem:[#allocation35_spill] sm:$0xff]  ;;  %v4336_v45 = vld [vmem:[#allocation36_spill] sm:$0xff] }
 0x129   : > { %v1126_v17 = vadd.f32 %v1125_v15, %v1124_v29  ;;  %v1136_v27 = vadd.f32 %v1135_v23, %v1134_v0  ;;  %v1163_v10 = vmul.f32 %v3532_v41, %v4333_v3  ;;  %v1165_v55 = vmul.f32 %v3536_v50, %v4334_v53 }
 0x12a   : > { %v1146_v57 = vadd.f32 %v1145_v39, %v1144_v36  ;;  %v1154_v8 = vadd.f32 %v1153_v5, %v1152_v35  ;;  %v1172_v44 = vmul.f32 %v3530_v28, %v4335_v52  ;;  %v1173_v16 = vmul.f32 %v3532_v41, %v4336_v45 }
 0x12b   : > { %v1127_v7 = vadd.f32 %v1126_v17, %v2879_v12  ;;  %v1137_v15 = vadd.f32 %v1136_v27, %v2912_v24  ;;  %v1164_v23 = vadd.f32 %v1163_v10, %v1162_v26  ;;  %v1175_v29 = vmul.f32 %v3536_v50, %v4308_v40 }
 0x12c   : > { %v1147_v0 = vadd.f32 %v1146_v57, %v2946_v37  ;;  %v1156_v39 = vadd.f32 %v1155_v20, %v1154_v8  ;;  %v1174_v35 = vadd.f32 %v1173_v16, %v1172_v44  ;;  %v1182_v36 = vmul.f32 %v3530_v28, %v4309_v38 }
 0x12d   : > { %v1130_v5 = vadd.f32 %v1129_v13, %v1127_v7  ;;  %v1140_v52 = vadd.f32 %v1139_v18, %v1137_v15  ;;  %v1166_v45 = vadd.f32 %v1165_v55, %v1164_v23  ;;  %v1183_v53 = vmul.f32 %v3532_v41, %v4310_v42 }
 0x12e   : > { %v1150_v17 = vadd.f32 %v1149_v31, %v1147_v0  ;;  %v1157_v26 = vadd.f32 %v1156_v39, %v2968_v47  ;;  %v1176_v27 = vadd.f32 %v1175_v29, %v1174_v35  ;;  %v1185_v57 = vmul.f32 %v3536_v50, %v3048_v32  ;;  %v4337_v35 = vld [vmem:[#allocation42_spill] sm:$0xff] }
 0x12f   : > { %2414 = vtanh.f32 %v1130_v5  ;;  %v1167_v16 = vadd.f32 %v1166_v45, %v3003_v62  ;;  %v1184_v20 = vadd.f32 %v1183_v53, %v1182_v36  ;;  %v1192_v7 = vmul.f32 %v3530_v28, %v4311_v1  ;;  %v4338_v5 = vld [vmem:[#allocation48_spill] sm:$0xff] }
 0x130   : > { %2416 = vtanh.f32 %v1140_v52  ;;  %v1160_v13 = vadd.f32 %v1159_v58, %v1157_v26  ;;  %v1177_v18 = vadd.f32 %v1176_v27, %v3037_v25  ;;  %v1193_v31 = vmul.f32 %v3532_v41, %v4312_v19 }
 0x131   : > { %2418 = vtanh.f32 %v1150_v17  ;;  %v1170_v8 = vadd.f32 %v1169_v9, %v1167_v16  ;;  %v1186_v10 = vadd.f32 %v1185_v57, %v1184_v20  ;;  %v1195_v55 = vmul.f32 %v3536_v50, %v3081_v54  ;;  %v4339_v17 = vld [vmem:[#allocation57_spill] sm:$0xff]  ;;  %v4340_v57 = vld [vmem:[#allocation43_spill] sm:$0xff] }
 0x132   : > { %2420 = vtanh.f32 %v1160_v13  ;;  %v1180_v44 = vadd.f32 %v1179_v30, %v1177_v18  ;;  %v1189_v45 = vstv %s3575_s15  ;;  %v1194_v53 = vadd.f32 %v1193_v31, %v1192_v7  ;;  %v4341_v20 = vld [vmem:[#allocation49_spill] sm:$0xff]  ;;  %v4342_v13 = vld [vmem:[#allocation58_spill] sm:$0xff]  ;;  %s2224_s15 = sld [smem:[#allocation6 + $0x4]] }
 0x133   : > { %2422 = vtanh.f32 %v1170_v8  ;;  %v1187_v15 = vadd.f32 %v1186_v10, %v3070_v48  ;;  %v1199_v23 = vstv %s2207_s22  ;;  %v4343_v8 = vld [vmem:[#allocation44_spill] sm:$0xff]  ;;  %s3742_s22 = sld [smem:[#allocation7 + $0x280]] }
 0x134   : > { %2424 = vtanh.f32 %v1180_v44  ;;  %v1196_v58 = vadd.f32 %v1195_v55, %v1194_v53  ;;  %v4344_v55 = vld [vmem:[#allocation50_spill] sm:$0xff] }
 0x135   : > { %v1190_v52 = vadd.f32 %v1189_v45, %v1187_v15  ;;  %v4345_v45 = vld [vmem:[#allocation59_spill] sm:$0xff] }
 0x136   : > { %v1197_v29 = vadd.f32 %v1196_v58, %v3094_v63 }
 0x137   : > { %2426 = vtanh.f32 %v1190_v52  ;;  %v4346_v52 = vld [vmem:[#allocation45_spill] sm:$0xff] }
 0x138   : > { %v1200_v0 = vadd.f32 %v1199_v23, %v1197_v29 }
 0x139   : > { %v2415_v9 = vpop.eup %2414 }
 0x13a   : > { %v2417_v39 = vpop.eup %2416  ;;  %2428 = vtanh.f32 %v1200_v0  ;;  %v1205_v36 = vmul.f32 %v2415_v9, %v4337_v35  ;;  %v1231_v30 = vmul.f32 %v2415_v9, %v4338_v5  ;;  %v1254_v26 = vmul.f32 %v2415_v9, %v4339_v17  ;;  %v4347_v0 = vld [vmem:[#allocation51_spill] sm:$0xff] }
 0x13b   : > { %v2419_v27 = vpop.eup %2418  ;;  %v1206_v16 = vmul.f32 %v2417_v39, %v4340_v57  ;;  %v1232_v7 = vmul.f32 %v2417_v39, %v4341_v20  ;;  %v1255_v18 = vmul.f32 %v2417_v39, %v4342_v13 }
 0x13c   : > { %v2421_v31 = vpop.eup %2420  ;;  %v1208_v10 = vmul.f32 %v2419_v27, %v4343_v8  ;;  %v1234_v44 = vmul.f32 %v2419_v27, %v4344_v55  ;;  %v1257_v53 = vmul.f32 %v2419_v27, %v4345_v45 }
 0x13d   : > { %v2423_v15 = vpop.eup %2422  ;;  %v1207_v58 = vadd.f32 %v1206_v16, %v1205_v36  ;;  %v1210_v23 = vmul.f32 %v2421_v31, %v4346_v52  ;;  %v1233_v29 = vadd.f32 %v1232_v7, %v1231_v30  ;;  %v1236_v9 = vmul.f32 %v2421_v31, %v4347_v0 }
 0x13e   : > { %v2425_v17 = vpop.eup %2424  ;;  %v1256_v57 = vadd.f32 %v1255_v18, %v1254_v26  ;;  %v1259_v20 = vmul.f32 %v2421_v31, %v4293_v46  ;;  %v1212_v39 = vmul.f32 %v2423_v15, %v4294_v33  ;;  %v1238_v8 = vmul.f32 %v2423_v15, %v4295_v51  ;;  %v4348_v18 = vld [vmem:[#allocation63_spill] sm:$0xff] }
 0x13f   : > { %v1209_v5 = vadd.f32 %v1208_v10, %v1207_v58  ;;  %v1235_v13 = vadd.f32 %v1234_v44, %v1233_v29  ;;  %v1261_v27 = vmul.f32 %v2423_v15, %v4322_v14  ;;  %v1214_v30 = vmul.f32 %v2425_v17, %v4323_v21  ;;  %v4349_v44 = vld [vmem:[#allocation54_spill] sm:$0xff] }
 0x140   : > { %v1258_v55 = vadd.f32 %v1257_v53, %v1256_v57  ;;  %v1240_v0 = vmul.f32 %v2425_v17, %v4324_v60  ;;  %v1263_v31 = vmul.f32 %v2425_v17, %v4348_v18  ;;  %v2211_v18 = vld [vmem:[%s3246_s13 + $0x18] ss:$4 sm:$0x3] }
 0x141   : > { %v2427_v36 = vpop.eup %2426  ;;  %v1211_v16 = vadd.f32 %v1210_v23, %v1209_v5  ;;  %v1237_v7 = vadd.f32 %v1236_v9, %v1235_v13 }
 0x142   : > { %v1260_v26 = vadd.f32 %v1259_v20, %v1258_v55  ;;  %v1216_v58 = vmul.f32 %v2427_v36, %v4349_v44  ;;  %v1242_v53 = vmul.f32 %v2427_v36, %v4300_v4  ;;  %v1265_v23 = vmul.f32 %v2427_v36, %v3254_v59 }
 0x143   : > { %v1213_v10 = vadd.f32 %v1212_v39, %v1211_v16  ;;  %v1239_v57 = vadd.f32 %v1238_v8, %v1237_v7  ;;  %v1221_v44 = vstv %s2208_s29  ;;  %v2212_v8 = vld [vmem:[%s3246_s13 + $0x19] ss:$4 sm:$0x3]  ;;  %s3744_s29 = sld [smem:[#allocation7 + $0x281]] }
 0x144   : > { %v2429_v15 = vpop.eup %2428  ;;  %v1262_v5 = vadd.f32 %v1261_v27, %v1260_v26 }
 0x145   : > { %v1215_v13 = vadd.f32 %v1214_v30, %v1213_v10  ;;  %v1218_v29 = vmul.f32 %v2429_v15, %v4301_v43  ;;  %v1241_v9 = vadd.f32 %v1240_v0, %v1239_v57  ;;  %v1244_v20 = vmul.f32 %v2429_v15, %v4302_v11 }
 0x146   : > { %v1264_v55 = vadd.f32 %v1263_v31, %v1262_v5  ;;  %v1267_v17 = vmul.f32 %v2429_v15, %v3265_v49  ;;  %v1223_v0 = vstv %s2209_s19  ;;  %v1228_v30 = vstv %s2210_s26  ;;  %s3746_s19 = sld [smem:[#allocation7 + $0x282]]  ;;  %s3748_s26 = sld [smem:[#allocation7 + $0x283]] }
 0x147   : > { %v1217_v39 = vadd.f32 %v1216_v58, %v1215_v13  ;;  %v1243_v16 = vadd.f32 %v1242_v53, %v1241_v9  ;;  %v1222_v10 = vmul.f32 %v1221_v44, %v3530_v28  ;;  %v1247_v57 = vmul.f32 %v1221_v44, %v3532_v41  ;;  %v2213_v53 = vld [vmem:[%s3246_s13 + $0x1a] ss:$4 sm:$0x3] }
 0x148   : > { %v1266_v7 = vadd.f32 %v1265_v23, %v1264_v55  ;;  %v1270_v5 = vmul.f32 %v1221_v44, %v3536_v50  ;;  %v1229_v13 = vmul.f32 %v2211_v18, %v1228_v30  ;;  %v1252_v9 = vmul.f32 %v2212_v8, %v1228_v30 }
 0x149   : > { %v1219_v27 = vadd.f32 %v1218_v29, %v1217_v39  ;;  %v1245_v36 = vadd.f32 %v1244_v20, %v1243_v16  ;;  %v1275_v28 = vmul.f32 %v2213_v53, %v1228_v30  ;;  %v1284_v41 = vstv %s3626_s20  ;;  %v4350_v30 = vld [vmem:[#allocation23_spill] sm:$0xff]  ;;  %s3750_s20 = sld [smem:[#allocation7 + $0x284]] }
 0x14a   : > { %v1268_v26 = vadd.f32 %v1267_v17, %v1266_v7  ;;  %v1314_v44 = vstv %s3632_s27  ;;  %v1334_v18 = vstv %s3636_s30  ;;  %s2235_s27 = sld [smem:[#allocation7 + $0x287]]  ;;  %s2237_s30 = sld [smem:[#allocation4 + $0x5]] }
 0x14b   : > { %v1220_v31 = vadd.f32 %v1219_v27, %v3250_v56  ;;  %v1246_v58 = vadd.f32 %v1245_v36, %v3262_v34  ;;  %v1294_v27 = vstv %s3628_s16  ;;  %v1304_v36 = vstv %s3630_s18  ;;  %s3752_s16 = sld [smem:[#allocation7 + $0x285]]  ;;  %s3807_s18 = sld [smem:[#allocation7 + $0x286]] }
 0x14c   : > { %v1269_v15 = vadd.f32 %v1268_v26, %v3285_v61  ;;  %v1324_v26 = vstv %s3634_s25  ;;  %s2236_s25 = sld [smem:[#allocation2 + $0x5]] }
 0x14d   : > { %v1224_v23 = vmul.f32 %v1223_v0, %v1220_v31  ;;  %v1248_v29 = vmul.f32 %v1246_v58, %v1223_v0 }
 0x14e   : > { %v1271_v20 = vmul.f32 %v1269_v15, %v1223_v0  ;;  %v4353_v15 = vld [vmem:[#allocation25_spill] sm:$0xff] }
 0x14f   : > { %v1225_v55 = vsub.f32 %v1222_v10, %v1224_v23  ;;  %v1249_v17 = vsub.f32 %v1247_v57, %v1248_v29  ;;  %v4351_v10 = vld [vmem:[#allocation24_spill] sm:$0xff]  ;;  %v4352_v57 = vld [vmem:[#allocation22_spill] sm:$0xff]  ;;  %v4355_v29 = vld [vmem:[#allocation27_spill] sm:$0xff] }
 0x150   : > { %v1272_v39 = vsub.f32 %v1270_v5, %v1271_v20  ;;  %v4354_v23 = vld [vmem:[#allocation26_spill] sm:$0xff] }
 0x151   : > { %v3646_v16 = vadd.f32 %v1229_v13, %v1225_v55  ;;  %v3648_v7 = vadd.f32 %v1252_v9, %v1249_v17  ;;  %v4356_v55 = vld [vmem:[#allocation28_spill] sm:$0xff] }
 0x152   : > { %v3652_v50 = vadd.f32 %v1275_v28, %v1272_v39  ;;  %v4357_v39 = vld [vmem:[#allocation29_spill] sm:$0xff] }
 0x153   : > { %v1277_v8 = vmul.f32 %v3646_v16, %v2862_v2  ;;  %v1278_v0 = vmul.f32 %v3648_v7, %v2870_v6  ;;  %v1287_v31 = vmul.f32 %v3646_v16, %v4350_v30  ;;  %v1288_v58 = vmul.f32 %v3648_v7, %v4351_v10  ;;  %v4358_v6 = vld [vmem:[#allocation30_spill] sm:$0xff]  ;;  %v4359_v2 = vld [vmem:[#allocation32_spill] sm:$0xff] }
 0x154   : > { %v1280_v53 = vmul.f32 %v3652_v50, %v4352_v57  ;;  %v1290_v5 = vmul.f32 %v3652_v50, %v4353_v15  ;;  %v1297_v13 = vmul.f32 %v3646_v16, %v4354_v23  ;;  %v1298_v9 = vmul.f32 %v3648_v7, %v4355_v29 }
 0x155   : > { %v1279_v20 = vadd.f32 %v1278_v0, %v1277_v8  ;;  %v1289_v28 = vadd.f32 %v1288_v58, %v1287_v31  ;;  %v1300_v17 = vmul.f32 %v3652_v50, %v4356_v55  ;;  %v1307_v10 = vmul.f32 %v3646_v16, %v4357_v39  ;;  %v4360_v0 = vld [vmem:[#allocation34_spill] sm:$0xff] }
 0x156   : > { %v1299_v30 = vadd.f32 %v1298_v9, %v1297_v13  ;;  %v1308_v57 = vmul.f32 %v3648_v7, %v4358_v6  ;;  %v1310_v15 = vmul.f32 %v3652_v50, %v4331_v22  ;;  %v1317_v23 = vmul.f32 %v3646_v16, %v4359_v2  ;;  %v4361_v13 = vld [vmem:[#allocation35_spill] sm:$0xff]  ;;  %v4362_v6 = vld [vmem:[#allocation36_spill] sm:$0xff] }
 0x157   : > { %v1281_v61 = vadd.f32 %v1280_v53, %v1279_v20  ;;  %v1291_v29 = vadd.f32 %v1290_v5, %v1289_v28  ;;  %v1318_v8 = vmul.f32 %v3648_v7, %v4333_v3  ;;  %v1320_v31 = vmul.f32 %v3652_v50, %v4360_v0 }
 0x158   : > { %v1301_v58 = vadd.f32 %v1300_v17, %v1299_v30  ;;  %v1309_v39 = vadd.f32 %v1308_v57, %v1307_v10  ;;  %v1327_v9 = vmul.f32 %v3646_v16, %v4361_v13  ;;  %v1328_v55 = vmul.f32 %v3648_v7, %v4362_v6 }
 0x159   : > { %v1282_v2 = vadd.f32 %v1281_v61, %v2879_v12  ;;  %v1292_v53 = vadd.f32 %v1291_v29, %v2912_v24  ;;  %v1319_v5 = vadd.f32 %v1318_v8, %v1317_v23  ;;  %v1330_v20 = vmul.f32 %v3652_v50, %v4308_v40 }
 0x15a   : > { %v1302_v28 = vadd.f32 %v1301_v58, %v2946_v37  ;;  %v1311_v30 = vadd.f32 %v1310_v15, %v1309_v39  ;;  %v1329_v10 = vadd.f32 %v1328_v55, %v1327_v9  ;;  %v1337_v57 = vmul.f32 %v3646_v16, %v4309_v38 }
 0x15b   : > { %v1285_v17 = vadd.f32 %v1284_v41, %v1282_v2  ;;  %v1295_v13 = vadd.f32 %v1294_v27, %v1292_v53  ;;  %v1321_v6 = vadd.f32 %v1320_v31, %v1319_v5  ;;  %v1338_v0 = vmul.f32 %v3648_v7, %v4310_v42 }
 0x15c   : > { %v1305_v61 = vadd.f32 %v1304_v36, %v1302_v28  ;;  %v1312_v23 = vadd.f32 %v1311_v30, %v2968_v47  ;;  %v1331_v29 = vadd.f32 %v1330_v20, %v1329_v10  ;;  %v1340_v8 = vmul.f32 %v3652_v50, %v3048_v32 }
 0x15d   : > { %2430 = vtanh.f32 %v1285_v17  ;;  %v1322_v15 = vadd.f32 %v1321_v6, %v3003_v62  ;;  %v1339_v55 = vadd.f32 %v1338_v0, %v1337_v57  ;;  %v1347_v2 = vmul.f32 %v3646_v16, %v4311_v1  ;;  %v4363_v57 = vld [vmem:[#allocation48_spill] sm:$0xff]  ;;  %v4364_v17 = vld [vmem:[#allocation57_spill] sm:$0xff] }
 0x15e   : > { %2432 = vtanh.f32 %v1295_v13  ;;  %v1315_v41 = vadd.f32 %v1314_v44, %v1312_v23  ;;  %v1332_v27 = vadd.f32 %v1331_v29, %v3037_v25  ;;  %v1348_v36 = vmul.f32 %v3648_v7, %v4312_v19  ;;  %v4365_v29 = vld [vmem:[#allocation43_spill] sm:$0xff] }
 0x15f   : > { %2434 = vtanh.f32 %v1305_v61  ;;  %v1325_v39 = vadd.f32 %v1324_v26, %v1322_v15  ;;  %v1341_v31 = vadd.f32 %v1340_v8, %v1339_v55  ;;  %v1350_v58 = vmul.f32 %v3652_v50, %v3081_v54  ;;  %v4366_v15 = vld [vmem:[#allocation49_spill] sm:$0xff] }
 0x160   : > { %2436 = vtanh.f32 %v1315_v41  ;;  %v1335_v9 = vadd.f32 %v1334_v18, %v1332_v27  ;;  %v1344_v6 = vstv %s3691_s23  ;;  %v1349_v0 = vadd.f32 %v1348_v36, %v1347_v2  ;;  %v4367_v2 = vld [vmem:[#allocation58_spill] sm:$0xff]  ;;  %v4368_v36 = vld [vmem:[#allocation44_spill] sm:$0xff]  ;;  %s2238_s23 = sld [smem:[#allocation6 + $0x5]] }
 0x161   : > { %2438 = vtanh.f32 %v1325_v39  ;;  %v1342_v53 = vadd.f32 %v1341_v31, %v3070_v48  ;;  %v1354_v5 = vstv %s2221_s12  ;;  %v4369_v31 = vld [vmem:[#allocation50_spill] sm:$0xff]  ;;  %s3858_s12 = sld [smem:[#allocation7 + $0x300]] }
 0x162   : > { %2440 = vtanh.f32 %v1335_v9  ;;  %v1351_v44 = vadd.f32 %v1350_v58, %v1349_v0 }
 0x163   : > { %v1345_v13 = vadd.f32 %v1344_v6, %v1342_v53 }
 0x164   : > { %v1352_v20 = vadd.f32 %v1351_v44, %v3094_v63 }
 0x165   : > { %2442 = vtanh.f32 %v1345_v13  ;;  %v4370_v13 = vld [vmem:[#allocation51_spill] sm:$0xff] }
 0x166   : > { %v1355_v28 = vadd.f32 %v1354_v5, %v1352_v20 }
 0x167   : > { %v2431_v26 = vpop.eup %2430 }
 0x168   : > { %v2433_v30 = vpop.eup %2432  ;;  %2444 = vtanh.f32 %v1355_v28  ;;  %v1360_v10 = vmul.f32 %v2431_v26, %v4337_v35  ;;  %v1386_v18 = vmul.f32 %v2431_v26, %v4363_v57  ;;  %v1409_v61 = vmul.f32 %v2431_v26, %v4364_v17 }
 0x169   : > { %v2435_v23 = vpop.eup %2434  ;;  %v1361_v8 = vmul.f32 %v2433_v30, %v4365_v29  ;;  %v1387_v55 = vmul.f32 %v2433_v30, %v4366_v15  ;;  %v1410_v41 = vmul.f32 %v2433_v30, %v4367_v2 }
 0x16a   : > { %v2437_v27 = vpop.eup %2436  ;;  %v1363_v39 = vmul.f32 %v2435_v23, %v4368_v36  ;;  %v1389_v58 = vmul.f32 %v2435_v23, %v4369_v31  ;;  %v1412_v9 = vmul.f32 %v2435_v23, %v4345_v45 }
 0x16b   : > { %v2439_v6 = vpop.eup %2438  ;;  %v1362_v0 = vadd.f32 %v1361_v8, %v1360_v10  ;;  %v1365_v53 = vmul.f32 %v2437_v27, %v4346_v52  ;;  %v1388_v44 = vadd.f32 %v1387_v55, %v1386_v18  ;;  %v1391_v5 = vmul.f32 %v2437_v27, %v4370_v13 }
 0x16c   : > { %v2441_v20 = vpop.eup %2440  ;;  %v1411_v28 = vadd.f32 %v1410_v41, %v1409_v61  ;;  %v1414_v26 = vmul.f32 %v2437_v27, %v4293_v46  ;;  %v1367_v30 = vmul.f32 %v2439_v6, %v4294_v33  ;;  %v1393_v36 = vmul.f32 %v2439_v6, %v4295_v51  ;;  %v4371_v41 = vld [vmem:[#allocation63_spill] sm:$0xff] }
 0x16d   : > { %v1364_v15 = vadd.f32 %v1363_v39, %v1362_v0  ;;  %v1390_v2 = vadd.f32 %v1389_v58, %v1388_v44  ;;  %v1416_v23 = vmul.f32 %v2439_v6, %v4322_v14  ;;  %v1369_v18 = vmul.f32 %v2441_v20, %v4323_v21  ;;  %v4372_v58 = vld [vmem:[#allocation54_spill] sm:$0xff] }
 0x16e   : > { %v1413_v31 = vadd.f32 %v1412_v9, %v1411_v28  ;;  %v1395_v13 = vmul.f32 %v2441_v20, %v4324_v60  ;;  %v1418_v27 = vmul.f32 %v2441_v20, %v4371_v41  ;;  %v2225_v41 = vld [vmem:[%s3246_s13 + $0x20] ss:$4 sm:$0x3] }
 0x16f   : > { %v2443_v10 = vpop.eup %2442  ;;  %v1366_v8 = vadd.f32 %v1365_v53, %v1364_v15  ;;  %v1392_v55 = vadd.f32 %v1391_v5, %v1390_v2 }
 0x170   : > { %v1415_v61 = vadd.f32 %v1414_v26, %v1413_v31  ;;  %v1371_v0 = vmul.f32 %v2443_v10, %v4372_v58  ;;  %v1397_v6 = vmul.f32 %v2443_v10, %v4300_v4  ;;  %v1420_v53 = vmul.f32 %v2443_v10, %v3254_v59 }
 0x171   : > { %v1368_v39 = vadd.f32 %v1367_v30, %v1366_v8  ;;  %v1394_v9 = vadd.f32 %v1393_v36, %v1392_v55  ;;  %v1376_v58 = vstv %s2222_s14  ;;  %v2226_v36 = vld [vmem:[%s3246_s13 + $0x21] ss:$4 sm:$0x3]  ;;  %s3860_s14 = sld [smem:[#allocation7 + $0x301]] }
 0x172   : > { %v2445_v44 = vpop.eup %2444  ;;  %v1417_v15 = vadd.f32 %v1416_v23, %v1415_v61 }
 0x173   : > { %v1370_v2 = vadd.f32 %v1369_v18, %v1368_v39  ;;  %v1373_v5 = vmul.f32 %v2445_v44, %v4301_v43  ;;  %v1396_v28 = vadd.f32 %v1395_v13, %v1394_v9  ;;  %v1399_v31 = vmul.f32 %v2445_v44, %v4302_v11 }
 0x174   : > { %v1419_v26 = vadd.f32 %v1418_v27, %v1417_v15  ;;  %v1422_v20 = vmul.f32 %v2445_v44, %v3265_v49  ;;  %v1378_v13 = vstv %s2223_s28  ;;  %v1383_v18 = vstv %s2224_s15  ;;  %v4373_v44 = vld [vmem:[#allocation67_spill] sm:$0xff]  ;;  %s3862_s28 = sld [smem:[#allocation7 + $0x302]]  ;;  %s3864_s15 = sld [smem:[#allocation7 + $0x303]] }
 0x175   : > { %v1372_v30 = vadd.f32 %v1371_v0, %v1370_v2  ;;  %v1398_v8 = vadd.f32 %v1397_v6, %v1396_v28  ;;  %v1377_v39 = vmul.f32 %v1376_v58, %v3646_v16  ;;  %v1402_v9 = vmul.f32 %v1376_v58, %v3648_v7  ;;  %v2227_v6 = vld [vmem:[%s3246_s13 + $0x22] ss:$4 sm:$0x3] }
 0x176   : > { %v1421_v55 = vadd.f32 %v1420_v53, %v1419_v26  ;;  %v1425_v53 = vmul.f32 %v1376_v58, %v3652_v50  ;;  %v1430_v16 = vmul.f32 %v2227_v6, %v1383_v18  ;;  %v1439_v7 = vstv %s3742_s22  ;;  %s3866_s22 = sld [smem:[#allocation7 + $0x304]] }
 0x177   : > { %v1374_v23 = vadd.f32 %v1373_v5, %v1372_v30  ;;  %v1400_v10 = vadd.f32 %v1399_v31, %v1398_v8  ;;  %v1384_v5 = vmul.f32 %v2225_v41, %v1383_v18  ;;  %v1407_v31 = vmul.f32 %v2226_v36, %v1383_v18 }
 0x178   : > { %v1423_v61 = vadd.f32 %v1422_v20, %v1421_v55  ;;  %v1469_v58 = vstv %s3748_s26  ;;  %v1489_v41 = vstv %s3752_s16  ;;  %s2249_s26 = sld [smem:[#allocation7 + $0x307]]  ;;  %s2251_s16 = sld [smem:[#allocation4 + $0x6]] }
 0x179   : > { %v1375_v27 = vadd.f32 %v1374_v23, %v3250_v56  ;;  %v1401_v0 = vadd.f32 %v1400_v10, %v3262_v34  ;;  %v1449_v10 = vstv %s3744_s29  ;;  %v4384_v34 = vld [vmem:[#allocation30_spill] sm:$0xff]  ;;  %v4385_v56 = vld [vmem:[#allocation32_spill] sm:$0xff]  ;;  %s3868_s29 = sld [smem:[#allocation7 + $0x305]] }
 0x17a   : > { %v1424_v15 = vadd.f32 %v1423_v61, %v4373_v44  ;;  %v1459_v61 = vstv %s3746_s19  ;;  %v4374_v44 = vld [vmem:[#allocation20_spill] sm:$0xff]  ;;  %s3923_s19 = sld [smem:[#allocation7 + $0x306]] }
 0x17b   : > { %v1379_v2 = vmul.f32 %v1378_v13, %v1375_v27  ;;  %v1403_v28 = vmul.f32 %v1401_v0, %v1378_v13  ;;  %v1479_v27 = vstv %s3750_s20  ;;  %s2250_s20 = sld [smem:[#allocation2 + $0x6]] }
 0x17c   : > { %v1426_v26 = vmul.f32 %v1424_v15, %v1378_v13  ;;  %v4375_v13 = vld [vmem:[#allocation21_spill] sm:$0xff]  ;;  %v4378_v15 = vld [vmem:[#allocation22_spill] sm:$0xff] }
 0x17d   : > { %v1380_v20 = vsub.f32 %v1377_v39, %v1379_v2  ;;  %v1404_v30 = vsub.f32 %v1402_v9, %v1403_v28  ;;  %v4376_v39 = vld [vmem:[#allocation23_spill] sm:$0xff]  ;;  %v4377_v9 = vld [vmem:[#allocation24_spill] sm:$0xff]  ;;  %v4379_v2 = vld [vmem:[#allocation25_spill] sm:$0xff] }
 0x17e   : > { %v1427_v8 = vsub.f32 %v1425_v53, %v1426_v26  ;;  %v4380_v28 = vld [vmem:[#allocation26_spill] sm:$0xff]  ;;  %v4381_v26 = vld [vmem:[#allocation27_spill] sm:$0xff] }
 0x17f   : > { %v3762_v55 = vadd.f32 %v1384_v5, %v1380_v20  ;;  %v3764_v23 = vadd.f32 %v1407_v31, %v1404_v30 }
 0x180   : > { %v3768_v50 = vadd.f32 %v1430_v16, %v1427_v8  ;;  %v4382_v8 = vld [vmem:[#allocation28_spill] sm:$0xff] }
 0x181   : > { %v1432_v36 = vmul.f32 %v3762_v55, %v4374_v44  ;;  %v1433_v18 = vmul.f32 %v3764_v23, %v4375_v13  ;;  %v1442_v0 = vmul.f32 %v3762_v55, %v4376_v39  ;;  %v1443_v6 = vmul.f32 %v3764_v23, %v4377_v9  ;;  %v4383_v13 = vld [vmem:[#allocation29_spill] sm:$0xff] }
 0x182   : > { %v1435_v53 = vmul.f32 %v3768_v50, %v4378_v15  ;;  %v1445_v5 = vmul.f32 %v3768_v50, %v4379_v2  ;;  %v1452_v31 = vmul.f32 %v3762_v55, %v4380_v28  ;;  %v1453_v16 = vmul.f32 %v3764_v23, %v4381_v26 }
 0x183   : > { %v1434_v20 = vadd.f32 %v1433_v18, %v1432_v36  ;;  %v1444_v30 = vadd.f32 %v1443_v6, %v1442_v0  ;;  %v1455_v39 = vmul.f32 %v3768_v50, %v4382_v8  ;;  %v1462_v9 = vmul.f32 %v3762_v55, %v4383_v13  ;;  %v4386_v18 = vld [vmem:[#allocation34_spill] sm:$0xff] }
 0x184   : > { %v1454_v44 = vadd.f32 %v1453_v16, %v1452_v31  ;;  %v1463_v15 = vmul.f32 %v3764_v23, %v4384_v34  ;;  %v1465_v2 = vmul.f32 %v3768_v50, %v4331_v22  ;;  %v1472_v28 = vmul.f32 %v3762_v55, %v4385_v56  ;;  %v4387_v31 = vld [vmem:[#allocation35_spill] sm:$0xff]  ;;  %v4388_v34 = vld [vmem:[#allocation36_spill] sm:$0xff] }
 0x185   : > { %v1436_v49 = vadd.f32 %v1435_v53, %v1434_v20  ;;  %v1446_v26 = vadd.f32 %v1445_v5, %v1444_v30  ;;  %v1473_v36 = vmul.f32 %v3764_v23, %v4333_v3  ;;  %v1475_v0 = vmul.f32 %v3768_v50, %v4386_v18 }
 0x186   : > { %v1456_v6 = vadd.f32 %v1455_v39, %v1454_v44  ;;  %v1464_v13 = vadd.f32 %v1463_v15, %v1462_v9  ;;  %v1482_v16 = vmul.f32 %v3762_v55, %v4387_v31  ;;  %v1483_v8 = vmul.f32 %v3764_v23, %v4388_v34 }
 0x187   : > { %v1437_v56 = vadd.f32 %v1436_v49, %v2879_v12  ;;  %v1447_v53 = vadd.f32 %v1446_v26, %v2912_v24  ;;  %v1474_v5 = vadd.f32 %v1473_v36, %v1472_v28  ;;  %v1485_v20 = vmul.f32 %v3768_v50, %v4308_v40 }
 0x188   : > { %v1457_v30 = vadd.f32 %v1456_v6, %v2946_v37  ;;  %v1466_v44 = vadd.f32 %v1465_v2, %v1464_v13  ;;  %v1484_v39 = vadd.f32 %v1483_v8, %v1482_v16  ;;  %v1492_v9 = vmul.f32 %v3762_v55, %v4309_v38 }
 0x189   : > { %v1440_v15 = vadd.f32 %v1439_v7, %v1437_v56  ;;  %v1450_v31 = vadd.f32 %v1449_v10, %v1447_v53  ;;  %v1476_v34 = vadd.f32 %v1475_v0, %v1474_v5  ;;  %v1493_v18 = vmul.f32 %v3764_v23, %v4310_v42 }
 0x18a   : > { %v1460_v49 = vadd.f32 %v1459_v61, %v1457_v30  ;;  %v1467_v28 = vadd.f32 %v1466_v44, %v2968_v47  ;;  %v1486_v26 = vadd.f32 %v1485_v20, %v1484_v39  ;;  %v1495_v36 = vmul.f32 %v3768_v50, %v3048_v32 }
 0x18b   : > { %2446 = vtanh.f32 %v1440_v15  ;;  %v1477_v13 = vadd.f32 %v1476_v34, %v3003_v62  ;;  %v1494_v2 = vadd.f32 %v1493_v18, %v1492_v9  ;;  %v1502_v56 = vmul.f32 %v3762_v55, %v4311_v1 }
 0x18c   : > { %2448 = vtanh.f32 %v1450_v31  ;;  %v1470_v7 = vadd.f32 %v1469_v58, %v1467_v28  ;;  %v1487_v10 = vadd.f32 %v1486_v26, %v3037_v25  ;;  %v1503_v61 = vmul.f32 %v3764_v23, %v4312_v19  ;;  %v4389_v28 = vld [vmem:[#allocation49_spill] sm:$0xff] }
 0x18d   : > { %2450 = vtanh.f32 %v1460_v49  ;;  %v1480_v8 = vadd.f32 %v1479_v27, %v1477_v13  ;;  %v1496_v0 = vadd.f32 %v1495_v36, %v1494_v2  ;;  %v1505_v6 = vmul.f32 %v3768_v50, %v3081_v54  ;;  %v4390_v36 = vld [vmem:[#allocation58_spill] sm:$0xff] }
 0x18e   : > { %2452 = vtanh.f32 %v1470_v7  ;;  %v1490_v16 = vadd.f32 %v1489_v41, %v1487_v10  ;;  %v1499_v34 = vstv %s3807_s18  ;;  %v1504_v18 = vadd.f32 %v1503_v61, %v1502_v56  ;;  %v4391_v56 = vld [vmem:[#allocation44_spill] sm:$0xff]  ;;  %v4392_v10 = vld [vmem:[#allocation50_spill] sm:$0xff]  ;;  %s2252_s18 = sld [smem:[#allocation6 + $0x6]] }
 0x18f   : > { %2454 = vtanh.f32 %v1480_v8  ;;  %v1497_v53 = vadd.f32 %v1496_v0, %v3070_v48  ;;  %v1509_v5 = vstv %s2235_s27  ;;  %s3974_s27 = sld [smem:[#allocation7 + $0x380]] }
 0x190   : > { %2456 = vtanh.f32 %v1490_v16  ;;  %v1506_v58 = vadd.f32 %v1505_v6, %v1504_v18  ;;  %v4393_v18 = vld [vmem:[#allocation51_spill] sm:$0xff] }
 0x191   : > { %v1500_v31 = vadd.f32 %v1499_v34, %v1497_v53 }
 0x192   : > { %v1507_v20 = vadd.f32 %v1506_v58, %v3094_v63 }
 0x193   : > { %2458 = vtanh.f32 %v1500_v31 }
 0x194   : > { %v1510_v30 = vadd.f32 %v1509_v5, %v1507_v20 }
 0x195   : > { %v2447_v27 = vpop.eup %2446 }
 0x196   : > { %v2449_v44 = vpop.eup %2448  ;;  %2460 = vtanh.f32 %v1510_v30  ;;  %v1515_v39 = vmul.f32 %v2447_v27, %v4337_v35  ;;  %v1541_v41 = vmul.f32 %v2447_v27, %v4363_v57  ;;  %v1564_v9 = vmul.f32 %v2447_v27, %v4364_v17 }
 0x197   : > { %v2451_v15 = vpop.eup %2450  ;;  %v1516_v49 = vmul.f32 %v2449_v44, %v4365_v29  ;;  %v1542_v26 = vmul.f32 %v2449_v44, %v4389_v28  ;;  %v1565_v13 = vmul.f32 %v2449_v44, %v4390_v36 }
 0x198   : > { %v2453_v2 = vpop.eup %2452  ;;  %v1518_v7 = vmul.f32 %v2451_v15, %v4391_v56  ;;  %v1544_v61 = vmul.f32 %v2451_v15, %v4392_v10  ;;  %v1567_v8 = vmul.f32 %v2451_v15, %v4345_v45 }
 0x199   : > { %v2455_v0 = vpop.eup %2454  ;;  %v1517_v6 = vadd.f32 %v1516_v49, %v1515_v39  ;;  %v1520_v16 = vmul.f32 %v2453_v2, %v4346_v52  ;;  %v1543_v34 = vadd.f32 %v1542_v26, %v1541_v41  ;;  %v1546_v53 = vmul.f32 %v2453_v2, %v4393_v18 }
 0x19a   : > { %v2457_v58 = vpop.eup %2456  ;;  %v1566_v31 = vadd.f32 %v1565_v13, %v1564_v9  ;;  %v1569_v5 = vmul.f32 %v2453_v2, %v4293_v46  ;;  %v1522_v30 = vmul.f32 %v2455_v0, %v4294_v33  ;;  %v1548_v44 = vmul.f32 %v2455_v0, %v4295_v51  ;;  %v4394_v13 = vld [vmem:[#allocation63_spill] sm:$0xff] }
 0x19b   : > { %v1519_v20 = vadd.f32 %v1518_v7, %v1517_v6  ;;  %v1545_v27 = vadd.f32 %v1544_v61, %v1543_v34  ;;  %v1571_v15 = vmul.f32 %v2455_v0, %v4322_v14  ;;  %v1524_v41 = vmul.f32 %v2457_v58, %v4323_v21  ;;  %v4395_v61 = vld [vmem:[#allocation54_spill] sm:$0xff] }
 0x19c   : > { %v1568_v10 = vadd.f32 %v1567_v8, %v1566_v31  ;;  %v1550_v18 = vmul.f32 %v2457_v58, %v4324_v60  ;;  %v1573_v2 = vmul.f32 %v2457_v58, %v4394_v13  ;;  %v4396_v58 = vld [vmem:[#allocation66_spill] sm:$0xff]  ;;  %v2239_v60 = vld [vmem:[%s3246_s13 + $0x28] ss:$4 sm:$0x3] }
 0x19d   : > { %v2459_v39 = vpop.eup %2458  ;;  %v1521_v49 = vadd.f32 %v1520_v16, %v1519_v20  ;;  %v1547_v26 = vadd.f32 %v1546_v53, %v1545_v27 }
 0x19e   : > { %v1570_v9 = vadd.f32 %v1569_v5, %v1568_v10  ;;  %v1526_v6 = vmul.f32 %v2459_v39, %v4395_v61  ;;  %v1552_v0 = vmul.f32 %v2459_v39, %v4300_v4  ;;  %v1575_v31 = vmul.f32 %v2459_v39, %v3254_v59 }
 0x19f   : > { %v1523_v7 = vadd.f32 %v1522_v30, %v1521_v49  ;;  %v1549_v8 = vadd.f32 %v1548_v44, %v1547_v26  ;;  %v1531_v61 = vstv %s2236_s25  ;;  %v2240_v44 = vld [vmem:[%s3246_s13 + $0x29] ss:$4 sm:$0x3]  ;;  %s3976_s25 = sld [smem:[#allocation7 + $0x381]] }
 0x1a0   : > { %v2461_v34 = vpop.eup %2460  ;;  %v1572_v16 = vadd.f32 %v1571_v15, %v1570_v9 }
 0x1a1   : > { %v1525_v53 = vadd.f32 %v1524_v41, %v1523_v7  ;;  %v1528_v20 = vmul.f32 %v2461_v34, %v4301_v43  ;;  %v1551_v27 = vadd.f32 %v1550_v18, %v1549_v8  ;;  %v1554_v10 = vmul.f32 %v2461_v34, %v4302_v11  ;;  %v4398_v8 = vld [vmem:[#allocation65_spill] sm:$0xff]  ;;  %v4411_v11 = vld [vmem:[#allocation32_spill] sm:$0xff] }
 0x1a2   : > { %v1574_v5 = vadd.f32 %v1573_v2, %v1572_v16  ;;  %v1577_v30 = vmul.f32 %v2461_v34, %v4396_v58  ;;  %v1533_v18 = vstv %s2237_s30  ;;  %v1538_v41 = vstv %s2238_s23  ;;  %v4397_v2 = vld [vmem:[#allocation64_spill] sm:$0xff]  ;;  %v2241_v34 = vld [vmem:[%s3246_s13 + $0x2a] ss:$4 sm:$0x3]  ;;  %v4399_v16 = vld [vmem:[#allocation67_spill] sm:$0xff]  ;;  %s3978_s30 = sld [smem:[#allocation7 + $0x382]] }
 0x1a3   : > { %v1527_v49 = vadd.f32 %v1526_v6, %v1525_v53  ;;  %v1553_v13 = vadd.f32 %v1552_v0, %v1551_v27  ;;  %v1532_v6 = vmul.f32 %v1531_v61, %v3762_v55  ;;  %v1580_v53 = vmul.f32 %v1531_v61, %v3768_v50  ;;  %v4410_v58 = vld [vmem:[#allocation30_spill] sm:$0xff]  ;;  %s3980_s23 = sld [smem:[#allocation7 + $0x383]] }
 0x1a4   : > { %v1576_v26 = vadd.f32 %v1575_v31, %v1574_v5  ;;  %v1539_v27 = vmul.f32 %v2239_v60, %v1538_v41  ;;  %v1562_v5 = vmul.f32 %v2240_v44, %v1538_v41  ;;  %v1585_v55 = vmul.f32 %v2241_v34, %v1538_v41 }
 0x1a5   : > { %v1529_v15 = vadd.f32 %v1528_v20, %v1527_v49  ;;  %v1555_v39 = vadd.f32 %v1554_v10, %v1553_v13  ;;  %v1557_v13 = vmul.f32 %v1531_v61, %v3764_v23  ;;  %v1594_v23 = vstv %s3858_s12  ;;  %s3982_s12 = sld [smem:[#allocation7 + $0x384]] }
 0x1a6   : > { %v1578_v9 = vadd.f32 %v1577_v30, %v1576_v26  ;;  %v1624_v61 = vstv %s3864_s15  ;;  %v1644_v60 = vstv %s3868_s29  ;;  %s2263_s15 = sld [smem:[#allocation7 + $0x387]] }
 0x1a7   : > { %v1530_v7 = vadd.f32 %v1529_v15, %v4397_v2  ;;  %v1556_v0 = vadd.f32 %v1555_v39, %v4398_v8  ;;  %v4400_v2 = vld [vmem:[#allocation20_spill] sm:$0xff]  ;;  %s2265_s29 = sld [smem:[#allocation4 + $0x7]] }
 0x1a8   : > { %v1579_v31 = vadd.f32 %v1578_v9, %v4399_v16  ;;  %v1604_v9 = vstv %s3860_s14  ;;  %v1614_v16 = vstv %s3862_s28  ;;  %s3984_s14 = sld [smem:[#allocation7 + $0x385]]  ;;  %s4039_s28 = sld [smem:[#allocation7 + $0x386]] }
 0x1a9   : > { %v1534_v20 = vmul.f32 %v1533_v18, %v1530_v7  ;;  %v1558_v10 = vmul.f32 %v1556_v0, %v1533_v18  ;;  %v1634_v7 = vstv %s3866_s22  ;;  %s2264_s22 = sld [smem:[#allocation2 + $0x7]] }
 0x1aa   : > { %v1581_v30 = vmul.f32 %v1579_v31, %v1533_v18  ;;  %v4401_v18 = vld [vmem:[#allocation21_spill] sm:$0xff]  ;;  %v4404_v31 = vld [vmem:[#allocation22_spill] sm:$0xff] }
 0x1ab   : > { %v1535_v49 = vsub.f32 %v1532_v6, %v1534_v20  ;;  %v1559_v26 = vsub.f32 %v1557_v13, %v1558_v10  ;;  %v4402_v6 = vld [vmem:[#allocation23_spill] sm:$0xff]  ;;  %v4403_v13 = vld [vmem:[#allocation24_spill] sm:$0xff]  ;;  %v4405_v20 = vld [vmem:[#allocation25_spill] sm:$0xff] }
 0x1ac   : > { %v1582_v15 = vsub.f32 %v1580_v53, %v1581_v30  ;;  %v4406_v10 = vld [vmem:[#allocation26_spill] sm:$0xff]  ;;  %v4407_v30 = vld [vmem:[#allocation27_spill] sm:$0xff] }
 0x1ad   : > { %v3878_v39 = vadd.f32 %v1539_v27, %v1535_v49  ;;  %v3880_v8 = vadd.f32 %v1562_v5, %v1559_v26 }
 0x1ae   : > { %v3884_v50 = vadd.f32 %v1585_v55, %v1582_v15  ;;  %v4408_v15 = vld [vmem:[#allocation28_spill] sm:$0xff] }
 0x1af   : > { %v1587_v44 = vmul.f32 %v3878_v39, %v4400_v2  ;;  %v1588_v41 = vmul.f32 %v3880_v8, %v4401_v18  ;;  %v1597_v0 = vmul.f32 %v3878_v39, %v4402_v6  ;;  %v1598_v34 = vmul.f32 %v3880_v8, %v4403_v13  ;;  %v4409_v18 = vld [vmem:[#allocation29_spill] sm:$0xff] }
 0x1b0   : > { %v1590_v53 = vmul.f32 %v3884_v50, %v4404_v31  ;;  %v1600_v27 = vmul.f32 %v3884_v50, %v4405_v20  ;;  %v1607_v5 = vmul.f32 %v3878_v39, %v4406_v10  ;;  %v1608_v55 = vmul.f32 %v3880_v8, %v4407_v30 }
 0x1b1   : > { %v1589_v49 = vadd.f32 %v1588_v41, %v1587_v44  ;;  %v1599_v26 = vadd.f32 %v1598_v34, %v1597_v0  ;;  %v1610_v6 = vmul.f32 %v3884_v50, %v4408_v15  ;;  %v1617_v13 = vmul.f32 %v3878_v39, %v4409_v18  ;;  %v4412_v41 = vld [vmem:[#allocation34_spill] sm:$0xff] }
 0x1b2   : > { %v1609_v2 = vadd.f32 %v1608_v55, %v1607_v5  ;;  %v1618_v31 = vmul.f32 %v3880_v8, %v4410_v58  ;;  %v1620_v20 = vmul.f32 %v3884_v50, %v4331_v22  ;;  %v1627_v10 = vmul.f32 %v3878_v39, %v4411_v11  ;;  %v4413_v5 = vld [vmem:[#allocation35_spill] sm:$0xff]  ;;  %v4414_v58 = vld [vmem:[#allocation36_spill] sm:$0xff] }
 0x1b3   : > { %v1591_v43 = vadd.f32 %v1590_v53, %v1589_v49  ;;  %v1601_v30 = vadd.f32 %v1600_v27, %v1599_v26  ;;  %v1628_v44 = vmul.f32 %v3880_v8, %v4333_v3  ;;  %v1630_v0 = vmul.f32 %v3884_v50, %v4412_v41 }
 0x1b4   : > { %v1611_v34 = vadd.f32 %v1610_v6, %v1609_v2  ;;  %v1619_v18 = vadd.f32 %v1618_v31, %v1617_v13  ;;  %v1637_v55 = vmul.f32 %v3878_v39, %v4413_v5  ;;  %v1638_v15 = vmul.f32 %v3880_v8, %v4414_v58 }
 0x1b5   : > { %v1592_v11 = vadd.f32 %v1591_v43, %v2879_v12  ;;  %v1602_v53 = vadd.f32 %v1601_v30, %v2912_v24  ;;  %v1629_v27 = vadd.f32 %v1628_v44, %v1627_v10  ;;  %v1640_v49 = vmul.f32 %v3884_v50, %v4308_v40 }
 0x1b6   : > { %v1612_v26 = vadd.f32 %v1611_v34, %v2946_v37  ;;  %v1621_v2 = vadd.f32 %v1620_v20, %v1619_v18  ;;  %v1639_v6 = vadd.f32 %v1638_v15, %v1637_v55  ;;  %v1647_v13 = vmul.f32 %v3878_v39, %v4309_v38 }
 0x1b7   : > { %v1595_v31 = vadd.f32 %v1594_v23, %v1592_v11  ;;  %v1605_v5 = vadd.f32 %v1604_v9, %v1602_v53  ;;  %v1631_v58 = vadd.f32 %v1630_v0, %v1629_v27  ;;  %v1648_v41 = vmul.f32 %v3880_v8, %v4310_v42 }
 0x1b8   : > { %v1615_v43 = vadd.f32 %v1614_v16, %v1612_v26  ;;  %v1622_v10 = vadd.f32 %v1621_v2, %v2968_v47  ;;  %v1641_v30 = vadd.f32 %v1640_v49, %v1639_v6  ;;  %v1650_v44 = vmul.f32 %v3884_v50, %v3048_v32 }
 0x1b9   : > { %2462 = vtanh.f32 %v1595_v31  ;;  %v1632_v18 = vadd.f32 %v1631_v58, %v3003_v62  ;;  %v1649_v20 = vadd.f32 %v1648_v41, %v1647_v13  ;;  %v1657_v11 = vmul.f32 %v3878_v39, %v4311_v1 }
 0x1ba   : > { %2464 = vtanh.f32 %v1605_v5  ;;  %v1625_v23 = vadd.f32 %v1624_v61, %v1622_v10  ;;  %v1642_v9 = vadd.f32 %v1641_v30, %v3037_v25  ;;  %v1658_v16 = vmul.f32 %v3880_v8, %v4312_v19 }
 0x1bb   : > { %2466 = vtanh.f32 %v1615_v43  ;;  %v1635_v15 = vadd.f32 %v1634_v7, %v1632_v18  ;;  %v1651_v0 = vadd.f32 %v1650_v44, %v1649_v20  ;;  %v1660_v34 = vmul.f32 %v3884_v50, %v3081_v54  ;;  %v4415_v20 = vld [vmem:[#allocation50_spill] sm:$0xff] }
 0x1bc   : > { %2468 = vtanh.f32 %v1625_v23  ;;  %v1645_v55 = vadd.f32 %v1644_v60, %v1642_v9  ;;  %v1654_v58 = vstv %s3923_s19  ;;  %v1659_v41 = vadd.f32 %v1658_v16, %v1657_v11  ;;  %s2266_s19 = sld [smem:[#allocation6 + $0x7]] }
 0x1bd   : > { %2470 = vtanh.f32 %v1635_v15  ;;  %v1652_v53 = vadd.f32 %v1651_v0, %v3070_v48  ;;  %v1664_v27 = vstv %s2249_s26 }
 0x1be   : > { %2472 = vtanh.f32 %v1645_v55  ;;  %v1661_v61 = vadd.f32 %v1660_v34, %v1659_v41  ;;  %v4416_v34 = vld [vmem:[#allocation51_spill] sm:$0xff] }
 0x1bf   : > { %v1655_v5 = vadd.f32 %v1654_v58, %v1652_v53 }
 0x1c0   : > { %v1662_v49 = vadd.f32 %v1661_v61, %v3094_v63 }
 0x1c1   : > { %2474 = vtanh.f32 %v1655_v5 }
 0x1c2   : > { %v1665_v26 = vadd.f32 %v1664_v27, %v1662_v49 }
 0x1c3   : > { %v2463_v7 = vpop.eup %2462 }
 0x1c4   : > { %v2465_v2 = vpop.eup %2464  ;;  %2476 = vtanh.f32 %v1665_v26  ;;  %v1670_v6 = vmul.f32 %v2463_v7, %v4337_v35  ;;  %v1696_v60 = vmul.f32 %v2463_v7, %v4363_v57  ;;  %v1719_v13 = vmul.f32 %v2463_v7, %v4364_v17 }
 0x1c5   : > { %v2467_v31 = vpop.eup %2466  ;;  %v1671_v43 = vmul.f32 %v2465_v2, %v4365_v29  ;;  %v1697_v10 = vmul.f32 %v2465_v2, %v4389_v28  ;;  %v1720_v30 = vmul.f32 %v2465_v2, %v4390_v36 }
 0x1c6   : > { %v2469_v44 = vpop.eup %2468  ;;  %v1673_v18 = vmul.f32 %v2467_v31, %v4391_v56  ;;  %v1699_v11 = vmul.f32 %v2467_v31, %v4415_v20  ;;  %v1722_v23 = vmul.f32 %v2467_v31, %v4345_v45 }
 0x1c7   : > { %v2471_v9 = vpop.eup %2470  ;;  %v1672_v16 = vadd.f32 %v1671_v43, %v1670_v6  ;;  %v1675_v15 = vmul.f32 %v2469_v44, %v4346_v52  ;;  %v1698_v0 = vadd.f32 %v1697_v10, %v1696_v60  ;;  %v1701_v55 = vmul.f32 %v2469_v44, %v4416_v34  ;;  %v4417_v43 = vld [vmem:[#allocation53_spill] sm:$0xff] }
 0x1c8   : > { %v2473_v58 = vpop.eup %2472  ;;  %v1721_v41 = vadd.f32 %v1720_v30, %v1719_v13  ;;  %v1724_v53 = vmul.f32 %v2469_v44, %v4293_v46  ;;  %v1677_v5 = vmul.f32 %v2471_v9, %v4294_v33  ;;  %v1703_v49 = vmul.f32 %v2471_v9, %v4295_v51  ;;  %v4418_v30 = vld [vmem:[#allocation63_spill] sm:$0xff] }
 0x1c9   : > { %v1674_v61 = vadd.f32 %v1673_v18, %v1672_v16  ;;  %v1700_v27 = vadd.f32 %v1699_v11, %v1698_v0  ;;  %v1726_v7 = vmul.f32 %v2471_v9, %v4322_v14  ;;  %v1679_v60 = vmul.f32 %v2473_v58, %v4323_v21  ;;  %v4419_v11 = vld [vmem:[#allocation54_spill] sm:$0xff]  ;;  %v4421_v21 = vld [vmem:[#allocation60_spill] sm:$0xff] }
 0x1ca   : > { %v1723_v26 = vadd.f32 %v1722_v23, %v1721_v41  ;;  %v1705_v10 = vmul.f32 %v2473_v58, %v4417_v43  ;;  %v1728_v44 = vmul.f32 %v2473_v58, %v4418_v30  ;;  %v4422_v58 = vld [vmem:[#allocation66_spill] sm:$0xff] }
 0x1cb   : > { %v2475_v2 = vpop.eup %2474  ;;  %v1676_v6 = vadd.f32 %v1675_v15, %v1674_v61  ;;  %v1702_v31 = vadd.f32 %v1701_v55, %v1700_v27  ;;  %v4420_v61 = vld [vmem:[#allocation55_spill] sm:$0xff]  ;;  %v2253_v14 = vld [vmem:[%s3246_s13 + $0x30] ss:$4 sm:$0x3] }
 0x1cc   : > { %v1725_v13 = vadd.f32 %v1724_v53, %v1723_v26  ;;  %v1681_v16 = vmul.f32 %v2475_v2, %v4419_v11  ;;  %v1707_v9 = vmul.f32 %v2475_v2, %v4300_v4  ;;  %v1730_v41 = vmul.f32 %v2475_v2, %v3254_v59 }
 0x1cd   : > { %v1678_v18 = vadd.f32 %v1677_v5, %v1676_v6  ;;  %v1704_v23 = vadd.f32 %v1703_v49, %v1702_v31  ;;  %v1686_v11 = vstv %s2250_s20  ;;  %v2254_v49 = vld [vmem:[%s3246_s13 + $0x31] ss:$4 sm:$0x3] }
 0x1ce   : > { %v2477_v0 = vpop.eup %2476  ;;  %v1727_v15 = vadd.f32 %v1726_v7, %v1725_v13 }
 0x1cf   : > { %v1680_v55 = vadd.f32 %v1679_v60, %v1678_v18  ;;  %v1683_v27 = vmul.f32 %v2477_v0, %v4420_v61  ;;  %v1706_v43 = vadd.f32 %v1705_v10, %v1704_v23  ;;  %v1709_v53 = vmul.f32 %v2477_v0, %v4421_v21  ;;  %v4437_v21 = vld [vmem:[#allocation32_spill] sm:$0xff] }
 0x1d0   : > { %v1729_v26 = vadd.f32 %v1728_v44, %v1727_v15  ;;  %v1732_v5 = vmul.f32 %v2477_v0, %v4422_v58  ;;  %v1688_v60 = vstv %s2251_s16  ;;  %v1693_v10 = vstv %s2252_s18  ;;  %v4425_v0 = vld [vmem:[#allocation67_spill] sm:$0xff]  ;;  %v4436_v58 = vld [vmem:[#allocation30_spill] sm:$0xff]  ;;  %s525_s16 = scalar_lea.vmem %s4116_s11, %s2274_s24 }
 0x1d1   : > { %v1682_v6 = vadd.f32 %v1681_v16, %v1680_v55  ;;  %v1708_v30 = vadd.f32 %v1707_v9, %v1706_v43  ;;  %v4423_v43 = vld [vmem:[#allocation64_spill] sm:$0xff]  ;;  %v1687_v18 = vmul.f32 %v1686_v11, %v3878_v39  ;;  %v4424_v16 = vld [vmem:[#allocation65_spill] sm:$0xff]  ;;  %v2255_v9 = vld [vmem:[%s3246_s13 + $0x32] ss:$4 sm:$0x3] }
 0x1d2   : > { %v1731_v31 = vadd.f32 %v1730_v41, %v1729_v26  ;;  %v1735_v41 = vmul.f32 %v1686_v11, %v3884_v50  ;;  %v1717_v26 = vmul.f32 %v2254_v49, %v1693_v10  ;;  %v1740_v39 = vmul.f32 %v2255_v9, %v1693_v10 }
 0x1d3   : > { %v1684_v7 = vadd.f32 %v1683_v27, %v1682_v6  ;;  %v1710_v2 = vadd.f32 %v1709_v53, %v1708_v30  ;;  %v1712_v30 = vmul.f32 %v1686_v11, %v3880_v8  ;;  %v1694_v27 = vmul.f32 %v2253_v14, %v1693_v10 }
 0x1d4   : > { %v1733_v13 = vadd.f32 %v1732_v5, %v1731_v31  ;;  %v1749_v8 = vstv %s3974_s27  ;;  %v1779_v11 = vstv %s3980_s23  ;;  %v1799_v14 = vstv %s3984_s14 }
 0x1d5   : > { %v1685_v44 = vadd.f32 %v1684_v7, %v4423_v43  ;;  %v1711_v23 = vadd.f32 %v1710_v2, %v4424_v16  ;;  %v4426_v43 = vld [vmem:[#allocation20_spill] sm:$0xff] }
 0x1d6   : > { %v1734_v15 = vadd.f32 %v1733_v13, %v4425_v0  ;;  %v1759_v13 = vstv %s3976_s25  ;;  %v1769_v0 = vstv %s3978_s30 }
 0x1d7   : > { %v1689_v55 = vmul.f32 %v1688_v60, %v1685_v44  ;;  %v1713_v53 = vmul.f32 %v1711_v23, %v1688_v60  ;;  %v1789_v44 = vstv %s3982_s12 }
 0x1d8   : > { %v1736_v5 = vmul.f32 %v1734_v15, %v1688_v60  ;;  %v4427_v60 = vld [vmem:[#allocation21_spill] sm:$0xff]  ;;  %v4430_v15 = vld [vmem:[#allocation22_spill] sm:$0xff] }
 0x1d9   : > { %v1690_v6 = vsub.f32 %v1687_v18, %v1689_v55  ;;  %v1714_v31 = vsub.f32 %v1712_v30, %v1713_v53  ;;  %v4428_v18 = vld [vmem:[#allocation23_spill] sm:$0xff]  ;;  %v4429_v30 = vld [vmem:[#allocation24_spill] sm:$0xff]  ;;  %v4431_v55 = vld [vmem:[#allocation25_spill] sm:$0xff] }
 0x1da   : > { %v1737_v7 = vsub.f32 %v1735_v41, %v1736_v5  ;;  %v4432_v53 = vld [vmem:[#allocation26_spill] sm:$0xff]  ;;  %v4433_v5 = vld [vmem:[#allocation27_spill] sm:$0xff] }
 0x1db   : > { %v3994_v2 = vadd.f32 %v1694_v27, %v1690_v6  ;;  %v3996_v16 = vadd.f32 %v1717_v26, %v1714_v31  ;;  %v4434_v31 = vld [vmem:[#allocation28_spill] sm:$0xff] }
 0x1dc   : > { %v4000_v50 = vadd.f32 %v1740_v39, %v1737_v7 }
 0x1dd   : > { %v1742_v49 = vmul.f32 %v3994_v2, %v4426_v43  ;;  %v1743_v10 = vmul.f32 %v3996_v16, %v4427_v60  ;;  %v1752_v23 = vmul.f32 %v3994_v2, %v4428_v18  ;;  %v1753_v9 = vmul.f32 %v3996_v16, %v4429_v30  ;;  %v4435_v60 = vld [vmem:[#allocation29_spill] sm:$0xff] }
 0x1de   : > { %v1745_v41 = vmul.f32 %v4000_v50, %v4430_v15  ;;  %v1755_v27 = vmul.f32 %v4000_v50, %v4431_v55  ;;  %v1762_v26 = vmul.f32 %v3994_v2, %v4432_v53  ;;  %v1763_v43 = vmul.f32 %v3996_v16, %v4433_v5 }
 0x1df   : > { %v1744_v39 = vadd.f32 %v1743_v10, %v1742_v49  ;;  %v1754_v6 = vadd.f32 %v1753_v9, %v1752_v23  ;;  %v1765_v7 = vmul.f32 %v4000_v50, %v4434_v31  ;;  %v1772_v18 = vmul.f32 %v3994_v2, %v4435_v60  ;;  %v4438_v10 = vld [vmem:[#allocation34_spill] sm:$0xff] }
 0x1e0   : > { %v1764_v30 = vadd.f32 %v1763_v43, %v1762_v26  ;;  %v1773_v15 = vmul.f32 %v3996_v16, %v4436_v58  ;;  %v1775_v55 = vmul.f32 %v4000_v50, %v4331_v22  ;;  %v1782_v53 = vmul.f32 %v3994_v2, %v4437_v21  ;;  %v4439_v26 = vld [vmem:[#allocation35_spill] sm:$0xff]  ;;  %v4440_v58 = vld [vmem:[#allocation36_spill] sm:$0xff] }
 0x1e1   : > { %v1746_v61 = vadd.f32 %v1745_v41, %v1744_v39  ;;  %v1756_v5 = vadd.f32 %v1755_v27, %v1754_v6  ;;  %v1783_v49 = vmul.f32 %v3996_v16, %v4333_v3  ;;  %v1785_v23 = vmul.f32 %v4000_v50, %v4438_v10 }
 0x1e2   : > { %v1766_v9 = vadd.f32 %v1765_v7, %v1764_v30  ;;  %v1774_v31 = vadd.f32 %v1773_v15, %v1772_v18  ;;  %v1792_v43 = vmul.f32 %v3994_v2, %v4439_v26  ;;  %v1793_v60 = vmul.f32 %v3996_v16, %v4440_v58 }
 0x1e3   : > { %v1747_v21 = vadd.f32 %v1746_v61, %v2879_v12  ;;  %v1757_v22 = vadd.f32 %v1756_v5, %v2912_v24  ;;  %v1784_v41 = vadd.f32 %v1783_v49, %v1782_v53  ;;  %v1795_v3 = vmul.f32 %v4000_v50, %v4308_v40 }
 0x1e4   : > { %v1767_v27 = vadd.f32 %v1766_v9, %v2946_v37  ;;  %v1776_v39 = vadd.f32 %v1775_v55, %v1774_v31  ;;  %v1794_v6 = vadd.f32 %v1793_v60, %v1792_v43  ;;  %v1802_v7 = vmul.f32 %v3994_v2, %v4309_v38 }
 0x1e5   : > { %v1750_v18 = vadd.f32 %v1749_v8, %v1747_v21  ;;  %v1760_v30 = vadd.f32 %v1759_v13, %v1757_v22  ;;  %v1786_v15 = vadd.f32 %v1785_v23, %v1784_v41  ;;  %v1803_v10 = vmul.f32 %v3996_v16, %v4310_v42 }
 0x1e6   : > { %v1770_v12 = vadd.f32 %v1769_v0, %v1767_v27  ;;  %v1777_v24 = vadd.f32 %v1776_v39, %v2968_v47  ;;  %v1796_v61 = vadd.f32 %v1795_v3, %v1794_v6  ;;  %v1805_v37 = vmul.f32 %v4000_v50, %v3048_v32 }
 0x1e7   : > { %2478 = vtanh.f32 %v1750_v18  ;;  %v1787_v40 = vadd.f32 %v1786_v15, %v3003_v62  ;;  %v1804_v55 = vadd.f32 %v1803_v10, %v1802_v7  ;;  %v1812_v38 = vmul.f32 %v3994_v2, %v4311_v1 }
 0x1e8   : > { %2480 = vtanh.f32 %v1760_v30  ;;  %v1780_v8 = vadd.f32 %v1779_v11, %v1777_v24  ;;  %v1797_v42 = vadd.f32 %v1796_v61, %v3037_v25  ;;  %v1813_v0 = vmul.f32 %v3996_v16, %v4312_v19  ;;  %v4444_v24 = vld [vmem:[#allocation63_spill] sm:$0xff] }
 0x1e9   : > { %2482 = vtanh.f32 %v1770_v12  ;;  %v1790_v47 = vadd.f32 %v1789_v44, %v1787_v40  ;;  %v1806_v13 = vadd.f32 %v1805_v37, %v1804_v55  ;;  %v1815_v32 = vmul.f32 %v4000_v50, %v3081_v54  ;;  %v4445_v37 = vld [vmem:[#allocation54_spill] sm:$0xff] }
 0x1ea   : > { %2484 = vtanh.f32 %v1780_v8  ;;  %v1800_v53 = vadd.f32 %v1799_v14, %v1797_v42  ;;  %v1809_v62 = vstv %s4039_s28  ;;  %v1814_v5 = vadd.f32 %v1813_v0, %v1812_v38 }
 0x1eb   : > { %2486 = vtanh.f32 %v1790_v47  ;;  %v1807_v1 = vadd.f32 %v1806_v13, %v3070_v48  ;;  %v1819_v25 = vstv %s2263_s15  ;;  %v4446_v47 = vld [vmem:[#allocation55_spill] sm:$0xff] }
 0x1ec   : > { %2488 = vtanh.f32 %v1800_v53  ;;  %v1816_v11 = vadd.f32 %v1815_v32, %v1814_v5  ;;  %v4447_v53 = vld [vmem:[#allocation60_spill] sm:$0xff] }
 0x1ed   : > { %v1810_v49 = vadd.f32 %v1809_v62, %v1807_v1  ;;  %v4448_v1 = vld [vmem:[#allocation66_spill] sm:$0xff] }
 0x1ee   : > { %v1817_v23 = vadd.f32 %v1816_v11, %v3094_v63 }
 0x1ef   : > { %2490 = vtanh.f32 %v1810_v49 }
 0x1f0   : > { %v1820_v19 = vadd.f32 %v1819_v25, %v1817_v23  ;;  %v1841_v23 = vstv %s2264_s22 }
 0x1f1   : > { %v2479_v44 = vpop.eup %2478 }
 0x1f2   : > { %v2481_v9 = vpop.eup %2480  ;;  %2492 = vtanh.f32 %v1820_v19  ;;  %v1825_v54 = vmul.f32 %v2479_v44, %v4337_v35  ;;  %v1851_v14 = vmul.f32 %v2479_v44, %v4363_v57  ;;  %v1874_v31 = vmul.f32 %v2479_v44, %v4364_v17 }
 0x1f3   : > { %v2483_v26 = vpop.eup %2482  ;;  %v1826_v48 = vmul.f32 %v2481_v9, %v4365_v29  ;;  %v1852_v43 = vmul.f32 %v2481_v9, %v4389_v28  ;;  %v1875_v58 = vmul.f32 %v2481_v9, %v4390_v36  ;;  %v1843_v9 = vstv %s2265_s29 }
 0x1f4   : > { %v2485_v60 = vpop.eup %2484  ;;  %v1828_v63 = vmul.f32 %v2483_v26, %v4391_v56  ;;  %v1854_v21 = vmul.f32 %v2483_v26, %v4415_v20  ;;  %v1877_v22 = vmul.f32 %v2483_v26, %v4345_v45  ;;  %v4441_v45 = vld [vmem:[#allocation62_spill] sm:$0xff]  ;;  %v4449_v26 = vld [vmem:[#allocation64_spill] sm:$0xff] }
 0x1f5   : > { %v2487_v41 = vpop.eup %2486  ;;  %v1827_v35 = vadd.f32 %v1826_v48, %v1825_v54  ;;  %v1830_v57 = vmul.f32 %v2485_v60, %v4346_v52  ;;  %v1853_v3 = vadd.f32 %v1852_v43, %v1851_v14  ;;  %v1856_v17 = vmul.f32 %v2485_v60, %v4416_v34  ;;  %v4442_v52 = vld [vmem:[#allocation47_spill] sm:$0xff]  ;;  %v4443_v34 = vld [vmem:[#allocation53_spill] sm:$0xff] }
 0x1f6   : > { %v2489_v27 = vpop.eup %2488  ;;  %v1876_v29 = vadd.f32 %v1875_v58, %v1874_v31  ;;  %v1879_v28 = vmul.f32 %v2485_v60, %v4293_v46  ;;  %v1832_v36 = vmul.f32 %v2487_v41, %v4294_v33  ;;  %v1858_v56 = vmul.f32 %v2487_v41, %v4295_v51  ;;  %v2267_v54 = vld [vmem:[%s3246_s13 + $0x38] ss:$4 sm:$0x3]  ;;  %v2268_v14 = vld [vmem:[%s3246_s13 + $0x39] ss:$4 sm:$0x3] }
 0x1f7   : > { %v1829_v39 = vadd.f32 %v1828_v63, %v1827_v35  ;;  %v1855_v6 = vadd.f32 %v1854_v21, %v1853_v3  ;;  %v1881_v7 = vmul.f32 %v2487_v41, %v4441_v45  ;;  %v1834_v15 = vmul.f32 %v2489_v27, %v4442_v52  ;;  %v4450_v58 = vld [vmem:[#allocation65_spill] sm:$0xff]  ;;  %v2269_v21 = vld [vmem:[%s3246_s13 + $0x3a] ss:$4 sm:$0x3] }
 0x1f8   : > { %v1878_v20 = vadd.f32 %v1877_v22, %v1876_v29  ;;  %v1860_v12 = vmul.f32 %v2489_v27, %v4443_v34  ;;  %v1883_v61 = vmul.f32 %v2489_v27, %v4444_v24  ;;  %v1842_v43 = vmul.f32 %v1841_v23, %v3994_v2  ;;  %v4451_v22 = vld [vmem:[#allocation67_spill] sm:$0xff] }
 0x1f9   : > { %v2491_v18 = vpop.eup %2490  ;;  %v1831_v30 = vadd.f32 %v1830_v57, %v1829_v39  ;;  %v1857_v10 = vadd.f32 %v1856_v17, %v1855_v6  ;;  %v1867_v63 = vmul.f32 %v1841_v23, %v3996_v16  ;;  %v1890_v35 = vmul.f32 %v1841_v23, %v4000_v50 }
 0x1fa   : > { %v1880_v46 = vadd.f32 %v1879_v28, %v1878_v20  ;;  %v1836_v40 = vmul.f32 %v2491_v18, %v4445_v37  ;;  %v1862_v55 = vmul.f32 %v2491_v18, %v4300_v4  ;;  %v1885_v42 = vmul.f32 %v2491_v18, %v3254_v59 }
 0x1fb   : > { %v1833_v33 = vadd.f32 %v1832_v36, %v1831_v30  ;;  %v1859_v51 = vadd.f32 %v1858_v56, %v1857_v10  ;;  %v1848_v59 = vstv %s2266_s19  ;;  %v1897_v57 = vlaneseq }
 0x1fc   : > { %v2493_v38 = vpop.eup %2492  ;;  %v1882_v8 = vadd.f32 %v1881_v7, %v1880_v46  ;;  %v1849_v17 = vmul.f32 %v2267_v54, %v1848_v59  ;;  %v1872_v29 = vmul.f32 %v2268_v14, %v1848_v59  ;;  %v1895_v39 = vmul.f32 %v2269_v21, %v1848_v59 }
 0x1fd   : > { %v1835_v0 = vadd.f32 %v1834_v15, %v1833_v33  ;;  %v1838_v13 = vmul.f32 %v2493_v38, %v4446_v47  ;;  %v1861_v32 = vadd.f32 %v1860_v12, %v1859_v51  ;;  %v1864_v62 = vmul.f32 %v2493_v38, %v4447_v53 }
 0x1fe   : > { %v1884_v5 = vadd.f32 %v1883_v61, %v1882_v8  ;;  %v1887_v11 = vmul.f32 %v2493_v38, %v4448_v1  ;;  %vm1899_vm0 = vcmp.lt.s32.totalorder %v1897_v57, 256 }
 0x1ff   : > { %v1837_v49 = vadd.f32 %v1836_v40, %v1835_v0  ;;  %v1863_v25 = vadd.f32 %v1862_v55, %v1861_v32 }
 0x200   : > { %v1886_v4 = vadd.f32 %v1885_v42, %v1884_v5 }
 0x201   : > { %v1839_v19 = vadd.f32 %v1838_v13, %v1837_v49  ;;  %v1865_v44 = vadd.f32 %v1864_v62, %v1863_v25 }
 0x202   : > { %v1888_v31 = vadd.f32 %v1887_v11, %v1886_v4 }
 0x203   : > { %v1840_v48 = vadd.f32 %v1839_v19, %v4449_v26  ;;  %v1866_v60 = vadd.f32 %v1865_v44, %v4450_v58 }
 0x204   : > { %v1889_v41 = vadd.f32 %v1888_v31, %v4451_v22 }
 0x205   : > { %v1844_v3 = vmul.f32 %v1843_v9, %v1840_v48  ;;  %v1868_v27 = vmul.f32 %v1866_v60, %v1843_v9 }
 0x206   : > { %v1891_v28 = vmul.f32 %v1889_v41, %v1843_v9 }
 0x207   : > { %v1845_v36 = vsub.f32 %v1842_v43, %v1844_v3  ;;  %v1869_v6 = vsub.f32 %v1867_v63, %v1868_v27 }
 0x208   : > { %v1892_v16 = vsub.f32 %v1890_v35, %v1891_v28 }
 0x209   : > { %v1850_v2 = vadd.f32 %v1849_v17, %v1845_v36  ;;  %v1873_v56 = vadd.f32 %v1872_v29, %v1869_v6 }
 0x20a   : > { %v1896_v20 = vadd.f32 %v1895_v39, %v1892_v16 }
 0x20b   : > { %1901 = vst.msk [vmem:[%s525_s16] ss:$4 sm:$0x3] %vm1899_vm0, %v1850_v2  ;;  %2270 = vst.msk [vmem:[%s525_s16 + $0x1] ss:$4 sm:$0x3] %vm1899_vm0, %v1873_v56 }
 0x20c   : > { %2271 = vst.msk [vmem:[%s525_s16 + $0x2] ss:$4 sm:$0x3] %vm1899_vm0, %v1896_v20 }
 0x20d PF: > { %s26_s17 = sadd.s32 1, %s2640_s17  }
 0x20e   : > { %p23_p3 = scmp.ge.s32.totalorder %s26_s17, 4  }
 0x210   :  { %25 = sbr.rel (!%p23_p3) target bundleno = 5 (0x5), region = 160 }
 0x217   :  { %1927 = vsyncpa [#allocation3], 1 }
 0x218   :  { %1929 = vsyncpa [#allocation3 + $0x1], 1 }
 0x219   :  { %1930 = vsyncpa [#allocation5], 1 }
 0x21a   :  { %1931 = vsyncpa [#allocation8], 1 }
 0x21b   :  { %1932 = vsyncpa [#allocation11], 1 }
 0x21c   :  { %1933 = vsyncpa [#allocation14], 1 }

</bundles_post_ra>
